<compile_context>
chip_gen: v7x
topology: tpu7x:2x2x1
jax: 0.10.0
libtpu: 0.0.40
codegen_flags: <defaults>
</compile_context>

<pallas_src>
import functools

import numpy as np

import jax
import jax.numpy as jnp
from jax.experimental import pallas as pl
from jax.experimental.pallas import tpu as pltpu

EPS = 1e-5
_G2 = 16   # guard rows for the 10x10 stage (need >= 11)
_G3 = 8    # guard rows for the 6x6 stage  (need >= 7)


# ------------------------------------------------------------------- kernel --

def _fused_kernel(x_ref, w1_ref, ac1_ref, m2_ref, w2_ref, ac2_ref, s2_ref,
                  w3_ref, ac3_ref, m3_ref, w4_ref, ac4_ref, sg_ref,
                  wf1_ref, acf1_ref, wf2_ref, acf2_ref, wf3_ref, cf3_ref,
                  out_ref, s2buf, c2buf, s3buf, c3buf, *, tb):
    """Whole network for one batch tile of `tb` images."""
    f32 = jnp.float32
    bf16 = jnp.bfloat16
    r2 = tb * 100          # rows of the compact 10x10 grid for this tile
    r3 = tb * 36           # rows of the compact 6x6 grid for this tile

    # Guard rows give finite (zero) data to shifted-view reads that fall outside
    # the tile.  Re-zeroed every grid step: cheap, and safe when the parallel
    # grid axis is partitioned across TensorCores.
    s2buf[0:_G2, :] = jnp.zeros((_G2, 32), bf16)
    s2buf[_G2 + r2:_G2 + r2 + _G2, :] = jnp.zeros((_G2, 32), bf16)
    c2buf[0:_G2, :] = jnp.zeros((_G2, 64), bf16)
    c2buf[_G2 + r2:_G2 + r2 + _G2, :] = jnp.zeros((_G2, 64), bf16)
    s3buf[0:_G3, :] = jnp.zeros((_G3, 64), bf16)
    s3buf[_G3 + r3:_G3 + r3 + _G3, :] = jnp.zeros((_G3, 64), bf16)
    c3buf[0:_G3, :] = jnp.zeros((_G3, 64), bf16)
    c3buf[_G3 + r3:_G3 + r3 + _G3, :] = jnp.zeros((_G3, 64), bf16)

    # ---- conv1 + BN + ReLU fused with maxpool1 -------------------------------
    # The pre-im2col'd input evaluates the 4 members of each 2x2 pool window in
    # 4 disjoint 32-lane groups of one matmul; the pool is a lane-group max.
    o1 = jnp.dot(x_ref[...], w1_ref[...], preferred_element_type=f32)
    o1 = jnp.maximum(o1 * ac1_ref[0:1, :] + ac1_ref[1:2, :], 0.0)
    p1 = jnp.maximum(jnp.maximum(o1[:, 0:32], o1[:, 32:64]),
                     jnp.maximum(o1[:, 64:96], o1[:, 96:128]))
    s2buf[_G2:_G2 + r2, :] = (p1 * m2_ref[...]).astype(bf16)   # zero borders

    # ---- conv2 + BN + ReLU on the compact 10x10 grid (9 taps fused, K=288) ---
    taps10 = [dh * 10 + dw for dh in (-1, 0, 1) for dw in (-1, 0, 1)]
    lhs2 = jnp.concatenate(
        [s2buf[_G2 + d:_G2 + d + r2, :] for d in taps10], axis=1)
    o2 = jnp.dot(lhs2, w2_ref[...], preferred_element_type=f32)
    o2 = jnp.maximum(o2 * ac2_ref[0:1, :] + ac2_ref[1:2, :], 0.0)
    c2buf[_G2:_G2 + r2, :] = o2.astype(bf16)

    # ---- maxpool2 + compaction onto the 6x6 padded grid ----------------------
    # Per image: max of 4 shifted reads of that image's 100-row block, then a
    # tiny (36,100) 0/1 selection matmul compacts the 16 valid cells and writes
    # exact zero borders (rows for border cells are all-zero in the selection).
    sel = s2_ref[...]
    pieces = []
    for b in range(tb):
        base = _G2 + b * 100
        blk = jnp.maximum(
            jnp.maximum(c2buf[base:base + 100, :],
                        c2buf[base + 1:base + 101, :]),
            jnp.maximum(c2buf[base + 10:base + 110, :],
                        c2buf[base + 11:base + 111, :]))
        pieces.append(jnp.dot(sel, blk, preferred_element_type=f32))
    s3buf[_G3:_G3 + r3, :] = jnp.concatenate(pieces, axis=0).astype(bf16)

    # ---- conv3 + BN + ReLU on the 6x6 grid (K=576); mask borders to zero -----
    taps6 = [dh * 6 + dw for dh in (-1, 0, 1) for dw in (-1, 0, 1)]
    lhs3 = jnp.concatenate(
        [s3buf[_G3 + d:_G3 + d + r3, :] for d in taps6], axis=1)
    o3 = jnp.dot(lhs3, w3_ref[...], preferred_element_type=f32)
    o3 = jnp.maximum(o3 * ac3_ref[0:1, :] + ac3_ref[1:2, :], 0.0)
    c3buf[_G3:_G3 + r3, :] = (o3 * m3_ref[...]).astype(bf16)   # conv4 padding

    # ---- conv4 + BN + ReLU (K=576).  Dropout2d(0.1): identity in eval mode. --
    lhs4 = jnp.concatenate(
        [c3buf[_G3 + d:_G3 + d + r3, :] for d in taps6], axis=1)
    o4 = jnp.dot(lhs4, w4_ref[...], preferred_element_type=f32)
    o4 = jnp.maximum(o4 * ac4_ref[0:1, :] + ac4_ref[1:2, :], 0.0)

    # ---- global average pool: tiny block-diagonal selection matmul -----------
    # (carries the 1/16 factor and the validity mask; garbage border rows of o4
    #  are multiplied by exact zeros)
    gap = jnp.dot(sg_ref[...], o4, preferred_element_type=f32)   # (tb, 128)

    # ---- fused, lane-dense FC head (fc2/fc3 zero-padded to 128 lanes) --------
    # Dropout(0.3) / Dropout(0.15): identity in eval mode.
    h = jnp.dot(gap.astype(bf16), wf1_ref[...], preferred_element_type=f32)
    h = jnp.maximum(h * acf1_ref[0:1, :] + acf1_ref[1:2, :], 0.0)
    h = jnp.dot(h.astype(bf16), wf2_ref[...], preferred_element_type=f32)
    h = jnp.maximum(h * acf2_ref[0:1, :] + acf2_ref[1:2, :], 0.0)
    out_ref[...] = jnp.dot(h.astype(bf16), wf3_ref[...],
                           preferred_element_type=f32) + cf3_ref[...]


# ----------------------------------------------------------- parameter prep --

def _fold_bn(bias, gamma, beta, mean, var):
    """Fold (y + bias) -> BatchNorm(eval) into a (2, C) [scale; shift] array."""
    scale = gamma / jnp.sqrt(var + EPS)
    shift = beta + (bias - mean) * scale
    return jnp.stack([scale, shift]).astype(jnp.float32)


def _conv_w_k(w, dtype):
    """PyTorch (Cout, Cin, 3, 3) -> im2col weight (9*Cin, Cout), tap-major."""
    cout, cin = w.shape[0], w.shape[1]
    return jnp.transpose(w, (2, 3, 1, 0)).reshape(9 * cin, cout).astype(dtype)


def _conv1_pool_weight(w):
    """(32, Cin, 3, 3) -> block-diagonal (36*Cin, 128) weight: member d of each
    2x2 pooling window is produced in lanes [32*d, 32*(d+1))."""
    cin = w.shape[1]
    w1 = jnp.transpose(w, (2, 3, 1, 0)).reshape(9 * cin, 32).astype(jnp.float32)
    wb = jnp.zeros((36 * cin, 128), jnp.float32)
    for d in range(4):
        wb = wb.at[d * 9 * cin:(d + 1) * 9 * cin, d * 32:(d + 1) * 32].set(w1)
    return wb


def _fc_prep(p, din_pad, dout_pad, with_bn):
    """PyTorch Linear (+ optional BN) -> lane-dense padded (W, affine/bias)."""
    dout, din = p["w"].shape
    w = jnp.zeros((din_pad, dout_pad), jnp.float32).at[:din, :dout].set(p["w"].T)
    if with_bn:
        ac = _fold_bn(p["b"], p["gamma"], p["beta"], p["mean"], p["var"])
        acp = jnp.zeros((2, dout_pad), jnp.float32).at[:, :dout].set(ac)
        acp = acp.at[0, dout:].set(1.0)          # padded lanes stay exactly 0
        return w.astype(jnp.bfloat16), acp
    c = jnp.zeros((1, dout_pad), jnp.float32).at[0, :dout].set(p["b"])
    return w.astype(jnp.bfloat16), c


def _grid_constants(tb):
    """Masks for the compact grids, pool2 selection, and the GAP selection."""
    i10 = np.arange(100)
    h2, w2 = i10 // 10, i10 % 10
    v2 = ((h2 >= 1) & (h2 <= 8) & (w2 >= 1) & (w2 <= 8)).astype(np.float32)
    m2 = np.tile(v2, tb)[:, None]                              # (tb*100, 1)

    i6 = np.arange(36)
    h3, w3 = i6 // 6, i6 % 6
    v3 = ((h3 >= 1) & (h3 <= 4) & (w3 >= 1) & (w3 <= 4)).astype(np.float32)
    m3 = np.tile(v3, tb)[:, None]                              # (tb*36, 1)

    s2 = np.zeros((36, 100), np.float32)                       # pool2 compaction
    for ho in range(4):
        for wo in range(4):
            s2[(ho + 1) * 6 + (wo + 1), (2 * ho + 1) * 10 + (2 * wo + 1)] = 1.0

    sg = np.zeros((tb, tb * 36), np.float32)                   # GAP (mean of 4x4)
    for b in range(tb):
        sg[b, b * 36:(b + 1) * 36] = v3 / 16.0

    return (jnp.asarray(m2), jnp.asarray(m3),
            jnp.asarray(s2, dtype=jnp.bfloat16), jnp.asarray(sg))


def _pool_window_index_tables():
    """Gather tables mapping (10-grid pos, pool member, conv tap) -> padded pixel."""
    Y = np.zeros((100, 36), np.int32)
    X = np.zeros((100, 36), np.int32)
    for g in range(100):
        h2, w2 = divmod(g, 10)
        for d in range(4):
            dh, dw = divmod(d, 2)
            for t in range(9):
                th, tw = divmod(t, 3)
                y = 2 * h2 + dh + th - 3
                x = 2 * w2 + dw + tw - 3
                c = d * 9 + t
                if 0 <= y < 16 and 0 <= x < 16:
                    Y[g, c] = y + 1
                    X[g, c] = x + 1
                # else: stays (0, 0) -> reads the zero pad corner
    return Y, X


_Y_IDX, _X_IDX = _pool_window_index_tables()


def _prep_input(x_nchw, tb, nt):
    """NCHW -> pre-im2col'd, pool-window-grouped (nt*tb*100, 36*cin) layout."""
    n = x_nchw.shape[0]
    cin = x_nchw.shape[1]
    x = jnp.transpose(x_nchw, (0, 2, 3, 1)).astype(jnp.float32)       # NHWC
    x = jnp.pad(x, ((0, nt * tb - n), (1, 1), (1, 1), (0, 0)))        # batch+spatial pad
    patches = x[:, _Y_IDX, _X_IDX, :]                                 # (N',100,36,cin)
    return patches.reshape(nt * tb * 100, 36 * cin)


# ----------------------------------------------------------------- forward --

def forward(x_nchw, params):
    n, cin, hh, ww = x_nchw.shape
    assert (hh, ww) == (16, 16), "kernel is specialised to 16x16 inputs"
    assert cin in (1, 3)
    num_classes = params["fc3"]["w"].shape[0]
    assert num_classes <= 128

    tb = 8 if n >= 16 else n        # >= 2 grid steps for batch >= 16 (v7x megacore)
    nt = -(-n // tb)

    x2d = _prep_input(x_nchw, tb, nt)
    m2, m3, s2, sg = _grid_constants(tb)

    def bn_ac(p):
        return _fold_bn(p["b"], p["gamma"], p["beta"], p["mean"], p["var"])

    w1b = _conv1_pool_weight(params["conv1"]["w"])
    ac1 = jnp.tile(bn_ac(params["conv1"]), (1, 4))                    # (2, 128)
    w2 = _conv_w_k(params["conv2"]["w"], jnp.bfloat16)
    w3 = _conv_w_k(params["conv3"]["w"], jnp.bfloat16)
    w4 = _conv_w_k(params["conv4"]["w"], jnp.bfloat16)
    ac2, ac3, ac4 = (bn_ac(params[k]) for k in ("conv2", "conv3", "conv4"))
    wf1, acf1 = _fc_prep(params["fc1"], 128, 128, True)
    wf2, acf2 = _fc_prep(params["fc2"], 128, 128, True)
    wf3, cf3 = _fc_prep(params["fc3"], 128, 128, False)

    inputs = (x2d, w1b, ac1, m2, w2, ac2, s2, w3, ac3, m3, w4, ac4, sg,
              wf1, acf1, wf2, acf2, wf3, cf3)

    def resident(a):
        return pl.BlockSpec(a.shape, lambda i: (0, 0))

    in_specs = [pl.BlockSpec((tb * 100, 36 * cin), lambda i: (i, 0))]
    in_specs += [resident(a) for a in inputs[1:]]

    kernel = functools.partial(_fused_kernel, tb=tb)

    logits = pl.pallas_call(
        kernel,
        out_shape=jax.ShapeDtypeStruct((nt * tb, 128), jnp.float32),
        grid=(nt,),
        in_specs=in_specs,
        out_specs=pl.BlockSpec((tb, 128), lambda i: (i, 0)),
        scratch_shapes=[
            pltpu.VMEM((2 * _G2 + tb * 100, 32), jnp.bfloat16),   # pool1 out (10x10)
            pltpu.VMEM((2 * _G2 + tb * 100, 64), jnp.bfloat16),   # conv2 out (10x10)
            pltpu.VMEM((2 * _G3 + tb * 36, 64), jnp.bfloat16),    # pool2 out (6x6)
            pltpu.VMEM((2 * _G3 + tb * 36, 64), jnp.bfloat16),    # conv3 out (6x6)
        ],
        compiler_params=pltpu.CompilerParams(
            dimension_semantics=("parallel",),
            vmem_limit_bytes=32 * 1024 * 1024),
    )(*inputs)

    return logits[:n, :num_classes]


# --------------------------------------------------- pure-JAX reference (f32) --

def _ref_conv_bn_relu(x, p):
    w = jnp.transpose(p["w"], (2, 3, 1, 0))          # (3,3,Cin,Cout)
    n, h, wd, _ = x.shape
    xp = jnp.pad(x, ((0, 0), (1, 1), (1, 1), (0, 0)))
    acc = jnp.zeros((n, h, wd, w.shape[-1]), jnp.float32)
    for kh in range(3):
        for kw in range(3):
            acc = acc + jnp.einsum("nhwc,co->nhwo",
                                   xp[:, kh:kh + h, kw:kw + wd, :], w[kh, kw])
    acc = acc + p["b"]
    y = (acc - p["mean"]) * p["gamma"] / jnp.sqrt(p["var"] + EPS) + p["beta"]
    return jnp.maximum(y, 0.0)


def _ref_pool(x):
    n, h, w, c = x.shape
    return jnp.max(x.reshape(n, h // 2, 2, w // 2, 2, c), axis=(2, 4))


def _ref_fc(x, p, with_bn, relu):
    y = x @ p["w"].T + p["b"]
    if with_bn:
        y = (y - p["mean"]) * p["gamma"] / jnp.sqrt(p["var"] + EPS) + p["beta"]
    return jnp.maximum(y, 0.0) if relu else y


def forward_reference(x_nchw, params):
    x = jnp.transpose(x_nchw, (0, 2, 3, 1)).astype(jnp.float32)
    x = _ref_pool(_ref_conv_bn_relu(x, params["conv1"]))
    x = _ref_pool(_ref_conv_bn_relu(x, params["conv2"]))
    x = _ref_conv_bn_relu(x, params["conv3"])
    x = _ref_conv_bn_relu(x, params["conv4"])
    x = jnp.mean(x, axis=(1, 2))
    x = _ref_fc(x, params["fc1"], True, True)
    x = _ref_fc(x, params["fc2"], True, True)
    return _ref_fc(x, params["fc3"], False, False)


# -------------------------------------------------------------- init params --

def _init_conv(key, cin, cout):
    k = jax.random.split(key, 6)
    return {
        "w": jax.random.normal(k[0], (cout, cin, 3, 3), jnp.float32) * 0.1,
        "b": jax.random.normal(k[1], (cout,), jnp.float32) * 0.05,
        "gamma": 1.0 + 0.1 * jax.random.normal(k[2], (cout,), jnp.float32),
        "beta": 0.05 * jax.random.normal(k[3], (cout,), jnp.float32),
        "mean": 0.05 * jax.random.normal(k[4], (cout,), jnp.float32),
        "var": 0.5 + jax.random.uniform(k[5], (cout,), jnp.float32),
    }


def _init_fc(key, din, dout, with_bn=True):
    k = jax.random.split(key, 6)
    p = {
        "w": jax.random.normal(k[0], (dout, din), jnp.float32) * 0.1,
        "b": jax.random.normal(k[1], (dout,), jnp.float32) * 0.05,
    }
    if with_bn:
        p.update({
            "gamma": 1.0 + 0.1 * jax.random.normal(k[2], (dout,), jnp.float32),
            "beta": 0.05 * jax.random.normal(k[3], (dout,), jnp.float32),
            "mean": 0.05 * jax.random.normal(k[4], (dout,), jnp.float32),
            "var": 0.5 + jax.random.uniform(k[5], (dout,), jnp.float32),
        })
    return p


def init_params(key, num_classes=13, use_grayscale=True):
    ks = jax.random.split(key, 7)
    cin = 1 if use_grayscale else 3
    return {
        "conv1": _init_conv(ks[0], cin, 32),
        "conv2": _init_conv(ks[1], 32, 64),
        "conv3": _init_conv(ks[2], 64, 64),
        "conv4": _init_conv(ks[3], 64, 128),
        "fc1": _init_fc(ks[4], 128, 128, with_bn=True),
        "fc2": _init_fc(ks[5], 128, 64, with_bn=True),
        "fc3": _init_fc(ks[6], 64, num_classes, with_bn=False),
    }


# -------------------------------------------------------------------- main --

if __name__ == "__main__":
    key = jax.random.PRNGKey(0)
    k_params, k_input = jax.random.split(key)

    params = init_params(k_params, num_classes=13, use_grayscale=True)

    fwd = jax.jit(forward)
    ref_fn = jax.jit(forward_reference)

    # Small deterministic input (batch=2, grayscale, 16x16) -> single grid step.
    x = jax.random.normal(k_input, (2, 1, 16, 16), jnp.float32)
    logits = jax.block_until_ready(fwd(x, params))
    assert logits.shape == (2, 13) and logits.dtype == jnp.float32
    assert bool(jnp.all(jnp.isfinite(logits)))
    ref = jax.block_until_ready(ref_fn(x, params))
    err = float(jnp.max(jnp.abs(logits - ref)))
    assert err < 1.5e-1, f"kernel mismatch vs reference: max|diff|={err}"

    # Larger batch exercises the multi-tile (grid > 1, batch-parallel) path.
    x_big = jax.random.normal(jax.random.PRNGKey(1), (20, 1, 16, 16), jnp.float32)
    logits_big = jax.block_until_ready(fwd(x_big, params))
    ref_big = jax.block_until_ready(ref_fn(x_big, params))
    err_big = float(jnp.max(jnp.abs(logits_big - ref_big)))
    assert logits_big.shape == (20, 13)
    assert err_big < 1.5e-1, f"kernel mismatch (batch=20): max|diff|={err_big}"

    print("KERNEL_OK")
</pallas_src>

<mosaic_0001>
module attributes {stable_mosaic.version = 11 : i64} {
  func.func @_fused_kernel(%arg0: i32, %arg1: memref<200x36xf32, #tpu.memory_space<vmem>>, %arg2: memref<36x128xf32, #tpu.memory_space<vmem>>, %arg3: memref<2x128xf32, #tpu.memory_space<vmem>>, %arg4: memref<200x1xf32, #tpu.memory_space<vmem>>, %arg5: memref<288x64xbf16, #tpu.memory_space<vmem>>, %arg6: memref<2x64xf32, #tpu.memory_space<vmem>>, %arg7: memref<36x100xbf16, #tpu.memory_space<vmem>>, %arg8: memref<576x64xbf16, #tpu.memory_space<vmem>>, %arg9: memref<2x64xf32, #tpu.memory_space<vmem>>, %arg10: memref<72x1xf32, #tpu.memory_space<vmem>>, %arg11: memref<576x128xbf16, #tpu.memory_space<vmem>>, %arg12: memref<2x128xf32, #tpu.memory_space<vmem>>, %arg13: memref<2x72xf32, #tpu.memory_space<vmem>>, %arg14: memref<128x128xbf16, #tpu.memory_space<vmem>>, %arg15: memref<2x128xf32, #tpu.memory_space<vmem>>, %arg16: memref<128x128xbf16, #tpu.memory_space<vmem>>, %arg17: memref<2x128xf32, #tpu.memory_space<vmem>>, %arg18: memref<128x128xbf16, #tpu.memory_space<vmem>>, %arg19: memref<1x128xf32, #tpu.memory_space<vmem>>, %arg20: memref<2x128xf32, #tpu.memory_space<vmem>>, %arg21: memref<232x32xbf16, #tpu.memory_space<vmem>>, %arg22: memref<232x64xbf16, #tpu.memory_space<vmem>>, %arg23: memref<88x64xbf16, #tpu.memory_space<vmem>>, %arg24: memref<88x64xbf16, #tpu.memory_space<vmem>>) attributes {dimension_semantics = [#tpu.dimension_semantics<parallel>], iteration_bounds = array<i64: 1>, scalar_prefetch = 0 : i64, scratch_operands = 4 : i64, tpu.core_type = #tpu.core_type<tc>, window_params = [{transform_indices = @transform_0, window_bounds = array<i64: 200, 36>}, {pipeline_mode = #tpu.pipeline_mode<synchronous>, transform_indices = @transform_1, window_bounds = array<i64: 36, 128>}, {pipeline_mode = #tpu.pipeline_mode<synchronous>, transform_indices = @transform_2, window_bounds = array<i64: 2, 128>}, {pipeline_mode = #tpu.pipeline_mode<synchronous>, transform_indices = @transform_3, window_bounds = array<i64: 200, 1>}, {pipeline_mode = #tpu.pipeline_mode<synchronous>, transform_indices = @transform_4, window_bounds = array<i64: 288, 64>}, {pipeline_mode = #tpu.pipeline_mode<synchronous>, transform_indices = @transform_5, window_bounds = array<i64: 2, 64>}, {pipeline_mode = #tpu.pipeline_mode<synchronous>, transform_indices = @transform_6, window_bounds = array<i64: 36, 100>}, {pipeline_mode = #tpu.pipeline_mode<synchronous>, transform_indices = @transform_7, window_bounds = array<i64: 576, 64>}, {pipeline_mode = #tpu.pipeline_mode<synchronous>, transform_indices = @transform_8, window_bounds = array<i64: 2, 64>}, {pipeline_mode = #tpu.pipeline_mode<synchronous>, transform_indices = @transform_9, window_bounds = array<i64: 72, 1>}, {pipeline_mode = #tpu.pipeline_mode<synchronous>, transform_indices = @transform_10, window_bounds = array<i64: 576, 128>}, {pipeline_mode = #tpu.pipeline_mode<synchronous>, transform_indices = @transform_11, window_bounds = array<i64: 2, 128>}, {pipeline_mode = #tpu.pipeline_mode<synchronous>, transform_indices = @transform_12, window_bounds = array<i64: 2, 72>}, {pipeline_mode = #tpu.pipeline_mode<synchronous>, transform_indices = @transform_13, window_bounds = array<i64: 128, 128>}, {pipeline_mode = #tpu.pipeline_mode<synchronous>, transform_indices = @transform_14, window_bounds = array<i64: 2, 128>}, {pipeline_mode = #tpu.pipeline_mode<synchronous>, transform_indices = @transform_15, window_bounds = array<i64: 128, 128>}, {pipeline_mode = #tpu.pipeline_mode<synchronous>, transform_indices = @transform_16, window_bounds = array<i64: 2, 128>}, {pipeline_mode = #tpu.pipeline_mode<synchronous>, transform_indices = @transform_17, window_bounds = array<i64: 128, 128>}, {pipeline_mode = #tpu.pipeline_mode<synchronous>, transform_indices = @transform_18, window_bounds = array<i64: 1, 128>}, {transform_indices = @transform_19, window_bounds = array<i64: 2, 128>}]} {
    %cst = arith.constant 0.000000e+00 : bf16
    %0 = vector.broadcast %cst : bf16 to vector<16x32xbf16>
    %c0 = arith.constant 0 : index
    %c0_0 = arith.constant 0 : index
    %1 = vector.load %arg21[%c0, %c0_0] : memref<232x32xbf16, #tpu.memory_space<vmem>>, vector<16x32xbf16>
    tpu.vector_store %arg21[%c0, %c0_0], %0 {strides = array<i32>} : memref<232x32xbf16, #tpu.memory_space<vmem>>, vector<16x32xbf16>,
    %cst_1 = arith.constant 0.000000e+00 : bf16
    %2 = vector.broadcast %cst_1 : bf16 to vector<16x32xbf16>
    %c216 = arith.constant 216 : index
    %c0_2 = arith.constant 0 : index
    %3 = vector.load %arg21[%c216, %c0_2] : memref<232x32xbf16, #tpu.memory_space<vmem>>, vector<16x32xbf16>
    tpu.vector_store %arg21[%c216, %c0_2], %2 {strides = array<i32>} : memref<232x32xbf16, #tpu.memory_space<vmem>>, vector<16x32xbf16>,
    %cst_3 = arith.constant 0.000000e+00 : bf16
    %4 = vector.broadcast %cst_3 : bf16 to vector<16x64xbf16>
    %c0_4 = arith.constant 0 : index
    %c0_5 = arith.constant 0 : index
    %5 = vector.load %arg22[%c0_4, %c0_5] : memref<232x64xbf16, #tpu.memory_space<vmem>>, vector<16x64xbf16>
    tpu.vector_store %arg22[%c0_4, %c0_5], %4 {strides = array<i32>} : memref<232x64xbf16, #tpu.memory_space<vmem>>, vector<16x64xbf16>,
    %cst_6 = arith.constant 0.000000e+00 : bf16
    %6 = vector.broadcast %cst_6 : bf16 to vector<16x64xbf16>
    %c216_7 = arith.constant 216 : index
    %c0_8 = arith.constant 0 : index
    %7 = vector.load %arg22[%c216_7, %c0_8] : memref<232x64xbf16, #tpu.memory_space<vmem>>, vector<16x64xbf16>
    tpu.vector_store %arg22[%c216_7, %c0_8], %6 {strides = array<i32>} : memref<232x64xbf16, #tpu.memory_space<vmem>>, vector<16x64xbf16>,
    %cst_9 = arith.constant 0.000000e+00 : bf16
    %8 = vector.broadcast %cst_9 : bf16 to vector<8x64xbf16>
    %c0_10 = arith.constant 0 : index
    %c0_11 = arith.constant 0 : index
    %9 = vector.load %arg23[%c0_10, %c0_11] : memref<88x64xbf16, #tpu.memory_space<vmem>>, vector<8x64xbf16>
    tpu.vector_store %arg23[%c0_10, %c0_11], %8 {strides = array<i32>} : memref<88x64xbf16, #tpu.memory_space<vmem>>, vector<8x64xbf16>,
    %cst_12 = arith.constant 0.000000e+00 : bf16
    %10 = vector.broadcast %cst_12 : bf16 to vector<8x64xbf16>
    %c80 = arith.constant 80 : index
    %c0_13 = arith.constant 0 : index
    %11 = vector.load %arg23[%c80, %c0_13] : memref<88x64xbf16, #tpu.memory_space<vmem>>, vector<8x64xbf16>
    tpu.vector_store %arg23[%c80, %c0_13], %10 {strides = array<i32>} : memref<88x64xbf16, #tpu.memory_space<vmem>>, vector<8x64xbf16>,
    %cst_14 = arith.constant 0.000000e+00 : bf16
    %12 = vector.broadcast %cst_14 : bf16 to vector<8x64xbf16>
    %c0_15 = arith.constant 0 : index
    %c0_16 = arith.constant 0 : index
    %13 = vector.load %arg24[%c0_15, %c0_16] : memref<88x64xbf16, #tpu.memory_space<vmem>>, vector<8x64xbf16>
    tpu.vector_store %arg24[%c0_15, %c0_16], %12 {strides = array<i32>} : memref<88x64xbf16, #tpu.memory_space<vmem>>, vector<8x64xbf16>,
    %cst_17 = arith.constant 0.000000e+00 : bf16
    %14 = vector.broadcast %cst_17 : bf16 to vector<8x64xbf16>
    %c80_18 = arith.constant 80 : index
    %c0_19 = arith.constant 0 : index
    %15 = vector.load %arg24[%c80_18, %c0_19] : memref<88x64xbf16, #tpu.memory_space<vmem>>, vector<8x64xbf16>
    tpu.vector_store %arg24[%c80_18, %c0_19], %14 {strides = array<i32>} : memref<88x64xbf16, #tpu.memory_space<vmem>>, vector<8x64xbf16>,
    %c0_20 = arith.constant 0 : index
    %c0_21 = arith.constant 0 : index
    %16 = vector.load %arg1[%c0_20, %c0_21] : memref<200x36xf32, #tpu.memory_space<vmem>>, vector<200x36xf32>
    %c0_22 = arith.constant 0 : index
    %c0_23 = arith.constant 0 : index
    %17 = vector.load %arg2[%c0_22, %c0_23] : memref<36x128xf32, #tpu.memory_space<vmem>>, vector<36x128xf32>
    %cst_24 = arith.constant dense<0.000000e+00> : vector<200x128xf32>
    %18 = tpu.matmul %16, %17, %cst_24 {dimension_numbers = #tpu.dot_dimension_numbers<[1], [0], [0], [1], [0, 0, 1, 1], [], []>} : vector<200x36xf32>, vector<36x128xf32>, vector<200x128xf32> -> vector<200x128xf32>
    %c0_25 = arith.constant 0 : index
    %c0_26 = arith.constant 0 : index
    %19 = vector.load %arg3[%c0_25, %c0_26] : memref<2x128xf32, #tpu.memory_space<vmem>>, vector<1x128xf32>
    %20 = vector.broadcast %19 : vector<1x128xf32> to vector<200x128xf32>
    %21 = arith.mulf %18, %20 : vector<200x128xf32>
    %c1 = arith.constant 1 : index
    %c0_27 = arith.constant 0 : index
    %22 = vector.load %arg3[%c1, %c0_27] : memref<2x128xf32, #tpu.memory_space<vmem>>, vector<1x128xf32>
    %23 = vector.broadcast %22 : vector<1x128xf32> to vector<200x128xf32>
    %24 = arith.addf %21, %23 : vector<200x128xf32>
    %cst_28 = arith.constant 0.000000e+00 : f32
    %25 = vector.broadcast %cst_28 : f32 to vector<200x128xf32>
    %26 = arith.maximumf %24, %25 : vector<200x128xf32>
    %27 = vector.extract_strided_slice %26 {offsets = [0, 0], sizes = [200, 32], strides = [1, 1]} : vector<200x128xf32> to vector<200x32xf32>
    %28 = vector.extract_strided_slice %26 {offsets = [0, 32], sizes = [200, 32], strides = [1, 1]} : vector<200x128xf32> to vector<200x32xf32>
    %29 = arith.maximumf %27, %28 : vector<200x32xf32>
    %30 = vector.extract_strided_slice %26 {offsets = [0, 64], sizes = [200, 32], strides = [1, 1]} : vector<200x128xf32> to vector<200x32xf32>
    %31 = vector.extract_strided_slice %26 {offsets = [0, 96], sizes = [200, 32], strides = [1, 1]} : vector<200x128xf32> to vector<200x32xf32>
    %32 = arith.maximumf %30, %31 : vector<200x32xf32>
    %33 = arith.maximumf %29, %32 : vector<200x32xf32>
    %c0_29 = arith.constant 0 : index
    %c0_30 = arith.constant 0 : index
    %34 = vector.load %arg4[%c0_29, %c0_30] : memref<200x1xf32, #tpu.memory_space<vmem>>, vector<200x1xf32>
    %35 = vector.broadcast %34 : vector<200x1xf32> to vector<200x32xf32>
    %36 = arith.mulf %33, %35 : vector<200x32xf32>
    %37 = arith.truncf %36 : vector<200x32xf32> to vector<200x32xbf16>
    %c16 = arith.constant 16 : index
    %c0_31 = arith.constant 0 : index
    %38 = vector.load %arg21[%c16, %c0_31] : memref<232x32xbf16, #tpu.memory_space<vmem>>, vector<200x32xbf16>
    tpu.vector_store %arg21[%c16, %c0_31], %37 {strides = array<i32>} : memref<232x32xbf16, #tpu.memory_space<vmem>>, vector<200x32xbf16>,
    %c5 = arith.constant 5 : index
    %c0_32 = arith.constant 0 : index
    %39 = vector.load %arg21[%c5, %c0_32] : memref<232x32xbf16, #tpu.memory_space<vmem>>, vector<200x32xbf16>
    %c6 = arith.constant 6 : index
    %c0_33 = arith.constant 0 : index
    %40 = vector.load %arg21[%c6, %c0_33] : memref<232x32xbf16, #tpu.memory_space<vmem>>, vector<200x32xbf16>
    %c7 = arith.constant 7 : index
    %c0_34 = arith.constant 0 : index
    %41 = vector.load %arg21[%c7, %c0_34] : memref<232x32xbf16, #tpu.memory_space<vmem>>, vector<200x32xbf16>
    %c15 = arith.constant 15 : index
    %c0_35 = arith.constant 0 : index
    %42 = vector.load %arg21[%c15, %c0_35] : memref<232x32xbf16, #tpu.memory_space<vmem>>, vector<200x32xbf16>
    %c16_36 = arith.constant 16 : index
    %c0_37 = arith.constant 0 : index
    %43 = vector.load %arg21[%c16_36, %c0_37] : memref<232x32xbf16, #tpu.memory_space<vmem>>, vector<200x32xbf16>
    %c17 = arith.constant 17 : index
    %c0_38 = arith.constant 0 : index
    %44 = vector.load %arg21[%c17, %c0_38] : memref<232x32xbf16, #tpu.memory_space<vmem>>, vector<200x32xbf16>
    %c25 = arith.constant 25 : index
    %c0_39 = arith.constant 0 : index
    %45 = vector.load %arg21[%c25, %c0_39] : memref<232x32xbf16, #tpu.memory_space<vmem>>, vector<200x32xbf16>
    %c26 = arith.constant 26 : index
    %c0_40 = arith.constant 0 : index
    %46 = vector.load %arg21[%c26, %c0_40] : memref<232x32xbf16, #tpu.memory_space<vmem>>, vector<200x32xbf16>
    %c27 = arith.constant 27 : index
    %c0_41 = arith.constant 0 : index
    %47 = vector.load %arg21[%c27, %c0_41] : memref<232x32xbf16, #tpu.memory_space<vmem>>, vector<200x32xbf16>
    %48 = tpu.concatenate %39, %40, %41, %42, %43, %44, %45, %46, %47 in 1 : vector<200x32xbf16>, vector<200x32xbf16>, vector<200x32xbf16>, vector<200x32xbf16>, vector<200x32xbf16>, vector<200x32xbf16>, vector<200x32xbf16>, vector<200x32xbf16>, vector<200x32xbf16> -> vector<200x288xbf16>
    %c0_42 = arith.constant 0 : index
    %c0_43 = arith.constant 0 : index
    %49 = vector.load %arg5[%c0_42, %c0_43] : memref<288x64xbf16, #tpu.memory_space<vmem>>, vector<288x64xbf16>
    %cst_44 = arith.constant dense<0.000000e+00> : vector<200x64xf32>
    %50 = tpu.matmul %48, %49, %cst_44 {dimension_numbers = #tpu.dot_dimension_numbers<[1], [0], [0], [1], [0, 0, 1, 1], [], []>} : vector<200x288xbf16>, vector<288x64xbf16>, vector<200x64xf32> -> vector<200x64xf32>
    %c0_45 = arith.constant 0 : index
    %c0_46 = arith.constant 0 : index
    %51 = vector.load %arg6[%c0_45, %c0_46] : memref<2x64xf32, #tpu.memory_space<vmem>>, vector<1x64xf32>
    %52 = vector.broadcast %51 : vector<1x64xf32> to vector<200x64xf32>
    %53 = arith.mulf %50, %52 : vector<200x64xf32>
    %c1_47 = arith.constant 1 : index
    %c0_48 = arith.constant 0 : index
    %54 = vector.load %arg6[%c1_47, %c0_48] : memref<2x64xf32, #tpu.memory_space<vmem>>, vector<1x64xf32>
    %55 = vector.broadcast %54 : vector<1x64xf32> to vector<200x64xf32>
    %56 = arith.addf %53, %55 : vector<200x64xf32>
    %cst_49 = arith.constant 0.000000e+00 : f32
    %57 = vector.broadcast %cst_49 : f32 to vector<200x64xf32>
    %58 = arith.maximumf %56, %57 : vector<200x64xf32>
    %59 = arith.truncf %58 : vector<200x64xf32> to vector<200x64xbf16>
    %c16_50 = arith.constant 16 : index
    %c0_51 = arith.constant 0 : index
    %60 = vector.load %arg22[%c16_50, %c0_51] : memref<232x64xbf16, #tpu.memory_space<vmem>>, vector<200x64xbf16>
    tpu.vector_store %arg22[%c16_50, %c0_51], %59 {strides = array<i32>} : memref<232x64xbf16, #tpu.memory_space<vmem>>, vector<200x64xbf16>,
    %c0_52 = arith.constant 0 : index
    %c0_53 = arith.constant 0 : index
    %61 = vector.load %arg7[%c0_52, %c0_53] : memref<36x100xbf16, #tpu.memory_space<vmem>>, vector<36x100xbf16>
    %c16_54 = arith.constant 16 : index
    %c0_55 = arith.constant 0 : index
    %62 = vector.load %arg22[%c16_54, %c0_55] : memref<232x64xbf16, #tpu.memory_space<vmem>>, vector<100x64xbf16>
    %c17_56 = arith.constant 17 : index
    %c0_57 = arith.constant 0 : index
    %63 = vector.load %arg22[%c17_56, %c0_57] : memref<232x64xbf16, #tpu.memory_space<vmem>>, vector<100x64xbf16>
    %64 = arith.maximumf %62, %63 : vector<100x64xbf16>
    %c26_58 = arith.constant 26 : index
    %c0_59 = arith.constant 0 : index
    %65 = vector.load %arg22[%c26_58, %c0_59] : memref<232x64xbf16, #tpu.memory_space<vmem>>, vector<100x64xbf16>
    %c27_60 = arith.constant 27 : index
    %c0_61 = arith.constant 0 : index
    %66 = vector.load %arg22[%c27_60, %c0_61] : memref<232x64xbf16, #tpu.memory_space<vmem>>, vector<100x64xbf16>
    %67 = arith.maximumf %65, %66 : vector<100x64xbf16>
    %68 = arith.maximumf %64, %67 : vector<100x64xbf16>
    %cst_62 = arith.constant dense<0.000000e+00> : vector<36x64xf32>
    %69 = tpu.matmul %61, %68, %cst_62 {dimension_numbers = #tpu.dot_dimension_numbers<[1], [0], [0], [1], [0, 0, 1, 1], [], []>} : vector<36x100xbf16>, vector<100x64xbf16>, vector<36x64xf32> -> vector<36x64xf32>
    %c116 = arith.constant 116 : index
    %c0_63 = arith.constant 0 : index
    %70 = vector.load %arg22[%c116, %c0_63] : memref<232x64xbf16, #tpu.memory_space<vmem>>, vector<100x64xbf16>
    %c117 = arith.constant 117 : index
    %c0_64 = arith.constant 0 : index
    %71 = vector.load %arg22[%c117, %c0_64] : memref<232x64xbf16, #tpu.memory_space<vmem>>, vector<100x64xbf16>
    %72 = arith.maximumf %70, %71 : vector<100x64xbf16>
    %c126 = arith.constant 126 : index
    %c0_65 = arith.constant 0 : index
    %73 = vector.load %arg22[%c126, %c0_65] : memref<232x64xbf16, #tpu.memory_space<vmem>>, vector<100x64xbf16>
    %c127 = arith.constant 127 : index
    %c0_66 = arith.constant 0 : index
    %74 = vector.load %arg22[%c127, %c0_66] : memref<232x64xbf16, #tpu.memory_space<vmem>>, vector<100x64xbf16>
    %75 = arith.maximumf %73, %74 : vector<100x64xbf16>
    %76 = arith.maximumf %72, %75 : vector<100x64xbf16>
    %cst_67 = arith.constant dense<0.000000e+00> : vector<36x64xf32>
    %77 = tpu.matmul %61, %76, %cst_67 {dimension_numbers = #tpu.dot_dimension_numbers<[1], [0], [0], [1], [0, 0, 1, 1], [], []>} : vector<36x100xbf16>, vector<100x64xbf16>, vector<36x64xf32> -> vector<36x64xf32>
    %78 = tpu.concatenate %69, %77 in 0 : vector<36x64xf32>, vector<36x64xf32> -> vector<72x64xf32>
    %79 = arith.truncf %78 : vector<72x64xf32> to vector<72x64xbf16>
    %c8 = arith.constant 8 : index
    %c0_68 = arith.constant 0 : index
    %80 = vector.load %arg23[%c8, %c0_68] : memref<88x64xbf16, #tpu.memory_space<vmem>>, vector<72x64xbf16>
    tpu.vector_store %arg23[%c8, %c0_68], %79 {strides = array<i32>} : memref<88x64xbf16, #tpu.memory_space<vmem>>, vector<72x64xbf16>,
    %c1_69 = arith.constant 1 : index
    %c0_70 = arith.constant 0 : index
    %81 = vector.load %arg23[%c1_69, %c0_70] : memref<88x64xbf16, #tpu.memory_space<vmem>>, vector<72x64xbf16>
    %c2 = arith.constant 2 : index
    %c0_71 = arith.constant 0 : index
    %82 = vector.load %arg23[%c2, %c0_71] : memref<88x64xbf16, #tpu.memory_space<vmem>>, vector<72x64xbf16>
    %c3 = arith.constant 3 : index
    %c0_72 = arith.constant 0 : index
    %83 = vector.load %arg23[%c3, %c0_72] : memref<88x64xbf16, #tpu.memory_space<vmem>>, vector<72x64xbf16>
    %c7_73 = arith.constant 7 : index
    %c0_74 = arith.constant 0 : index
    %84 = vector.load %arg23[%c7_73, %c0_74] : memref<88x64xbf16, #tpu.memory_space<vmem>>, vector<72x64xbf16>
    %c8_75 = arith.constant 8 : index
    %c0_76 = arith.constant 0 : index
    %85 = vector.load %arg23[%c8_75, %c0_76] : memref<88x64xbf16, #tpu.memory_space<vmem>>, vector<72x64xbf16>
    %c9 = arith.constant 9 : index
    %c0_77 = arith.constant 0 : index
    %86 = vector.load %arg23[%c9, %c0_77] : memref<88x64xbf16, #tpu.memory_space<vmem>>, vector<72x64xbf16>
    %c13 = arith.constant 13 : index
    %c0_78 = arith.constant 0 : index
    %87 = vector.load %arg23[%c13, %c0_78] : memref<88x64xbf16, #tpu.memory_space<vmem>>, vector<72x64xbf16>
    %c14 = arith.constant 14 : index
    %c0_79 = arith.constant 0 : index
    %88 = vector.load %arg23[%c14, %c0_79] : memref<88x64xbf16, #tpu.memory_space<vmem>>, vector<72x64xbf16>
    %c15_80 = arith.constant 15 : index
    %c0_81 = arith.constant 0 : index
    %89 = vector.load %arg23[%c15_80, %c0_81] : memref<88x64xbf16, #tpu.memory_space<vmem>>, vector<72x64xbf16>
    %90 = tpu.concatenate %81, %82, %83, %84, %85, %86, %87, %88, %89 in 1 : vector<72x64xbf16>, vector<72x64xbf16>, vector<72x64xbf16>, vector<72x64xbf16>, vector<72x64xbf16>, vector<72x64xbf16>, vector<72x64xbf16>, vector<72x64xbf16>, vector<72x64xbf16> -> vector<72x576xbf16>
    %c0_82 = arith.constant 0 : index
    %c0_83 = arith.constant 0 : index
    %91 = vector.load %arg8[%c0_82, %c0_83] : memref<576x64xbf16, #tpu.memory_space<vmem>>, vector<576x64xbf16>
    %cst_84 = arith.constant dense<0.000000e+00> : vector<72x64xf32>
    %92 = tpu.matmul %90, %91, %cst_84 {dimension_numbers = #tpu.dot_dimension_numbers<[1], [0], [0], [1], [0, 0, 1, 1], [], []>} : vector<72x576xbf16>, vector<576x64xbf16>, vector<72x64xf32> -> vector<72x64xf32>
    %c0_85 = arith.constant 0 : index
    %c0_86 = arith.constant 0 : index
    %93 = vector.load %arg9[%c0_85, %c0_86] : memref<2x64xf32, #tpu.memory_space<vmem>>, vector<1x64xf32>
    %94 = vector.broadcast %93 : vector<1x64xf32> to vector<72x64xf32>
    %95 = arith.mulf %92, %94 : vector<72x64xf32>
    %c1_87 = arith.constant 1 : index
    %c0_88 = arith.constant 0 : index
    %96 = vector.load %arg9[%c1_87, %c0_88] : memref<2x64xf32, #tpu.memory_space<vmem>>, vector<1x64xf32>
    %97 = vector.broadcast %96 : vector<1x64xf32> to vector<72x64xf32>
    %98 = arith.addf %95, %97 : vector<72x64xf32>
    %cst_89 = arith.constant 0.000000e+00 : f32
    %99 = vector.broadcast %cst_89 : f32 to vector<72x64xf32>
    %100 = arith.maximumf %98, %99 : vector<72x64xf32>
    %c0_90 = arith.constant 0 : index
    %c0_91 = arith.constant 0 : index
    %101 = vector.load %arg10[%c0_90, %c0_91] : memref<72x1xf32, #tpu.memory_space<vmem>>, vector<72x1xf32>
    %102 = vector.broadcast %101 : vector<72x1xf32> to vector<72x64xf32>
    %103 = arith.mulf %100, %102 : vector<72x64xf32>
    %104 = arith.truncf %103 : vector<72x64xf32> to vector<72x64xbf16>
    %c8_92 = arith.constant 8 : index
    %c0_93 = arith.constant 0 : index
    %105 = vector.load %arg24[%c8_92, %c0_93] : memref<88x64xbf16, #tpu.memory_space<vmem>>, vector<72x64xbf16>
    tpu.vector_store %arg24[%c8_92, %c0_93], %104 {strides = array<i32>} : memref<88x64xbf16, #tpu.memory_space<vmem>>, vector<72x64xbf16>,
    %c1_94 = arith.constant 1 : index
    %c0_95 = arith.constant 0 : index
    %106 = vector.load %arg24[%c1_94, %c0_95] : memref<88x64xbf16, #tpu.memory_space<vmem>>, vector<72x64xbf16>
    %c2_96 = arith.constant 2 : index
    %c0_97 = arith.constant 0 : index
    %107 = vector.load %arg24[%c2_96, %c0_97] : memref<88x64xbf16, #tpu.memory_space<vmem>>, vector<72x64xbf16>
    %c3_98 = arith.constant 3 : index
    %c0_99 = arith.constant 0 : index
    %108 = vector.load %arg24[%c3_98, %c0_99] : memref<88x64xbf16, #tpu.memory_space<vmem>>, vector<72x64xbf16>
    %c7_100 = arith.constant 7 : index
    %c0_101 = arith.constant 0 : index
    %109 = vector.load %arg24[%c7_100, %c0_101] : memref<88x64xbf16, #tpu.memory_space<vmem>>, vector<72x64xbf16>
    %c8_102 = arith.constant 8 : index
    %c0_103 = arith.constant 0 : index
    %110 = vector.load %arg24[%c8_102, %c0_103] : memref<88x64xbf16, #tpu.memory_space<vmem>>, vector<72x64xbf16>
    %c9_104 = arith.constant 9 : index
    %c0_105 = arith.constant 0 : index
    %111 = vector.load %arg24[%c9_104, %c0_105] : memref<88x64xbf16, #tpu.memory_space<vmem>>, vector<72x64xbf16>
    %c13_106 = arith.constant 13 : index
    %c0_107 = arith.constant 0 : index
    %112 = vector.load %arg24[%c13_106, %c0_107] : memref<88x64xbf16, #tpu.memory_space<vmem>>, vector<72x64xbf16>
    %c14_108 = arith.constant 14 : index
    %c0_109 = arith.constant 0 : index
    %113 = vector.load %arg24[%c14_108, %c0_109] : memref<88x64xbf16, #tpu.memory_space<vmem>>, vector<72x64xbf16>
    %c15_110 = arith.constant 15 : index
    %c0_111 = arith.constant 0 : index
    %114 = vector.load %arg24[%c15_110, %c0_111] : memref<88x64xbf16, #tpu.memory_space<vmem>>, vector<72x64xbf16>
    %115 = tpu.concatenate %106, %107, %108, %109, %110, %111, %112, %113, %114 in 1 : vector<72x64xbf16>, vector<72x64xbf16>, vector<72x64xbf16>, vector<72x64xbf16>, vector<72x64xbf16>, vector<72x64xbf16>, vector<72x64xbf16>, vector<72x64xbf16>, vector<72x64xbf16> -> vector<72x576xbf16>
    %c0_112 = arith.constant 0 : index
    %c0_113 = arith.constant 0 : index
    %116 = vector.load %arg11[%c0_112, %c0_113] : memref<576x128xbf16, #tpu.memory_space<vmem>>, vector<576x128xbf16>
    %cst_114 = arith.constant dense<0.000000e+00> : vector<72x128xf32>
    %117 = tpu.matmul %115, %116, %cst_114 {dimension_numbers = #tpu.dot_dimension_numbers<[1], [0], [0], [1], [0, 0, 1, 1], [], []>} : vector<72x576xbf16>, vector<576x128xbf16>, vector<72x128xf32> -> vector<72x128xf32>
    %c0_115 = arith.constant 0 : index
    %c0_116 = arith.constant 0 : index
    %118 = vector.load %arg12[%c0_115, %c0_116] : memref<2x128xf32, #tpu.memory_space<vmem>>, vector<1x128xf32>
    %119 = vector.broadcast %118 : vector<1x128xf32> to vector<72x128xf32>
    %120 = arith.mulf %117, %119 : vector<72x128xf32>
    %c1_117 = arith.constant 1 : index
    %c0_118 = arith.constant 0 : index
    %121 = vector.load %arg12[%c1_117, %c0_118] : memref<2x128xf32, #tpu.memory_space<vmem>>, vector<1x128xf32>
    %122 = vector.broadcast %121 : vector<1x128xf32> to vector<72x128xf32>
    %123 = arith.addf %120, %122 : vector<72x128xf32>
    %cst_119 = arith.constant 0.000000e+00 : f32
    %124 = vector.broadcast %cst_119 : f32 to vector<72x128xf32>
    %125 = arith.maximumf %123, %124 : vector<72x128xf32>
    %c0_120 = arith.constant 0 : index
    %c0_121 = arith.constant 0 : index
    %126 = vector.load %arg13[%c0_120, %c0_121] : memref<2x72xf32, #tpu.memory_space<vmem>>, vector<2x72xf32>
    %cst_122 = arith.constant dense<0.000000e+00> : vector<2x128xf32>
    %127 = tpu.matmul %126, %125, %cst_122 {dimension_numbers = #tpu.dot_dimension_numbers<[1], [0], [0], [1], [0, 0, 1, 1], [], []>} : vector<2x72xf32>, vector<72x128xf32>, vector<2x128xf32> -> vector<2x128xf32>
    %128 = arith.truncf %127 : vector<2x128xf32> to vector<2x128xbf16>
    %c0_123 = arith.constant 0 : index
    %c0_124 = arith.constant 0 : index
    %129 = vector.load %arg14[%c0_123, %c0_124] : memref<128x128xbf16, #tpu.memory_space<vmem>>, vector<128x128xbf16>
    %cst_125 = arith.constant dense<0.000000e+00> : vector<2x128xf32>
    %130 = tpu.matmul %128, %129, %cst_125 {dimension_numbers = #tpu.dot_dimension_numbers<[1], [0], [0], [1], [0, 0, 1, 1], [], []>} : vector<2x128xbf16>, vector<128x128xbf16>, vector<2x128xf32> -> vector<2x128xf32>
    %c0_126 = arith.constant 0 : index
    %c0_127 = arith.constant 0 : index
    %131 = vector.load %arg15[%c0_126, %c0_127] : memref<2x128xf32, #tpu.memory_space<vmem>>, vector<1x128xf32>
    %132 = vector.broadcast %131 : vector<1x128xf32> to vector<2x128xf32>
    %133 = arith.mulf %130, %132 : vector<2x128xf32>
    %c1_128 = arith.constant 1 : index
    %c0_129 = arith.constant 0 : index
    %134 = vector.load %arg15[%c1_128, %c0_129] : memref<2x128xf32, #tpu.memory_space<vmem>>, vector<1x128xf32>
    %135 = vector.broadcast %134 : vector<1x128xf32> to vector<2x128xf32>
    %136 = arith.addf %133, %135 : vector<2x128xf32>
    %cst_130 = arith.constant 0.000000e+00 : f32
    %137 = vector.broadcast %cst_130 : f32 to vector<2x128xf32>
    %138 = arith.maximumf %136, %137 : vector<2x128xf32>
    %139 = arith.truncf %138 : vector<2x128xf32> to vector<2x128xbf16>
    %c0_131 = arith.constant 0 : index
    %c0_132 = arith.constant 0 : index
    %140 = vector.load %arg16[%c0_131, %c0_132] : memref<128x128xbf16, #tpu.memory_space<vmem>>, vector<128x128xbf16>
    %cst_133 = arith.constant dense<0.000000e+00> : vector<2x128xf32>
    %141 = tpu.matmul %139, %140, %cst_133 {dimension_numbers = #tpu.dot_dimension_numbers<[1], [0], [0], [1], [0, 0, 1, 1], [], []>} : vector<2x128xbf16>, vector<128x128xbf16>, vector<2x128xf32> -> vector<2x128xf32>
    %c0_134 = arith.constant 0 : index
    %c0_135 = arith.constant 0 : index
    %142 = vector.load %arg17[%c0_134, %c0_135] : memref<2x128xf32, #tpu.memory_space<vmem>>, vector<1x128xf32>
    %143 = vector.broadcast %142 : vector<1x128xf32> to vector<2x128xf32>
    %144 = arith.mulf %141, %143 : vector<2x128xf32>
    %c1_136 = arith.constant 1 : index
    %c0_137 = arith.constant 0 : index
    %145 = vector.load %arg17[%c1_136, %c0_137] : memref<2x128xf32, #tpu.memory_space<vmem>>, vector<1x128xf32>
    %146 = vector.broadcast %145 : vector<1x128xf32> to vector<2x128xf32>
    %147 = arith.addf %144, %146 : vector<2x128xf32>
    %cst_138 = arith.constant 0.000000e+00 : f32
    %148 = vector.broadcast %cst_138 : f32 to vector<2x128xf32>
    %149 = arith.maximumf %147, %148 : vector<2x128xf32>
    %150 = arith.truncf %149 : vector<2x128xf32> to vector<2x128xbf16>
    %c0_139 = arith.constant 0 : index
    %c0_140 = arith.constant 0 : index
    %151 = vector.load %arg18[%c0_139, %c0_140] : memref<128x128xbf16, #tpu.memory_space<vmem>>, vector<128x128xbf16>
    %cst_141 = arith.constant dense<0.000000e+00> : vector<2x128xf32>
    %152 = tpu.matmul %150, %151, %cst_141 {dimension_numbers = #tpu.dot_dimension_numbers<[1], [0], [0], [1], [0, 0, 1, 1], [], []>} : vector<2x128xbf16>, vector<128x128xbf16>, vector<2x128xf32> -> vector<2x128xf32>
    %c0_142 = arith.constant 0 : index
    %c0_143 = arith.constant 0 : index
    %153 = vector.load %arg19[%c0_142, %c0_143] : memref<1x128xf32, #tpu.memory_space<vmem>>, vector<1x128xf32>
    %154 = vector.broadcast %153 : vector<1x128xf32> to vector<2x128xf32>
    %155 = arith.addf %152, %154 : vector<2x128xf32>
    %c0_144 = arith.constant 0 : index
    %c0_145 = arith.constant 0 : index
    %156 = vector.load %arg20[%c0_144, %c0_145] : memref<2x128xf32, #tpu.memory_space<vmem>>, vector<2x128xf32>
    tpu.vector_store %arg20[%c0_144, %c0_145], %155 {strides = array<i32>} : memref<2x128xf32, #tpu.memory_space<vmem>>, vector<2x128xf32>,
    return
  }
  func.func @transform_0(%arg0: i32) -> (i32, i32) {
    %c0_i32 = arith.constant 0 : i32
    %c0_i32_0 = arith.constant 0 : i32
    return %arg0, %c0_i32 : i32, i32
  }
  func.func @transform_1(%arg0: i32) -> (i32, i32) {
    %c0_i32 = arith.constant 0 : i32
    %c0_i32_0 = arith.constant 0 : i32
    %c0_i32_1 = arith.constant 0 : i32
    return %c0_i32, %c0_i32_0 : i32, i32
  }
  func.func @transform_2(%arg0: i32) -> (i32, i32) {
    %c0_i32 = arith.constant 0 : i32
    %c0_i32_0 = arith.constant 0 : i32
    %c0_i32_1 = arith.constant 0 : i32
    return %c0_i32, %c0_i32_0 : i32, i32
  }
  func.func @transform_3(%arg0: i32) -> (i32, i32) {
    %c0_i32 = arith.constant 0 : i32
    %c0_i32_0 = arith.constant 0 : i32
    %c0_i32_1 = arith.constant 0 : i32
    return %c0_i32, %c0_i32_0 : i32, i32
  }
  func.func @transform_4(%arg0: i32) -> (i32, i32) {
    %c0_i32 = arith.constant 0 : i32
    %c0_i32_0 = arith.constant 0 : i32
    %c0_i32_1 = arith.constant 0 : i32
    return %c0_i32, %c0_i32_0 : i32, i32
  }
  func.func @transform_5(%arg0: i32) -> (i32, i32) {
    %c0_i32 = arith.constant 0 : i32
    %c0_i32_0 = arith.constant 0 : i32
    %c0_i32_1 = arith.constant 0 : i32
    return %c0_i32, %c0_i32_0 : i32, i32
  }
  func.func @transform_6(%arg0: i32) -> (i32, i32) {
    %c0_i32 = arith.constant 0 : i32
    %c0_i32_0 = arith.constant 0 : i32
    %c0_i32_1 = arith.constant 0 : i32
    return %c0_i32, %c0_i32_0 : i32, i32
  }
  func.func @transform_7(%arg0: i32) -> (i32, i32) {
    %c0_i32 = arith.constant 0 : i32
    %c0_i32_0 = arith.constant 0 : i32
    %c0_i32_1 = arith.constant 0 : i32
    return %c0_i32, %c0_i32_0 : i32, i32
  }
  func.func @transform_8(%arg0: i32) -> (i32, i32) {
    %c0_i32 = arith.constant 0 : i32
    %c0_i32_0 = arith.constant 0 : i32
    %c0_i32_1 = arith.constant 0 : i32
    return %c0_i32, %c0_i32_0 : i32, i32
  }
  func.func @transform_9(%arg0: i32) -> (i32, i32) {
    %c0_i32 = arith.constant 0 : i32
    %c0_i32_0 = arith.constant 0 : i32
    %c0_i32_1 = arith.constant 0 : i32
    return %c0_i32, %c0_i32_0 : i32, i32
  }
  func.func @transform_10(%arg0: i32) -> (i32, i32) {
    %c0_i32 = arith.constant 0 : i32
    %c0_i32_0 = arith.constant 0 : i32
    %c0_i32_1 = arith.constant 0 : i32
    return %c0_i32, %c0_i32_0 : i32, i32
  }
  func.func @transform_11(%arg0: i32) -> (i32, i32) {
    %c0_i32 = arith.constant 0 : i32
    %c0_i32_0 = arith.constant 0 : i32
    %c0_i32_1 = arith.constant 0 : i32
    return %c0_i32, %c0_i32_0 : i32, i32
  }
  func.func @transform_12(%arg0: i32) -> (i32, i32) {
    %c0_i32 = arith.constant 0 : i32
    %c0_i32_0 = arith.constant 0 : i32
    %c0_i32_1 = arith.constant 0 : i32
    return %c0_i32, %c0_i32_0 : i32, i32
  }
  func.func @transform_13(%arg0: i32) -> (i32, i32) {
    %c0_i32 = arith.constant 0 : i32
    %c0_i32_0 = arith.constant 0 : i32
    %c0_i32_1 = arith.constant 0 : i32
    return %c0_i32, %c0_i32_0 : i32, i32
  }
  func.func @transform_14(%arg0: i32) -> (i32, i32) {
    %c0_i32 = arith.constant 0 : i32
    %c0_i32_0 = arith.constant 0 : i32
    %c0_i32_1 = arith.constant 0 : i32
    return %c0_i32, %c0_i32_0 : i32, i32
  }
  func.func @transform_15(%arg0: i32) -> (i32, i32) {
    %c0_i32 = arith.constant 0 : i32
    %c0_i32_0 = arith.constant 0 : i32
    %c0_i32_1 = arith.constant 0 : i32
    return %c0_i32, %c0_i32_0 : i32, i32
  }
  func.func @transform_16(%arg0: i32) -> (i32, i32) {
    %c0_i32 = arith.constant 0 : i32
    %c0_i32_0 = arith.constant 0 : i32
    %c0_i32_1 = arith.constant 0 : i32
    return %c0_i32, %c0_i32_0 : i32, i32
  }
  func.func @transform_17(%arg0: i32) -> (i32, i32) {
    %c0_i32 = arith.constant 0 : i32
    %c0_i32_0 = arith.constant 0 : i32
    %c0_i32_1 = arith.constant 0 : i32
    return %c0_i32, %c0_i32_0 : i32, i32
  }
  func.func @transform_18(%arg0: i32) -> (i32, i32) {
    %c0_i32 = arith.constant 0 : i32
    %c0_i32_0 = arith.constant 0 : i32
    %c0_i32_1 = arith.constant 0 : i32
    return %c0_i32, %c0_i32_0 : i32, i32
  }
  func.func @transform_19(%arg0: i32) -> (i32, i32) {
    %c0_i32 = arith.constant 0 : i32
    %c0_i32_0 = arith.constant 0 : i32
    return %arg0, %c0_i32 : i32, i32
  }
}

</mosaic_0001>

<bundles_post_ra>
// kernel: tile.9
= control target key start
LH: loop header
LB: loop body
LE: loop exit
PB: predicated region body
PF: predicated region fallthrough
CT: control target
= control target key end

     0   :  { %s29_s10 = smov 3  ;;  %s10_s11 = smov 3  ;;  %vm12_vm0 = vcmask 261120   ;;  %vm19_vm1 = vcmask 1048320   ;;  %vm26_vm2 = vcmask 785920   ;;  %vm33_vm3 = vcmask 523520   ;;  %s67_s0 = inlined_call_operand.vmem [shape: f32[2,4,32], index: 0, kind: input, shape index: {}]   ;;  %s68_s1 = inlined_call_operand.vmem [shape: f32[2,128], index: 1, kind: output, shape index: {}]  }
   0x1   :  { %v41_v0 = vld [vmem:[%s67_s0 + $0x4] sm:$0xf]  ;;  %v8_v1 = vld [vmem:[%s67_s0] sm:$0xf]  ;;  %s15_s0 = smov 3  ;;  %s22_s12 = smov 3 }
   0x2   :  { %7 = vst [vmem:[#allocation1 + $0x8] sm:$0xf] %v41_v0  ;;  %9 = vst [vmem:[#allocation1] sm:$0xf] %v8_v1  ;;  %s45_s13 = smov 96   ;;  %s46_s14 = smov 32  }
   0x3   :  { %s47_s15 = smov 64  }
   0x9   :  { %v16_v2 = vld [vmem:[#allocation1 + $0x3] ss:$8 sm:%s15_s0]   ;;  %v30_v3 = vld [vmem:[#allocation1 + $0x1] ss:$8 sm:%s29_s10]   ;;  %v11_v4 = vld [vmem:[#allocation1] ss:$8 sm:%s10_s11]  }
   0xa   :  { %17 = vrot.lane.b32.xlu0 %v16_v2, %s45_s13  ;;  %31 = vrot.lane.b32.xlu1 %v30_v3, %s46_s14  ;;  %v23_v5 = vld [vmem:[#allocation1 + $0x2] ss:$8 sm:%s22_s12]   ;;  %13 = vst.msk [vmem:[#allocation0] sm:$0x3] %vm12_vm0, %v11_v4  }
   0xe   :  { %24 = vrot.lane.b32.xlu0 %v23_v5, %s47_s15 }
  0x7c   :  { %v18_v6 = vpop.permute.xlu0 %17   ;;  %v32_v7 = vpop.permute.xlu1 %31  }
  0x7d   :  { %20 = vst.msk [vmem:[#allocation0] sm:$0x3] %vm19_vm1, %v18_v6  }
  0x80   :  { %v25_v8 = vpop.permute.xlu0 %24  }
  0x81   :  { %27 = vst.msk [vmem:[#allocation0] sm:$0x3] %vm26_vm2, %v25_v8  }
  0x82   :  { %34 = vst.msk [vmem:[#allocation0] sm:$0x3] %vm33_vm3, %v32_v7  }
  0x89   :  { %v38_v9 = vld [vmem:[#allocation0] sm:$0x3] }
  0x8a   :  { %40 = vst [vmem:[%s68_s1] sm:$0x3] %v38_v9 }

// kernel: forward.1
= control target key start
LH: loop header
LB: loop body
LE: loop exit
PB: predicated region body
PF: predicated region fallthrough
CT: control target
= control target key end

     0   :  { %s11348_s0 = inlined_call_operand.vmem [shape: f32[200,36], index: 0, kind: input, shape index: {}]   ;;  %s11349_s1 = inlined_call_operand.vmem [shape: f32[36,128], index: 1, kind: input, shape index: {}]   ;;  %s11350_s2 = inlined_call_operand.vmem [shape: f32[2,128], index: 2, kind: input, shape index: {}]   ;;  %s11351_s3 = inlined_call_operand.vmem [shape: f32[200,1], index: 3, kind: input, shape index: {}]   ;;  %s11352_s4 = inlined_call_operand.vmem [shape: bf16[288,64], index: 4, kind: input, shape index: {}]   ;;  %s11353_s5 = inlined_call_operand.vmem [shape: f32[2,64], index: 5, kind: input, shape index: {}]   ;;  %s11354_s6 = inlined_call_operand.vmem [shape: bf16[36,100], index: 6, kind: input, shape index: {}]   ;;  %s11355_s7 = inlined_call_operand.vmem [shape: bf16[576,64], index: 7, kind: input, shape index: {}]   ;;  %s11356_s8 = inlined_call_operand.vmem [shape: f32[2,64], index: 8, kind: input, shape index: {}]   ;;  %s11357_s9 = inlined_call_operand.vmem [shape: f32[72,1], index: 9, kind: input, shape index: {}]   ;;  %s11358_s10 = inlined_call_operand.vmem [shape: bf16[576,128], index: 10, kind: input, shape index: {}]   ;;  %s11359_s11 = inlined_call_operand.vmem [shape: f32[2,128], index: 11, kind: input, shape index: {}]   ;;  %s11360_s12 = inlined_call_operand.vmem [shape: f32[2,72], index: 12, kind: input, shape index: {}]   ;;  %s11361_s13 = inlined_call_operand.vmem [shape: bf16[128,128], index: 13, kind: input, shape index: {}]   ;;  %s11362_s14 = inlined_call_operand.vmem [shape: f32[2,128], index: 14, kind: input, shape index: {}]   ;;  %s11363_s15 = inlined_call_operand.vmem [shape: bf16[128,128], index: 15, kind: input, shape index: {}]   ;;  %s11364_s16 = inlined_call_operand.vmem [shape: f32[2,128], index: 16, kind: input, shape index: {}]   ;;  %s11365_s17 = inlined_call_operand.vmem [shape: bf16[128,128], index: 17, kind: input, shape index: {}]   ;;  %s11366_s18 = inlined_call_operand.vmem [shape: f32[1,128], index: 18, kind: input, shape index: {}]   ;;  %s11367_s19 = inlined_call_operand.hbm [shape: f32[2,128], index: 19, kind: output, shape index: {}]  }
   0x1   :  { %11403 = sst [smem:[#allocation11_spill]] %s11348_s0 }
   0x2   :  { %11404 = sst [smem:[#allocation12_spill]] %s11349_s1 }
   0x3   :  { %11405 = sst [smem:[#allocation13_spill]] %s11350_s2 }
   0x4   :  { %11406 = sst [smem:[#allocation14_spill]] %s11351_s3 }
   0x5   :  { %s11407_s20 = sld [smem:[#allocation12_spill]]  ;;  %v11372_v3 = vmov 0.0|0.0   ;;  %vm7862_vm0 = vmmov 0   ;;  %v11391_v6 = vmov 0.0   ;;  %vm69_vm1 = vcmask 519168   ;;  %s11408_s28 = sld [smem:[#allocation11_spill]] }
   0x6   :  { %7617 = vmatprep.subr.bf16.mxu0 %v11372_v3  ;;  %7297 = vmatprep.mubr.msk.f32.mxu0 %vm7862_vm0, %v11391_v6  ;;  %v7864_v8 = vmov 0   ;;  %vm184_vm2 = vcmask 1043456   ;;  %vm108_vm3 = vcmask 293888   ;;  %s11409_s30 = sld [smem:[#allocation14_spill]] }
   0x7   :  { %7659 = vset.pattern.permute.xlu1 %v7864_v8  ;;  %72 = vst.msk [vmem:[#allocation3 + $0x6c] sm:$0xf] %vm69_vm1, %v7864_v8  ;;  %73 = vst.msk [vmem:[#allocation3 + $0x70] sm:$0xf] %vm69_vm1, %v7864_v8  ;;  %7660 = vset.pattern.permute.xlu0 %v7864_v8 }
   0x8   :  { %74 = vst.msk [vmem:[#allocation4] sm:$0xf] %vm69_vm1, %v7864_v8  ;;  %75 = vst.msk [vmem:[#allocation4 + $0x28] sm:$0xf] %vm69_vm1, %v7864_v8 }
   0x9   :  { %76 = vst.msk [vmem:[#allocation5] sm:$0xf] %vm69_vm1, %v7864_v8  ;;  %77 = vst.msk [vmem:[#allocation5 + $0x28] sm:$0xf] %vm69_vm1, %v7864_v8 }
   0xb   :  { %v103_v0 = vld [vmem:[%s11407_s20] sm:$0xff]  ;;  %v104_v1 = vld [vmem:[%s11407_s20 + $0x8] sm:$0xff]  ;;  %v105_v2 = vld [vmem:[%s11407_s20 + $0x10] sm:$0xff] }
   0xc   :  { %v7618_v4 = vpack.c.bf16 %v104_v1, %v103_v0  ;;  %v106_v5 = vld [vmem:[%s11407_s20 + $0x18] sm:$0xff]  ;;  %v107_v9 = vld [vmem:[%s11407_s20 + $0x20] sm:$0xf]  ;;  %v714_v12 = vld [vmem:[%s11409_s30 + $0x8] sm:$0xff] }
   0xd   :  { %v7621_v7 = vpack.c.bf16 %v106_v5, %v105_v2  ;;  %v78_v10 = vld [vmem:[%s11408_s28] sm:$0xff]  ;;  %745 = vperm.xlu0 %7660, %v714_v12   ;;  %v715_v13 = vld [vmem:[%s11409_s30 + $0x10] sm:$0xff]  ;;  %v79_v14 = vld [vmem:[%s11408_s28 + $0x8] sm:$0xff] }
   0xe   :  { %7619 = vmatpush3.bf16.msra.mxu0 %v7618_v4  ;;  %v713_v11 = vld [vmem:[%s11409_s30] sm:$0xff]  ;;  %v716_v16 = vld [vmem:[%s11409_s30 + $0x18] sm:$0xff]  ;;  %v80_v17 = vld [vmem:[%s11408_s28 + $0x10] sm:$0xff] }
   0xf   :  { %7620 = vmatprep.subr.bf16.mxu0 %v11372_v3  ;;  %740 = vperm.xlu1 %7659, %v713_v11   ;;  %v717_v15 = vld [vmem:[%s11409_s30 + $0x20] sm:$0xff]  ;;  %v718_v18 = vld [vmem:[%s11409_s30 + $0x28] sm:$0xff]  ;;  %v719_v19 = vld [vmem:[%s11409_s30 + $0x30] sm:$0xff] }
  0x10   :  { %v81_v20 = vld [vmem:[%s11408_s28 + $0x18] sm:$0xff]  ;;  %v721_v22 = vld [vmem:[%s11409_s30 + $0x40] sm:$0xff]  ;;  %v722_v24 = vld [vmem:[%s11409_s30 + $0x48] sm:$0xff] }
  0x11   :  { %760 = vperm.xlu0 %7660, %v717_v15   ;;  %v720_v21 = vld [vmem:[%s11409_s30 + $0x38] sm:$0xff]  ;;  %v82_v23 = vld [vmem:[%s11408_s28 + $0x20] sm:$0xff]  ;;  %v723_v25 = vld [vmem:[%s11409_s30 + $0x50] sm:$0xff] }
  0x12   :  { %7622 = vmatpush3.bf16.msra.mxu0 %v7621_v7  ;;  %v83_v26 = vld [vmem:[%s11408_s28 + $0x28] sm:$0xff]  ;;  %v724_v27 = vld [vmem:[%s11409_s30 + $0x58] sm:$0xff]  ;;  %v725_v28 = vld [vmem:[%s11409_s30 + $0x60] sm:$0xff] }
  0x13   :  { %7295 = vmatprep.subr.mxu0 %v11391_v6  ;;  %750 = vperm.xlu1 %7659, %v715_v13   ;;  %v84_v29 = vld [vmem:[%s11408_s28 + $0x30] sm:$0xff]  ;;  %v726_v30 = vld [vmem:[%s11409_s30 + $0x68] sm:$0xff]  ;;  %v85_v32 = vld [vmem:[%s11408_s28 + $0x38] sm:$0xff] }
  0x14   :  { %v727_v31 = vld [vmem:[%s11409_s30 + $0x70] sm:$0xff]  ;;  %v728_v33 = vld [vmem:[%s11409_s30 + $0x78] sm:$0xff]  ;;  %v729_v34 = vld [vmem:[%s11409_s30 + $0x80] sm:$0xff] }
  0x15   :  { %765 = vperm.xlu0 %7660, %v718_v18   ;;  %v86_v35 = vld [vmem:[%s11408_s28 + $0x40] sm:$0xff]  ;;  %v730_v36 = vld [vmem:[%s11409_s30 + $0x88] sm:$0xff]  ;;  %v731_v37 = vld [vmem:[%s11409_s30 + $0x90] sm:$0xff] }
  0x16   :  { %7296 = vmatpush3.msk.msra.mxu0 %vm184_vm2, %v107_v9  ;;  %v87_v38 = vld [vmem:[%s11408_s28 + $0x48] sm:$0xff]  ;;  %v732_v39 = vld [vmem:[%s11409_s30 + $0x98] sm:$0xff]  ;;  %v733_v40 = vld [vmem:[%s11409_s30 + $0xa0] sm:$0xff] }
  0x17   :  { %7298 = vmatmul.mubr.msk.f32.vlgmr.msra.gmra.mrb[0].mxu0 %vm108_vm3, %v78_v10  ;;  %7372 = vmatprep.subr.bf16.mxu0 %v11391_v6  ;;  %v88_v41 = vld [vmem:[%s11408_s28 + $0x50] sm:$0xff]  ;;  %v734_v42 = vld [vmem:[%s11409_s30 + $0xa8] sm:$0xff]  ;;  %v89_v44 = vld [vmem:[%s11408_s28 + $0x58] sm:$0xff] }
  0x18   :  { %7300 = vmatprep.mubr.msk.f32.mxu0 %vm7862_vm0, %v11391_v6  ;;  %755 = vperm.xlu1 %7659, %v716_v16   ;;  %v735_v43 = vld [vmem:[%s11409_s30 + $0xb0] sm:$0xff]  ;;  %v736_v45 = vld [vmem:[%s11409_s30 + $0xb8] sm:$0xff]  ;;  %v737_v46 = vld [vmem:[%s11409_s30 + $0xc0] sm:$0xff] }
  0x19   :  { %775 = vperm.xlu0 %7660, %v720_v21   ;;  %v90_v47 = vld [vmem:[%s11408_s28 + $0x60] sm:$0xff]  ;;  %v91_v48 = vld [vmem:[%s11408_s28 + $0x68] sm:$0xff]  ;;  %v92_v49 = vld [vmem:[%s11408_s28 + $0x70] sm:$0xff] }
  0x1a   :  { %v93_v50 = vld [vmem:[%s11408_s28 + $0x78] sm:$0xff]  ;;  %v94_v51 = vld [vmem:[%s11408_s28 + $0x80] sm:$0xff]  ;;  %v95_v52 = vld [vmem:[%s11408_s28 + $0x88] sm:$0xff] }
  0x1b   :  { %7301 = vmatmul.mubr.msk.f32.gmra.mrb[2].mxu0 %vm108_vm3, %v79_v14  ;;  %v96_v53 = vld [vmem:[%s11408_s28 + $0x90] sm:$0xff]  ;;  %v97_v54 = vld [vmem:[%s11408_s28 + $0x98] sm:$0xff]  ;;  %v98_v55 = vld [vmem:[%s11408_s28 + $0xa0] sm:$0xff] }
  0x1c   :  { %7303 = vmatprep.mubr.msk.f32.mxu0 %vm7862_vm0, %v11391_v6  ;;  %770 = vperm.xlu1 %7659, %v719_v19   ;;  %v99_v56 = vld [vmem:[%s11408_s28 + $0xa8] sm:$0xff] }
  0x1d   :  { %785 = vperm.xlu0 %7660, %v722_v24  }
  0x1f   :  { %7304 = vmatmul.mubr.msk.f32.gmra.mrb[4].mxu0 %vm108_vm3, %v80_v17 }
  0x20   :  { %7306 = vmatprep.mubr.msk.f32.mxu0 %vm7862_vm0, %v11391_v6  ;;  %780 = vperm.xlu1 %7659, %v721_v22  }
  0x21   :  { %795 = vperm.xlu0 %7660, %v724_v27  }
  0x23   :  { %7307 = vmatmul.mubr.msk.f32.gmra.mrb[6].mxu0 %vm108_vm3, %v81_v20 }
  0x24   :  { %7309 = vmatprep.mubr.msk.f32.mxu0 %vm7862_vm0, %v11391_v6  ;;  %790 = vperm.xlu1 %7659, %v723_v25  }
  0x25   :  { %805 = vperm.xlu0 %7660, %v726_v30  }
  0x27   :  { %7310 = vmatmul.mubr.msk.f32.gmra.mrb[8].mxu0 %vm108_vm3, %v82_v23 }
  0x28   :  { %7312 = vmatprep.mubr.msk.f32.mxu0 %vm7862_vm0, %v11391_v6  ;;  %800 = vperm.xlu1 %7659, %v725_v28  }
  0x29   :  { %815 = vperm.xlu0 %7660, %v728_v33  }
  0x2b   :  { %7313 = vmatmul.mubr.msk.f32.gmra.mrb[10].mxu0 %vm108_vm3, %v83_v26 }
  0x2c   :  { %7315 = vmatprep.mubr.msk.f32.mxu0 %vm7862_vm0, %v11391_v6  ;;  %810 = vperm.xlu1 %7659, %v727_v31  }
  0x2d   :  { %825 = vperm.xlu0 %7660, %v730_v36  }
  0x2f   :  { %7316 = vmatmul.mubr.msk.f32.gmra.mrb[12].mxu0 %vm108_vm3, %v84_v29 }
  0x30   :  { %7318 = vmatprep.mubr.msk.f32.mxu0 %vm7862_vm0, %v11391_v6  ;;  %820 = vperm.xlu1 %7659, %v729_v34  }
  0x31   :  { %835 = vperm.xlu0 %7660, %v732_v39  }
  0x33   :  { %7319 = vmatmul.mubr.msk.f32.gmra.mrb[14].mxu0 %vm108_vm3, %v85_v32 }
  0x34   :  { %7321 = vmatprep.mubr.msk.f32.mxu0 %vm7862_vm0, %v11391_v6  ;;  %830 = vperm.xlu1 %7659, %v731_v37  }
  0x35   :  { %845 = vperm.xlu0 %7660, %v734_v42  }
  0x37   :  { %7322 = vmatmul.mubr.msk.f32.gmra.mrb[16].mxu0 %vm108_vm3, %v86_v35 }
  0x38   :  { %7324 = vmatprep.mubr.msk.f32.mxu0 %vm7862_vm0, %v11391_v6  ;;  %840 = vperm.xlu1 %7659, %v733_v40  }
  0x39   :  { %855 = vperm.xlu0 %7660, %v736_v45  }
  0x3b   :  { %7325 = vmatmul.mubr.msk.f32.gmra.mrb[18].mxu0 %vm108_vm3, %v87_v38 }
  0x3c   :  { %7327 = vmatprep.mubr.msk.f32.mxu0 %vm7862_vm0, %v11391_v6  ;;  %850 = vperm.xlu1 %7659, %v735_v43  }
  0x3f   :  { %7328 = vmatmul.mubr.msk.f32.gmra.mrb[20].mxu0 %vm108_vm3, %v88_v41 }
  0x40   :  { %7330 = vmatprep.mubr.msk.f32.mxu0 %vm7862_vm0, %v11391_v6  ;;  %860 = vperm.xlu1 %7659, %v737_v46  }
  0x43   :  { %7331 = vmatmul.mubr.msk.f32.gmra.mrb[22].mxu0 %vm108_vm3, %v89_v44 }
  0x44   :  { %7333 = vmatprep.mubr.msk.f32.mxu0 %vm7862_vm0, %v11391_v6 }
  0x47   :  { %7334 = vmatmul.mubr.msk.f32.gmra.mrb[24].mxu0 %vm108_vm3, %v90_v47 }
  0x48   :  { %7336 = vmatprep.mubr.msk.f32.mxu0 %vm7862_vm0, %v11391_v6 }
  0x4b   :  { %7337 = vmatmul.mubr.msk.f32.gmra.mrb[26].mxu0 %vm108_vm3, %v91_v48 }
  0x4c   :  { %7339 = vmatprep.mubr.msk.f32.mxu0 %vm7862_vm0, %v11391_v6 }
  0x4f   :  { %7340 = vmatmul.mubr.msk.f32.gmra.mrb[28].mxu0 %vm108_vm3, %v92_v49 }
  0x50   :  { %7342 = vmatprep.mubr.msk.f32.mxu0 %vm7862_vm0, %v11391_v6 }
  0x53   :  { %7343 = vmatmul.mubr.msk.f32.gmra.mrb[30].mxu0 %vm108_vm3, %v93_v50 }
  0x54   :  { %7345 = vmatprep.mubr.msk.f32.mxu0 %vm7862_vm0, %v11391_v6 }
  0x57   :  { %7346 = vmatmul.mubr.msk.f32.gmra.mrb[32].mxu0 %vm108_vm3, %v94_v51 }
  0x58   :  { %7348 = vmatprep.mubr.msk.f32.mxu0 %vm7862_vm0, %v11391_v6 }
  0x5b   :  { %7349 = vmatmul.mubr.msk.f32.gmra.mrb[34].mxu0 %vm108_vm3, %v95_v52 }
  0x5c   :  { %7351 = vmatprep.mubr.msk.f32.mxu0 %vm7862_vm0, %v11391_v6 }
  0x5f   :  { %7352 = vmatmul.mubr.msk.f32.gmra.mrb[36].mxu0 %vm108_vm3, %v96_v53 }
  0x60   :  { %7354 = vmatprep.mubr.msk.f32.mxu0 %vm7862_vm0, %v11391_v6 }
  0x63   :  { %7355 = vmatmul.mubr.msk.f32.gmra.mrb[38].mxu0 %vm108_vm3, %v97_v54 }
  0x64   :  { %7357 = vmatprep.mubr.msk.f32.mxu0 %vm7862_vm0, %v11391_v6 }
  0x67   :  { %7358 = vmatmul.mubr.msk.f32.gmra.mrb[40].mxu0 %vm108_vm3, %v98_v55 }
  0x68   :  { %7360 = vmatprep.mubr.msk.f32.mxu0 %vm7862_vm0, %v11391_v6 }
  0x6b   :  { %7361 = vmatmul.mubr.msk.f32.gmra.mrb[42].mxu0 %vm108_vm3, %v99_v56 }
  0x6c   :  { %24 = vsyncpa [#allocation7], 0  ;;  %7363 = vmatprep.mubr.msk.f32.mxu0 %vm7862_vm0, %v11391_v6  ;;  %v100_v57 = vld [vmem:[%s11408_s28 + $0xb0] sm:$0xff]  ;;  %v101_v58 = vld [vmem:[%s11408_s28 + $0xb8] sm:$0xff]  ;;  %s11410_s23 = sld [smem:[#allocation13_spill]]  ;;  %vm64_vm4 = vcmask 257024  }
  0x6d   :  { %v102_v59 = vld [vmem:[%s11408_s28 + $0xc0] sm:$0xff]  ;;  %s7865_s28 = smov 96   ;;  %65 = vst.msk [vmem:[#allocation2] sm:$0xf] %vm64_vm4, %v7864_v8  ;;  %66 = vst.msk [vmem:[#allocation2 + $0x4] sm:$0xf] %vm64_vm4, %v7864_v8 }
  0x6e   :  { %67 = vst.msk [vmem:[#allocation2 + $0x6c] sm:$0xf] %vm64_vm4, %v7864_v8  ;;  %68 = vst.msk [vmem:[#allocation2 + $0x70] sm:$0xf] %vm64_vm4, %v7864_v8  ;;  %s7866_s3 = smov 64   ;;  %s7867_s25 = smov 32  }
  0x6f   :  { %7364 = vmatmul.mubr.msk.f32.gmra.mrb[44].mxu0 %vm108_vm3, %v100_v57  ;;  %vm1250_vm5 = vcmask 1046528   ;;  %vm1117_vm6 = vsmask.f32 7424  ;;  %vm1436_vm7 = vcmask 1041408   ;;  %vm1693_vm8 = vcmask 1040384   ;;  %s7868_s27 = smov [#allocation6]  }
  0x70   :  { %7366 = vmatprep.mubr.msk.f32.mxu0 %vm7862_vm0, %v11391_v6  ;;  %vm1928_vm9 = vsmask.f32 5376  ;;  %vm1719_vm10 = vcmask 261120   ;;  %vm1547_vm11 = vsmask.f32 1280  ;;  %vm1747_vm13 = vcmask 523264  }
  0x71   :  { %vm1371_vm12 = vsmask.f32 2304  ;;  %vm1774_vm14 = vcmask 785408   ;;  %vm2926_vm15 = vsmask.f32 3328  ;;  %s6471_s29 = sshll.u32 %s7868_s27, 4  ;;  %s6472_s29 = int_to_ptr.vmem [resolvable:$true] %s6471_s29 }
  0x72   :  { %v8233_v60 = vld [vmem:[%s11410_s23] ss:$0 sm:$0xff]  ;;  %v8238_v62 = vld [vmem:[%s11410_s23 + $0x1] ss:$0 sm:$0xff]  ;;  %p7842_p1 = scmp.lt.s32.totalorder %s6472_s29, %s6472_s29 }
  0x73   :  { %7367 = vmatmul.mubr.msk.f32.gmra.mrb[46].mxu0 %vm108_vm3, %v101_v58 }
  0x74   :  { %7369 = vmatprep.mubr.msk.f32.mxu0 %vm7862_vm0, %v11391_v6 }
  0x77   :  { %7370 = vmatmul.mubr.msk.f32.gmra.mrb[48].mxu0 %vm108_vm3, %v102_v59  ;;  %vm2927_vm3 = vsmask.f32 7440 }
  0x78   :  { %7376 = vmatprep.mubr.msk.bf16.mxu0 %vm7862_vm0, %v11391_v6 }
  0xea   :  { %v254_v61 = vpop.f32.mrb[0].mxu0 }
  0xeb   :  { %v383_v63 = vmul.f32 %v8233_v60, %v254_v61  ;;  %v7299_v0 = vpop.f32.mrb[1].mxu0 }
  0xed   :  { %v8242_v1 = vadd.f32 %v8238_v62, %v383_v63 }
  0xee   :  { %v259_v2 = vpop.f32.mrb[2].mxu0 }
  0xef   :  { %v438_v4 = vmax.f32 %v8242_v1, 0.0  ;;  %v384_v5 = vmul.f32 %v8233_v60, %v259_v2  ;;  %v7302_v7 = vpop.f32.mrb[3].mxu0 }
  0xf1   :  { %v8247_v9 = vadd.f32 %v8238_v62, %v384_v5  ;;  %488 = vrot.lane.b32.xlu0 %v438_v4, %s7865_s28  ;;  %v8334_v5 = vpop.permute.xlu0 %745 }
  0xf2   :  { %v264_v10 = vpop.f32.mrb[4].mxu0 }
  0xf3   :  { %v439_v11 = vmax.f32 %v8247_v9, 0.0  ;;  %v385_v12 = vmul.f32 %v8233_v60, %v264_v10  ;;  %v7305_v13 = vpop.f32.mrb[5].mxu0 }
  0xf5   :  { %v8255_v14 = vadd.f32 %v8238_v62, %v385_v12  ;;  %490 = vrot.lane.b32.xlu0 %v439_v11, %s7865_s28  ;;  %v8342_v12 = vpop.permute.xlu1 %740 }
  0xf6   :  { %v269_v15 = vpop.f32.mrb[6].mxu0 }
  0xf7   :  { %v440_v16 = vmax.f32 %v8255_v14, 0.0  ;;  %v386_v17 = vmul.f32 %v8233_v60, %v269_v15  ;;  %v7308_v18 = vpop.f32.mrb[7].mxu0 }
  0xf9   :  { %v8263_v19 = vadd.f32 %v8238_v62, %v386_v17  ;;  %492 = vrot.lane.b32.xlu1 %v440_v16, %s7865_s28 }
  0xfa   :  { %v274_v20 = vpop.f32.mrb[8].mxu0 }
  0xfb   :  { %v441_v21 = vmax.f32 %v8263_v19, 0.0  ;;  %v387_v22 = vmul.f32 %v8233_v60, %v274_v20  ;;  %v7311_v23 = vpop.f32.mrb[9].mxu0 }
  0xfd   :  { %v8271_v24 = vadd.f32 %v8238_v62, %v387_v22  ;;  %494 = vrot.lane.b32.xlu1 %v441_v21, %s7865_s28  ;;  %v8352_v22 = vpop.permute.xlu0 %760 }
  0xfe   :  { %v279_v25 = vpop.f32.mrb[10].mxu0 }
  0xff   :  { %v442_v26 = vmax.f32 %v8271_v24, 0.0  ;;  %v388_v27 = vmul.f32 %v8233_v60, %v279_v25  ;;  %v7314_v28 = vpop.f32.mrb[11].mxu0 }
 0x100   :  { %v8356_v28 = vpop.permute.xlu1 %750 }
 0x101   :  { %v8279_v29 = vadd.f32 %v8238_v62, %v388_v27  ;;  %496 = vrot.lane.b32.xlu0 %v442_v26, %s7865_s28 }
 0x102   :  { %v284_v30 = vpop.f32.mrb[12].mxu0 }
 0x103   :  { %v443_v31 = vmax.f32 %v8279_v29, 0.0  ;;  %v389_v32 = vmul.f32 %v8233_v60, %v284_v30  ;;  %v7317_v33 = vpop.f32.mrb[13].mxu0  ;;  %v7667_v29 = vld [vmem:[%s11352_s4 + $0x88] sm:$0xff]  }
 0x105   :  { %v8287_v34 = vadd.f32 %v8238_v62, %v389_v32  ;;  %498 = vrot.lane.b32.xlu1 %v443_v31, %s7865_s28 }
 0x106   :  { %v289_v35 = vpop.f32.mrb[14].mxu0 }
 0x107   :  { %v444_v36 = vmax.f32 %v8287_v34, 0.0  ;;  %v390_v37 = vmul.f32 %v8233_v60, %v289_v35  ;;  %v7320_v38 = vpop.f32.mrb[15].mxu0 }
 0x108   :  { %v8366_v38 = vpop.permute.xlu0 %765 }
 0x109   :  { %v8295_v39 = vadd.f32 %v8238_v62, %v390_v37  ;;  %500 = vrot.lane.b32.xlu0 %v444_v36, %s7865_s28 }
 0x10a   :  { %v294_v40 = vpop.f32.mrb[16].mxu0 }
 0x10b   :  { %v445_v41 = vmax.f32 %v8295_v39, 0.0  ;;  %v391_v42 = vmul.f32 %v8233_v60, %v294_v40  ;;  %v7323_v43 = vpop.f32.mrb[17].mxu0 }
 0x10c   :  { %v8374_v43 = vpop.permute.xlu1 %755 }
 0x10d   :  { %v8303_v44 = vadd.f32 %v8238_v62, %v391_v42  ;;  %502 = vrot.lane.b32.xlu1 %v445_v41, %s7865_s28 }
 0x10e   :  { %v299_v45 = vpop.f32.mrb[18].mxu0 }
 0x10f   :  { %v11390_v46 = vmax.f32 %v8303_v44, 0.0  ;;  %v392_v47 = vmul.f32 %v8233_v60, %v299_v45  ;;  %v7326_v48 = vpop.f32.mrb[19].mxu0 }
 0x111   :  { %v8311_v49 = vadd.f32 %v8238_v62, %v392_v47  ;;  %504 = vrot.lane.b32.xlu0 %v11390_v46, %s7865_s28 }
 0x112   :  { %v304_v50 = vpop.f32.mrb[20].mxu0 }
 0x113   :  { %v11389_v51 = vmax.f32 %v8311_v49, 0.0  ;;  %v393_v52 = vmul.f32 %v8233_v60, %v304_v50  ;;  %v7329_v53 = vpop.f32.mrb[21].mxu0 }
 0x114   :  { %v8384_v53 = vpop.permute.xlu0 %775 }
 0x115   :  { %v8319_v54 = vadd.f32 %v8238_v62, %v393_v52  ;;  %506 = vrot.lane.b32.xlu1 %v11389_v51, %s7865_s28 }
 0x116   :  { %v309_v55 = vpop.f32.mrb[22].mxu0 }
 0x117   :  { %v11388_v56 = vmax.f32 %v8319_v54, 0.0  ;;  %v394_v57 = vmul.f32 %v8233_v60, %v309_v55  ;;  %v7332_v58 = vpop.f32.mrb[23].mxu0 }
 0x119   :  { %v8327_v59 = vadd.f32 %v8238_v62, %v394_v57  ;;  %508 = vrot.lane.b32.xlu0 %v11388_v56, %s7865_s28 }
 0x11a   :  { %v314_v61 = vpop.f32.mrb[24].mxu0 }
 0x11b   :  { %v11384_v63 = vmax.f32 %v8327_v59, 0.0  ;;  %v395_v0 = vmul.f32 %v8233_v60, %v314_v61  ;;  %v7335_v2 = vpop.f32.mrb[25].mxu0  ;;  %v8388_v61 = vpop.permute.xlu1 %770 }
 0x11d   :  { %v8337_v7 = vadd.f32 %v8238_v62, %v395_v0  ;;  %510 = vrot.lane.b32.xlu1 %v11384_v63, %s7865_s28 }
 0x11e   :  { %v319_v10 = vpop.f32.mrb[26].mxu0 }
 0x11f   :  { %v11383_v13 = vmax.f32 %v8337_v7, 0.0  ;;  %v396_v15 = vmul.f32 %v8233_v60, %v319_v10  ;;  %v7338_v17 = vpop.f32.mrb[27].mxu0 }
 0x121   :  { %v8347_v18 = vadd.f32 %v8238_v62, %v396_v15  ;;  %512 = vrot.lane.b32.xlu0 %v11383_v13, %s7865_s28 }
 0x122   :  { %v324_v20 = vpop.f32.mrb[28].mxu0 }
 0x123   :  { %v11381_v23 = vmax.f32 %v8347_v18, 0.0  ;;  %v397_v25 = vmul.f32 %v8233_v60, %v324_v20  ;;  %v7341_v27 = vpop.f32.mrb[29].mxu0  ;;  %v8398_v20 = vpop.permute.xlu0 %785 }
 0x125   :  { %v8359_v30 = vadd.f32 %v8238_v62, %v397_v25  ;;  %514 = vrot.lane.b32.xlu1 %v11381_v23, %s7865_s28 }
 0x126   :  { %v329_v32 = vpop.f32.mrb[30].mxu0 }
 0x127   :  { %v11380_v33 = vmax.f32 %v8359_v30, 0.0  ;;  %v398_v35 = vmul.f32 %v8233_v60, %v329_v32  ;;  %v7344_v37 = vpop.f32.mrb[31].mxu0  ;;  %v8406_v32 = vpop.permute.xlu1 %780 }
 0x129   :  { %v8369_v40 = vadd.f32 %v8238_v62, %v398_v35  ;;  %516 = vrot.lane.b32.xlu0 %v11380_v33, %s7865_s28 }
 0x12a   :  { %v334_v42 = vpop.f32.mrb[32].mxu0 }
 0x12b   :  { %v11379_v45 = vmax.f32 %v8369_v40, 0.0  ;;  %v399_v47 = vmul.f32 %v8233_v60, %v334_v42  ;;  %v7347_v48 = vpop.f32.mrb[33].mxu0 }
 0x12d   :  { %v8379_v50 = vadd.f32 %v8238_v62, %v399_v47  ;;  %518 = vrot.lane.b32.xlu1 %v11379_v45, %s7865_s28 }
 0x12e   :  { %v339_v52 = vpop.f32.mrb[34].mxu0 }
 0x12f   :  { %v11377_v55 = vmax.f32 %v8379_v50, 0.0  ;;  %v400_v57 = vmul.f32 %v8233_v60, %v339_v52  ;;  %v7350_v58 = vpop.f32.mrb[35].mxu0  ;;  %v8416_v52 = vpop.permute.xlu0 %795 }
 0x131   :  { %v8391_v0 = vadd.f32 %v8238_v62, %v400_v57  ;;  %520 = vrot.lane.b32.xlu0 %v11377_v55, %s7865_s28 }
 0x132   :  { %v344_v2 = vpop.f32.mrb[36].mxu0 }
 0x133   :  { %v11376_v10 = vmax.f32 %v8391_v0, 0.0  ;;  %v401_v15 = vmul.f32 %v8233_v60, %v344_v2  ;;  %v7353_v17 = vpop.f32.mrb[37].mxu0 }
 0x135   :  { %v8401_v25 = vadd.f32 %v8238_v62, %v401_v15  ;;  %522 = vrot.lane.b32.xlu1 %v11376_v10, %s7865_s28  ;;  %v8420_v15 = vpop.permute.xlu1 %790 }
 0x136   :  { %v349_v27 = vpop.f32.mrb[38].mxu0 }
 0x137   :  { %v11374_v35 = vmax.f32 %v8401_v25, 0.0  ;;  %v402_v37 = vmul.f32 %v8233_v60, %v349_v27  ;;  %v7356_v42 = vpop.f32.mrb[39].mxu0 }
 0x139   :  { %v8411_v47 = vadd.f32 %v8238_v62, %v402_v37  ;;  %524 = vrot.lane.b32.xlu0 %v11374_v35, %s7865_s28  ;;  %v8430_v35 = vpop.permute.xlu0 %805 }
 0x13a   :  { %v354_v48 = vpop.f32.mrb[40].mxu0 }
 0x13b   :  { %v11375_v57 = vmax.f32 %v8411_v47, 0.0  ;;  %v403_v58 = vmul.f32 %v8233_v60, %v354_v48  ;;  %v7359_v2 = vpop.f32.mrb[41].mxu0 }
 0x13c   :  { %v8438_v2 = vpop.permute.xlu1 %800 }
 0x13d   :  { %v8423_v17 = vadd.f32 %v8238_v62, %v403_v58  ;;  %526 = vrot.lane.b32.xlu0 %v11375_v57, %s7865_s28 }
 0x13e   :  { %v359_v27 = vpop.f32.mrb[42].mxu0 }
 0x13f   :  { %v11378_v37 = vmax.f32 %v8423_v17, 0.0  ;;  %v404_v42 = vmul.f32 %v8233_v60, %v359_v27  ;;  %v7362_v3 = vpop.f32.mrb[43].mxu0 }
 0x140   :  { %v8452_v23 = vpop.permute.xlu1 %810 }
 0x141   :  { %v8433_v48 = vadd.f32 %v8238_v62, %v404_v42  ;;  %528 = vrot.lane.b32.xlu1 %v11378_v37, %s7865_s28  ;;  %v8448_v42 = vpop.permute.xlu0 %815 }
 0x142   :  { %v364_v58 = vpop.f32.mrb[44].mxu0 }
 0x143   :  { %v11382_v57 = vmax.f32 %v8433_v48, 0.0  ;;  %v405_v10 = vmul.f32 %v8233_v60, %v364_v58  ;;  %v7365_v55 = vpop.f32.mrb[45].mxu0 }
 0x145   :  { %v8443_v27 = vadd.f32 %v8238_v62, %v405_v10  ;;  %530 = vrot.lane.b32.xlu0 %v11382_v57, %s7865_s28  ;;  %v8462_v63 = vpop.permute.xlu0 %825 }
 0x146   :  { %v369_v3 = vpop.f32.mrb[46].mxu0 }
 0x147   :  { %v11385_v37 = vmax.f32 %v8443_v27, 0.0  ;;  %v406_v45 = vmul.f32 %v8233_v60, %v369_v3  ;;  %v7368_v33 = vpop.f32.mrb[47].mxu0 }
 0x148   :  { %v8470_v33 = vpop.permute.xlu1 %820 }
 0x149   :  { %v8455_v58 = vadd.f32 %v8238_v62, %v406_v45  ;;  %532 = vrot.lane.b32.xlu1 %v11385_v37, %s7865_s28  ;;  %v8476_v37 = vpop.permute.xlu0 %835 }
 0x14a   :  { %v374_v55 = vpop.f32.mrb[48].mxu0 }
 0x14b   :  { %v11387_v10 = vmax.f32 %v8455_v58, 0.0  ;;  %v407_v57 = vmul.f32 %v8233_v60, %v374_v55  ;;  %v7371_v13 = vpop.f32.mrb[49].mxu0 }
 0x14c   :  { %v8478_v60 = vpop.permute.xlu1 %830 }
 0x14d   :  { %v8465_v3 = vadd.f32 %v8238_v62, %v407_v57  ;;  %534 = vrot.lane.b32.xlu0 %v11387_v10, %s7865_s28  ;;  %v8480_v13 = vpop.permute.xlu0 %845 }
 0x14f   :  { %v11386_v45 = vmax.f32 %v8465_v3, 0.0 }
 0x150   :  { %v8490_v62 = vpop.permute.xlu1 %840 }
 0x151   :  { %536 = vrot.lane.b32.xlu1 %v11386_v45, %s7865_s28  ;;  %v8492_v57 = vpop.permute.xlu0 %855 }
 0x154   :  { %v8494_v55 = vpop.permute.xlu1 %850 }
 0x158   :  { %v8502_v56 = vpop.permute.xlu1 %860 }
 0x163   :  { %v489_v45 = vpop.permute.xlu0 %488 }
 0x164   :  { %v8498_v10 = vmax.f32 %v438_v4, %v489_v45 }
 0x166   :  { %613 = vrot.lane.b32.xlu1 %v8498_v10, %s7866_s3 }
 0x167   :  { %v491_v51 = vpop.permute.xlu0 %490 }
 0x168   :  { %v8506_v8 = vmax.f32 %v439_v11, %v491_v51 }
 0x16a   :  { %615 = vrot.lane.b32.xlu0 %v8506_v8, %s7866_s3 }
 0x16b   :  { %v493_v46 = vpop.permute.xlu1 %492 }
 0x16c   :  { %v8512_v1 = vmax.f32 %v440_v16, %v493_v46 }
 0x16e   :  { %617 = vrot.lane.b32.xlu1 %v8512_v1, %s7866_s3 }
 0x16f   :  { %v495_v4 = vpop.permute.xlu1 %494 }
 0x170   :  { %v8518_v45 = vmax.f32 %v441_v21, %v495_v4  ;;  %v7666_v21 = vld [vmem:[%s11352_s4 + $0x80] sm:$0xff]   ;;  %v11412_v4 = vmax.f32 %v8311_v49, 0.0 }
 0x171   :  { %7373 = vmatpush3.bf16.msra.mxu0 %v7666_v21 }
 0x172   :  { %619 = vrot.lane.b32.xlu0 %v8518_v45, %s7866_s3  ;;  %7374 = vmatprep.subr.bf16.mxu0 %v11391_v6 }
 0x173   :  { %v497_v9 = vpop.permute.xlu0 %496 }
 0x174   :  { %v8524_v11 = vmax.f32 %v442_v26, %v497_v9 }
 0x175   :  { %7375 = vmatpush3.bf16.msra.mxu0 %v7667_v29 }
 0x176   :  { %621 = vrot.lane.b32.xlu1 %v8524_v11, %s7866_s3 }
 0x177   :  { %v499_v14 = vpop.permute.xlu1 %498 }
 0x178   :  { %v8530_v16 = vmax.f32 %v443_v31, %v499_v14 }
 0x17a   :  { %623 = vrot.lane.b32.xlu0 %v8530_v16, %s7866_s3 }
 0x17b   :  { %v501_v19 = vpop.permute.xlu0 %500 }
 0x17c   :  { %v8539_v24 = vmax.f32 %v444_v36, %v501_v19  ;;  %v11411_v36 = vmax.f32 %v8303_v44, 0.0  ;;  %v11414_v19 = vmax.f32 %v8327_v59, 0.0 }
 0x17e   :  { %625 = vrot.lane.b32.xlu1 %v8539_v24, %s7866_s3 }
 0x17f   :  { %v503_v26 = vpop.permute.xlu1 %502 }
 0x180   :  { %v8549_v31 = vmax.f32 %v445_v41, %v503_v26  ;;  %v11413_v41 = vmax.f32 %v8319_v54, 0.0  ;;  %v11415_v26 = vmax.f32 %v8337_v7, 0.0 }
 0x182   :  { %627 = vrot.lane.b32.xlu0 %v8549_v31, %s7866_s3 }
 0x183   :  { %v505_v34 = vpop.permute.xlu0 %504 }
 0x184   :  { %v8555_v46 = vmax.f32 %v11411_v36, %v505_v34  ;;  %v11416_v34 = vmax.f32 %v8347_v18, 0.0 }
 0x186   :  { %629 = vrot.lane.b32.xlu1 %v8555_v46, %s7866_s3 }
 0x187   :  { %v507_v51 = vpop.permute.xlu1 %506 }
 0x188   :  { %v8561_v9 = vmax.f32 %v11412_v4, %v507_v51  ;;  %v11417_v51 = vmax.f32 %v8359_v30, 0.0 }
 0x18a   :  { %631 = vrot.lane.b32.xlu0 %v8561_v9, %s7866_s3 }
 0x18b   :  { %v509_v39 = vpop.permute.xlu0 %508 }
 0x18c   :  { %v8567_v14 = vmax.f32 %v11413_v41, %v509_v39  ;;  %v11418_v39 = vmax.f32 %v8369_v40, 0.0 }
 0x18e   :  { %633 = vrot.lane.b32.xlu1 %v8567_v14, %s7866_s3 }
 0x18f   :  { %v511_v44 = vpop.permute.xlu1 %510 }
 0x190   :  { %v8573_v21 = vmax.f32 %v11414_v19, %v511_v44  ;;  %v11419_v44 = vmax.f32 %v8379_v50, 0.0 }
 0x192   :  { %635 = vrot.lane.b32.xlu0 %v8573_v21, %s7866_s3 }
 0x193   :  { %v513_v49 = vpop.permute.xlu0 %512 }
 0x194   :  { %v8579_v29 = vmax.f32 %v11415_v26, %v513_v49  ;;  %v11420_v49 = vmax.f32 %v8391_v0, 0.0 }
 0x196   :  { %637 = vrot.lane.b32.xlu1 %v8579_v29, %s7866_s3 }
 0x197   :  { %v515_v54 = vpop.permute.xlu1 %514 }
 0x198   :  { %v8585_v36 = vmax.f32 %v11416_v34, %v515_v54  ;;  %v11421_v54 = vmax.f32 %v8401_v25, 0.0 }
 0x19a   :  { %639 = vrot.lane.b32.xlu0 %v8585_v36, %s7866_s3 }
 0x19b   :  { %v517_v59 = vpop.permute.xlu0 %516 }
 0x19c   :  { %v8591_v4 = vmax.f32 %v11417_v51, %v517_v59  ;;  %v11422_v59 = vmax.f32 %v8411_v47, 0.0 }
 0x19e   :  { %641 = vrot.lane.b32.xlu1 %v8591_v4, %s7866_s3 }
 0x19f   :  { %v519_v7 = vpop.permute.xlu1 %518 }
 0x1a0   :  { %v8597_v41 = vmax.f32 %v11418_v39, %v519_v7  ;;  %v11423_v7 = vmax.f32 %v8423_v17, 0.0 }
 0x1a2   :  { %643 = vrot.lane.b32.xlu0 %v8597_v41, %s7866_s3 }
 0x1a3   :  { %v521_v18 = vpop.permute.xlu0 %520 }
 0x1a4   :  { %v8603_v19 = vmax.f32 %v11419_v44, %v521_v18  ;;  %v11424_v18 = vmax.f32 %v8433_v48, 0.0 }
 0x1a6   :  { %645 = vrot.lane.b32.xlu1 %v8603_v19, %s7866_s3 }
 0x1a7   :  { %v523_v30 = vpop.permute.xlu1 %522 }
 0x1a8   :  { %v8609_v26 = vmax.f32 %v11420_v49, %v523_v30  ;;  %v11425_v30 = vmax.f32 %v8443_v27, 0.0 }
 0x1aa   :  { %647 = vrot.lane.b32.xlu0 %v8609_v26, %s7866_s3 }
 0x1ab   :  { %v525_v40 = vpop.permute.xlu0 %524 }
 0x1ac   :  { %v8615_v34 = vmax.f32 %v11421_v54, %v525_v40  ;;  %v11426_v40 = vmax.f32 %v8455_v58, 0.0 }
 0x1ae   :  { %649 = vrot.lane.b32.xlu1 %v8615_v34, %s7866_s3 }
 0x1af   :  { %v527_v50 = vpop.permute.xlu0 %526 }
 0x1b0   :  { %v8621_v51 = vmax.f32 %v11422_v59, %v527_v50  ;;  %v11427_v50 = vmax.f32 %v8465_v3, 0.0 }
 0x1b2   :  { %651 = vrot.lane.b32.xlu0 %v8621_v51, %s7866_s3 }
 0x1b3   :  { %v529_v0 = vpop.permute.xlu1 %528 }
 0x1b4   :  { %v8627_v39 = vmax.f32 %v11423_v7, %v529_v0 }
 0x1b6   :  { %653 = vrot.lane.b32.xlu1 %v8627_v39, %s7866_s3 }
 0x1b7   :  { %v531_v25 = vpop.permute.xlu0 %530 }
 0x1b8   :  { %v8633_v44 = vmax.f32 %v11424_v18, %v531_v25 }
 0x1ba   :  { %655 = vrot.lane.b32.xlu0 %v8633_v44, %s7866_s3 }
 0x1bb   :  { %v533_v47 = vpop.permute.xlu1 %532 }
 0x1bc   :  { %v8639_v49 = vmax.f32 %v11425_v30, %v533_v47 }
 0x1be   :  { %657 = vrot.lane.b32.xlu1 %v8639_v49, %s7866_s3 }
 0x1bf   :  { %v535_v17 = vpop.permute.xlu0 %534 }
 0x1c0   :  { %v8645_v54 = vmax.f32 %v11426_v40, %v535_v17 }
 0x1c2   :  { %659 = vrot.lane.b32.xlu0 %v8645_v54, %s7866_s3 }
 0x1c3   :  { %v537_v48 = vpop.permute.xlu1 %536 }
 0x1c4   :  { %v8651_v59 = vmax.f32 %v11427_v50, %v537_v48  ;;  %v1015_v48 = vld [vmem:[#allocation2 + $0x4] sm:$0xf] }
 0x1c6   :  { %661 = vrot.lane.b32.xlu1 %v8651_v59, %s7866_s3 }
 0x1d8   :  { %v614_v27 = vpop.permute.xlu1 %613 }
 0x1d9   :  { %v688_v0 = vmax.f32 %v8498_v10, %v614_v27  ;;  %v1040_v10 = vld [vmem:[#allocation2] sm:$0x8] }
 0x1db   :  { %v863_v7 = vmul.f32 %v8342_v12, %v688_v0  ;;  %v6545_v0 = vcombine.low %v1040_v10, %v1015_v48 }
 0x1dc   :  { %v616_v25 = vpop.permute.xlu0 %615 }
 0x1dd   :  { %v6821_v58 = vpack.c.bf16 %v863_v7, %v863_v7  ;;  %v689_v18 = vmax.f32 %v8506_v8, %v616_v25 }
 0x1df   :  { %989 = vst.msk [vmem:[#allocation2 + $0x8] sm:$0xf] %vm64_vm4, %v6821_v58  ;;  %v864_v47 = vmul.f32 %v8334_v5, %v689_v18  ;;  %v7681_v5 = vld [vmem:[%s11352_s4 + $0x40] sm:$0xff]   ;;  %v1121_v18 = vshll.u32 %v6545_v0, 16 }
 0x1e0   :  { %v618_v30 = vpop.permute.xlu1 %617  ;;  %6919 = vmatprep.subr.bf16.mxu1 %v7681_v5 }
 0x1e1   :  { %v6822_v3 = vpack.c.bf16 %v864_v47, %v864_v47  ;;  %v690_v17 = vmax.f32 %v8512_v1, %v618_v30  ;;  %v7683_v30 = vld [vmem:[%s11352_s4 + $0x48] sm:$0xff]  }
 0x1e3   :  { %990 = vst.msk [vmem:[#allocation2 + $0xc] sm:$0xf] %vm64_vm4, %v6822_v3  ;;  %v865_v40 = vmul.f32 %v8356_v28, %v690_v17  ;;  %v7682_v28 = vld [vmem:[%s11352_s4] sm:$0xff]   ;;  %v1251_v17 = vrot.slane %v6545_v0, 1 }
 0x1e4   :  { %v620_v50 = vpop.permute.xlu0 %619  ;;  %6920 = vmatpush3.bf16.msra.mxu1 %v7682_v28 }
 0x1e5   :  { %v6823_v12 = vpack.c.bf16 %v865_v40, %v865_v40  ;;  %v691_v27 = vmax.f32 %v8518_v45, %v620_v50  ;;  %v1119_v50 = vshrl.u32 %v6545_v0, 16  ;;  %6921 = vmatprep.subr.bf16.mxu1 %v7683_v30  ;;  %v7685_v0 = vld [vmem:[%s11352_s4 + $0x50] sm:$0xff]  }
 0x1e6   :  { %v8673_v58 = vld [vmem:[#allocation2 + $0x8] sm:$0xf] }
 0x1e7   :  { %991 = vst.msk [vmem:[#allocation2 + $0x10] sm:$0xf] %vm64_vm4, %v6823_v12  ;;  %v866_v8 = vmul.f32 %v8374_v43, %v691_v27  ;;  %v1123_v27 = vrot.slane %v1121_v18, 1 }
 0x1e8   :  { %v622_v1 = vpop.permute.xlu1 %621 }
 0x1e9   :  { %v6824_v7 = vpack.c.bf16 %v866_v8, %v866_v8  ;;  %v692_v25 = vmax.f32 %v8524_v11, %v622_v1  ;;  %v7684_v11 = vld [vmem:[%s11352_s4 + $0x8] sm:$0xff]  }
 0x1ea   :  { %v1017_v45 = vld [vmem:[#allocation2 + $0xc] sm:$0xf]  ;;  %6922 = vmatpush3.bf16.msra.mxu1 %v7684_v11  ;;  %v1124_v11 = vor.u32 %v1123_v27, %v1119_v50 }
 0x1eb   :  { %992 = vst.msk [vmem:[#allocation2 + $0x14] sm:$0xf] %vm64_vm4, %v6824_v7  ;;  %v867_v43 = vmul.f32 %v8352_v22, %v692_v25  ;;  %v8678_v47 = vcombine.low %v8673_v58, %v1017_v45  ;;  %v1047_v22 = vld [vmem:[#allocation2 + $0xc] sm:$0xe]  ;;  %6923 = vmatprep.subr.bf16.mxu1 %v7685_v0 }
 0x1ec   :  { %v624_v3 = vpop.permute.xlu0 %623 }
 0x1ed   :  { %11428 = vst [vmem:[#allocation9_spill] sm:$0xff] %v8678_v47  ;;  %v6825_v40 = vpack.c.bf16 %v867_v43, %v867_v43  ;;  %v693_v48 = vmax.f32 %v8530_v16, %v624_v3  ;;  %v1437_v10 = vrot.slane %v8678_v47, 6  ;;  %v11395_v12 = vrot.slane %v8678_v47, 1  ;;  %v7686_v43 = vld [vmem:[%s11352_s4 + $0x10] sm:$0xff]  }
 0x1ee   :  { %v1126_v8 = vshll.u32 %v8678_v47, 16  ;;  %v1018_v5 = vld [vmem:[#allocation2 + $0x10] sm:$0xf]  ;;  %v11393_v1 = vshrl.u32 %v8678_v47, 16  ;;  %6924 = vmatpush3.bf16.msra.mxu1 %v7686_v43 }
 0x1ef   :  { %993 = vst.msk [vmem:[#allocation2 + $0x18] sm:$0xf] %vm64_vm4, %v6825_v40  ;;  %v868_v28 = vmul.f32 %v8366_v38, %v693_v48  ;;  %1462 = vrot.lane.b32.xlu0 %v1437_v10, %s7867_s25  ;;  %v8694_v16 = vcombine.low %v1047_v22, %v1018_v5  ;;  %v1253_v3 = vsel %vm1250_vm5, %v1251_v17, %v11395_v12  ;;  %v1042_v22 = vld [vmem:[#allocation2 + $0x4] sm:$0x8] }
 0x1f0   :  { %v626_v7 = vpop.permute.xlu1 %625  ;;  %v1372_v25 = vrot.slane %v11393_v1, 5  ;;  %v1373_v18 = vrot.slane %v1126_v8, 6  ;;  %v1128_v40 = vrot.slane %v1126_v8, 1  ;;  %v8714_v0 = vcombine.low %v1017_v45, %v1018_v5 }
 0x1f1   :  { %v6826_v38 = vpack.c.bf16 %v868_v28, %v868_v28  ;;  %v694_v30 = vmax.f32 %v8539_v24, %v626_v7  ;;  %v1694_v6 = vrot.slane %v8694_v16, 7  ;;  %v6547_v7 = vcombine.low %v1042_v22, %v8673_v58 }
 0x1f2   :  { %v1019_v48 = vld [vmem:[#allocation2 + $0x14] sm:$0xf]  ;;  %v8716_v17 = vor.u32 %v1373_v18, %v1372_v25  ;;  %v7689_v25 = vld [vmem:[%s11352_s4 + $0x18] sm:$0xff]   ;;  %v1493_v18 = vrot.slane %v8714_v0, 6 }
 0x1f3   :  { %994 = vst.msk [vmem:[#allocation2 + $0x1c] sm:$0xf] %vm64_vm4, %v6826_v38  ;;  %v869_v1 = vmul.f32 %v8388_v61, %v694_v30  ;;  %1276 = vrot.lane.b32.xlu0 %v1253_v3, %s7866_s3  ;;  %v8712_v24 = vcombine.low %v1018_v5, %v1019_v48  ;;  %v1129_v61 = vsel %vm1117_vm6, %v1124_v11, %v1128_v40  ;;  %v1960_v30 = vshrl.u32 %v1694_v6, 16 }
 0x1f4   :  { %v628_v28 = vpop.permute.xlu0 %627  ;;  %11429 = vst [vmem:[#allocation10_spill] sm:$0xff] %v8716_v17  ;;  %v1549_v3 = vshrl.u32 %v8694_v16, 16  ;;  %v1963_v11 = vshll.u32 %v1694_v6, 16  ;;  %v11432_v17 = vrot.slane %v8714_v0, 1 }
 0x1f5   :  { %v6827_v50 = vpack.c.bf16 %v869_v1, %v869_v1  ;;  %v695_v27 = vmax.f32 %v8549_v31, %v628_v28  ;;  %v11394_v8 = vrot.slane %v8712_v24, 6  ;;  %v11396_v38 = vshll.u32 %v8712_v24, 16  ;;  %v7688_v1 = vld [vmem:[%s11352_s4 + $0x58] sm:$0xff]  }
 0x1f6   :  { %v1020_v43 = vld [vmem:[#allocation2 + $0x18] sm:$0xf]  ;;  %v11399_v58 = vrot.slane %v8712_v24, 1  ;;  %6925 = vmatprep.subr.bf16.mxu1 %v7688_v1 }
 0x1f7   :  { %995 = vst.msk [vmem:[#allocation2 + $0x20] sm:$0xf] %vm64_vm4, %v6827_v50  ;;  %v870_v45 = vmul.f32 %v8384_v53, %v695_v27  ;;  %1221 = vrot.lane.b32.xlu0 %v1129_v61, %s7867_s25  ;;  %v8727_v5 = vcombine.low %v1019_v48, %v1020_v43  ;;  %v1439_v31 = vsel %vm1436_vm7, %v1437_v10, %v11394_v8  ;;  %v1552_v10 = vshll.u32 %v8694_v16, 16  ;;  %v7690_v27 = vld [vmem:[%s11352_s4 + $0x60] sm:$0xff]  }
 0x1f8   :  { %v630_v53 = vpop.permute.xlu1 %629  ;;  %1464 = vrot.lane.b32.xlu1 %v1439_v31, %s7867_s25  ;;  %v1319_v61 = vrot.slane %v6547_v7, 1  ;;  %v11430_v31 = vshrl.u32 %v8678_v47, 16  ;;  %v8752_v12 = vrot.slane %v11396_v38, 1  ;;  %v1551_v16 = vrot.slane %v1549_v3, 6  ;;  %6926 = vmatpush3.bf16.msra.mxu1 %v7689_v25 }
 0x1f9   :  { %v6828_v48 = vpack.c.bf16 %v870_v45, %v870_v45  ;;  %v696_v22 = vmax.f32 %v8555_v46, %v630_v53  ;;  %v1695_v50 = vrot.slane %v8727_v5, 7  ;;  %v7691_v46 = vld [vmem:[%s11352_s4 + $0x20] sm:$0xff]   ;;  %v1962_v3 = vrot.slane %v1960_v30, 2  ;;  %6927 = vmatprep.subr.bf16.mxu1 %v7690_v27 }
 0x1fa   :  { %v1132_v8 = vor.u32 %v11430_v31, %v1128_v40  ;;  %v11431_v40 = vrot.slane %v8678_v47, 1  ;;  %v1021_v25 = vld [vmem:[#allocation2 + $0x1c] sm:$0xf]  ;;  %v1965_v31 = vrot.slane %v1963_v11, 3  ;;  %v1554_v28 = vrot.slane %v1552_v10, 7 }
 0x1fb   :  { %996 = vst.msk [vmem:[#allocation2 + $0x24] sm:$0xf] %vm64_vm4, %v6828_v48  ;;  %v871_v45 = vmul.f32 %v8406_v32, %v696_v22  ;;  %1518 = vrot.lane.b32.xlu0 %v1493_v18, %s7866_s3  ;;  %v1696_v1 = vsel %vm1693_vm8, %v1694_v6, %v1695_v50  ;;  %v1321_v47 = vsel %vm1250_vm5, %v1319_v61, %v11432_v17  ;;  %v1557_v10 = vshrl.u32 %v8727_v5, 16 }
 0x1fc   :  { %v1255_v7 = vsel %vm1250_vm5, %v11431_v40, %v11399_v58  ;;  %v632_v53 = vpop.permute.xlu0 %631  ;;  %v1968_v38 = vshrl.u32 %v1696_v1, 16  ;;  %v1971_v48 = vshll.u32 %v1696_v1, 16  ;;  %v1494_v40 = vrot.slane %v8727_v5, 6  ;;  %6928 = vmatpush3.bf16.msra.mxu1 %v7691_v46 }
 0x1fd   :  { %1278 = vrot.lane.b32.xlu1 %v1255_v7, %s7866_s3  ;;  %v6829_v32 = vpack.c.bf16 %v871_v45, %v871_v45  ;;  %v697_v22 = vmax.f32 %v8561_v9, %v632_v53  ;;  %v1137_v6 = vsel %vm1117_vm6, %v1132_v8, %v8752_v12  ;;  %v8776_v11 = vcombine.low %v1020_v43, %v1021_v25 }
 0x1fe   :  { %v1970_v30 = vrot.slane %v1968_v38, 2  ;;  %v1973_v58 = vrot.slane %v1971_v48, 3  ;;  %v8774_v7 = vld [vmem:[#allocation2 + $0x20] sm:$0xf]  ;;  %v1560_v8 = vshll.u32 %v8727_v5, 16  ;;  %v1966_v27 = vor.u32 %v1965_v31, %v1962_v3 }
 0x1ff   :  { %997 = vst.msk [vmem:[#allocation2 + $0x28] sm:$0xf] %vm64_vm4, %v6829_v32  ;;  %v872_v9 = vmul.f32 %v8398_v20, %v697_v22  ;;  %1344 = vrot.lane.b32.xlu0 %v1321_v47, %s7865_s28  ;;  %v8782_v17 = vcombine.low %v1021_v25, %v8774_v7  ;;  %v8787_v61 = vor.u32 %v1554_v28, %v1551_v16  ;;  %v1322_v46 = vrot.slane %v8727_v5, 1  ;;  %v7693_v20 = vld [vmem:[%s11352_s4 + $0x68] sm:$0xff]  }
 0x200   :  { %v634_v38 = vpop.permute.xlu1 %633  ;;  %v1974_v43 = vor.u32 %v1973_v58, %v1970_v30  ;;  %v1495_v1 = vsel %vm1436_vm7, %v1493_v18, %v1494_v40  ;;  %v7694_v58 = vld [vmem:[%s11352_s4 + $0x28] sm:$0xff]   ;;  %v1440_v16 = vrot.slane %v8776_v11, 6  ;;  %6929 = vmatprep.subr.bf16.mxu1 %v7693_v20  ;;  %v1559_v48 = vrot.slane %v1557_v10, 6 }
 0x201   :  { %1223 = vrot.lane.b32.xlu1 %v1137_v6, %s7867_s25  ;;  %v6830_v47 = vpack.c.bf16 %v872_v9, %v872_v9  ;;  %v698_v45 = vmax.f32 %v8567_v14, %v634_v38  ;;  %v1697_v25 = vrot.slane %v8782_v17, 7  ;;  %v1566_v3 = vshrl.u32 %v8782_v17, 16  ;;  %v7695_v14 = vld [vmem:[%s11352_s4 + $0x70] sm:$0xff]   ;;  %6930 = vmatpush3.bf16.msra.mxu1 %v7694_v58 }
 0x202   :  { %v1975_v28 = vsel %vm1928_vm9, %v1966_v27, %v1974_v43  ;;  %v1569_v53 = vshll.u32 %v8782_v17, 16  ;;  %v1562_v32 = vrot.slane %v1560_v8, 7  ;;  %v11433_v6 = vmov 0.0   ;;  %6931 = vmatprep.subr.bf16.mxu1 %v7695_v14  ;;  %v7699_v14 = vld [vmem:[%s11352_s4 + $0x78] sm:$0xff]  }
 0x203   :  { %998 = vst.msk [vmem:[#allocation2 + $0x2c] sm:$0xf] %vm64_vm4, %v6830_v47  ;;  %v873_v18 = vmul.f32 %v8420_v15, %v698_v45  ;;  %7377 = vmatmul.mubr.msk.bf16.vlgmr.msra.gmra.mrb[52].mxu0 %vm1719_vm10, %v1975_v28  ;;  %1664 = vrot.lane.b32.xlu0 %v8787_v61, %s7865_s28  ;;  %v1698_v31 = vsel %vm1693_vm8, %v1695_v50, %v1697_v25  ;;  %v1568_v27 = vrot.slane %v1566_v3, 6  ;;  %v1023_v47 = vld [vmem:[#allocation2 + $0x24] sm:$0xf]  ;;  %v7697_v50 = vld [vmem:[%s11352_s4 + $0x30] sm:$0xff]  }
 0x204   :  { %v636_v22 = vpop.permute.xlu0 %635  ;;  %7380 = vmatprep.mubr.msk.bf16.mxu0 %vm7862_vm0, %v11433_v6  ;;  %v1993_v30 = vshrl.u32 %v1698_v31, 16  ;;  %v1996_v9 = vshll.u32 %v1698_v31, 16  ;;  %v1571_v20 = vrot.slane %v1569_v53, 7  ;;  %v11434_v10 = vrot.slane %v8712_v24, 6 }
 0x205   :  { %1520 = vrot.lane.b32.xlu1 %v1495_v1, %s7866_s3  ;;  %v6831_v38 = vpack.c.bf16 %v873_v18, %v873_v18  ;;  %v699_v15 = vmax.f32 %v8573_v21, %v636_v22  ;;  %v1496_v28 = vrot.slane %v8782_v17, 6  ;;  %v11435_v58 = vrot.slane %v8714_v0, 1  ;;  %6932 = vmatpush3.bf16.msra.mxu1 %v7697_v50 }
 0x206   :  { %v1441_v8 = vsel %vm1436_vm7, %v11434_v10, %v1440_v16  ;;  %v1995_v45 = vrot.slane %v1993_v30, 2  ;;  %v1998_v1 = vrot.slane %v1996_v9, 3  ;;  %v8827_v18 = vld [vmem:[#allocation2 + $0x28] sm:$0xf]  ;;  %v1563_v53 = vor.u32 %v1562_v32, %v1559_v48  ;;  %v7700_v32 = vld [vmem:[%s11352_s4 + $0x38] sm:$0xff]   ;;  %6933 = vmatprep.subr.bf16.mxu1 %v7699_v14 }
 0x207   :  { %999 = vst.msk [vmem:[#allocation2 + $0x30] sm:$0xf] %vm64_vm4, %v6831_v38  ;;  %v874_v21 = vmul.f32 %v8416_v52, %v699_v15  ;;  %1466 = vrot.lane.b32.xlu0 %v1441_v8, %s7867_s25  ;;  %v1323_v3 = vsel %vm1250_vm5, %v11435_v58, %v1322_v46  ;;  %v8838_v31 = vcombine.low %v1023_v47, %v8827_v18 }
 0x208   :  { %v638_v22 = vpop.permute.xlu1 %637  ;;  %v1999_v52 = vor.u32 %v1998_v1, %v1995_v45  ;;  %v8845_v30 = vcombine.low %v8774_v7, %v1023_v47  ;;  %v8848_v38 = vor.u32 %v1571_v20, %v1568_v27  ;;  %v1497_v7 = vsel %vm1436_vm7, %v1494_v40, %v1496_v28 }
 0x209   :  { %1346 = vrot.lane.b32.xlu1 %v1323_v3, %s7865_s28  ;;  %v6832_v9 = vpack.c.bf16 %v874_v21, %v874_v21  ;;  %v700_v0 = vmax.f32 %v8579_v29, %v638_v22  ;;  %v1699_v48 = vrot.slane %v8838_v31, 7  ;;  %v1256_v47 = vrot.slane %v8776_v11, 1  ;;  %6934 = vmatpush3.bf16.msra.mxu1 %v7700_v32 }
 0x20a   :  { %v2000_v15 = vsel %vm1928_vm9, %v1974_v43, %v1999_v52  ;;  %v1564_v43 = vsel %vm1547_vm11, %v8787_v61, %v1563_v53  ;;  %v1142_v20 = vshll.u32 %v8776_v11, 16  ;;  %v1573_v61 = vsel %vm1547_vm11, %v1563_v53, %v8848_v38  ;;  %v1025_v1 = vld [vmem:[#allocation2 + $0x2c] sm:$0xf]  ;;  %7428 = vmatprep.subr.bf16.mxu1 %v11433_v6 }
 0x20b   :  { %1000 = vst.msk [vmem:[#allocation2 + $0x34] sm:$0xf] %vm64_vm4, %v6832_v9  ;;  %v875_v29 = vmul.f32 %v8438_v2, %v700_v0  ;;  %7381 = vmatmul.mubr.msk.bf16.gmra.mrb[56].mxu0 %vm1719_vm10, %v2000_v15  ;;  %1522 = vrot.lane.b32.xlu0 %v1497_v7, %s7866_s3  ;;  %v1700_v27 = vsel %vm1693_vm8, %v1697_v25, %v1699_v48  ;;  %v1138_v2 = vshrl.u32 %v8712_v24, 16  ;;  %v1442_v25 = vrot.slane %v8845_v30, 6 }
 0x20c   :  { %v640_v50 = vpop.permute.xlu0 %639  ;;  %7384 = vmatprep.mubr.msk.bf16.mxu0 %vm7862_vm0, %v11433_v6  ;;  %v2018_v40 = vshrl.u32 %v1700_v27, 16  ;;  %v2021_v10 = vshll.u32 %v1700_v27, 16  ;;  %v1575_v14 = vshrl.u32 %v8838_v31, 16  ;;  %v1578_v22 = vshll.u32 %v8838_v31, 16 }
 0x20d   :  { %1666 = vrot.lane.b32.xlu1 %v1564_v43, %s7865_s28  ;;  %v6833_v8 = vpack.c.bf16 %v875_v29, %v875_v29  ;;  %v701_v45 = vmax.f32 %v8585_v36, %v640_v50  ;;  %v11436_v53 = vrot.slane %v8712_v24, 1  ;;  %v1144_v0 = vrot.slane %v1142_v20, 1 }
 0x20e   :  { %v2020_v21 = vrot.slane %v2018_v40, 2  ;;  %v2023_v58 = vrot.slane %v2021_v10, 3  ;;  %v8877_v3 = vld [vmem:[#allocation2 + $0x30] sm:$0xf]  ;;  %v1498_v27 = vrot.slane %v8838_v31, 6  ;;  %v1443_v10 = vsel %vm1436_vm7, %v1440_v16, %v1442_v25 }
 0x20f   :  { %1001 = vst.msk [vmem:[#allocation2 + $0x38] sm:$0xf] %vm64_vm4, %v6833_v8  ;;  %v876_v36 = vmul.f32 %v8430_v35, %v701_v45  ;;  %1668 = vrot.lane.b32.xlu0 %v1573_v61, %s7865_s28  ;;  %v1257_v9 = vsel %vm1250_vm5, %v11436_v53, %v1256_v47  ;;  %v8893_v32 = vcombine.low %v1025_v1, %v8877_v3  ;;  %v1577_v8 = vrot.slane %v1575_v14, 6 }
 0x210   :  { %v642_v15 = vpop.permute.xlu1 %641  ;;  %v2024_v7 = vor.u32 %v2023_v58, %v2020_v21  ;;  %v1140_v35 = vor.u32 %v1138_v2, %v8752_v12  ;;  %v1580_v45 = vrot.slane %v1578_v22, 7  ;;  %v1499_v22 = vsel %vm1436_vm7, %v1496_v28, %v1498_v27 }
 0x211   :  { %1280 = vrot.lane.b32.xlu1 %v1257_v9, %s7866_s3  ;;  %v6834_v29 = vpack.c.bf16 %v876_v36, %v876_v36  ;;  %v702_v43 = vmax.f32 %v8591_v4, %v642_v15  ;;  %v1701_v50 = vrot.slane %v8893_v32, 7  ;;  %v1258_v36 = vrot.slane %v8845_v30, 1 }
 0x212   :  { %v2025_v40 = vsel %vm1928_vm9, %v1999_v52, %v2024_v7  ;;  %v1145_v4 = vsel %vm1117_vm6, %v1140_v35, %v1144_v0  ;;  %v1324_v52 = vrot.slane %v8782_v17, 1  ;;  %v8925_v9 = vor.u32 %v1580_v45, %v1577_v8  ;;  %v1027_v35 = vld [vmem:[#allocation2 + $0x34] sm:$0xf] }
 0x213   :  { %1002 = vst.msk [vmem:[#allocation2 + $0x3c] sm:$0xf] %vm64_vm4, %v6834_v29  ;;  %v877_v12 = vmul.f32 %v8452_v23, %v702_v43  ;;  %7385 = vmatmul.mubr.msk.bf16.gmra.mrb[60].mxu0 %vm1719_vm10, %v2025_v40  ;;  %1468 = vrot.lane.b32.xlu0 %v1443_v10, %s7867_s25  ;;  %v1702_v61 = vsel %vm1693_vm8, %v1699_v48, %v1701_v50  ;;  %v1150_v43 = vshll.u32 %v8845_v30, 16  ;;  %v1146_v10 = vshrl.u32 %v8776_v11, 16 }
 0x214   :  { %v644_v21 = vpop.permute.xlu0 %643  ;;  %7388 = vmatprep.mubr.msk.bf16.mxu0 %vm7862_vm0, %v11433_v6  ;;  %v2043_v16 = vshrl.u32 %v1702_v61, 16  ;;  %v2046_v58 = vshll.u32 %v1702_v61, 16  ;;  %v8928_v15 = vcombine.low %v8827_v18, %v1025_v1  ;;  %v1325_v28 = vsel %vm1250_vm5, %v1322_v46, %v1324_v52 }
 0x215   :  { %1225 = vrot.lane.b32.xlu1 %v1145_v4, %s7867_s25  ;;  %v6835_v14 = vpack.c.bf16 %v877_v12, %v877_v12  ;;  %v703_v23 = vmax.f32 %v8597_v41, %v644_v21  ;;  %v1587_v46 = vshll.u32 %v8893_v32, 16  ;;  %v1582_v4 = vsel %vm1547_vm11, %v8848_v38, %v8925_v9 }
 0x216   :  { %v2045_v48 = vrot.slane %v2043_v16, 2  ;;  %v2048_v53 = vrot.slane %v2046_v58, 3  ;;  %v8930_v29 = vld [vmem:[#allocation2 + $0x38] sm:$0xf]  ;;  %v1259_v61 = vsel %vm1250_vm5, %v1256_v47, %v1258_v36  ;;  %v1444_v21 = vrot.slane %v8928_v15, 6 }
 0x217   :  { %1003 = vst.msk [vmem:[#allocation2 + $0x40] sm:$0xf] %vm64_vm4, %v6835_v14  ;;  %v878_v41 = vmul.f32 %v8448_v42, %v703_v23  ;;  %1524 = vrot.lane.b32.xlu0 %v1499_v22, %s7866_s3  ;;  %v8942_v18 = vcombine.low %v1027_v35, %v8930_v29  ;;  %v1584_v42 = vshrl.u32 %v8893_v32, 16  ;;  %v8968_v38 = vrot.slane %v1150_v43, 1 }
 0x218   :  { %v646_v1 = vpop.permute.xlu1 %645  ;;  %v2049_v40 = vor.u32 %v2048_v53, %v2045_v48  ;;  %v1500_v14 = vrot.slane %v8893_v32, 6  ;;  %v1326_v23 = vrot.slane %v8838_v31, 1  ;;  %v1589_v53 = vrot.slane %v1587_v46, 7 }
 0x219   :  { %1348 = vrot.lane.b32.xlu1 %v1325_v28, %s7865_s28  ;;  %v6836_v8 = vpack.c.bf16 %v878_v41, %v878_v41  ;;  %v704_v45 = vmax.f32 %v8603_v19, %v646_v1  ;;  %v1703_v5 = vrot.slane %v8942_v18, 7  ;;  %v1586_v48 = vrot.slane %v1584_v42, 6 }
 0x21a   :  { %v2050_v12 = vsel %vm1928_vm9, %v2024_v7, %v2049_v40  ;;  %v1148_v7 = vor.u32 %v1146_v10, %v1144_v0  ;;  %v8982_v1 = vld [vmem:[#allocation2 + $0x3c] sm:$0xf] }
 0x21b   :  { %1004 = vst.msk [vmem:[#allocation2 + $0x44] sm:$0xf] %vm64_vm4, %v6836_v8  ;;  %v879_v19 = vmul.f32 %v8470_v33, %v704_v45  ;;  %7389 = vmatmul.mubr.msk.bf16.gmra.mrb[64].mxu0 %vm1719_vm10, %v2050_v12  ;;  %1670 = vrot.lane.b32.xlu0 %v1582_v4, %s7865_s28  ;;  %v1704_v16 = vsel %vm1693_vm8, %v1701_v50, %v1703_v5 }
 0x21c   :  { %v648_v47 = vpop.permute.xlu0 %647  ;;  %7392 = vmatprep.mubr.msk.bf16.mxu0 %vm7862_vm0, %v11433_v6  ;;  %v2068_v33 = vshrl.u32 %v1704_v16, 16  ;;  %v2071_v58 = vshll.u32 %v1704_v16, 16  ;;  %v1445_v50 = vsel %vm1436_vm7, %v1442_v25, %v1444_v21  ;;  %v8997_v12 = vcombine.low %v8877_v3, %v1027_v35 }
 0x21d   :  { %1282 = vrot.lane.b32.xlu1 %v1259_v61, %s7866_s3  ;;  %v6837_v22 = vpack.c.bf16 %v879_v19, %v879_v19  ;;  %v705_v0 = vmax.f32 %v8609_v26, %v648_v47  ;;  %v1153_v26 = vsel %vm1117_vm6, %v1148_v7, %v8968_v38  ;;  %v1501_v7 = vsel %vm1436_vm7, %v1498_v27, %v1500_v14 }
 0x21e   :  { %v2070_v41 = vrot.slane %v2068_v33, 2  ;;  %v2073_v28 = vrot.slane %v2071_v58, 3  ;;  %v8984_v8 = vld [vmem:[#allocation2 + $0x40] sm:$0xf]  ;;  %v1327_v3 = vsel %vm1250_vm5, %v1324_v52, %v1326_v23  ;;  %v9012_v35 = vor.u32 %v1589_v53, %v1586_v48 }
 0x21f   :  { %1005 = vst.msk [vmem:[#allocation2 + $0x48] sm:$0xf] %vm64_vm4, %v6837_v22  ;;  %v880_v45 = vmul.f32 %v8462_v63, %v705_v0  ;;  %1470 = vrot.lane.b32.xlu0 %v1445_v50, %s7867_s25  ;;  %v8993_v42 = vcombine.low %v8982_v1, %v8984_v8  ;;  %v1158_v16 = vshll.u32 %v8928_v15, 16  ;;  %v1154_v33 = vshrl.u32 %v8845_v30, 16 }
 0x220   :  { %v650_v25 = vpop.permute.xlu1 %649  ;;  %v2074_v46 = vor.u32 %v2073_v28, %v2070_v41  ;;  %v1593_v0 = vshrl.u32 %v8942_v18, 16  ;;  %v1591_v48 = vsel %vm1547_vm11, %v8925_v9, %v9012_v35 }
 0x221   :  { %1227 = vrot.lane.b32.xlu1 %v1153_v26, %s7867_s25  ;;  %v6838_v4 = vpack.c.bf16 %v880_v45, %v880_v45  ;;  %v706_v61 = vmax.f32 %v8615_v34, %v650_v25  ;;  %v1705_v63 = vrot.slane %v8993_v42, 7  ;;  %v1160_v9 = vrot.slane %v1158_v16, 1 }
 0x222   :  { %v2075_v19 = vsel %vm1928_vm9, %v2049_v40, %v2074_v46  ;;  %v1260_v40 = vrot.slane %v8928_v15, 1  ;;  %v9032_v41 = vld [vmem:[#allocation2 + $0x44] sm:$0xf] }
 0x223   :  { %1006 = vst.msk [vmem:[#allocation2 + $0x4c] sm:$0xf] %vm64_vm4, %v6838_v4  ;;  %v881_v34 = vmul.f32 %v8478_v60, %v706_v61  ;;  %7393 = vmatmul.mubr.msk.bf16.gmra.mrb[68].mxu0 %vm1719_vm10, %v2075_v19  ;;  %1526 = vrot.lane.b32.xlu0 %v1501_v7, %s7866_s3  ;;  %v1706_v27 = vsel %vm1693_vm8, %v1703_v5, %v1705_v63  ;;  %v1446_v60 = vrot.slane %v8997_v12, 6  ;;  %v1596_v5 = vshll.u32 %v8942_v18, 16 }
 0x224   :  { %v652_v47 = vpop.permute.xlu0 %651  ;;  %7396 = vmatprep.mubr.msk.bf16.mxu0 %vm7862_vm0, %v11433_v6  ;;  %v2093_v17 = vshrl.u32 %v1706_v27, 16  ;;  %v2096_v52 = vshll.u32 %v1706_v27, 16  ;;  %v1595_v27 = vrot.slane %v1593_v0, 6 }
 0x225   :  { %1350 = vrot.lane.b32.xlu1 %v1327_v3, %s7865_s28  ;;  %v6839_v58 = vpack.c.bf16 %v881_v34, %v881_v34  ;;  %v707_v22 = vmax.f32 %v8621_v51, %v652_v47  ;;  %v1261_v51 = vsel %vm1250_vm5, %v1258_v36, %v1260_v40  ;;  %v1502_v36 = vrot.slane %v8942_v18, 6 }
 0x226   :  { %v2095_v53 = vrot.slane %v2093_v17, 2  ;;  %v2098_v50 = vrot.slane %v2096_v52, 3  ;;  %v9034_v28 = vld [vmem:[#allocation2 + $0x48] sm:$0xf]  ;;  %v1447_v34 = vsel %vm1436_vm7, %v1444_v21, %v1446_v60  ;;  %v1598_v47 = vrot.slane %v1596_v5, 7 }
 0x227   :  { %1007 = vst.msk [vmem:[#allocation2 + $0x50] sm:$0xf] %vm64_vm4, %v6839_v58  ;;  %v882_v45 = vmul.f32 %v8476_v37, %v707_v22  ;;  %1672 = vrot.lane.b32.xlu0 %v1591_v48, %s7865_s28  ;;  %v9048_v26 = vcombine.low %v9032_v41, %v9034_v28  ;;  %v1156_v37 = vor.u32 %v1154_v33, %v8968_v38  ;;  %v1262_v5 = vrot.slane %v8997_v12, 1 }
 0x228   :  { %v654_v25 = vpop.permute.xlu1 %653  ;;  %v2099_v4 = vor.u32 %v2098_v50, %v2095_v53  ;;  %v1503_v0 = vsel %vm1436_vm7, %v1500_v14, %v1502_v36  ;;  %v9080_v53 = vor.u32 %v1598_v47, %v1595_v27  ;;  %v9084_v50 = vcombine.low %v8930_v29, %v8982_v1 }
 0x229   :  { %1284 = vrot.lane.b32.xlu1 %v1261_v51, %s7866_s3  ;;  %v6840_v61 = vpack.c.bf16 %v882_v45, %v882_v45  ;;  %v708_v19 = vmax.f32 %v8627_v39, %v654_v25  ;;  %v1707_v7 = vrot.slane %v9048_v26, 7  ;;  %v1161_v39 = vsel %vm1117_vm6, %v1156_v37, %v1160_v9 }
 0x22a   :  { %v2100_v3 = vsel %vm1928_vm9, %v2074_v46, %v2099_v4  ;;  %v1328_v46 = vrot.slane %v8893_v32, 1  ;;  %v9086_v45 = vld [vmem:[#allocation2 + $0x4c] sm:$0xf]  ;;  %v1166_v25 = vshll.u32 %v8997_v12, 16  ;;  %v1600_v27 = vsel %vm1547_vm11, %v9012_v35, %v9080_v53 }
 0x22b   :  { %1008 = vst.msk [vmem:[#allocation2 + $0x54] sm:$0xf] %vm64_vm4, %v6840_v61  ;;  %v883_v38 = vmul.f32 %v8490_v62, %v708_v19  ;;  %7397 = vmatmul.mubr.msk.bf16.gmra.mrb[72].mxu0 %vm1719_vm10, %v2100_v3  ;;  %1472 = vrot.lane.b32.xlu0 %v1447_v34, %s7867_s25  ;;  %v1708_v17 = vsel %vm1693_vm8, %v1705_v63, %v1707_v7  ;;  %v1602_v61 = vshrl.u32 %v8993_v42, 16 }
 0x22c   :  { %v656_v52 = vpop.permute.xlu0 %655  ;;  %7400 = vmatprep.mubr.msk.bf16.mxu0 %vm7862_vm0, %v11433_v6  ;;  %v2118_v21 = vshrl.u32 %v1708_v17, 16  ;;  %v2121_v58 = vshll.u32 %v1708_v17, 16  ;;  %v1329_v14 = vsel %vm1250_vm5, %v1326_v23, %v1328_v46  ;;  %v1605_v23 = vshll.u32 %v8993_v42, 16 }
 0x22d   :  { %1229 = vrot.lane.b32.xlu1 %v1161_v39, %s7867_s25  ;;  %v6841_v22 = vpack.c.bf16 %v883_v38, %v883_v38  ;;  %v709_v62 = vmax.f32 %v8633_v44, %v656_v52  ;;  %v1263_v47 = vsel %vm1250_vm5, %v1260_v40, %v1262_v5  ;;  %v1448_v38 = vrot.slane %v9084_v50, 6 }
 0x22e   :  { %v2120_v63 = vrot.slane %v2118_v21, 2  ;;  %v2123_v48 = vrot.slane %v2121_v58, 3  ;;  %v9088_v51 = vld [vmem:[#allocation2 + $0x50] sm:$0xf]  ;;  %v9127_v35 = vrot.slane %v1166_v25, 1  ;;  %v1504_v52 = vrot.slane %v8993_v42, 6 }
 0x22f   :  { %1009 = vst.msk [vmem:[#allocation2 + $0x58] sm:$0xf] %vm64_vm4, %v6841_v22  ;;  %v884_v44 = vmul.f32 %v8480_v13, %v709_v62  ;;  %1528 = vrot.lane.b32.xlu0 %v1503_v0, %s7866_s3  ;;  %v9101_v29 = vcombine.low %v9086_v45, %v9088_v51  ;;  %v1162_v13 = vshrl.u32 %v8928_v15, 16  ;;  %v1330_v21 = vrot.slane %v8942_v18, 1  ;;  %v11438_v18 = vld [vmem:[#allocation10_spill] sm:$0xff] }
 0x230   :  { %v658_v1 = vpop.permute.xlu1 %657  ;;  %v2124_v37 = vor.u32 %v2123_v48, %v2120_v63  ;;  %v1604_v22 = vrot.slane %v1602_v61, 6  ;;  %v1607_v62 = vrot.slane %v1605_v23, 7 }
 0x231   :  { %1352 = vrot.lane.b32.xlu1 %v1329_v14, %s7865_s28  ;;  %v6842_v19 = vpack.c.bf16 %v884_v44, %v884_v44  ;;  %v710_v3 = vmax.f32 %v8639_v49, %v658_v1  ;;  %v1709_v31 = vrot.slane %v9101_v29, 7 }
 0x232   :  { %v2125_v34 = vsel %vm1928_vm9, %v2099_v4, %v2124_v37  ;;  %v1164_v4 = vor.u32 %v1162_v13, %v1160_v9  ;;  %v9141_v48 = vld [vmem:[#allocation2 + $0x54] sm:$0xf] }
 0x233   :  { %1010 = vst.msk [vmem:[#allocation2 + $0x5c] sm:$0xf] %vm64_vm4, %v6842_v19  ;;  %v885_v49 = vmul.f32 %v8494_v55, %v710_v3  ;;  %7401 = vmatmul.mubr.msk.bf16.gmra.mrb[76].mxu0 %vm1719_vm10, %v2125_v34  ;;  %1674 = vrot.lane.b32.xlu0 %v1600_v27, %s7865_s28  ;;  %v1710_v39 = vsel %vm1693_vm8, %v1707_v7, %v1709_v31 }
 0x234   :  { %v660_v40 = vpop.permute.xlu0 %659  ;;  %7404 = vmatprep.mubr.msk.bf16.mxu0 %vm7862_vm0, %v11433_v6  ;;  %v2143_v55 = vshrl.u32 %v1710_v39, 16  ;;  %v2146_v17 = vshll.u32 %v1710_v39, 16  ;;  %v1449_v7 = vsel %vm1436_vm7, %v1446_v60, %v1448_v38  ;;  %v1505_v27 = vsel %vm1436_vm7, %v1502_v36, %v1504_v52 }
 0x235   :  { %1286 = vrot.lane.b32.xlu1 %v1263_v47, %s7866_s3  ;;  %v6843_v58 = vpack.c.bf16 %v885_v49, %v885_v49  ;;  %v711_v9 = vmax.f32 %v8645_v54, %v660_v40  ;;  %v1169_v54 = vsel %vm1117_vm6, %v1164_v4, %v9127_v35  ;;  %v9172_v47 = vor.u32 %v1607_v62, %v1604_v22  ;;  %v9184_v49 = vld [vmem:[#allocation2 + $0x6c] sm:$0xf] }
 0x236   :  { %v2145_v0 = vrot.slane %v2143_v55, 2  ;;  %v2148_v63 = vrot.slane %v2146_v17, 3  ;;  %v9143_v44 = vld [vmem:[#allocation2 + $0x58] sm:$0xf]  ;;  %v1611_v39 = vshrl.u32 %v9048_v26, 16  ;;  %v1614_v40 = vshll.u32 %v9048_v26, 16 }
 0x237   :  { %1011 = vst.msk [vmem:[#allocation2 + $0x60] sm:$0xf] %vm64_vm4, %v6843_v58  ;;  %v886_v14 = vmul.f32 %v8492_v57, %v711_v9  ;;  %1474 = vrot.lane.b32.xlu0 %v1449_v7, %s7867_s25  ;;  %v9152_v1 = vcombine.low %v9141_v48, %v9143_v44  ;;  %v9159_v57 = vcombine.low %v8984_v8, %v9032_v41  ;;  %v1264_v41 = vrot.slane %v9084_v50, 1  ;;  %v1048_v55 = vld [vmem:[#allocation2 + $0x70] sm:$0x3] }
 0x238   :  { %v662_v60 = vpop.permute.xlu1 %661  ;;  %v2149_v61 = vor.u32 %v2148_v63, %v2145_v0  ;;  %v1170_v7 = vshrl.u32 %v8997_v12, 16  ;;  %v11437_v63 = vshll.u32 %v8712_v24, 16 }
 0x239   :  { %1231 = vrot.lane.b32.xlu1 %v1169_v54, %s7867_s25  ;;  %v6844_v19 = vpack.c.bf16 %v886_v14, %v886_v14  ;;  %v712_v3 = vmax.f32 %v8651_v59, %v662_v60  ;;  %v1711_v23 = vrot.slane %v9152_v1, 7  ;;  %v1331_v59 = vsel %vm1250_vm5, %v1328_v46, %v1330_v21 }
 0x23a   :  { %v2150_v34 = vsel %vm1928_vm9, %v2124_v37, %v2149_v61  ;;  %v11401_v37 = vshll.u32 %v9084_v50, 16  ;;  %v1450_v4 = vrot.slane %v9159_v57, 6  ;;  %v9192_v9 = vld [vmem:[#allocation2 + $0x5c] sm:$0xf]  ;;  %v1265_v62 = vsel %vm1250_vm5, %v1262_v5, %v1264_v41 }
 0x23b   :  { %1012 = vst.msk [vmem:[#allocation2 + $0x64] sm:$0xf] %vm64_vm4, %v6844_v19  ;;  %v887_v8 = vmul.f32 %v8502_v56, %v712_v3  ;;  %7405 = vmatmul.mubr.msk.bf16.gmra.mrb[80].mxu0 %vm1719_vm10, %v2150_v34  ;;  %1530 = vrot.lane.b32.xlu0 %v1505_v27, %s7866_s3  ;;  %v1712_v36 = vsel %vm1693_vm8, %v1709_v31, %v1711_v23  ;;  %v1376_v14 = vrot.slane %v11437_v63, 6  ;;  %v1375_v54 = vrot.slane %v1138_v2, 5 }
 0x23c   :  { %7408 = vmatprep.mubr.msk.bf16.mxu0 %vm7862_vm0, %v11433_v6  ;;  %v2168_v32 = vshrl.u32 %v1712_v36, 16  ;;  %v2171_v46 = vshll.u32 %v1712_v36, 16  ;;  %v1609_v31 = vsel %vm1547_vm11, %v9080_v53, %v9172_v47  ;;  %v1176_v53 = vrot.slane %v11401_v37, 1 }
 0x23d   :  { %1354 = vrot.lane.b32.xlu1 %v1331_v59, %s7865_s28  ;;  %v6845_v56 = vpack.c.bf16 %v887_v8, %v887_v8  ;;  %v6564_v5 = vcombine.low %v9184_v49, %v1048_v55  ;;  %v1451_v19 = vsel %vm1436_vm7, %v1448_v38, %v1450_v4  ;;  %v1172_v3 = vor.u32 %v1170_v7, %v9127_v35 }
 0x23e   :  { %v2170_v17 = vrot.slane %v2168_v32, 2  ;;  %v2173_v58 = vrot.slane %v2171_v46, 3  ;;  %v9194_v22 = vld [vmem:[#allocation2 + $0x60] sm:$0xf]  ;;  %v1506_v34 = vrot.slane %v9048_v26, 6  ;;  %v1332_v59 = vrot.slane %v8993_v42, 1 }
 0x23f   :  { %1013 = vst.msk [vmem:[#allocation2 + $0x68] sm:$0xf] %vm64_vm4, %v6845_v56  ;;  %1676 = vrot.lane.b32.xlu0 %v1609_v31, %s7865_s28  ;;  %v9208_v0 = vcombine.low %v9192_v9, %v9194_v22  ;;  %v1613_v8 = vrot.slane %v1611_v39, 6  ;;  %v1616_v36 = vrot.slane %v1614_v40, 7  ;;  %v1177_v38 = vsel %vm1117_vm6, %v1172_v3, %v1176_v53  ;;  %vm9790_vm4 = vmor %vm2926_vm15, %vm2927_vm3 }
 0x240   :  { %v2174_v60 = vor.u32 %v2173_v58, %v2170_v17  ;;  %v9234_v35 = vcombine.low %v9034_v28, %v9086_v45  ;;  %v1507_v56 = vsel %vm1436_vm7, %v1504_v52, %v1506_v34  ;;  %v1717_v39 = vrot.slane %v6564_v5, 7 }
 0x241   :  { %1288 = vrot.lane.b32.xlu1 %v1265_v62, %s7866_s3  ;;  %v1713_v27 = vrot.slane %v9208_v0, 7  ;;  %v9245_v40 = vor.u32 %v1376_v14, %v1375_v54  ;;  %v1333_v28 = vsel %vm1250_vm5, %v1330_v21, %v1332_v59  ;;  %v9252_v31 = vor.u32 %v1616_v36, %v1613_v8 }
 0x242   :  { %v2175_v2 = vsel %vm1928_vm9, %v2149_v61, %v2174_v60  ;;  %v9254_v17 = vld [vmem:[#allocation2 + $0x64] sm:$0xf]  ;;  %v1452_v52 = vrot.slane %v9234_v35, 6  ;;  %v11400_v62 = vshll.u32 %v9159_v57, 16  ;;  %v1380_v14 = vrot.slane %v1142_v20, 6 }
 0x243   :  { %7409 = vmatmul.mubr.msk.bf16.gmra.mrb[84].mxu0 %vm1719_vm10, %v2175_v2  ;;  %1476 = vrot.lane.b32.xlu0 %v1451_v19, %s7867_s25  ;;  %v1714_v32 = vsel %vm1693_vm8, %v1711_v23, %v1713_v27  ;;  %v1266_v23 = vrot.slane %v9159_v57, 1  ;;  %v9268_v21 = vsel %vm1371_vm12, %v11438_v18, %v9245_v40  ;;  %v1178_v5 = vshrl.u32 %v9084_v50, 16 }
 0x244   :  { %7412 = vmatprep.mubr.msk.bf16.mxu0 %vm7862_vm0, %v11433_v6  ;;  %v2193_v61 = vshrl.u32 %v1714_v32, 16  ;;  %v2196_v46 = vshll.u32 %v1714_v32, 16  ;;  %v1379_v19 = vrot.slane %v1146_v10, 5  ;;  %v1620_v2 = vshrl.u32 %v9101_v29, 16 }
 0x245   :  { %1233 = vrot.lane.b32.xlu1 %v1177_v38, %s7867_s25  ;;  %v1623_v8 = vshll.u32 %v9101_v29, 16  ;;  %v1618_v20 = vsel %vm1547_vm11, %v9172_v47, %v9252_v31  ;;  %v1267_v38 = vsel %vm1250_vm5, %v1264_v41, %v1266_v23  ;;  %v1180_v10 = vor.u32 %v1178_v5, %v1176_v53 }
 0x246   :  { %v2195_v45 = vrot.slane %v2193_v61, 2  ;;  %v2198_v55 = vrot.slane %v2196_v46, 3  ;;  %v9256_v58 = vld [vmem:[#allocation2 + $0x68] sm:$0xf]  ;;  %v1184_v47 = vrot.slane %v11400_v62, 1  ;;  %v1508_v46 = vrot.slane %v9101_v29, 6 }
 0x247   :  { %1532 = vrot.lane.b32.xlu0 %v1507_v56, %s7866_s3  ;;  %v9263_v63 = vcombine.low %v9254_v17, %v9256_v58  ;;  %v1334_v56 = vrot.slane %v9048_v26, 1  ;;  %v1186_v42 = vshrl.u32 %v9159_v57, 16 }
 0x248   :  { %v2199_v54 = vor.u32 %v2198_v55, %v2195_v45  ;;  %v1629_v45 = vshrl.u32 %v9152_v1, 16  ;;  %v1632_v55 = vshll.u32 %v9152_v1, 16 }
 0x249   :  { %1356 = vrot.lane.b32.xlu1 %v1333_v28, %s7865_s28  ;;  %v1715_v3 = vrot.slane %v9263_v63, 7  ;;  %v1622_v28 = vrot.slane %v1620_v2, 6  ;;  %v1384_v2 = vrot.slane %v1150_v43, 6 }
 0x24a   :  { %v2200_v36 = vsel %vm1928_vm9, %v2174_v60, %v2199_v54  ;;  %v1453_v60 = vsel %vm1436_vm7, %v1450_v4, %v1452_v52  ;;  %v1625_v4 = vrot.slane %v1623_v8, 7  ;;  %v1634_v37 = vrot.slane %v1632_v55, 7 }
 0x24b   :  { %7413 = vmatmul.mubr.msk.bf16.gmra.mrb[88].mxu0 %vm1719_vm10, %v2200_v36  ;;  %1678 = vrot.lane.b32.xlu0 %v1618_v20, %s7865_s28  ;;  %v1716_v32 = vsel %vm1693_vm8, %v1713_v27, %v1715_v3  ;;  %v1718_v41 = vsel %vm1693_vm8, %v1715_v3, %v1717_v39  ;;  %v1185_v20 = vsel %vm1117_vm6, %v1180_v10, %v1184_v47  ;;  %vm3139_vm8 = vcmask 1042432  }
 0x24c   :  { %7416 = vmatprep.mubr.msk.bf16.mxu0 %vm7862_vm0, %v11433_v6  ;;  %v2218_v53 = vshrl.u32 %v1716_v32, 16  ;;  %v2221_v61 = vshll.u32 %v1716_v32, 16  ;;  %v2243_v39 = vshrl.u32 %v1718_v41, 16  ;;  %v2246_v3 = vshll.u32 %v1718_v41, 16 }
 0x24d   :  { %1290 = vrot.lane.b32.xlu1 %v1267_v38, %s7866_s3  ;;  %v9312_v38 = vcombine.low %v9088_v51, %v9141_v48  ;;  %v1190_v32 = vshll.u32 %v9234_v35, 16  ;;  %v1509_v41 = vsel %vm1436_vm7, %v1506_v34, %v1508_v46  ;;  %v1335_v10 = vsel %vm1250_vm5, %v1332_v59, %v1334_v56 }
 0x24e   :  { %v2220_v27 = vrot.slane %v2218_v53, 2  ;;  %v2223_v36 = vrot.slane %v2221_v61, 3  ;;  %v1268_v51 = vrot.slane %v9234_v35, 1  ;;  %v1631_v48 = vrot.slane %v1629_v45, 6 }
 0x24f   :  { %1478 = vrot.lane.b32.xlu0 %v1453_v60, %s7867_s25  ;;  %v1626_v60 = vor.u32 %v1625_v4, %v1622_v28  ;;  %v1381_v53 = vor.u32 %v1380_v14, %v1379_v19  ;;  %v2245_v62 = vrot.slane %v2243_v39, 2  ;;  %v2248_v43 = vrot.slane %v2246_v3, 3 }
 0x250   :  { %v2224_v8 = vor.u32 %v2223_v36, %v2220_v27  ;;  %v1454_v26 = vrot.slane %v9312_v38, 6  ;;  %v9332_v34 = vrot.slane %v1190_v32, 1  ;;  %v1510_v14 = vrot.slane %v9152_v1, 6 }
 0x251   :  { %1235 = vrot.lane.b32.xlu1 %v1185_v20, %s7867_s25  ;;  %v9336_v59 = vsel %vm1371_vm12, %v9245_v40, %v1381_v53  ;;  %v1270_v19 = vrot.slane %v9312_v38, 1  ;;  %v1188_v28 = vor.u32 %v1186_v42, %v1184_v47  ;;  %v9346_v4 = vcombine.low %v9143_v44, %v9192_v9 }
 0x252   :  { %v2225_v61 = vsel %vm1928_vm9, %v2199_v54, %v2224_v8  ;;  %v1336_v54 = vrot.slane %v9101_v29, 1  ;;  %v1383_v40 = vrot.slane %v1154_v33, 5  ;;  %v1627_v45 = vsel %vm1547_vm11, %v9252_v31, %v1626_v60 }
 0x253   :  { %7417 = vmatmul.mubr.msk.bf16.gmra.mrb[92].mxu0 %vm1719_vm10, %v2225_v61  ;;  %1534 = vrot.lane.b32.xlu0 %v1509_v41, %s7866_s3  ;;  %v2249_v55 = vor.u32 %v2248_v43, %v2245_v62  ;;  %v9352_v27 = vor.u32 %v1634_v37, %v1631_v48  ;;  %v1269_v36 = vsel %vm1250_vm5, %v1266_v23, %v1268_v51  ;;  %v1456_v62 = vrot.slane %v9346_v4, 6 }
 0x254   :  { %7420 = vmatprep.mubr.msk.bf16.mxu0 %vm7862_vm0, %v11433_v6  ;;  %v1455_v44 = vsel %vm1436_vm7, %v1452_v52, %v1454_v26  ;;  %v1193_v33 = vsel %vm1117_vm6, %v1188_v28, %v9332_v34  ;;  %v1385_v9 = vor.u32 %v1384_v2, %v1383_v40  ;;  %v1511_v37 = vsel %vm1436_vm7, %v1508_v46, %v1510_v14 }
 0x255   :  { %1358 = vrot.lane.b32.xlu1 %v1335_v10, %s7865_s28  ;;  %v1337_v23 = vsel %vm1250_vm5, %v1334_v56, %v1336_v54  ;;  %v1271_v31 = vsel %vm1250_vm5, %v1268_v51, %v1270_v19  ;;  %v1194_v52 = vshrl.u32 %v9234_v35, 16  ;;  %v1198_v47 = vshll.u32 %v9312_v38, 16 }
 0x256   :  { %v9379_v39 = vsel %vm1371_vm12, %v1381_v53, %v1385_v9  ;;  %v1387_v46 = vrot.slane %v1162_v13, 5  ;;  %v2250_v3 = vsel %vm1928_vm9, %v2224_v8, %v2249_v55  ;;  %v1636_v56 = vsel %vm1547_vm11, %v1626_v60, %v9352_v27 }
 0x257   :  { %1680 = vrot.lane.b32.xlu0 %v1627_v45, %s7865_s28  ;;  %v9388_v20 = vcombine.low %v9194_v22, %v9254_v17  ;;  %v1202_v2 = vshrl.u32 %v9312_v38, 16  ;;  %v1206_v41 = vshll.u32 %v9346_v4, 16  ;;  %v1388_v13 = vrot.slane %v1158_v16, 6 }
 0x258   :  { %v1391_v8 = vrot.slane %v1170_v7, 5  ;;  %v1392_v10 = vrot.slane %v1166_v25, 6  ;;  %v1210_v17 = vshrl.u32 %v9346_v4, 16  ;;  %v1395_v60 = vrot.slane %v1178_v5, 5 }
 0x259   :  { %1292 = vrot.lane.b32.xlu1 %v1269_v36, %s7866_s3  ;;  %v11439_v51 = vshll.u32 %v9084_v50, 16  ;;  %v1399_v16 = vrot.slane %v1186_v42, 5  ;;  %v1389_v53 = vor.u32 %v1388_v13, %v1387_v46  ;;  %v11440_v7 = vshll.u32 %v9159_v57, 16 }
 0x25a   :  { %v1393_v61 = vor.u32 %v1392_v10, %v1391_v8  ;;  %v1403_v25 = vrot.slane %v1194_v52, 5  ;;  %v1638_v28 = vshrl.u32 %v9208_v0, 16  ;;  %v1404_v45 = vrot.slane %v1190_v32, 6 }
 0x25b   :  { %7421 = vmatmul.mubr.msk.bf16.gmra.mrb[96].mxu0 %vm1719_vm10, %v2250_v3  ;;  %1480 = vrot.lane.b32.xlu0 %v1455_v44, %s7867_s25  ;;  %v1396_v48 = vrot.slane %v11439_v51, 6  ;;  %v1400_v43 = vrot.slane %v11440_v7, 6  ;;  %v1407_v36 = vrot.slane %v1202_v2, 5  ;;  %v9417_v5 = vsel %vm1371_vm12, %v1385_v9, %v1389_v53 }
 0x25c   :  { %7424 = vmatprep.mubr.msk.bf16.mxu0 %vm7862_vm0, %v11433_v6  ;;  %v9420_v42 = vsel %vm1371_vm12, %v1389_v53, %v1393_v61  ;;  %v1405_v3 = vor.u32 %v1404_v45, %v1403_v25  ;;  %v1411_v32 = vrot.slane %v1210_v17, 5  ;;  %v1416_v10 = vshrl.u32 %v9388_v20, 16 }
 0x25d   :  { %1237 = vrot.lane.b32.xlu1 %v1193_v33, %s7867_s25  ;;  %v1397_v40 = vor.u32 %v1396_v48, %v1395_v60  ;;  %v1401_v44 = vor.u32 %v1400_v43, %v1399_v16  ;;  %v1408_v33 = vrot.slane %v1198_v47, 6  ;;  %v1641_v60 = vshll.u32 %v9208_v0, 16 }
 0x25e   :  { %v6560_v16 = vcombine.low %v9256_v58, %v9256_v58  ;;  %v1200_v53 = vrot.slane %v1198_v47, 1  ;;  %v1418_v7 = vrot.slane %v1416_v10, 5  ;;  %v1196_v47 = vor.u32 %v1194_v52, %v9332_v34 }
 0x25f   :  { %1536 = vrot.lane.b32.xlu0 %v1511_v37, %s7866_s3  ;;  %v9424_v46 = vsel %vm1371_vm12, %v1393_v61, %v1397_v40  ;;  %v1412_v37 = vrot.slane %v1206_v41, 6  ;;  %v9433_v9 = vsel %vm1371_vm12, %v1397_v40, %v1401_v44  ;;  %v1409_v8 = vor.u32 %v1408_v33, %v1407_v36 }
 0x260   :  { %v9439_v51 = vsel %vm1371_vm12, %v1401_v44, %v1405_v3  ;;  %v1425_v40 = vshrl.u32 %v6560_v16, 16  ;;  %v1428_v45 = vshll.u32 %v6560_v16, 16  ;;  %v1640_v33 = vrot.slane %v1638_v28, 6 }
 0x261   :  { %1360 = vrot.lane.b32.xlu1 %v1337_v23, %s7865_s28  ;;  %v9430_v13 = vpop.permute.xlu0 %1462  ;;  %v1419_v23 = vshll.u32 %v9388_v20, 16  ;;  %v1413_v48 = vor.u32 %v1412_v37, %v1411_v32  ;;  %v9446_v61 = vsel %vm1371_vm12, %v1405_v3, %v1409_v8  ;;  %v1201_v37 = vsel %vm1117_vm6, %v1196_v47, %v1200_v53 }
 0x262   :  { %v1427_v3 = vrot.slane %v1425_v40, 5  ;;  %v1430_v32 = vrot.slane %v1428_v45, 6  ;;  %v1272_v16 = vrot.slane %v9346_v4, 1  ;;  %v1458_v40 = vrot.slane %v9388_v20, 6  ;;  %v1014_v45 = vld [vmem:[#allocation2] sm:$0xc] }
 0x263   :  { %7425 = vmatmul.mubr.msk.bf16.gmra.mrb[100].mxu0 %vm1719_vm10, %v2249_v55  ;;  %1682 = vrot.lane.b32.xlu0 %v1636_v56, %s7865_s28  ;;  %v1421_v43 = vrot.slane %v1419_v23, 6  ;;  %v9450_v25 = vsel %vm1371_vm12, %v1409_v8, %v1413_v48  ;;  %v1457_v55 = vsel %vm1436_vm7, %v1454_v26, %v1456_v62  ;;  %v1512_v56 = vrot.slane %v9208_v0, 6 }
 0x264   :  { %v1338_v8 = vrot.slane %v9152_v1, 1  ;;  %v1431_v26 = vor.u32 %v1430_v32, %v1427_v3  ;;  %v1273_v29 = vsel %vm1250_vm5, %v1270_v19, %v1272_v16  ;;  %v1046_v3 = vld [vmem:[#allocation2 + $0x70] sm:$0x1]  ;;  %v7834_v32 = vld [vmem:[#allocation2 + $0x4] sm:$0xf] }
 0x265   :  { %1294 = vrot.lane.b32.xlu1 %v1271_v31, %s7866_s3  ;;  %v9452_v36 = vpop.permute.xlu0 %1276  ;;  %v1422_v44 = vor.u32 %v1421_v43, %v1418_v7  ;;  %v1643_v31 = vrot.slane %v1641_v60, 7  ;;  %v1513_v28 = vsel %vm1436_vm7, %v1510_v14, %v1512_v56  ;;  %v1044_v43 = vld [vmem:[#allocation2 + $0x6c] sm:$0x1] }
 0x266   :  { %v6561_v47 = vcombine.low %v9256_v58, %v1044_v43  ;;  %v6562_v43 = vcombine.low %v9184_v49, %v1046_v3 }
 0x267   :  { %1482 = vrot.lane.b32.xlu0 %v1457_v55, %s7867_s25  ;;  %v9465_v10 = vsel %vm1371_vm12, %v1413_v48, %v1422_v44  ;;  %v9473_v23 = vor.u32 %v1643_v31, %v1640_v33  ;;  %v9476_v60 = vsel %vm1371_vm12, %v1422_v44, %v1431_v26  ;;  %v1339_v48 = vsel %vm1250_vm5, %v1336_v54, %v1338_v8  ;;  %v1039_v55 = vld [vmem:[#allocation2 + $0x64] sm:$0x7] }
 0x268   :  { %v1208_v54 = vrot.slane %v1206_v41, 1  ;;  %v1647_v33 = vshrl.u32 %v9263_v63, 16  ;;  %v1650_v31 = vshll.u32 %v9263_v63, 16  ;;  %v1459_v41 = vsel %vm1436_vm7, %v1456_v62, %v1458_v40 }
 0x269   :  { %1239 = vrot.lane.b32.xlu1 %v1201_v37, %s7867_s25  ;;  %v1222_v34 = vpop.permute.xlu0 %1221  ;;  %v1645_v14 = vsel %vm1547_vm11, %v9352_v27, %v9473_v23  ;;  %v1204_v27 = vor.u32 %v1202_v2, %v1200_v53  ;;  %v6532_v37 = vcombine.low %v1014_v45, %v7834_v32  ;;  %v1514_v26 = vrot.slane %v9263_v63, 6 }
 0x26a   :  { %v9468_v52 = vpop.permute.xlu1 %1464  ;;  %v9505_v58 = vcombine.low %v9194_v22, %v1039_v55  ;;  %v1340_v53 = vrot.slane %v9208_v0, 1  ;;  %v1652_v45 = vrot.slane %v1650_v31, 7  ;;  %v1803_v22 = vsel %vm1719_vm10, %v11438_v18, %v9430_v13 }
 0x26b   :  { %1538 = vrot.lane.b32.xlu0 %v1513_v28, %s7866_s3  ;;  %v1209_v2 = vsel %vm1117_vm6, %v1204_v27, %v1208_v54  ;;  %v1460_v28 = vrot.slane %v6561_v47, 6  ;;  %v1515_v27 = vsel %vm1436_vm7, %v1512_v56, %v1514_v26  ;;  %vm3258_vm12 = vcmask 818176  }
 0x26c   :  { %v1214_v32 = vshll.u32 %v9505_v58, 16 }
 0x26d   :  { %1362 = vrot.lane.b32.xlu1 %v1339_v48, %s7865_s28  ;;  %v1519_v7 = vpop.permute.xlu0 %1518  ;;  %v1274_v48 = vrot.slane %v9388_v20, 1  ;;  %v1461_v13 = vsel %vm1436_vm7, %v1458_v40, %v1460_v28  ;;  %v1659_v28 = vshll.u32 %v6562_v43, 16 }
 0x26e   :  { %v1841_v47 = vsel %vm1747_vm13, %v1803_v22, %v1519_v7  ;;  %v1216_v40 = vrot.slane %v1214_v32, 1 }
 0x26f   :  { %v1279_v1 = vpop.permute.xlu1 %1278  ;;  %1684 = vrot.lane.b32.xlu0 %v1645_v14, %s7865_s28  ;;  %v1649_v14 = vrot.slane %v1647_v33, 6  ;;  %v1341_v33 = vsel %vm1250_vm5, %v1338_v8, %v1340_v53  ;;  %v1275_v56 = vsel %vm1250_vm5, %v1272_v16, %v1274_v48  ;;  %v1656_v8 = vshrl.u32 %v6562_v43, 16 }
 0x271   :  { %1296 = vrot.lane.b32.xlu1 %v1273_v29, %s7866_s3  ;;  %v1345_v44 = vpop.permute.xlu0 %1344  ;;  %v1722_v29 = vsel %vm1719_vm10, %v6532_v37, %v1222_v34  ;;  %v1516_v34 = vrot.slane %v6562_v43, 6  ;;  %v1653_v3 = vor.u32 %v1652_v45, %v1649_v14  ;;  %v1212_v37 = vor.u32 %v1210_v17, %v1208_v54 }
 0x272   :  { %v1749_v7 = vsel %vm1747_vm13, %v1722_v29, %v9452_v36  ;;  %v1218_v36 = vshrl.u32 %v9505_v58, 16  ;;  %v1342_v14 = vrot.slane %v9263_v63, 1  ;;  %v1658_v32 = vrot.slane %v1656_v8, 6 }
 0x273   :  { %v1224_v19 = vpop.permute.xlu1 %1223  ;;  %1484 = vrot.lane.b32.xlu0 %v1459_v41, %s7867_s25  ;;  %v11441_v41 = vld [vmem:[#allocation9_spill] sm:$0xff]  ;;  %v1517_v54 = vsel %vm1436_vm7, %v1514_v26, %v1516_v34 }
 0x274   :  { %v1724_v49 = vsel %vm1719_vm10, %v11441_v41, %v1224_v19  ;;  %v1776_v19 = vsel %vm1774_vm14, %v1749_v7, %v1345_v44 }
 0x275   :  { %1241 = vrot.lane.b32.xlu1 %v1209_v2, %s7867_s25  ;;  %v1665_v62 = vpop.permute.xlu0 %1664  ;;  %v1751_v2 = vsel %vm1747_vm13, %v1724_v49, %v1279_v1  ;;  %v1806_v1 = vsel %vm1719_vm10, %v9268_v21, %v9468_v52  ;;  %v1929_v44 = vshrl.u32 %v1776_v19, 16  ;;  %v1932_v43 = vshll.u32 %v1776_v19, 16 }
 0x276   :  { %v1867_v18 = vsel %vm1774_vm14, %v1841_v47, %v1665_v62  ;;  %v1654_v49 = vsel %vm1547_vm11, %v9473_v23, %v1653_v3 }
 0x277   :  { %v1521_v55 = vpop.permute.xlu1 %1520  ;;  %1540 = vrot.lane.b32.xlu0 %v1515_v27, %s7866_s3  ;;  %v1944_v22 = vshrl.u32 %v1867_v18, 16  ;;  %v1947_v45 = vshll.u32 %v1867_v18, 16  ;;  %v1661_v18 = vrot.slane %v1659_v28, 7  ;;  %v1931_v8 = vrot.slane %v1929_v44, 2 }
 0x278   :  { %v1843_v47 = vsel %vm1747_vm13, %v1806_v1, %v1521_v55  ;;  %v1934_v23 = vrot.slane %v1932_v43, 3 }
 0x279   :  { %1364 = vrot.lane.b32.xlu1 %v1341_v33, %s7865_s28  ;;  %v1467_v31 = vpop.permute.xlu0 %1466  ;;  %v1217_v33 = vsel %vm1117_vm6, %v1212_v37, %v1216_v40  ;;  %v1949_v21 = vrot.slane %v1947_v45, 3 }
 0x27a   :  { %v1809_v52 = vsel %vm1719_vm10, %v9336_v59, %v1467_v31  ;;  %v1935_v44 = vor.u32 %v1934_v23, %v1931_v8 }
 0x27b   :  { %v1347_v62 = vpop.permute.xlu1 %1346  ;;  %1486 = vrot.lane.b32.xlu0 %v1461_v13, %s7867_s25  ;;  %v1946_v13 = vrot.slane %v1944_v22, 2 }
 0x27c   :  { %v1778_v16 = vsel %vm1774_vm14, %v1751_v2, %v1347_v62  ;;  %v1220_v2 = vor.u32 %v1218_v36, %v1216_v40 }
 0x27d   :  { %v1936_v29 = vshrl.u32 %v1778_v16, 16  ;;  %v1939_v17 = vshll.u32 %v1778_v16, 16  ;;  %1298 = vrot.lane.b32.xlu1 %v1275_v56, %s7866_s3  ;;  %v1523_v27 = vpop.permute.xlu0 %1522  ;;  %v1950_v59 = vor.u32 %v1949_v21, %v1946_v13 }
 0x27e   :  { %v1845_v37 = vsel %vm1747_vm13, %v1809_v52, %v1523_v27 }
 0x27f   :  { %v1667_v41 = vpop.permute.xlu1 %1666  ;;  %v1938_v56 = vrot.slane %v1936_v29, 2  ;;  %v1941_v26 = vrot.slane %v1939_v17, 3  ;;  %1686 = vrot.lane.b32.xlu0 %v1654_v49, %s7865_s28  ;;  %v1662_v29 = vor.u32 %v1661_v18, %v1658_v32  ;;  %v1343_v32 = vsel %vm1250_vm5, %v1340_v53, %v1342_v14 }
 0x280   :  { %v1869_v34 = vsel %vm1774_vm14, %v1843_v47, %v1667_v41 }
 0x281   :  { %v1951_v7 = vshrl.u32 %v1869_v34, 16  ;;  %v1954_v55 = vshll.u32 %v1869_v34, 16  ;;  %1243 = vrot.lane.b32.xlu1 %v1217_v33, %s7867_s25  ;;  %v1669_v19 = vpop.permute.xlu0 %1668  ;;  %v1942_v45 = vor.u32 %v1941_v26, %v1938_v56  ;;  %v1663_v36 = vsel %vm1547_vm11, %v1653_v3, %v1662_v29 }
 0x282   :  { %v1871_v22 = vsel %vm1774_vm14, %v1845_v37, %v1669_v19 }
 0x283   :  { %v1953_v62 = vrot.slane %v1951_v7, 2  ;;  %v1956_v28 = vrot.slane %v1954_v55, 3  ;;  %v1281_v16 = vpop.permute.xlu1 %1280  ;;  %v1984_v17 = vshrl.u32 %v1871_v22, 16  ;;  %v1987_v1 = vshll.u32 %v1871_v22, 16  ;;  %1542 = vrot.lane.b32.xlu0 %v1517_v54, %s7866_s3 }
 0x284   :  { %v1943_v33 = vsel %vm1928_vm9, %v1935_v44, %v1942_v45 }
 0x285   :  { %1245 = vrot.lane.b32.xlu1 %v1220_v2, %s7867_s25  ;;  %v1957_v31 = vor.u32 %v1956_v28, %v1953_v62  ;;  %v1986_v43 = vrot.slane %v1984_v17, 2  ;;  %v1989_v27 = vrot.slane %v1987_v1, 3  ;;  %v1469_v47 = vpop.permute.xlu0 %1468 }
 0x287   :  { %v1226_v40 = vpop.permute.xlu1 %1225  ;;  %v1958_v41 = vsel %vm1928_vm9, %v1950_v59, %v1957_v31  ;;  %v1990_v54 = vor.u32 %v1989_v27, %v1986_v43  ;;  %1688 = vrot.lane.b32.xlu0 %v1663_v36, %s7865_s28 }
 0x288   :  { %v1726_v49 = vsel %vm1719_vm10, %v8712_v24, %v1226_v40  ;;  %2456 = vmatprep.mubr.bf16.mxu1 %v1958_v41  ;;  %v1812_v24 = vsel %vm1719_vm10, %v9379_v39, %v1469_v47 }
 0x289   :  { %1366 = vrot.lane.b32.xlu1 %v1343_v32, %s7865_s28  ;;  %2457 = vmatmul.mubr.bf16.vlgmr.msra.gmra.mrb[0].mxu1 %v1943_v33  ;;  %v1525_v3 = vpop.permute.xlu0 %1524  ;;  %v1991_v18 = vsel %vm1928_vm9, %v1957_v31, %v1990_v54  ;;  %v1753_v13 = vsel %vm1747_vm13, %v1726_v49, %v1281_v16 }
 0x28a   :  { %2464 = vmatprep.mubr.bf16.mxu1 %v1991_v18  ;;  %v1847_v34 = vsel %vm1747_vm13, %v1812_v24, %v1525_v3 }
 0x28b   :  { %v1349_v0 = vpop.permute.xlu1 %1348 }
 0x28c   :  { %v1780_v53 = vsel %vm1774_vm14, %v1753_v13, %v1349_v0 }
 0x28d   :  { %v1976_v56 = vshrl.u32 %v1780_v53, 16  ;;  %v1979_v26 = vshll.u32 %v1780_v53, 16  ;;  %1300 = vrot.lane.b32.xlu1 %v1274_v48, %s7866_s3  ;;  %v1671_v21 = vpop.permute.xlu0 %1670 }
 0x28e   :  { %v1873_v55 = vsel %vm1774_vm14, %v1847_v34, %v1671_v21 }
 0x28f   :  { %v1978_v52 = vrot.slane %v1976_v56, 2  ;;  %v1981_v7 = vrot.slane %v1979_v26, 3  ;;  %v1283_v8 = vpop.permute.xlu1 %1282  ;;  %v2009_v23 = vshrl.u32 %v1873_v55, 16  ;;  %v2012_v37 = vshll.u32 %v1873_v55, 16 }
 0x291   :  { %v1982_v19 = vor.u32 %v1981_v7, %v1978_v52  ;;  %1368 = vrot.lane.b32.xlu1 %v1342_v14, %s7865_s28  ;;  %v2011_v39 = vrot.slane %v2009_v23, 2  ;;  %v2014_v2 = vrot.slane %v2012_v37, 3  ;;  %v1471_v62 = vpop.permute.xlu0 %1470 }
 0x292   :  { %v1815_v14 = vsel %vm1719_vm10, %v9417_v5, %v1471_v62 }
 0x293   :  { %v1228_v20 = vpop.permute.xlu1 %1227  ;;  %v1983_v48 = vsel %vm1928_vm9, %v1942_v45, %v1982_v19  ;;  %v2015_v28 = vor.u32 %v2014_v2, %v2011_v39 }
 0x294   :  { %v1728_v22 = vsel %vm1719_vm10, %v8776_v11, %v1228_v20  ;;  %2465 = vmatmul.mubr.bf16.gmra.mrb[4].mxu1 %v1983_v48 }
 0x295   :  { %v1527_v16 = vpop.permute.xlu0 %1526  ;;  %v2016_v29 = vsel %vm1928_vm9, %v1990_v54, %v2015_v28  ;;  %v1755_v17 = vsel %vm1747_vm13, %v1728_v22, %v1283_v8 }
 0x296   :  { %2472 = vmatprep.mubr.bf16.mxu1 %v2016_v29  ;;  %v1849_v45 = vsel %vm1747_vm13, %v1815_v14, %v1527_v16 }
 0x297   :  { %v1351_v1 = vpop.permute.xlu1 %1350 }
 0x298   :  { %v1782_v63 = vsel %vm1774_vm14, %v1755_v17, %v1351_v1 }
 0x299   :  { %v2001_v59 = vshrl.u32 %v1782_v63, 16  ;;  %v2004_v31 = vshll.u32 %v1782_v63, 16  ;;  %v1673_v44 = vpop.permute.xlu0 %1672 }
 0x29a   :  { %v1875_v27 = vsel %vm1774_vm14, %v1849_v45, %v1673_v44 }
 0x29b   :  { %v2003_v43 = vrot.slane %v2001_v59, 2  ;;  %v2006_v11 = vrot.slane %v2004_v31, 3  ;;  %v1285_v47 = vpop.permute.xlu1 %1284  ;;  %v2034_v40 = vshrl.u32 %v1875_v27, 16  ;;  %v2037_v36 = vshll.u32 %v1875_v27, 16 }
 0x29d   :  { %v2007_v41 = vor.u32 %v2006_v11, %v2003_v43  ;;  %v2036_v32 = vrot.slane %v2034_v40, 2  ;;  %v2039_v54 = vrot.slane %v2037_v36, 3  ;;  %v1473_v49 = vpop.permute.xlu0 %1472 }
 0x29e   :  { %v1818_v26 = vsel %vm1719_vm10, %v9420_v42, %v1473_v49 }
 0x29f   :  { %v1230_v33 = vpop.permute.xlu1 %1229  ;;  %v2008_v3 = vsel %vm1928_vm9, %v1982_v19, %v2007_v41  ;;  %v2040_v5 = vor.u32 %v2039_v54, %v2036_v32 }
 0x2a0   :  { %v1730_v18 = vsel %vm1719_vm10, %v8845_v30, %v1230_v33  ;;  %2473 = vmatmul.mubr.bf16.gmra.mrb[8].mxu1 %v2008_v3 }
 0x2a1   :  { %v1529_v13 = vpop.permute.xlu0 %1528  ;;  %v2041_v0 = vsel %vm1928_vm9, %v2015_v28, %v2040_v5  ;;  %v1757_v53 = vsel %vm1747_vm13, %v1730_v18, %v1285_v47 }
 0x2a2   :  { %2480 = vmatprep.mubr.bf16.mxu1 %v2041_v0  ;;  %v1851_v52 = vsel %vm1747_vm13, %v1818_v26, %v1529_v13 }
 0x2a3   :  { %v1353_v24 = vpop.permute.xlu1 %1352 }
 0x2a4   :  { %v1784_v56 = vsel %vm1774_vm14, %v1757_v53, %v1353_v24 }
 0x2a5   :  { %v2026_v34 = vshrl.u32 %v1784_v56, 16  ;;  %v2029_v21 = vshll.u32 %v1784_v56, 16  ;;  %v1675_v7 = vpop.permute.xlu0 %1674 }
 0x2a6   :  { %v1877_v8 = vsel %vm1774_vm14, %v1851_v52, %v1675_v7 }
 0x2a7   :  { %v2028_v55 = vrot.slane %v2026_v34, 2  ;;  %v2031_v30 = vrot.slane %v2029_v21, 3  ;;  %v1287_v23 = vpop.permute.xlu1 %1286  ;;  %v2059_v37 = vshrl.u32 %v1877_v8, 16  ;;  %v2062_v19 = vshll.u32 %v1877_v8, 16 }
 0x2a9   :  { %v2032_v39 = vor.u32 %v2031_v30, %v2028_v55  ;;  %v2061_v2 = vrot.slane %v2059_v37, 2  ;;  %v2064_v62 = vrot.slane %v2062_v19, 3  ;;  %v1475_v20 = vpop.permute.xlu0 %1474 }
 0x2aa   :  { %v1821_v14 = vsel %vm1719_vm10, %v9424_v46, %v1475_v20 }
 0x2ab   :  { %v1232_v48 = vpop.permute.xlu1 %1231  ;;  %v2033_v28 = vsel %vm1928_vm9, %v2007_v41, %v2032_v39  ;;  %v2065_v42 = vor.u32 %v2064_v62, %v2061_v2 }
 0x2ac   :  { %v1732_v22 = vsel %vm1719_vm10, %v8928_v15, %v1232_v48  ;;  %2481 = vmatmul.mubr.bf16.gmra.mrb[12].mxu1 %v2033_v28 }
 0x2ad   :  { %v1531_v16 = vpop.permute.xlu0 %1530  ;;  %v2066_v29 = vsel %vm1928_vm9, %v2040_v5, %v2065_v42  ;;  %v1759_v17 = vsel %vm1747_vm13, %v1732_v22, %v1287_v23 }
 0x2ae   :  { %2488 = vmatprep.mubr.bf16.mxu1 %v2066_v29  ;;  %v1853_v45 = vsel %vm1747_vm13, %v1821_v14, %v1531_v16 }
 0x2af   :  { %v1355_v1 = vpop.permute.xlu1 %1354 }
 0x2b0   :  { %v1786_v63 = vsel %vm1774_vm14, %v1759_v17, %v1355_v1 }
 0x2b1   :  { %v2051_v59 = vshrl.u32 %v1786_v63, 16  ;;  %v2054_v31 = vshll.u32 %v1786_v63, 16  ;;  %v1677_v44 = vpop.permute.xlu0 %1676 }
 0x2b2   :  { %v1879_v11 = vsel %vm1774_vm14, %v1853_v45, %v1677_v44 }
 0x2b3   :  { %v2053_v43 = vrot.slane %v2051_v59, 2  ;;  %v2056_v15 = vrot.slane %v2054_v31, 3  ;;  %v1289_v27 = vpop.permute.xlu1 %1288  ;;  %v2084_v47 = vshrl.u32 %v1879_v11, 16  ;;  %v2087_v40 = vshll.u32 %v1879_v11, 16 }
 0x2b5   :  { %v2057_v36 = vor.u32 %v2056_v15, %v2053_v43  ;;  %v2086_v41 = vrot.slane %v2084_v47, 2  ;;  %v2089_v32 = vrot.slane %v2087_v40, 3  ;;  %v1477_v54 = vpop.permute.xlu0 %1476 }
 0x2b6   :  { %v1824_v24 = vsel %vm1719_vm10, %v9433_v9, %v1477_v54 }
 0x2b7   :  { %v1234_v49 = vpop.permute.xlu1 %1233  ;;  %v2058_v33 = vsel %vm1928_vm9, %v2032_v39, %v2057_v36  ;;  %v2090_v46 = vor.u32 %v2089_v32, %v2086_v41 }
 0x2b8   :  { %v1734_v3 = vsel %vm1719_vm10, %v8997_v12, %v1234_v49  ;;  %2489 = vmatmul.mubr.bf16.gmra.mrb[16].mxu1 %v2058_v33 }
 0x2b9   :  { %v1533_v5 = vpop.permute.xlu0 %1532  ;;  %v2091_v18 = vsel %vm1928_vm9, %v2065_v42, %v2090_v46  ;;  %v1761_v13 = vsel %vm1747_vm13, %v1734_v3, %v1289_v27 }
 0x2ba   :  { %2496 = vmatprep.mubr.bf16.mxu1 %v2091_v18  ;;  %v1855_v34 = vsel %vm1747_vm13, %v1824_v24, %v1533_v5 }
 0x2bb   :  { %v1357_v0 = vpop.permute.xlu1 %1356 }
 0x2bc   :  { %v1788_v53 = vsel %vm1774_vm14, %v1761_v13, %v1357_v0 }
 0x2bd   :  { %v2076_v56 = vshrl.u32 %v1788_v53, 16  ;;  %v2079_v26 = vshll.u32 %v1788_v53, 16  ;;  %v1679_v21 = vpop.permute.xlu0 %1678 }
 0x2be   :  { %v1881_v7 = vsel %vm1774_vm14, %v1855_v34, %v1679_v21 }
 0x2bf   :  { %v2078_v52 = vrot.slane %v2076_v56, 2  ;;  %v2081_v12 = vrot.slane %v2079_v26, 3  ;;  %v1291_v55 = vpop.permute.xlu1 %1290  ;;  %v2109_v30 = vshrl.u32 %v1881_v7, 16  ;;  %v2112_v8 = vshll.u32 %v1881_v7, 16 }
 0x2c1   :  { %v2082_v23 = vor.u32 %v2081_v12, %v2078_v52  ;;  %v2111_v37 = vrot.slane %v2109_v30, 2  ;;  %v2114_v19 = vrot.slane %v2112_v8, 3  ;;  %v1479_v39 = vpop.permute.xlu0 %1478 }
 0x2c2   :  { %v1827_v29 = vsel %vm1719_vm10, %v9439_v51, %v1479_v39 }
 0x2c3   :  { %v1236_v2 = vpop.permute.xlu1 %1235  ;;  %v2083_v62 = vsel %vm1928_vm9, %v2057_v36, %v2082_v23  ;;  %v2115_v9 = vor.u32 %v2114_v19, %v2111_v37 }
 0x2c4   :  { %v1736_v20 = vsel %vm1719_vm10, %v9084_v50, %v1236_v2  ;;  %2497 = vmatmul.mubr.bf16.gmra.mrb[20].mxu1 %v2083_v62 }
 0x2c5   :  { %v1535_v48 = vpop.permute.xlu0 %1534  ;;  %v2116_v28 = vsel %vm1928_vm9, %v2090_v46, %v2115_v9  ;;  %v1763_v42 = vsel %vm1747_vm13, %v1736_v20, %v1291_v55 }
 0x2c6   :  { %2504 = vmatprep.mubr.bf16.mxu1 %v2116_v28  ;;  %v1857_v63 = vsel %vm1747_vm13, %v1827_v29, %v1535_v48 }
 0x2c7   :  { %v1359_v22 = vpop.permute.xlu1 %1358 }
 0x2c8   :  { %v1790_v16 = vsel %vm1774_vm14, %v1763_v42, %v1359_v22 }
 0x2c9   :  { %v2101_v17 = vshrl.u32 %v1790_v16, 16  ;;  %v2104_v1 = vshll.u32 %v1790_v16, 16  ;;  %v1681_v14 = vpop.permute.xlu0 %1680 }
 0x2ca   :  { %v1883_v31 = vsel %vm1774_vm14, %v1857_v63, %v1681_v14 }
 0x2cb   :  { %v2103_v59 = vrot.slane %v2101_v17, 2  ;;  %v2106_v50 = vrot.slane %v2104_v1, 3  ;;  %v1293_v45 = vpop.permute.xlu1 %1292  ;;  %v2134_v44 = vshrl.u32 %v1883_v31, 16  ;;  %v2137_v43 = vshll.u32 %v1883_v31, 16 }
 0x2cd   :  { %v2107_v15 = vor.u32 %v2106_v50, %v2103_v59  ;;  %v2136_v11 = vrot.slane %v2134_v44, 2  ;;  %v2139_v27 = vrot.slane %v2137_v43, 3  ;;  %v1481_v47 = vpop.permute.xlu0 %1480 }
 0x2ce   :  { %v1830_v3 = vsel %vm1719_vm10, %v9446_v61, %v1481_v47 }
 0x2cf   :  { %v1238_v40 = vpop.permute.xlu1 %1237  ;;  %v2108_v36 = vsel %vm1928_vm9, %v2082_v23, %v2107_v15  ;;  %v2140_v51 = vor.u32 %v2139_v27, %v2136_v11 }
 0x2d0   :  { %v1738_v41 = vsel %vm1719_vm10, %v9159_v57, %v1238_v40  ;;  %2505 = vmatmul.mubr.bf16.gmra.mrb[24].mxu1 %v2108_v36 }
 0x2d1   :  { %v1537_v32 = vpop.permute.xlu0 %1536  ;;  %v2141_v54 = vsel %vm1928_vm9, %v2115_v9, %v2140_v51  ;;  %v1765_v49 = vsel %vm1747_vm13, %v1738_v41, %v1293_v45 }
 0x2d2   :  { %2512 = vmatprep.mubr.bf16.mxu1 %v2141_v54  ;;  %v1859_v13 = vsel %vm1747_vm13, %v1830_v3, %v1537_v32 }
 0x2d3   :  { %v1361_v33 = vpop.permute.xlu1 %1360 }
 0x2d4   :  { %v1792_v46 = vsel %vm1774_vm14, %v1765_v49, %v1361_v33 }
 0x2d5   :  { %v2126_v5 = vshrl.u32 %v1792_v46, 16  ;;  %v2129_v18 = vshll.u32 %v1792_v46, 16  ;;  %v1683_v0 = vpop.permute.xlu0 %1682 }
 0x2d6   :  { %v1885_v24 = vsel %vm1774_vm14, %v1859_v13, %v1683_v0  ;;  %v9645_v56 = vpop.f32.mrb[52].mxu0 }
 0x2d7   :  { %v2128_v53 = vrot.slane %v2126_v5, 2  ;;  %v2131_v57 = vrot.slane %v2129_v18, 3  ;;  %v1295_v26 = vpop.permute.xlu1 %1294  ;;  %v2159_v34 = vshrl.u32 %v1885_v24, 16  ;;  %v2162_v21 = vshll.u32 %v1885_v24, 16  ;;  %v7378_v52 = vpop.f32.mrb[53].mxu0 }
 0x2d8   :  { %v9647_v7 = vpop.f32.mrb[54].mxu0 }
 0x2d9   :  { %v2132_v12 = vor.u32 %v2131_v57, %v2128_v53  ;;  %v2161_v55 = vrot.slane %v2159_v34, 2  ;;  %v2164_v61 = vrot.slane %v2162_v21, 3  ;;  %v7379_v30 = vpop.f32.mrb[55].mxu0  ;;  %v1483_v8 = vpop.permute.xlu0 %1482 }
 0x2da   :  { %v1833_v22 = vsel %vm1719_vm10, %v9450_v25, %v1483_v8 }
 0x2db   :  { %v1240_v23 = vpop.permute.xlu1 %1239  ;;  %v2133_v37 = vsel %vm1928_vm9, %v2107_v15, %v2132_v12  ;;  %v2165_v19 = vor.u32 %v2164_v61, %v2161_v55 }
 0x2dc   :  { %v1740_v39 = vsel %vm1719_vm10, %v9234_v35, %v1240_v23  ;;  %2513 = vmatmul.mubr.bf16.gmra.mrb[28].mxu1 %v2133_v37 }
 0x2dd   :  { %v1539_v2 = vpop.permute.xlu0 %1538  ;;  %v2166_v62 = vsel %vm1928_vm9, %v2140_v51, %v2165_v19  ;;  %v1767_v20 = vsel %vm1747_vm13, %v1740_v39, %v1295_v26 }
 0x2de   :  { %v9653_v9 = vpop.f32.mrb[56].mxu0  ;;  %2520 = vmatprep.mubr.bf16.mxu1 %v2166_v62  ;;  %v1861_v35 = vsel %vm1747_vm13, %v1833_v22, %v1539_v2 }
 0x2df   :  { %v1363_v48 = vpop.permute.xlu1 %1362  ;;  %v7382_v42 = vpop.f32.mrb[57].mxu0 }
 0x2e0   :  { %v1794_v28 = vsel %vm1774_vm14, %v1767_v20, %v1363_v48  ;;  %v9659_v17 = vpop.f32.mrb[58].mxu0 }
 0x2e1   :  { %v2151_v16 = vshrl.u32 %v1794_v28, 16  ;;  %v2154_v29 = vshll.u32 %v1794_v28, 16  ;;  %v7383_v1 = vpop.f32.mrb[59].mxu0  ;;  %v1685_v63 = vpop.permute.xlu0 %1684 }
 0x2e2   :  { %v1887_v50 = vsel %vm1774_vm14, %v1861_v35, %v1685_v63 }
 0x2e3   :  { %v2153_v14 = vrot.slane %v2151_v16, 2  ;;  %v2156_v59 = vrot.slane %v2154_v29, 3  ;;  %v1297_v31 = vpop.permute.xlu1 %1296  ;;  %v2184_v45 = vshrl.u32 %v1887_v50, 16  ;;  %v2187_v44 = vshll.u32 %v1887_v50, 16 }
 0x2e5   :  { %v2157_v43 = vor.u32 %v2156_v59, %v2153_v14  ;;  %v2186_v15 = vrot.slane %v2184_v45, 2  ;;  %v2189_v11 = vrot.slane %v2187_v44, 3  ;;  %v1485_v27 = vpop.permute.xlu0 %1484 }
 0x2e6   :  { %v9663_v25 = vpop.f32.mrb[60].mxu0  ;;  %v1836_v34 = vsel %vm1719_vm10, %v9465_v10, %v1485_v27 }
 0x2e7   :  { %v1242_v47 = vpop.permute.xlu1 %1241  ;;  %v2158_v40 = vsel %vm1928_vm9, %v2132_v12, %v2157_v43  ;;  %v2190_v36 = vor.u32 %v2189_v11, %v2186_v15  ;;  %v7386_v41 = vpop.f32.mrb[61].mxu0 }
 0x2e8   :  { %v1742_v51 = vsel %vm1719_vm10, %v9312_v38, %v1242_v47  ;;  %2521 = vmatmul.mubr.bf16.gmra.mrb[32].mxu1 %v2158_v40  ;;  %v9668_v32 = vpop.f32.mrb[62].mxu0 }
 0x2e9   :  { %v7387_v54 = vpop.f32.mrb[63].mxu0  ;;  %v1541_v49 = vpop.permute.xlu0 %1540  ;;  %v2191_v33 = vsel %vm1928_vm9, %v2165_v19, %v2190_v36  ;;  %v1769_v46 = vsel %vm1747_vm13, %v1742_v51, %v1297_v31 }
 0x2ea   :  { %2528 = vmatprep.mubr.bf16.mxu1 %v2191_v33  ;;  %v1863_v12 = vsel %vm1747_vm13, %v1836_v34, %v1541_v49 }
 0x2eb   :  { %v1365_v3 = vpop.permute.xlu1 %1364 }
 0x2ec   :  { %v1796_v5 = vsel %vm1774_vm14, %v1769_v46, %v1365_v3 }
 0x2ed   :  { %v2176_v18 = vshrl.u32 %v1796_v5, 16  ;;  %v2179_v13 = vshll.u32 %v1796_v5, 16  ;;  %v1487_v0 = vpop.permute.xlu0 %1486 }
 0x2ee   :  { %v9673_v38 = vpop.f32.mrb[64].mxu0  ;;  %v1839_v22 = vsel %vm1719_vm10, %v9476_v60, %v1487_v0 }
 0x2ef   :  { %v2178_v53 = vrot.slane %v2176_v18, 2  ;;  %v2181_v57 = vrot.slane %v2179_v13, 3  ;;  %v1299_v24 = vpop.permute.xlu1 %1298  ;;  %v7390_v26 = vpop.f32.mrb[65].mxu0 }
 0x2f0   :  { %v9677_v52 = vpop.f32.mrb[66].mxu0 }
 0x2f1   :  { %v2182_v21 = vor.u32 %v2181_v57, %v2178_v53  ;;  %v7391_v55 = vpop.f32.mrb[67].mxu0  ;;  %v1687_v61 = vpop.permute.xlu0 %1686 }
 0x2f2   :  { %v1889_v30 = vsel %vm1774_vm14, %v1863_v12, %v1687_v61 }
 0x2f3   :  { %v1244_v8 = vpop.permute.xlu1 %1243  ;;  %v2183_v23 = vsel %vm1928_vm9, %v2157_v43, %v2182_v21  ;;  %v2209_v37 = vshrl.u32 %v1889_v30, 16  ;;  %v2212_v19 = vshll.u32 %v1889_v30, 16 }
 0x2f4   :  { %2529 = vmatmul.mubr.bf16.gmra.mrb[36].mxu1 %v2183_v23  ;;  %v1744_v28 = vsel %vm1719_vm10, %v9346_v4, %v1244_v8 }
 0x2f5   :  { %v2211_v39 = vrot.slane %v2209_v37, 2  ;;  %v2214_v2 = vrot.slane %v2212_v19, 3  ;;  %v1543_v62 = vpop.permute.xlu0 %1542  ;;  %v1771_v59 = vsel %vm1747_vm13, %v1744_v28, %v1299_v24 }
 0x2f6   :  { %v9682_v20 = vpop.f32.mrb[68].mxu0  ;;  %v1865_v29 = vsel %vm1747_vm13, %v1839_v22, %v1543_v62 }
 0x2f7   :  { %v1246_v10 = vpop.permute.xlu1 %1245  ;;  %v2215_v48 = vor.u32 %v2214_v2, %v2211_v39  ;;  %v7394_v42 = vpop.f32.mrb[69].mxu0 }
 0x2f8   :  { %v9688_v16 = vpop.f32.mrb[70].mxu0  ;;  %v1746_v49 = vsel %vm1719_vm10, %v9505_v58, %v1246_v10  ;;  %vm3140_vm10 = vcmask 1046532  }
 0x2f9   :  { %v7395_v35 = vpop.f32.mrb[71].mxu0  ;;  %v1689_v1 = vpop.permute.xlu0 %1688  ;;  %v2216_v63 = vsel %vm1928_vm9, %v2190_v36, %v2215_v48  ;;  %vm9817_vm11 = vmor %vm3139_vm8, %vm3140_vm10 }
 0x2fa   :  { %v1891_v14 = vsel %vm1774_vm14, %v1865_v29, %v1689_v1  ;;  %2536 = vmatprep.mubr.bf16.mxu1 %v2216_v63 }
 0x2fb   :  { %v1367_v50 = vpop.permute.xlu1 %1366  ;;  %v2234_v31 = vshrl.u32 %v1891_v14, 16  ;;  %v2237_v4 = vshll.u32 %v1891_v14, 16 }
 0x2fc   :  { %v1798_v45 = vsel %vm1774_vm14, %v1771_v59, %v1367_v50 }
 0x2fd   :  { %v2201_v44 = vshrl.u32 %v1798_v45, 16  ;;  %v2204_v60 = vshll.u32 %v1798_v45, 16  ;;  %v2236_v43 = vrot.slane %v2234_v31, 2  ;;  %v2239_v15 = vrot.slane %v2237_v4, 3 }
 0x2fe   :  { %v9695_v47 = vpop.f32.mrb[72].mxu0 }
 0x2ff   :  { %v2203_v11 = vrot.slane %v2201_v44, 2  ;;  %v2206_v27 = vrot.slane %v2204_v60, 3  ;;  %v1301_v40 = vpop.permute.xlu1 %1300  ;;  %v2240_v36 = vor.u32 %v2239_v15, %v2236_v43  ;;  %v7398_v51 = vpop.f32.mrb[73].mxu0 }
 0x300   :  { %v9697_v54 = vpop.f32.mrb[74].mxu0  ;;  %v1773_v3 = vsel %vm1747_vm13, %v1746_v49, %v1301_v40  ;;  %v9743_v51 = vld [vmem:[%s11353_s5 + $0x1] ss:$0 sm:$0xff] }
 0x301   :  { %v2207_v41 = vor.u32 %v2206_v27, %v2203_v11  ;;  %v7399_v33 = vpop.f32.mrb[75].mxu0  ;;  %v2241_v46 = vsel %vm1928_vm9, %v2215_v48, %v2240_v36  ;;  %v9737_v11 = vld [vmem:[%s11353_s5] ss:$0 sm:$0xff] }
 0x303   :  { %v1369_v5 = vpop.permute.xlu1 %1368  ;;  %v2208_v18 = vsel %vm1928_vm9, %v2182_v21, %v2207_v41 }
 0x304   :  { %v1800_v13 = vsel %vm1774_vm14, %v1773_v3, %v1369_v5  ;;  %2537 = vmatmul.mubr.bf16.gmra.mrb[40].mxu1 %v2208_v18  ;;  %vm3653_vm14 = vcmask 1045504  }
 0x305   :  { %v2226_v0 = vshrl.u32 %v1800_v13, 16  ;;  %v2229_v53 = vshll.u32 %v1800_v13, 16  ;;  %2544 = vmatprep.mubr.bf16.mxu1 %v2241_v46 }
 0x306   :  { %v9705_v26 = vpop.f32.mrb[76].mxu0 }
 0x307   :  { %v2228_v57 = vrot.slane %v2226_v0, 2  ;;  %v2231_v24 = vrot.slane %v2229_v53, 3  ;;  %v7402_v34 = vpop.f32.mrb[77].mxu0 }
 0x308   :  { %v9707_v12 = vpop.f32.mrb[78].mxu0 }
 0x309   :  { %v2232_v58 = vor.u32 %v2231_v24, %v2228_v57  ;;  %v7403_v55 = vpop.f32.mrb[79].mxu0 }
 0x30b   :  { %v2233_v61 = vsel %vm1928_vm9, %v2207_v41, %v2232_v58 }
 0x30c   :  { %2545 = vmatmul.mubr.bf16.gmra.mrb[44].mxu1 %v2233_v61 }
 0x30d   :  { %2552 = vmatprep.mubr.bf16.mxu1 %v2240_v36 }
 0x30e   :  { %v9710_v21 = vpop.f32.mrb[80].mxu0 }
 0x30f   :  { %v7406_v30 = vpop.f32.mrb[81].mxu0 }
 0x310   :  { %v9712_v8 = vpop.f32.mrb[82].mxu0 }
 0x311   :  { %v7407_v23 = vpop.f32.mrb[83].mxu0 }
 0x314   :  { %2553 = vmatmul.mubr.bf16.gmra.mrb[48].mxu1 %v2232_v58 }
 0x315   :  { %7442 = vmatprep.mubr.msk.bf16.mxu1 %vm7862_vm0, %v11433_v6 }
 0x316   :  { %v9716_v37 = vpop.f32.mrb[84].mxu0 }
 0x317   :  { %v7410_v19 = vpop.f32.mrb[85].mxu0 }
 0x318   :  { %v9718_v39 = vpop.f32.mrb[86].mxu0 }
 0x319   :  { %v7411_v2 = vpop.f32.mrb[87].mxu0 }
 0x31e   :  { %v9720_v62 = vpop.f32.mrb[88].mxu0 }
 0x31f   :  { %v7414_v10 = vpop.f32.mrb[89].mxu0 }
 0x320   :  { %v9722_v48 = vpop.f32.mrb[90].mxu0 }
 0x321   :  { %v7415_v28 = vpop.f32.mrb[91].mxu0 }
 0x326   :  { %v9724_v42 = vpop.f32.mrb[92].mxu0 }
 0x327   :  { %v7418_v22 = vpop.f32.mrb[93].mxu0 }
 0x328   :  { %v9726_v29 = vpop.f32.mrb[94].mxu0 }
 0x329   :  { %v7419_v35 = vpop.f32.mrb[95].mxu0 }
 0x32e   :  { %v9728_v1 = vpop.f32.mrb[96].mxu0 }
 0x32f   :  { %v7422_v63 = vpop.f32.mrb[97].mxu0 }
 0x330   :  { %v9730_v14 = vpop.f32.mrb[98].mxu0 }
 0x331   :  { %v7423_v59 = vpop.f32.mrb[99].mxu0 }
 0x336   :  { %v9732_v50 = vpop.f32.mrb[100].mxu0 }
 0x337   :  { %v7426_v31 = vpop.f32.mrb[101].mxu0 }
 0x338   :  { %v2693_v4 = vpop.f32.mrb[102].mxu0 }
 0x339   :  { %v7427_v45 = vpop.f32.mrb[103].mxu0 }
 0x35c   :  { %v6935_v44 = vpop.f32.mrb[0].mxu1 }
 0x35d   :  { %v6936_v60 = vpop.f32.mrb[1].mxu1 }
 0x35e   :  { %v6937_v43 = vadd.f32 %v6936_v60, %v6935_v44  ;;  %v6938_v15 = vpop.f32.mrb[2].mxu1 }
 0x35f   :  { %v6939_v27 = vpop.f32.mrb[3].mxu1 }
 0x360   :  { %v2595_v40 = vadd.f32 %v6937_v43, %v9645_v56  ;;  %v6940_v36 = vadd.f32 %v6939_v27, %v6938_v15 }
 0x362   :  { %v2701_v41 = vmul.f32 %v9737_v11, %v2595_v40  ;;  %v2598_v49 = vadd.f32 %v6940_v36, %v9647_v7 }
 0x364   :  { %v2731_v33 = vadd.f32 %v9743_v51, %v2701_v41  ;;  %v2702_v46 = vmul.f32 %v9737_v11, %v2598_v49 }
 0x366   :  { %v2756_v3 = vmax.f32 %v2731_v33, 0.0  ;;  %v2732_v5 = vadd.f32 %v9743_v51, %v2702_v46 }
 0x367   :  { %v6941_v18 = vpop.f32.mrb[4].mxu1 }
 0x368   :  { %v6846_v13 = vpack.c.bf16 %v2756_v3, %v2756_v3  ;;  %v2757_v56 = vmax.f32 %v2732_v5, 0.0  ;;  %v6942_v0 = vpop.f32.mrb[5].mxu1 }
 0x369   :  { %v6943_v53 = vadd.f32 %v6942_v0, %v6941_v18  ;;  %v6944_v57 = vpop.f32.mrb[6].mxu1 }
 0x36a   :  { %2882 = vst.msk [vmem:[#allocation3 + $0x8] sm:$0xf] %vm69_vm1, %v6846_v13  ;;  %v6847_v24 = vpack.c.bf16 %v2757_v56, %v2757_v56  ;;  %v6945_v34 = vpop.f32.mrb[7].mxu1 }
 0x36b   :  { %v2603_v58 = vadd.f32 %v6943_v53, %v9653_v9  ;;  %v6946_v7 = vadd.f32 %v6945_v34, %v6944_v57 }
 0x36c   :  { %2883 = vst.msk [vmem:[#allocation3 + $0xc] sm:$0xf] %vm69_vm1, %v6847_v24 }
 0x36d   :  { %v2703_v55 = vmul.f32 %v9737_v11, %v2603_v58  ;;  %v2606_v61 = vadd.f32 %v6946_v7, %v9659_v17 }
 0x36f   :  { %v2733_v30 = vadd.f32 %v9743_v51, %v2703_v55  ;;  %v2704_v23 = vmul.f32 %v9737_v11, %v2606_v61 }
 0x371   :  { %v2758_v19 = vmax.f32 %v2733_v30, 0.0  ;;  %v2734_v2 = vadd.f32 %v9743_v51, %v2704_v23  ;;  %v9761_v4 = vld [vmem:[#allocation3 + $0x8] sm:$0xf] }
 0x372   :  { %v2930_v15 = vshrl.u32 %v9761_v4, 16  ;;  %v2933_v27 = vshll.u32 %v9761_v4, 16 }
 0x373   :  { %v6848_v10 = vpack.c.bf16 %v2758_v19, %v2758_v19  ;;  %v2759_v28 = vmax.f32 %v2734_v2, 0.0  ;;  %v6947_v22 = vpop.f32.mrb[8].mxu1  ;;  %v9758_v35 = vld [vmem:[#allocation3 + $0xc] sm:$0xe] }
 0x374   :  { %v6948_v9 = vpop.f32.mrb[9].mxu1  ;;  %v3089_v45 = vshrl.u32 %v9758_v35, 16  ;;  %v3092_v44 = vshll.u32 %v9758_v35, 16  ;;  %v9773_v3 = vld [vmem:[#allocation3 + $0xc] sm:$0xf]  ;;  %v2932_v18 = vrot.slane %v2930_v15, 4 }
 0x375   :  { %2884 = vst.msk [vmem:[#allocation3 + $0x10] sm:$0xf] %vm69_vm1, %v6848_v10  ;;  %v6849_v63 = vpack.c.bf16 %v2759_v28, %v2759_v28  ;;  %v6949_v59 = vadd.f32 %v6948_v9, %v6947_v22  ;;  %v6950_v31 = vpop.f32.mrb[10].mxu1  ;;  %v2943_v24 = vshrl.u32 %v9773_v3, 16 }
 0x376   :  { %v6951_v17 = vpop.f32.mrb[11].mxu1  ;;  %v3091_v41 = vrot.slane %v3089_v45, 4  ;;  %v3094_v49 = vrot.slane %v3092_v44, 5 }
 0x377   :  { %2885 = vst.msk [vmem:[#allocation3 + $0x14] sm:$0xf] %vm69_vm1, %v6849_v63  ;;  %v2611_v60 = vadd.f32 %v6949_v59, %v9663_v25  ;;  %v6952_v43 = vadd.f32 %v6951_v17, %v6950_v31  ;;  %v2935_v25 = vrot.slane %v2933_v27, 5  ;;  %v2945_v17 = vrot.slane %v2943_v24, 4 }
 0x378   :  { %v3095_v34 = vor.u32 %v3094_v49, %v3091_v41 }
 0x379   :  { %v2705_v40 = vmul.f32 %v9737_v11, %v2611_v60  ;;  %v2614_v36 = vadd.f32 %v6952_v43, %v9668_v32  ;;  %v2939_v32 = vshll.u32 %v9773_v3, 16  ;;  %v2936_v9 = vor.u32 %v2935_v25, %v2932_v18 }
 0x37a   :  { %v3096_v27 = vrot.slane %v3095_v34, 4 }
 0x37b   :  { %v2735_v33 = vadd.f32 %v9743_v51, %v2705_v40  ;;  %v2706_v46 = vmul.f32 %v9737_v11, %v2614_v36  ;;  %v2941_v31 = vrot.slane %v2939_v32, 5 }
 0x37c   :  { %v2914_v5 = vld [vmem:[#allocation3 + $0x10] sm:$0xf] }
 0x37d   :  { %v2760_v13 = vmax.f32 %v2735_v33, 0.0  ;;  %v2736_v56 = vadd.f32 %v9743_v51, %v2706_v46  ;;  %v2949_v0 = vshll.u32 %v2914_v5, 16  ;;  %v2953_v53 = vshrl.u32 %v2914_v5, 16 }
 0x37e   :  { %v9776_v57 = vld [vmem:[#allocation3 + $0x14] sm:$0xf]  ;;  %v2937_v33 = vrot.slane %v2936_v9, 4  ;;  %v2946_v46 = vor.u32 %v2945_v17, %v2941_v31 }
 0x37f   :  { %v6850_v58 = vpack.c.bf16 %v2760_v13, %v2760_v13  ;;  %v2761_v7 = vmax.f32 %v2736_v56, 0.0  ;;  %v6953_v55 = vpop.f32.mrb[12].mxu1  ;;  %v9780_v61 = vrot.slane %v2949_v0, 5  ;;  %v2955_v30 = vrot.slane %v2953_v53, 4 }
 0x380   :  { %v6954_v23 = vpop.f32.mrb[13].mxu1  ;;  %v2959_v19 = vshll.u32 %v9776_v57, 16  ;;  %v2963_v2 = vshrl.u32 %v9776_v57, 16 }
 0x381   :  { %2886 = vst.msk [vmem:[#allocation3 + $0x18] sm:$0xf] %vm69_vm1, %v6850_v58  ;;  %v6851_v10 = vpack.c.bf16 %v2761_v7, %v2761_v7  ;;  %v6955_v28 = vadd.f32 %v6954_v23, %v6953_v55  ;;  %v6956_v22 = vpop.f32.mrb[14].mxu1  ;;  %v2956_v63 = vor.u32 %v2955_v30, %v9780_v61  ;;  %v2942_v58 = vsel %vm9790_vm4, %v2937_v33, %v2941_v31 }
 0x382   :  { %v6957_v59 = vpop.f32.mrb[15].mxu1  ;;  %v2961_v45 = vrot.slane %v2959_v19, 5  ;;  %v2965_v44 = vrot.slane %v2963_v2, 4  ;;  %v2947_v7 = vrot.slane %v2946_v46, 4  ;;  %v3071_v33 = vmax.bf16 %v2942_v58, %v9761_v4 }
 0x383   :  { %2887 = vst.msk [vmem:[#allocation3 + $0x1c] sm:$0xf] %vm69_vm1, %v6851_v10  ;;  %v2619_v60 = vadd.f32 %v6955_v28, %v9673_v38  ;;  %v6958_v43 = vadd.f32 %v6957_v59, %v6956_v22  ;;  %v2957_v15 = vrot.slane %v2956_v63, 4  ;;  %v3097_v38 = vsel %vm9790_vm4, %v3096_v27, %v9780_v61 }
 0x384   :  { %v2966_v18 = vor.u32 %v2965_v44, %v2961_v45  ;;  %v3122_v53 = vmax.bf16 %v3097_v38, %v9758_v35  ;;  %v2952_v28 = vsel %vm9790_vm4, %v2947_v7, %v9780_v61 }
 0x385   :  { %v2707_v36 = vmul.f32 %v9737_v11, %v2619_v60  ;;  %v2622_v41 = vadd.f32 %v6958_v43, %v9677_v52  ;;  %v2962_v49 = vsel %vm9790_vm4, %v2957_v15, %v2961_v45 }
 0x386   :  { %v9803_v56 = vmax.bf16 %v2962_v49, %v2914_v5  ;;  %v2967_v55 = vrot.slane %v2966_v18, 4  ;;  %v6623_v61 = vrot.slane %v3122_v53, 9  ;;  %v3072_v53 = vmax.bf16 %v2952_v28, %v9773_v3 }
 0x387   :  { %v2737_v25 = vadd.f32 %v9743_v51, %v2707_v36  ;;  %v2708_v13 = vmul.f32 %v9737_v11, %v2622_v41 }
 0x388   :  { %v2916_v0 = vld [vmem:[#allocation3 + $0x18] sm:$0xf]  ;;  %v3144_v35 = vrot.slane %v9803_v56, 5 }
 0x389   :  { %v2762_v52 = vmax.f32 %v2737_v25, 0.0  ;;  %v2738_v32 = vadd.f32 %v9743_v51, %v2708_v13  ;;  %v2969_v24 = vshll.u32 %v2916_v0, 16  ;;  %v2973_v34 = vshrl.u32 %v2916_v0, 16 }
 0x38a   :  { %v9809_v30 = vld [vmem:[#allocation3 + $0x1c] sm:$0xf]  ;;  %v3145_v38 = vsel %vm9817_vm11, %v6623_v61, %v3144_v35  ;;  %v3146_v46 = vrot.slane %v3144_v35, 4 }
 0x38b   :  { %v6852_v23 = vpack.c.bf16 %v2762_v52, %v2762_v52  ;;  %v2763_v5 = vmax.f32 %v2738_v32, 0.0  ;;  %v6959_v19 = vpop.f32.mrb[16].mxu1  ;;  %v2971_v2 = vrot.slane %v2969_v24, 5  ;;  %v2975_v9 = vrot.slane %v2973_v34, 4 }
 0x38c   :  { %v6960_v10 = vpop.f32.mrb[17].mxu1  ;;  %v2979_v63 = vshll.u32 %v9809_v30, 16  ;;  %v2983_v59 = vshrl.u32 %v9809_v30, 16 }
 0x38d   :  { %2888 = vst.msk [vmem:[#allocation3 + $0x20] sm:$0xf] %vm69_vm1, %v6852_v23  ;;  %v6853_v31 = vpack.c.bf16 %v2763_v5, %v2763_v5  ;;  %v6961_v17 = vadd.f32 %v6960_v10, %v6959_v19  ;;  %v6962_v45 = vpop.f32.mrb[18].mxu1  ;;  %v2972_v44 = vsel %vm9790_vm4, %v2967_v55, %v2971_v2  ;;  %v2976_v15 = vor.u32 %v2975_v9, %v2971_v2 }
 0x38e   :  { %v6963_v60 = vpop.f32.mrb[19].mxu1  ;;  %v9827_v43 = vmax.bf16 %v2972_v44, %v9776_v57  ;;  %v2981_v27 = vrot.slane %v2979_v63, 5  ;;  %v2985_v36 = vrot.slane %v2983_v59, 4 }
 0x38f   :  { %2889 = vst.msk [vmem:[#allocation3 + $0x24] sm:$0xf] %vm69_vm1, %v6853_v31  ;;  %v2627_v41 = vadd.f32 %v6961_v17, %v9682_v20  ;;  %v6964_v49 = vadd.f32 %v6963_v60, %v6962_v45  ;;  %v2977_v25 = vrot.slane %v2976_v15, 4  ;;  %v3193_v20 = vmax.bf16 %v3145_v38, %v3071_v33 }
 0x390   :  { %v3147_v18 = vrot.slane %v9827_v43, 5  ;;  %v2986_v24 = vor.u32 %v2985_v36, %v2981_v27 }
 0x391   :  { %v2709_v57 = vmul.f32 %v9737_v11, %v2627_v41  ;;  %v2630_v13 = vadd.f32 %v6964_v49, %v9688_v16  ;;  %v2982_v32 = vsel %vm9790_vm4, %v2977_v25, %v2981_v27 }
 0x392   :  { %v3148_v52 = vsel %vm9817_vm11, %v3146_v46, %v3147_v18  ;;  %v9844_v7 = vmax.bf16 %v2982_v32, %v2916_v0  ;;  %v2987_v19 = vrot.slane %v2986_v24, 4  ;;  %v3149_v27 = vrot.slane %v3147_v18, 4 }
 0x393   :  { %v2739_v4 = vadd.f32 %v9743_v51, %v2709_v57  ;;  %v2710_v34 = vmul.f32 %v9737_v11, %v2630_v13  ;;  %v3194_v58 = vmax.bf16 %v3148_v52, %v3072_v53 }
 0x394   :  { %v2918_v55 = vld [vmem:[#allocation3 + $0x20] sm:$0xf]  ;;  %v3150_v2 = vrot.slane %v9844_v7, 5 }
 0x395   :  { %v2764_v23 = vmax.f32 %v2739_v4, 0.0  ;;  %v2740_v16 = vadd.f32 %v9743_v51, %v2710_v34  ;;  %v6627_v3 = vcombine.low %v3193_v20, %v3194_v58  ;;  %v2989_v5 = vshll.u32 %v2918_v55, 16 }
 0x396   :  { %v9848_v35 = vld [vmem:[#allocation3 + $0x24] sm:$0xf]  ;;  %v2993_v10 = vshrl.u32 %v2918_v55, 16  ;;  %v3151_v57 = vsel %vm9817_vm11, %v3149_v27, %v3150_v2  ;;  %v3152_v13 = vrot.slane %v3150_v2, 4 }
 0x397   :  { %v6854_v28 = vpack.c.bf16 %v2764_v23, %v2764_v23  ;;  %v2765_v9 = vmax.f32 %v2740_v16, 0.0  ;;  %v6965_v63 = vpop.f32.mrb[20].mxu1  ;;  %7429 = vmatpush3.bf16.msra.mxu1 %v6627_v3  ;;  %v2991_v59 = vrot.slane %v2989_v5, 5  ;;  %v2999_v0 = vshll.u32 %v9848_v35, 16 }
 0x398   :  { %v6966_v31 = vpop.f32.mrb[21].mxu1  ;;  %7430 = vmatprep.subr.bf16.mxu1 %v11433_v6  ;;  %v2995_v17 = vrot.slane %v2993_v10, 4  ;;  %v3003_v45 = vshrl.u32 %v9848_v35, 16  ;;  %v3195_v32 = vmax.bf16 %v3151_v57, %v9803_v56 }
 0x399   :  { %2890 = vst.msk [vmem:[#allocation3 + $0x28] sm:$0xf] %vm69_vm1, %v6854_v28  ;;  %v6855_v44 = vpack.c.bf16 %v2765_v9, %v2765_v9  ;;  %v6967_v61 = vadd.f32 %v6966_v31, %v6965_v63  ;;  %v6968_v60 = vpop.f32.mrb[22].mxu1  ;;  %v2992_v15 = vsel %vm9790_vm4, %v2987_v19, %v2991_v59  ;;  %v3001_v38 = vrot.slane %v2999_v0, 5 }
 0x39a   :  { %v6969_v36 = vpop.f32.mrb[23].mxu1  ;;  %v9857_v41 = vmax.bf16 %v2992_v15, %v9809_v30  ;;  %v2996_v49 = vor.u32 %v2995_v17, %v2991_v59  ;;  %v3005_v33 = vrot.slane %v3003_v45, 4 }
 0x39b   :  { %2891 = vst.msk [vmem:[#allocation3 + $0x2c] sm:$0xf] %vm69_vm1, %v6855_v44  ;;  %v2635_v46 = vadd.f32 %v6967_v61, %v9695_v47  ;;  %v6970_v25 = vadd.f32 %v6969_v36, %v6968_v60 }
 0x39c   :  { %v3153_v53 = vrot.slane %v9857_v41, 5  ;;  %v2997_v52 = vrot.slane %v2996_v49, 4  ;;  %v3006_v24 = vor.u32 %v3005_v33, %v3001_v38 }
 0x39d   :  { %v2711_v18 = vmul.f32 %v9737_v11, %v2635_v46  ;;  %v2638_v30 = vadd.f32 %v6970_v25, %v9697_v54 }
 0x39e   :  { %v3154_v20 = vsel %vm9817_vm11, %v3152_v13, %v3153_v53  ;;  %v3002_v47 = vsel %vm9790_vm4, %v2997_v52, %v3001_v38  ;;  %v3007_v2 = vrot.slane %v3006_v24, 4  ;;  %v3155_v15 = vrot.slane %v3153_v53, 4 }
 0x39f   :  { %v2741_v4 = vadd.f32 %v9743_v51, %v2711_v18  ;;  %v2712_v34 = vmul.f32 %v9737_v11, %v2638_v30  ;;  %v3196_v58 = vmax.bf16 %v3154_v20, %v9827_v43  ;;  %v9874_v23 = vmax.bf16 %v3002_v47, %v2918_v55 }
 0x3a0   :  { %v2920_v16 = vld [vmem:[#allocation3 + $0x28] sm:$0xf] }
 0x3a1   :  { %v2766_v3 = vmax.f32 %v2741_v4, 0.0  ;;  %v2742_v54 = vadd.f32 %v9743_v51, %v2712_v34  ;;  %v6628_v5 = vcombine.low %v3195_v32, %v3196_v58  ;;  %v3009_v19 = vshll.u32 %v2920_v16, 16 }
 0x3a2   :  { %v3156_v56 = vrot.slane %v9874_v23, 5  ;;  %v9878_v10 = vld [vmem:[#allocation3 + $0x2c] sm:$0xf]  ;;  %v3013_v28 = vshrl.u32 %v2920_v16, 16 }
 0x3a3   :  { %v6856_v9 = vpack.c.bf16 %v2766_v3, %v2766_v3  ;;  %v2767_v63 = vmax.f32 %v2742_v54, 0.0  ;;  %v6971_v59 = vpop.f32.mrb[24].mxu1  ;;  %7431 = vmatpush3.bf16.msra.mxu1 %v6628_v5  ;;  %v3011_v0 = vrot.slane %v3009_v19, 5  ;;  %v3019_v43 = vshll.u32 %v9878_v10, 16 }
 0x3a4   :  { %v6972_v55 = vpop.f32.mrb[25].mxu1  ;;  %7432 = vmatprep.subr.bf16.mxu1 %v11433_v6  ;;  %v3015_v31 = vrot.slane %v3013_v28, 4  ;;  %v3023_v17 = vshrl.u32 %v9878_v10, 16  ;;  %v3157_v57 = vsel %vm9817_vm11, %v3155_v15, %v3156_v56  ;;  %v3158_v13 = vrot.slane %v3156_v56, 4 }
 0x3a5   :  { %2892 = vst.msk [vmem:[#allocation3 + $0x30] sm:$0xf] %vm69_vm1, %v6856_v9  ;;  %v6857_v45 = vpack.c.bf16 %v2767_v63, %v2767_v63  ;;  %v6973_v44 = vadd.f32 %v6972_v55, %v6971_v59  ;;  %v6974_v61 = vpop.f32.mrb[26].mxu1  ;;  %v3012_v60 = vsel %vm9790_vm4, %v3007_v2, %v3011_v0  ;;  %v3021_v38 = vrot.slane %v3019_v43, 5 }
 0x3a6   :  { %v6975_v27 = vpop.f32.mrb[27].mxu1  ;;  %v9887_v36 = vmax.bf16 %v3012_v60, %v9848_v35  ;;  %v3016_v49 = vor.u32 %v3015_v31, %v3011_v0  ;;  %v3025_v33 = vrot.slane %v3023_v17, 4  ;;  %v3197_v20 = vmax.bf16 %v3157_v57, %v9844_v7 }
 0x3a7   :  { %2893 = vst.msk [vmem:[#allocation3 + $0x34] sm:$0xf] %vm69_vm1, %v6857_v45  ;;  %v2643_v46 = vadd.f32 %v6973_v44, %v9705_v26  ;;  %v6976_v25 = vadd.f32 %v6975_v27, %v6974_v61 }
 0x3a8   :  { %v3159_v52 = vrot.slane %v9887_v36, 5  ;;  %v3017_v18 = vrot.slane %v3016_v49, 4  ;;  %v3026_v32 = vor.u32 %v3025_v33, %v3021_v38 }
 0x3a9   :  { %v2713_v53 = vmul.f32 %v9737_v11, %v2643_v46  ;;  %v2646_v35 = vadd.f32 %v6976_v25, %v9707_v12 }
 0x3aa   :  { %v3160_v30 = vsel %vm9817_vm11, %v3158_v13, %v3159_v52  ;;  %v3022_v26 = vsel %vm9790_vm4, %v3017_v18, %v3021_v38  ;;  %v3027_v19 = vrot.slane %v3026_v32, 4  ;;  %v3161_v44 = vrot.slane %v3159_v52, 4 }
 0x3ab   :  { %v2743_v47 = vadd.f32 %v9743_v51, %v2713_v53  ;;  %v2714_v24 = vmul.f32 %v9737_v11, %v2646_v35  ;;  %v3198_v4 = vmax.bf16 %v3160_v30, %v9857_v41  ;;  %v9904_v34 = vmax.bf16 %v3022_v26, %v2920_v16 }
 0x3ac   :  { %v2922_v58 = vld [vmem:[#allocation3 + $0x30] sm:$0xf] }
 0x3ad   :  { %v2768_v3 = vmax.f32 %v2743_v47, 0.0  ;;  %v2744_v12 = vadd.f32 %v9743_v51, %v2714_v24  ;;  %v6629_v54 = vcombine.low %v3197_v20, %v3198_v4  ;;  %v3029_v5 = vshll.u32 %v2922_v58, 16 }
 0x3ae   :  { %v3162_v7 = vrot.slane %v9904_v34, 5  ;;  %v9908_v2 = vld [vmem:[#allocation3 + $0x34] sm:$0xf]  ;;  %v3033_v56 = vshrl.u32 %v2922_v58, 16 }
 0x3af   :  { %v6858_v28 = vpack.c.bf16 %v2768_v3, %v2768_v3  ;;  %v2769_v9 = vmax.f32 %v2744_v12, 0.0  ;;  %v6977_v63 = vpop.f32.mrb[28].mxu1  ;;  %7433 = vmatpush3.bf16.msra.mxu1 %v6629_v54  ;;  %v3031_v59 = vrot.slane %v3029_v5, 5  ;;  %v3039_v41 = vshll.u32 %v9908_v2, 16 }
 0x3b0   :  { %v6978_v16 = vpop.f32.mrb[29].mxu1  ;;  %7434 = vmatprep.subr.bf16.mxu1 %v11433_v6  ;;  %v3035_v0 = vrot.slane %v3033_v56, 4  ;;  %v3043_v43 = vshrl.u32 %v9908_v2, 16  ;;  %v3163_v46 = vsel %vm9817_vm11, %v3161_v44, %v3162_v7  ;;  %v3164_v25 = vrot.slane %v3162_v7, 4 }
 0x3b1   :  { %2894 = vst.msk [vmem:[#allocation3 + $0x38] sm:$0xf] %vm69_vm1, %v6858_v28  ;;  %v6859_v55 = vpack.c.bf16 %v2769_v9, %v2769_v9  ;;  %v6979_v31 = vadd.f32 %v6978_v16, %v6977_v63  ;;  %v6980_v17 = vpop.f32.mrb[30].mxu1  ;;  %v3032_v45 = vsel %vm9790_vm4, %v3027_v19, %v3031_v59  ;;  %v3041_v27 = vrot.slane %v3039_v41, 5 }
 0x3b2   :  { %v6981_v61 = vpop.f32.mrb[31].mxu1  ;;  %v9917_v60 = vmax.bf16 %v3032_v45, %v9878_v10  ;;  %v3036_v15 = vor.u32 %v3035_v0, %v3031_v59  ;;  %v3045_v49 = vrot.slane %v3043_v43, 4  ;;  %v3199_v53 = vmax.bf16 %v3163_v46, %v9874_v23 }
 0x3b3   :  { %2895 = vst.msk [vmem:[#allocation3 + $0x3c] sm:$0xf] %vm69_vm1, %v6859_v55  ;;  %v2651_v38 = vadd.f32 %v6979_v31, %v9710_v21  ;;  %v6982_v33 = vadd.f32 %v6981_v61, %v6980_v17 }
 0x3b4   :  { %v3165_v57 = vrot.slane %v9917_v60, 5  ;;  %v3037_v13 = vrot.slane %v3036_v15, 4  ;;  %v3046_v35 = vor.u32 %v3045_v49, %v3041_v27 }
 0x3b5   :  { %v2715_v52 = vmul.f32 %v9737_v11, %v2651_v38  ;;  %v2654_v10 = vadd.f32 %v6982_v33, %v9712_v8 }
 0x3b6   :  { %v3166_v18 = vsel %vm9817_vm11, %v3164_v25, %v3165_v57  ;;  %v3042_v21 = vsel %vm9790_vm4, %v3037_v13, %v3041_v27  ;;  %v3047_v12 = vrot.slane %v3046_v35, 4  ;;  %v3167_v63 = vrot.slane %v3165_v57, 4 }
 0x3b7   :  { %v2745_v30 = vadd.f32 %v9743_v51, %v2715_v52  ;;  %v2716_v20 = vmul.f32 %v9737_v11, %v2654_v10  ;;  %v3200_v26 = vmax.bf16 %v3166_v18, %v9887_v36  ;;  %v9934_v32 = vmax.bf16 %v3042_v21, %v2922_v58 }
 0x3b8   :  { %v9936_v47 = vld [vmem:[#allocation3 + $0x38] sm:$0xf] }
 0x3b9   :  { %v2925_v8 = vld [vmem:[#allocation3 + $0x38] sm:$0x7]  ;;  %v2770_v24 = vmax.f32 %v2745_v30, 0.0  ;;  %v2746_v4 = vadd.f32 %v9743_v51, %v2716_v20  ;;  %v6630_v3 = vcombine.low %v3199_v53, %v3200_v26  ;;  %v3099_v23 = vshll.u32 %v9936_v47, 16 }
 0x3ba   :  { %v3168_v54 = vrot.slane %v9934_v32, 5  ;;  %v3049_v5 = vshll.u32 %v2925_v8, 16  ;;  %v3087_v19 = vld [vmem:[#allocation3 + $0x3c] sm:$0xf]  ;;  %v3103_v58 = vshrl.u32 %v9936_v47, 16  ;;  %v3053_v25 = vshrl.u32 %v2925_v8, 16 }
 0x3bb   :  { %v6860_v7 = vpack.c.bf16 %v2770_v24, %v2770_v24  ;;  %v2771_v56 = vmax.f32 %v2746_v4, 0.0  ;;  %v6983_v28 = vpop.f32.mrb[32].mxu1  ;;  %7435 = vmatpush3.bf16.msra.mxu1 %v6630_v3  ;;  %v3101_v36 = vrot.slane %v3099_v23, 5  ;;  %v3109_v59 = vshll.u32 %v3087_v19, 16  ;;  %v9954_v18 = vld [vmem:[#allocation3 + $0x38] sm:$0xc] }
 0x3bc   :  { %v6984_v9 = vpop.f32.mrb[33].mxu1  ;;  %7436 = vmatprep.subr.bf16.mxu1 %v11433_v6  ;;  %v3169_v17 = vsel %vm9817_vm11, %v3167_v63, %v3168_v54  ;;  %v3051_v45 = vrot.slane %v3049_v5, 5  ;;  %v3105_v44 = vrot.slane %v3103_v58, 4  ;;  %v3113_v49 = vshrl.u32 %v3087_v19, 16  ;;  %v9963_v8 = vld [vmem:[#allocation3 + $0x3c] sm:$0xf] }
 0x3bd   :  { %2896 = vst.msk [vmem:[#allocation3 + $0x40] sm:$0xf] %vm69_vm1, %v6860_v7  ;;  %v6861_v41 = vpack.c.bf16 %v2771_v56, %v2771_v56  ;;  %v6985_v16 = vadd.f32 %v6984_v9, %v6983_v28  ;;  %v6986_v0 = vpop.f32.mrb[34].mxu1  ;;  %v3102_v43 = vsel %vm9790_vm4, %v3047_v12, %v3101_v36  ;;  %v3111_v27 = vrot.slane %v3109_v59, 5  ;;  %v3086_v7 = vld [vmem:[#allocation3 + $0x3c] sm:$0x7] }
 0x3be   :  { %v6987_v55 = vpop.f32.mrb[35].mxu1  ;;  %v3123_v31 = vmax.bf16 %v3102_v43, %v9908_v2  ;;  %v3170_v38 = vrot.slane %v3168_v54, 4  ;;  %v3106_v46 = vor.u32 %v3105_v44, %v3101_v36  ;;  %v3201_v52 = vmax.bf16 %v3169_v17, %v9904_v34  ;;  %v2924_v56 = vld [vmem:[#allocation3 + $0x38] sm:$0x3] }
 0x3bf   :  { %2897 = vst.msk [vmem:[#allocation3 + $0x44] sm:$0xf] %vm69_vm1, %v6861_v41  ;;  %v2659_v61 = vadd.f32 %v6985_v16, %v9716_v37  ;;  %v6988_v15 = vadd.f32 %v6987_v55, %v6986_v0  ;;  %v3115_v10 = vrot.slane %v3113_v49, 4  ;;  %v3052_v37 = vsel %vm9790_vm4, %v3047_v12, %v3051_v45 }
 0x3c0   :  { %v3171_v33 = vrot.slane %v3123_v31, 5  ;;  %v3107_v21 = vrot.slane %v3106_v46, 4  ;;  %v3055_v35 = vrot.slane %v3053_v25, 4  ;;  %v3343_v4 = vshrl.u32 %v9954_v18, 16 }
 0x3c1   :  { %v2717_v57 = vmul.f32 %v9737_v11, %v2659_v61  ;;  %v2662_v13 = vadd.f32 %v6988_v15, %v9718_v39  ;;  %v3116_v39 = vor.u32 %v3115_v10, %v3111_v27  ;;  %v3346_v3 = vshll.u32 %v9954_v18, 16 }
 0x3c2   :  { %v3172_v53 = vsel %vm9817_vm11, %v3170_v38, %v3171_v33  ;;  %v3112_v34 = vsel %vm9790_vm4, %v3107_v21, %v3111_v27  ;;  %v3056_v24 = vor.u32 %v3055_v35, %v3051_v45  ;;  %v3082_v19 = vmax.bf16 %v3052_v37, %v9908_v2 }
 0x3c3   :  { %v2747_v30 = vadd.f32 %v9743_v51, %v2717_v57  ;;  %v2718_v20 = vmul.f32 %v9737_v11, %v2662_v13  ;;  %v3202_v26 = vmax.bf16 %v3172_v53, %v9917_v60  ;;  %v3117_v5 = vrot.slane %v3116_v39, 4 }
 0x3c4   :  { %v3124_v60 = vmax.bf16 %v3112_v34, %v9936_v47  ;;  %v3057_v28 = vrot.slane %v3056_v24, 4  ;;  %v3352_v36 = vshll.u32 %v9963_v8, 16  ;;  %v9973_v41 = vld [vmem:[#allocation3 + $0x40] sm:$0xf]  ;;  %v3356_v16 = vshrl.u32 %v9963_v8, 16 }
 0x3c5   :  { %v2772_v23 = vmax.f32 %v2747_v30, 0.0  ;;  %v2748_v12 = vadd.f32 %v9743_v51, %v2718_v20  ;;  %v6631_v54 = vcombine.low %v3201_v52, %v3202_v26  ;;  %v3125_v59 = vmax.bf16 %v3117_v5, %v3086_v7 }
 0x3c6   :  { %v3173_v2 = vrot.slane %v3171_v33, 4  ;;  %v3174_v43 = vrot.slane %v3124_v60, 5  ;;  %v9977_v55 = vrot.slane %v3343_v4, 4  ;;  %v9979_v47 = vrot.slane %v3346_v3, 5  ;;  %v3331_v13 = vld [vmem:[#allocation3 + $0x44] sm:$0xf] }
 0x3c7   :  { %v6862_v58 = vpack.c.bf16 %v2772_v23, %v2772_v23  ;;  %v2773_v9 = vmax.f32 %v2748_v12, 0.0  ;;  %v6989_v63 = vpop.f32.mrb[36].mxu1  ;;  %7437 = vmatpush3.bf16.msra.mxu1 %v6631_v54  ;;  %v3177_v44 = vrot.slane %v3125_v59, 5  ;;  %v3083_v61 = vmax.bf16 %v3057_v28, %v2924_v56 }
 0x3c8   :  { %v6990_v0 = vpop.f32.mrb[37].mxu1  ;;  %7438 = vmatprep.subr.bf16.mxu1 %v11433_v6  ;;  %v3175_v27 = vsel %vm9817_vm11, %v3173_v2, %v3174_v43  ;;  %v3176_v49 = vrot.slane %v3174_v43, 4  ;;  %v9984_v38 = vrot.slane %v3352_v36, 5  ;;  %v3362_v33 = vshll.u32 %v9973_v41, 16  ;;  %v3502_v43 = vld [vmem:[#allocation3 + $0x3c] sm:$0x8] }
 0x3c9   :  { %2898 = vst.msk [vmem:[#allocation3 + $0x48] sm:$0xf] %vm69_vm1, %v6862_v58  ;;  %v6863_v31 = vpack.c.bf16 %v2773_v9, %v2773_v9  ;;  %v6991_v17 = vadd.f32 %v6990_v0, %v6989_v63  ;;  %v6992_v45 = vpop.f32.mrb[38].mxu1  ;;  %v3179_v57 = vrot.slane %v3177_v44, 4  ;;  %v3358_v52 = vrot.slane %v3356_v16, 4 }
 0x3ca   :  { %v6993_v15 = vpop.f32.mrb[39].mxu1  ;;  %v3178_v10 = vsel %vm9817_vm11, %v3176_v49, %v3177_v44  ;;  %v3203_v53 = vmax.bf16 %v3175_v27, %v9934_v32  ;;  %v9992_v37 = vrot.slane %v3362_v33, 5  ;;  %v3366_v21 = vshrl.u32 %v9973_v41, 16 }
 0x3cb   :  { %2899 = vst.msk [vmem:[#allocation3 + $0x4c] sm:$0xf] %vm69_vm1, %v6863_v31  ;;  %v2667_v46 = vadd.f32 %v6991_v17, %v9720_v62  ;;  %v6994_v25 = vadd.f32 %v6993_v15, %v6992_v45  ;;  %v3204_v20 = vmax.bf16 %v3178_v10, %v3082_v19  ;;  %v3205_v26 = vmax.bf16 %v3179_v57, %v3083_v61 }
 0x3cc   :  { %v3368_v62 = vrot.slane %v3366_v21, 4  ;;  %v3372_v39 = vshll.u32 %v3331_v13, 16  ;;  %v3376_v34 = vshrl.u32 %v3331_v13, 16  ;;  %v3349_v12 = vor.u32 %v9979_v47, %v9977_v55  ;;  %v10012_v55 = vld [vmem:[%s11354_s6] sm:$0xff]  }
 0x3cd   :  { %v2719_v35 = vmul.f32 %v9737_v11, %v2667_v46  ;;  %v2670_v30 = vadd.f32 %v6994_v25, %v9722_v48  ;;  %v6632_v3 = vcombine.low %v3203_v53, %v3204_v20  ;;  %v6633_v32 = vcombine.low %v3205_v26, %v3205_v26 }
 0x3ce   :  { %v3369_v54 = vor.u32 %v3368_v62, %v9992_v37  ;;  %v3374_v5 = vrot.slane %v3372_v39, 5  ;;  %v3378_v48 = vrot.slane %v3376_v34, 4  ;;  %v3359_v60 = vor.u32 %v3358_v52, %v9984_v38 }
 0x3cf   :  { %v2749_v24 = vadd.f32 %v9743_v51, %v2719_v35  ;;  %v2720_v4 = vmul.f32 %v9737_v11, %v2670_v30  ;;  %7439 = vmatpush3.bf16.msra.mxu1 %v6632_v3  ;;  %v3270_v28 = vsel %vm1436_vm7, %v6633_v32, 0  ;;  %v3350_v61 = vrot.slane %v3349_v12, 4 }
 0x3d0   :  { %v3332_v23 = vld [vmem:[#allocation3 + $0x48] sm:$0xf]  ;;  %7440 = vmatprep.subr.bf16.mxu1 %v11433_v6  ;;  %v3370_v58 = vrot.slane %v3369_v54, 4  ;;  %v3379_v9 = vor.u32 %v3378_v48, %v3374_v5  ;;  %v3507_v25 = vshrl.u32 %v3502_v43, 16  ;;  %v3360_v53 = vrot.slane %v3359_v60, 4 }
 0x3d1   :  { %v2774_v19 = vmax.f32 %v2749_v24, 0.0  ;;  %v2750_v7 = vadd.f32 %v9743_v51, %v2720_v4  ;;  %v3382_v56 = vshll.u32 %v3332_v23, 16  ;;  %v3386_v63 = vshrl.u32 %v3332_v23, 16 }
 0x3d2   :  { %v10006_v36 = vld [vmem:[#allocation3 + $0x4c] sm:$0xf]  ;;  %v3375_v47 = vsel %vm9790_vm4, %v3370_v58, %v3374_v5  ;;  %v3380_v31 = vrot.slane %v3379_v9, 4  ;;  %v3511_v21 = vsel %vm9790_vm4, %v3507_v25, %v9992_v37  ;;  %v3365_v39 = vsel %vm9790_vm4, %v3360_v53, %v9992_v37  ;;  %v10086_v53 = vld [vmem:[%s11354_s6 + $0x10] ss:$0 sps:$4 sm:$0x33]  }
 0x3d3   :  { %v6864_v59 = vpack.c.bf16 %v2774_v19, %v2774_v19  ;;  %v2775_v16 = vmax.f32 %v2750_v7, 0.0  ;;  %v3384_v0 = vrot.slane %v3382_v56, 5  ;;  %v3392_v2 = vshll.u32 %v10006_v36, 16  ;;  %7441 = vmatpush3.bf16.msra.mxu1 %v3270_v28 }
 0x3d4   :  { %v3388_v17 = vrot.slane %v3386_v63, 4  ;;  %v3396_v45 = vshrl.u32 %v10006_v36, 16  ;;  %v10019_v27 = vmax.bf16 %v3375_v47, %v9973_v41  ;;  %7454 = vmatprep.subr.bf16.mxu1 %v11433_v6  ;;  %v3536_v26 = vmax.bf16 %v3511_v21, %v3502_v43 }
 0x3d5   :  { %2900 = vst.msk [vmem:[#allocation3 + $0x50] sm:$0xf] %vm69_vm1, %v6864_v59  ;;  %v6865_v44 = vpack.c.bf16 %v2775_v16, %v2775_v16  ;;  %v3394_v15 = vrot.slane %v3392_v2, 5  ;;  %v3385_v49 = vsel %vm9790_vm4, %v3380_v31, %v3384_v0  ;;  %v3490_v56 = vmax.bf16 %v3365_v39, %v9963_v8 }
 0x3d6   :  { %v3389_v33 = vor.u32 %v3388_v17, %v3384_v0  ;;  %v3398_v46 = vrot.slane %v3396_v45, 4  ;;  %v10025_v52 = vmax.bf16 %v3385_v49, %v3331_v13  ;;  %7443 = vmatmul.mubr.msk.bf16.vlgmr.msra.gmra.mrb[52].mxu1 %vm3258_vm12, %v10012_v55  ;;  %v3556_v35 = vrot.slane %v10019_v27, 5 }
 0x3d7   :  { %2901 = vst.msk [vmem:[#allocation3 + $0x54] sm:$0xf] %vm69_vm1, %v6865_v44  ;;  %v6995_v57 = vpop.f32.mrb[40].mxu1  ;;  %7446 = vmatprep.mubr.msk.bf16.mxu1 %vm7862_vm0, %v11433_v6  ;;  %v3355_v13 = vsel %vm9790_vm4, %v3350_v61, %v9984_v38  ;;  %v6638_v54 = vrot.slane %v3536_v26, 9  ;;  %v10050_v38 = vld [vmem:[%s11354_s6 + $0x8] sm:$0xff]  }
 0x3d8   :  { %v6996_v10 = vpop.f32.mrb[41].mxu1  ;;  %v3390_v41 = vrot.slane %v3389_v33, 4  ;;  %v3399_v24 = vor.u32 %v3398_v46, %v3394_v15  ;;  %v3559_v4 = vrot.slane %v10025_v52, 5  ;;  %v3489_v37 = vmax.bf16 %v3355_v13, %v9954_v18 }
 0x3d9   :  { %v6997_v30 = vadd.f32 %v6996_v10, %v6995_v57  ;;  %v6998_v20 = vpop.f32.mrb[42].mxu1  ;;  %v3558_v48 = vrot.slane %v3556_v35, 4 }
 0x3da   :  { %v6999_v62 = vpop.f32.mrb[43].mxu1  ;;  %v3395_v34 = vsel %vm9790_vm4, %v3390_v41, %v3394_v15  ;;  %v3400_v60 = vrot.slane %v3399_v24, 4  ;;  %v3561_v8 = vrot.slane %v3559_v4, 4 }
 0x3db   :  { %v2675_v3 = vadd.f32 %v6997_v30, %v9724_v42  ;;  %v7000_v32 = vadd.f32 %v6999_v62, %v6998_v20  ;;  %v10045_v12 = vmax.bf16 %v3395_v34, %v3332_v23  ;;  %v3557_v23 = vsel %vm9817_vm11, %v6638_v54, %v3556_v35  ;;  %v7835_v20 = vld [vmem:[%s11353_s5] ss:$0 sm:$0xff] }
 0x3dc   :  { %v10052_v5 = vld [vmem:[#allocation3 + $0x50] sm:$0xf]  ;;  %v3560_v16 = vsel %vm9817_vm11, %v3558_v48, %v3559_v4  ;;  %v3607_v2 = vmax.bf16 %v3557_v23, %v3489_v37  ;;  %v10095_v62 = vld [vmem:[#allocation3 + $0x6c] sm:$0xf] }
 0x3dd   :  { %v2721_v19 = vmul.f32 %v9737_v11, %v2675_v3  ;;  %v2678_v7 = vadd.f32 %v7000_v32, %v9726_v29  ;;  %v3402_v42 = vshll.u32 %v10052_v5, 16  ;;  %v3562_v28 = vrot.slane %v10045_v12, 5  ;;  %v7836_v3 = vld [vmem:[%s11353_s5 + $0x1] ss:$0 sm:$0xff] }
 0x3de   :  { %v10062_v58 = vld [vmem:[#allocation3 + $0x54] sm:$0xf]  ;;  %v3406_v9 = vshrl.u32 %v10052_v5, 16  ;;  %7447 = vmatmul.mubr.msk.bf16.gmra.mrb[56].mxu1 %vm3258_vm12, %v10050_v38  ;;  %v3608_v33 = vmax.bf16 %v3560_v16, %v3490_v56 }
 0x3df   :  { %v2751_v18 = vadd.f32 %v9743_v51, %v2721_v19  ;;  %v2722_v63 = vmul.f32 %v9737_v11, %v2678_v7  ;;  %v7001_v59 = vpop.f32.mrb[44].mxu1  ;;  %v3404_v29 = vrot.slane %v3402_v42, 5  ;;  %v3412_v47 = vshll.u32 %v10062_v58, 16  ;;  %7450 = vmatprep.mubr.msk.bf16.mxu1 %vm7862_vm0, %v11433_v6 }
 0x3e0   :  { %v7002_v0 = vpop.f32.mrb[45].mxu1  ;;  %v3408_v43 = vrot.slane %v3406_v9, 4  ;;  %v3563_v49 = vsel %vm9817_vm11, %v3561_v8, %v3562_v28  ;;  %v3564_v41 = vrot.slane %v3562_v28, 4  ;;  %v3416_v35 = vshrl.u32 %v10062_v58, 16  ;;  %v3505_v8 = vld [vmem:[#allocation3 + $0x70] sm:$0x3] }
 0x3e1   :  { %v2776_v31 = vmax.f32 %v2751_v18, 0.0  ;;  %v2752_v17 = vadd.f32 %v9743_v51, %v2722_v63  ;;  %v7003_v45 = vadd.f32 %v7002_v0, %v7001_v59  ;;  %v7004_v44 = vpop.f32.mrb[46].mxu1  ;;  %v3405_v11 = vsel %vm9790_vm4, %v3400_v60, %v3404_v29 }
 0x3e2   :  { %v7005_v61 = vpop.f32.mrb[47].mxu1  ;;  %v10078_v15 = vmax.bf16 %v3405_v11, %v10006_v36  ;;  %v3409_v46 = vor.u32 %v3408_v43, %v3404_v29  ;;  %v3414_v26 = vrot.slane %v3412_v47, 5  ;;  %v3609_v34 = vmax.bf16 %v3563_v49, %v10019_v27 }
 0x3e3   :  { %v6866_v25 = vpack.c.bf16 %v2776_v31, %v2776_v31  ;;  %v2777_v57 = vmax.f32 %v2752_v17, 0.0  ;;  %v2683_v51 = vadd.f32 %v7003_v45, %v9728_v1  ;;  %v7006_v10 = vadd.f32 %v7005_v61, %v7004_v44 }
 0x3e4   :  { %v3565_v21 = vrot.slane %v10078_v15, 5  ;;  %v3410_v36 = vrot.slane %v3409_v46, 4  ;;  %v6639_v24 = vcombine.low %v3607_v2, %v3608_v33  ;;  %v3418_v4 = vrot.slane %v3416_v35, 4 }
 0x3e5   :  { %2902 = vst.msk [vmem:[#allocation3 + $0x58] sm:$0xf] %vm69_vm1, %v6866_v25  ;;  %v6867_v30 = vpack.c.bf16 %v2777_v57, %v2777_v57  ;;  %v2723_v1 = vmul.f32 %v7835_v20, %v2683_v51  ;;  %v2686_v13 = vadd.f32 %v7006_v10, %v9730_v14  ;;  %v3513_v27 = vshll.u32 %v10095_v62, 16 }
 0x3e6   :  { %v3566_v39 = vsel %vm9817_vm11, %v3564_v41, %v3565_v21  ;;  %v3415_v48 = vsel %vm9790_vm4, %v3410_v36, %v3414_v26  ;;  %7451 = vmatmul.mubr.msk.bf16.gmra.mrb[60].mxu1 %vm3258_vm12, %v10086_v53  ;;  %v3517_v7 = vshrl.u32 %v10095_v62, 16  ;;  %v3654_v9 = vrot.slane %v6639_v24, 2 }
 0x3e7   :  { %2903 = vst.msk [vmem:[#allocation3 + $0x5c] sm:$0xf] %vm69_vm1, %v6867_v30  ;;  %v2753_v32 = vadd.f32 %v7836_v3, %v2723_v1  ;;  %v2724_v54 = vmul.f32 %v7835_v20, %v2686_v13  ;;  %v7007_v37 = vpop.f32.mrb[48].mxu1  ;;  %v3610_v14 = vmax.bf16 %v3566_v39, %v10025_v52  ;;  %7468 = vmatprep.mubr.msk.bf16.mxu1 %vm7862_vm0, %v11433_v6  ;;  %v10120_v43 = vrot.slane %v3513_v27, 5 }
 0x3e8   :  { %v7008_v19 = vpop.f32.mrb[49].mxu1  ;;  %v3419_v18 = vor.u32 %v3418_v4, %v3414_v26  ;;  %v10116_v63 = vmax.bf16 %v3415_v48, %v10052_v5  ;;  %v3519_v47 = vrot.slane %v3517_v7, 4  ;;  %v3523_v49 = vshll.u32 %v3505_v8, 16 }
 0x3e9   :  { %v2778_v42 = vmax.f32 %v2753_v32, 0.0  ;;  %v2754_v23 = vadd.f32 %v7836_v3, %v2724_v54  ;;  %v7009_v60 = vadd.f32 %v7008_v19, %v7007_v37  ;;  %v7010_v56 = vpop.f32.mrb[50].mxu1  ;;  %v10111_v28 = vcombine.low %v3609_v34, %v3610_v14 }
 0x3ea   :  { %v7011_v52 = vpop.f32.mrb[51].mxu1  ;;  %v3420_v44 = vrot.slane %v3419_v18, 4  ;;  %v3567_v51 = vrot.slane %v3565_v21, 4  ;;  %v3520_v41 = vor.u32 %v3519_v47, %v10120_v43  ;;  %v3527_v36 = vshrl.u32 %v3505_v8, 16  ;;  %v3341_v8 = vld [vmem:[#allocation3 + $0x6c] sm:$0x1] }
 0x3eb   :  { %v6868_v59 = vpack.c.bf16 %v2778_v42, %v2778_v42  ;;  %v2779_v29 = vmax.f32 %v2754_v23, 0.0  ;;  %v2691_v16 = vadd.f32 %v7009_v60, %v9732_v50  ;;  %v3655_v0 = vrot.slane %v10111_v28, 2 }
 0x3ec   :  { %v3336_v2 = vld [vmem:[#allocation3 + $0x58] sm:$0xf]  ;;  %v3568_v50 = vrot.slane %v10116_v63, 5  ;;  %v3525_v21 = vrot.slane %v3523_v49, 5  ;;  %v3521_v37 = vrot.slane %v3520_v41, 4  ;;  %v3529_v19 = vrot.slane %v3527_v36, 4 }
 0x3ed   :  { %2904 = vst.msk [vmem:[#allocation3 + $0x60] sm:$0xf] %vm69_vm1, %v6868_v59  ;;  %v6869_v31 = vpack.c.bf16 %v2779_v29, %v2779_v29  ;;  %v2725_v17 = vmul.f32 %v7835_v20, %v2691_v16  ;;  %v3656_v5 = vsel %vm3653_vm14, %v3654_v9, %v3655_v0  ;;  %v3422_v45 = vshll.u32 %v3336_v2, 16 }
 0x3ee   :  { %7455 = vmatpush3.bf16.msra.mxu1 %v3656_v5  ;;  %v3337_v11 = vld [vmem:[#allocation3 + $0x5c] sm:$0xf]  ;;  %v3426_v61 = vshrl.u32 %v3336_v2, 16  ;;  %v3569_v34 = vsel %vm9817_vm11, %v3567_v51, %v3568_v50  ;;  %v3570_v4 = vrot.slane %v3568_v50, 4  ;;  %v3526_v16 = vsel %vm9790_vm4, %v3521_v37, %v3525_v21 }
 0x3ef   :  { %2905 = vst.msk [vmem:[#allocation3 + $0x64] sm:$0xf] %vm69_vm1, %v6869_v31  ;;  %v2755_v33 = vadd.f32 %v7836_v3, %v2725_v17  ;;  %7456 = vmatprep.subr.bf16.mxu1 %v11433_v6  ;;  %v3424_v46 = vrot.slane %v3422_v45, 5  ;;  %v3432_v25 = vshll.u32 %v3337_v11, 16  ;;  %v3436_v57 = vshrl.u32 %v3337_v11, 16 }
 0x3f0   :  { %v3428_v10 = vrot.slane %v3426_v61, 4  ;;  %v3611_v27 = vmax.bf16 %v3569_v34, %v10045_v12  ;;  %v3472_v49 = vshll.u32 %v3341_v8, 16  ;;  %v3538_v51 = vmax.bf16 %v3526_v16, %v10095_v62 }
 0x3f1   :  { %v2780_v35 = vmax.f32 %v2755_v33, 0.0  ;;  %v3425_v30 = vsel %vm9790_vm4, %v3420_v44, %v3424_v46  ;;  %v3434_v20 = vrot.slane %v3432_v25, 5  ;;  %v3438_v1 = vrot.slane %v3436_v57, 4 }
 0x3f2   :  { %v10133_v13 = vmax.bf16 %v3425_v30, %v10062_v58  ;;  %v3429_v26 = vor.u32 %v3428_v10, %v3424_v46 }
 0x3f3   :  { %v6870_v39 = vpack.c.bf16 %v2780_v35, %v2780_v35  ;;  %v3439_v24 = vor.u32 %v3438_v1, %v3434_v20 }
 0x3f4   :  { %v3571_v3 = vrot.slane %v10133_v13, 5  ;;  %v3338_v32 = vld [vmem:[#allocation3 + $0x60] sm:$0xf]  ;;  %v3430_v54 = vrot.slane %v3429_v26, 4 }
 0x3f5   :  { %2906 = vst.msk [vmem:[#allocation3 + $0x68] sm:$0xf] %vm69_vm1, %v6870_v39  ;;  %v3442_v14 = vshll.u32 %v3338_v32, 16  ;;  %v3446_v48 = vshrl.u32 %v3338_v32, 16  ;;  %v3440_v42 = vrot.slane %v3439_v24, 4 }
 0x3f6   :  { %v3572_v58 = vsel %vm9817_vm11, %v3570_v4, %v3571_v3  ;;  %v3435_v7 = vsel %vm9790_vm4, %v3430_v54, %v3434_v20  ;;  %v3339_v23 = vld [vmem:[#allocation3 + $0x64] sm:$0xf]  ;;  %v3573_v18 = vrot.slane %v3571_v3, 4  ;;  %v3504_v39 = vld [vmem:[#allocation3 + $0x70] sm:$0x1]  ;;  %v3589_v3 = vrot.slane %v3538_v51, 5 }
 0x3f7   :  { %v3612_v60 = vmax.bf16 %v3572_v58, %v10078_v15  ;;  %v3444_v56 = vrot.slane %v3442_v14, 5  ;;  %v10145_v52 = vmax.bf16 %v3435_v7, %v3336_v2  ;;  %v3448_v9 = vrot.slane %v3446_v48, 4 }
 0x3f8   :  { %v3452_v59 = vshll.u32 %v3339_v23, 16  ;;  %v3456_v29 = vshrl.u32 %v3339_v23, 16  ;;  %v3530_v2 = vor.u32 %v3529_v19, %v3525_v21 }
 0x3f9   :  { %v6641_v47 = vcombine.low %v3611_v27, %v3612_v60  ;;  %v3445_v12 = vsel %vm9790_vm4, %v3440_v42, %v3444_v56  ;;  %v3574_v31 = vrot.slane %v10145_v52, 5  ;;  %v3449_v17 = vor.u32 %v3448_v9, %v3444_v56 }
 0x3fa   :  { %v3498_v5 = vmax.bf16 %v3445_v12, %v3337_v11  ;;  %v3454_v15 = vrot.slane %v3452_v59, 5  ;;  %v3458_v45 = vrot.slane %v3456_v29, 4  ;;  %v3531_v1 = vrot.slane %v3530_v2, 4 }
 0x3fb   :  { %v3657_v44 = vrot.slane %v6641_v47, 2  ;;  %v3575_v50 = vsel %vm9817_vm11, %v3573_v18, %v3574_v31  ;;  %v3450_v61 = vrot.slane %v3449_v17, 4  ;;  %v3576_v33 = vrot.slane %v3574_v31, 4 }
 0x3fc   :  { %v3577_v46 = vrot.slane %v3498_v5, 5  ;;  %v3340_v25 = vld [vmem:[#allocation3 + $0x68] sm:$0xf]  ;;  %v3459_v57 = vor.u32 %v3458_v45, %v3454_v15  ;;  %v3613_v30 = vmax.bf16 %v3575_v50, %v10116_v63  ;;  %v3474_v63 = vrot.slane %v3472_v49, 5 }
 0x3fd   :  { %v3658_v10 = vsel %vm3653_vm14, %v3655_v0, %v3657_v44  ;;  %v3455_v11 = vsel %vm9790_vm4, %v3450_v61, %v3454_v15  ;;  %v3462_v41 = vshll.u32 %v3340_v25, 16  ;;  %v3466_v36 = vshrl.u32 %v3340_v25, 16 }
 0x3fe   :  { %7457 = vmatpush3.bf16.msra.mxu1 %v3658_v10  ;;  %v3578_v35 = vsel %vm9817_vm11, %v3576_v33, %v3577_v46  ;;  %v3499_v20 = vmax.bf16 %v3455_v11, %v3338_v32  ;;  %v3460_v28 = vrot.slane %v3459_v57, 4  ;;  %v3579_v37 = vrot.slane %v3577_v46, 4 }
 0x3ff   :  { %7458 = vmatprep.subr.bf16.mxu1 %v11433_v6  ;;  %v3614_v62 = vmax.bf16 %v3578_v35, %v10133_v13  ;;  %v3464_v26 = vrot.slane %v3462_v41, 5  ;;  %v3468_v0 = vrot.slane %v3466_v36, 4  ;;  %v3539_v32 = vmax.bf16 %v3531_v1, %v3504_v39  ;;  %v3808_v41 = vld [vmem:[#allocation4] sm:$0xe] }
 0x400   :  { %v3580_v34 = vrot.slane %v3499_v20, 5  ;;  %v3591_v42 = vrot.slane %v3589_v3, 4 }
 0x401   :  { %v6642_v24 = vcombine.low %v3613_v30, %v3614_v62  ;;  %v3465_v21 = vsel %vm9790_vm4, %v3460_v28, %v3464_v26  ;;  %v3469_v4 = vor.u32 %v3468_v0, %v3464_v26  ;;  %v3592_v9 = vrot.slane %v3539_v32, 5  ;;  %v3810_v62 = vld [vmem:[#allocation4] sm:$0x8] }
 0x402   :  { %v3500_v54 = vmax.bf16 %v3465_v21, %v3339_v23  ;;  %v3581_v13 = vsel %vm9817_vm11, %v3579_v37, %v3580_v34  ;;  %v3582_v19 = vrot.slane %v3580_v34, 4 }
 0x403   :  { %v3659_v14 = vrot.slane %v6642_v24, 2  ;;  %v3470_v48 = vrot.slane %v3469_v4, 4  ;;  %v3615_v18 = vmax.bf16 %v3581_v13, %v10145_v52  ;;  %v3593_v31 = vsel %vm9817_vm11, %v3591_v42, %v3592_v9  ;;  %v7718_v42 = vld [vmem:[%s11355_s7 + $0x40] sm:$0xff]  }
 0x404   :  { %v3583_v58 = vrot.slane %v3500_v54, 5  ;;  %v7719_v9 = vld [vmem:[%s11355_s7] sm:$0xff]  }
 0x405   :  { %v3660_v27 = vsel %vm3653_vm14, %v3657_v44, %v3659_v14  ;;  %v3516_v7 = vsel %vm9790_vm4, %v3470_v48, %v10120_v43  ;;  %v3475_v56 = vsel %vm9790_vm4, %v3470_v48, %v3474_v63 }
 0x406   :  { %7459 = vmatpush3.bf16.msra.mxu1 %v3660_v27  ;;  %v3584_v23 = vsel %vm9817_vm11, %v3582_v19, %v3583_v58  ;;  %v3537_v60 = vmax.bf16 %v3516_v7, %v3340_v25  ;;  %v3585_v29 = vrot.slane %v3583_v58, 4  ;;  %v3501_v47 = vmax.bf16 %v3475_v56, %v3340_v25  ;;  %v10235_v27 = vld [vmem:[%s11355_s7 + $0xc0] sm:$0xff]  }
 0x407   :  { %7460 = vmatprep.subr.bf16.mxu1 %v11433_v6  ;;  %v3616_v59 = vmax.bf16 %v3584_v23, %v3498_v5  ;;  %v10240_v7 = vld [vmem:[%s11355_s7 + $0x80] sm:$0xff]   ;;  %7094 = vmatprep.subr.bf16.mxu0 %v10235_v27 }
 0x408   :  { %v3586_v16 = vrot.slane %v3537_v60, 5  ;;  %v3619_v5 = vmax.bf16 %v3593_v31, %v3501_v47  ;;  %7095 = vmatpush3.bf16.msra.mxu0 %v10240_v7  ;;  %v7723_v47 = vld [vmem:[%s11355_s7 + $0x8] sm:$0xff]   ;;  %v7724_v31 = vld [vmem:[%s11355_s7 + $0x50] sm:$0xff]  }
 0x409   :  { %v6643_v8 = vcombine.low %v3615_v18, %v3616_v59  ;;  %v10257_v18 = vld [vmem:[%s11355_s7 + $0xc8] sm:$0xff]  }
 0x40a   :  { %v3587_v43 = vsel %vm9817_vm11, %v3585_v29, %v3586_v16  ;;  %v3588_v12 = vrot.slane %v3586_v16, 4  ;;  %v6645_v50 = vcombine.low %v3619_v5, %v3619_v5  ;;  %v7722_v29 = vld [vmem:[%s11355_s7 + $0x48] sm:$0xff]   ;;  %7096 = vmatprep.subr.bf16.mxu0 %v10257_v18  ;;  %v7730_v5 = vld [vmem:[%s11355_s7 + $0x60] sm:$0xff]  }
 0x40b   :  { %v3661_v17 = vrot.slane %v6643_v8, 2  ;;  %v3617_v45 = vmax.bf16 %v3587_v43, %v3499_v20  ;;  %v10271_v8 = vld [vmem:[%s11355_s7 + $0x88] sm:$0xff]   ;;  %v10280_v43 = vld [vmem:[%s11355_s7 + $0xd0] sm:$0xff]  }
 0x40c   :  { %v3590_v40 = vsel %vm9817_vm11, %v3588_v12, %v3589_v3  ;;  %v3665_v49 = vrot.slane %v6645_v50, 2  ;;  %7097 = vmatpush3.bf16.msra.mxu0 %v10271_v8  ;;  %v7733_v50 = vld [vmem:[%s11355_s7 + $0x28] sm:$0xff]  }
 0x40d   :  { %v3662_v15 = vsel %vm3653_vm14, %v3659_v14, %v3661_v17  ;;  %v3618_v52 = vmax.bf16 %v3590_v40, %v3500_v54  ;;  %v10299_v40 = vld [vmem:[%s11355_s7 + $0x90] sm:$0xff]   ;;  %7098 = vmatprep.subr.bf16.mxu0 %v10280_v43 }
 0x40e   :  { %7461 = vmatpush3.bf16.msra.mxu1 %v3662_v15  ;;  %v3674_v33 = vsel %vm1436_vm7, %v3665_v49, 0  ;;  %vm3912_vm7 = vcmask 1044480   ;;  %v7725_v15 = vld [vmem:[%s11355_s7 + $0x10] sm:$0xff]  }
 0x40f   :  { %7462 = vmatprep.subr.bf16.mxu1 %v11433_v6  ;;  %v6644_v2 = vcombine.low %v3617_v45, %v3618_v52  ;;  %v7726_v45 = vld [vmem:[%s11355_s7 + $0x58] sm:$0xff]  }
 0x410   :  { %7099 = vmatpush3.bf16.msra.mxu0 %v10299_v40  ;;  %v7727_v52 = vld [vmem:[%s11355_s7 + $0x18] sm:$0xff]  }
 0x411   :  { %v3663_v44 = vrot.slane %v6644_v2, 2  ;;  %v7731_v2 = vld [vmem:[%s11355_s7 + $0x20] sm:$0xff]  }
 0x413   :  { %v3664_v61 = vsel %vm3653_vm14, %v3661_v17, %v3663_v44  ;;  %v3666_v22 = vsel %vm3653_vm14, %v3663_v44, %v3665_v49  ;;  %v7732_v44 = vld [vmem:[%s11355_s7 + $0x68] sm:$0xff]  }
 0x414   :  { %7463 = vmatpush3.bf16.msra.mxu1 %v3664_v61 }
 0x415   :  { %7464 = vmatprep.subr.bf16.mxu1 %v11433_v6 }
 0x418   :  { %7465 = vmatpush3.bf16.msra.mxu1 %v3666_v22 }
 0x419   :  { %7466 = vmatprep.subr.bf16.mxu1 %v11433_v6 }
 0x41c   :  { %7467 = vmatpush3.bf16.msra.mxu1 %v3674_v33 }
 0x41d   :  { %7048 = vmatprep.subr.bf16.mxu1 %v7718_v42 }
 0x41f   :  { %7469 = vmatmul.mubr.msk.bf16.vlgmr.msra.gmra.mrb[64].mxu1 %vm3258_vm12, %v10012_v55 }
 0x420   :  { %7472 = vmatprep.mubr.msk.bf16.mxu1 %vm7862_vm0, %v11433_v6  ;;  %7049 = vmatpush3.bf16.msra.mxu1 %v7719_v9  ;;  %v7739_v9 = vld [vmem:[%s11355_s7 + $0x38] sm:$0xff]  }
 0x421   :  { %7050 = vmatprep.subr.bf16.mxu1 %v7722_v29 }
 0x424   :  { %7051 = vmatpush3.bf16.msra.mxu1 %v7723_v47 }
 0x425   :  { %7052 = vmatprep.subr.bf16.mxu1 %v7724_v31 }
 0x427   :  { %7473 = vmatmul.mubr.msk.bf16.gmra.mrb[68].mxu1 %vm3258_vm12, %v10050_v38 }
 0x428   :  { %7476 = vmatprep.mubr.msk.bf16.mxu1 %vm7862_vm0, %v11433_v6  ;;  %7053 = vmatpush3.bf16.msra.mxu1 %v7725_v15 }
 0x429   :  { %7054 = vmatprep.subr.bf16.mxu1 %v7726_v45 }
 0x42c   :  { %7055 = vmatpush3.bf16.msra.mxu1 %v7727_v52 }
 0x42d   :  { %7056 = vmatprep.subr.bf16.mxu1 %v7730_v5 }
 0x42f   :  { %7477 = vmatmul.mubr.msk.bf16.gmra.mrb[72].mxu1 %vm3258_vm12, %v10086_v53 }
 0x430   :  { %7057 = vmatpush3.bf16.msra.mxu1 %v7731_v2 }
 0x431   :  { %7058 = vmatprep.subr.bf16.mxu1 %v7732_v44 }
 0x434   :  { %7059 = vmatpush3.bf16.msra.mxu1 %v7733_v50 }
 0x4a9   :  { %v3306_v46 = vpop.f32.mrb[52].mxu1 }
 0x4aa   :  { %v6871_v25 = vpack.c.bf16 %v3306_v46, %v3306_v46  ;;  %v7444_v57 = vpop.f32.mrb[53].mxu1 }
 0x4ab   :  { %v3309_v51 = vpop.f32.mrb[54].mxu1 }
 0x4ac   :  { %3789 = vst.msk [vmem:[#allocation4 + $0x4] sm:$0xf] %vm69_vm1, %v6871_v25  ;;  %v6872_v10 = vpack.c.bf16 %v3309_v51, %v3309_v51  ;;  %v7445_v55 = vpop.f32.mrb[55].mxu1 }
 0x4ae   :  { %3790 = vst.msk [vmem:[#allocation4 + $0x8] sm:$0xf] %vm69_vm1, %v6872_v10 }
 0x4b1   :  { %v3314_v11 = vpop.f32.mrb[56].mxu1 }
 0x4b2   :  { %v6873_v36 = vpack.c.bf16 %v3314_v11, %v3314_v11  ;;  %v7448_v38 = vpop.f32.mrb[57].mxu1 }
 0x4b3   :  { %v10204_v35 = vld [vmem:[#allocation4 + $0x4] sm:$0xf]  ;;  %v3317_v30 = vpop.f32.mrb[58].mxu1 }
 0x4b4   :  { %3791 = vst.msk [vmem:[#allocation4 + $0xc] sm:$0xf] %vm69_vm1, %v6873_v36  ;;  %v10208_v53 = vcombine.low %v3808_v41, %v10204_v35  ;;  %v6874_v20 = vpack.c.bf16 %v3317_v30, %v3317_v30  ;;  %v7449_v1 = vpop.f32.mrb[59].mxu1  ;;  %v6665_v39 = vcombine.low %v3810_v62, %v10204_v35  ;;  %v3815_v51 = vld [vmem:[#allocation4 + $0x4] sm:$0x8] }
 0x4b5   :  { %v10210_v28 = vld [vmem:[#allocation4 + $0x8] sm:$0xf] }
 0x4b6   :  { %v3848_v26 = vshll.u32 %v10208_v53, 16  ;;  %3792 = vst.msk [vmem:[#allocation4 + $0x10] sm:$0xf] %vm69_vm1, %v6874_v20  ;;  %v10216_v0 = vcombine.low %v10204_v35, %v10210_v28  ;;  %v3846_v24 = vshrl.u32 %v10208_v53, 16  ;;  %v3913_v63 = vrot.slane %v6665_v39, 3 }
 0x4b7   :  { %v10329_v41 = vcombine.low %v3815_v51, %v10210_v28 }
 0x4b8   :  { %v3850_v21 = vrot.slane %v3848_v26, 1 }
 0x4b9   :  { %v10219_v34 = vpop.f32.mrb[60].mxu1  ;;  %v4050_v1 = vrot.slane %v10329_v41, 3 }
 0x4ba   :  { %v7452_v4 = vpop.f32.mrb[61].mxu1  ;;  %v3851_v13 = vor.u32 %v3850_v21, %v3846_v24  ;;  %v7734_v24 = vld [vmem:[%s11355_s7 + $0x70] sm:$0xff]  }
 0x4bb   :  { %v3801_v3 = vld [vmem:[#allocation4 + $0xc] sm:$0xf]  ;;  %v3325_v54 = vpop.f32.mrb[62].mxu1  ;;  %7060 = vmatprep.subr.bf16.mxu1 %v7734_v24 }
 0x4bc   :  { %v10223_v37 = vcombine.low %v10210_v28, %v3801_v3  ;;  %v7453_v32 = vpop.f32.mrb[63].mxu1  ;;  %v7735_v21 = vld [vmem:[%s11355_s7 + $0x30] sm:$0xff]  }
 0x4bd   :  { %v10225_v14 = vld [vmem:[#allocation4 + $0x10] sm:$0xf]  ;;  %7061 = vmatpush3.bf16.msra.mxu1 %v7735_v21 }
 0x4be   :  { %v3914_v48 = vrot.slane %v10223_v37, 3  ;;  %v3853_v19 = vshll.u32 %v10223_v37, 16  ;;  %v10230_v58 = vcombine.low %v3801_v3, %v10225_v14  ;;  %v7737_v32 = vld [vmem:[%s11355_s7 + $0x78] sm:$0xff]   ;;  %v3857_v42 = vshrl.u32 %v10223_v37, 16 }
 0x4bf   :  { %7062 = vmatprep.subr.bf16.mxu1 %v7737_v32  ;;  %v3814_v32 = vld [vmem:[#allocation4 + $0x28] sm:$0x7] }
 0x4c0   :  { %v3915_v23 = vsel %vm3912_vm7, %v3913_v63, %v3914_v48  ;;  %v10248_v60 = vrot.slane %v3853_v19, 1  ;;  %v3946_v56 = vshrl.u32 %v10230_v58, 16  ;;  %v3949_v59 = vshll.u32 %v10230_v58, 16  ;;  %v10345_v63 = vld [vmem:[%s11355_s7 + $0xd8] sm:$0xff]  }
 0x4c1   :  { %3922 = vrot.lane.b32.xlu0 %v3915_v23, %s7866_s3  ;;  %v4051_v62 = vrot.slane %v10230_v58, 3  ;;  %v10358_v23 = vld [vmem:[%s11355_s7 + $0x98] sm:$0xff]   ;;  %7100 = vmatprep.subr.bf16.mxu0 %v10345_v63 }
 0x4c2   :  { %v3856_v16 = vsel %vm1117_vm6, %v3851_v13, %v10248_v60  ;;  %v10284_v12 = vrot.slane %v3946_v56, 7  ;;  %7101 = vmatpush3.bf16.msra.mxu0 %v10358_v23  ;;  %v3859_v50 = vor.u32 %v3857_v42, %v10248_v60  ;;  %7063 = vmatpush3.bf16.msra.mxu1 %v7739_v9  ;;  %v10416_v42 = vld [vmem:[%s11355_s7 + $0xe0] sm:$0xff]  }
 0x4c3   :  { %3884 = vrot.lane.b32.xlu1 %v3856_v16, %s7866_s3  ;;  %v4052_v29 = vsel %vm3912_vm7, %v4050_v1, %v4051_v62  ;;  %7635 = vmatprep.subr.bf16.mxu1 %v10235_v27 }
 0x4c4   :  { %v10293_v17 = vor.u32 %v3949_v59, %v10284_v12  ;;  %v4230_v5 = vshll.u32 %v4052_v29, 16  ;;  %v4228_v51 = vshrl.u32 %v4052_v29, 16  ;;  %7102 = vmatprep.subr.bf16.mxu0 %v10416_v42 }
 0x4f2   :  { %v3710_v61 = vpop.f32.mrb[64].mxu1 }
 0x4f3   :  { %v3737_v49 = vrot.slane %v3710_v61, 4  ;;  %v7470_v22 = vpop.f32.mrb[65].mxu1 }
 0x4f4   :  { %v3713_v33 = vpop.f32.mrb[66].mxu1 }
 0x4f5   :  { %v3751_v46 = vsel %vm184_vm2, %v10219_v34, %v3737_v49  ;;  %v3738_v25 = vrot.slane %v3713_v33, 4  ;;  %v7471_v57 = vpop.f32.mrb[67].mxu1 }
 0x4f6   :  { %v6875_v10 = vpack.c.bf16 %v3751_v46, %v3751_v46 }
 0x4f7   :  { %v3739_v55 = vsel %vm184_vm2, %v3737_v49, %v3738_v25 }
 0x4f8   :  { %3793 = vst.msk [vmem:[#allocation4 + $0x14] sm:$0xf] %vm69_vm1, %v6875_v10  ;;  %v6876_v11 = vpack.c.bf16 %v3739_v55, %v3739_v55 }
 0x4fa   :  { %3794 = vst.msk [vmem:[#allocation4 + $0x18] sm:$0xf] %vm69_vm1, %v6876_v11  ;;  %v3718_v36 = vpop.f32.mrb[68].mxu1  ;;  %v4232_v11 = vrot.slane %v4230_v5, 1 }
 0x4fb   :  { %v3740_v38 = vrot.slane %v3718_v36, 4  ;;  %v7474_v30 = vpop.f32.mrb[69].mxu1 }
 0x4fc   :  { %v3721_v20 = vpop.f32.mrb[70].mxu1  ;;  %v4233_v24 = vor.u32 %v4232_v11, %v4228_v51 }
 0x4fd   :  { %v3741_v26 = vsel %vm184_vm2, %v3738_v25, %v3740_v38  ;;  %v3742_v39 = vrot.slane %v3721_v20, 4  ;;  %v7475_v34 = vpop.f32.mrb[71].mxu1 }
 0x4fe   :  { %v6877_v4 = vpack.c.bf16 %v3741_v26, %v3741_v26 }
 0x4ff   :  { %v3743_v3 = vsel %vm184_vm2, %v3740_v38, %v3742_v39  ;;  %v3803_v54 = vld [vmem:[#allocation4 + $0x14] sm:$0xf] }
 0x500   :  { %3795 = vst.msk [vmem:[#allocation4 + $0x1c] sm:$0xf] %vm69_vm1, %v6877_v4  ;;  %v6878_v13 = vpack.c.bf16 %v3743_v3, %v3743_v3  ;;  %v10352_v19 = vcombine.low %v10225_v14, %v3803_v54 }
 0x501   :  { %v3804_v16 = vld [vmem:[#allocation4 + $0x18] sm:$0xf] }
 0x502   :  { %3796 = vst.msk [vmem:[#allocation4 + $0x20] sm:$0xf] %vm69_vm1, %v6878_v13  ;;  %v3726_v14 = vpop.f32.mrb[72].mxu1  ;;  %v3916_v47 = vrot.slane %v10352_v19, 3  ;;  %v3861_v31 = vshll.u32 %v10352_v19, 16  ;;  %v10368_v15 = vcombine.low %v3803_v54, %v3804_v16  ;;  %v3865_v1 = vshrl.u32 %v10352_v19, 16 }
 0x503   :  { %v3744_v45 = vrot.slane %v3726_v14, 4  ;;  %v7478_v52 = vpop.f32.mrb[73].mxu1  ;;  %v4012_v13 = vshll.u32 %v10329_v41, 16 }
 0x504   :  { %v3729_v2 = vpop.f32.mrb[74].mxu1  ;;  %v3917_v44 = vsel %vm3912_vm7, %v3914_v48, %v3916_v47  ;;  %v3863_v61 = vrot.slane %v3861_v31, 1  ;;  %v3954_v49 = vshrl.u32 %v10368_v15, 16  ;;  %v4053_v46 = vrot.slane %v10368_v15, 3 }
 0x505   :  { %v3745_v22 = vsel %vm184_vm2, %v3742_v39, %v3744_v45  ;;  %3924 = vrot.lane.b32.xlu0 %v3917_v44, %s7866_s3  ;;  %v7479_v33 = vpop.f32.mrb[75].mxu1  ;;  %v3957_v60 = vshll.u32 %v10368_v15, 16  ;;  %vm3937_vm2 = vsmask.f32 256  ;;  %v4009_v39 = vshrl.u32 %v10329_v41, 16 }
 0x506   :  { %v6879_v25 = vpack.c.bf16 %v3745_v22, %v3745_v22  ;;  %v3864_v57 = vsel %vm1117_vm6, %v3859_v50, %v3863_v61  ;;  %v10385_v10 = vrot.slane %v3954_v49, 7  ;;  %v10388_v55 = vsel %vm3912_vm7, %v4051_v62, %v4053_v46 }
 0x507   :  { %3886 = vrot.lane.b32.xlu1 %v3864_v57, %s7866_s3  ;;  %v3805_v48 = vld [vmem:[#allocation4 + $0x1c] sm:$0xf]  ;;  %v4235_v36 = vshll.u32 %v10388_v55, 16  ;;  %v3867_v3 = vor.u32 %v3865_v1, %v3863_v61  ;;  %v11402_v9 = vrot.slane %v10368_v15, 2  ;;  %v10454_v61 = vrot.slane %v4009_v39, 2 }
 0x508   :  { %3797 = vst.msk [vmem:[#allocation4 + $0x24] sm:$0xf] %vm69_vm1, %v6879_v25  ;;  %v10391_v27 = vcombine.low %v3804_v16, %v3805_v48  ;;  %v3959_v30 = vor.u32 %v3957_v60, %v10385_v10  ;;  %v10456_v22 = vrot.slane %v4012_v13, 3  ;;  %v4016_v33 = vrot.slane %v3946_v56, 2 }
 0x509   :  { %v10394_v38 = vld [vmem:[#allocation4 + $0x20] sm:$0xf]  ;;  %v4237_v21 = vrot.slane %v4235_v36, 1 }
 0x50a   :  { %v3918_v20 = vrot.slane %v10391_v27, 3  ;;  %v3869_v62 = vshll.u32 %v10391_v27, 16  ;;  %v10403_v26 = vcombine.low %v3805_v48, %v10394_v38  ;;  %v10408_v34 = vsel %vm3937_vm2, %v10284_v12, %v3959_v30  ;;  %v10421_v12 = vld [vmem:[%s11355_s7 + $0xa0] sm:$0xff]  }
 0x50b   :  { %v10426_v16 = vsel %vm1117_vm6, %v4233_v24, %v4237_v21  ;;  %7103 = vmatpush3.bf16.msra.mxu0 %v10421_v12  ;;  %v3873_v57 = vshrl.u32 %v10391_v27, 16 }
 0x50c   :  { %v3919_v4 = vsel %vm3912_vm7, %v3916_v47, %v3918_v20  ;;  %v3871_v54 = vrot.slane %v3869_v62, 1  ;;  %v4001_v29 = vrot.slane %v10403_v26, 2  ;;  %v4055_v41 = vrot.slane %v10403_v26, 3 }
 0x50d   :  { %3926 = vrot.lane.b32.xlu0 %v3919_v4, %s7866_s3  ;;  %v3962_v47 = vshrl.u32 %v10403_v26, 16  ;;  %v3965_v30 = vshll.u32 %v10403_v26, 16  ;;  %v3816_v4 = vld [vmem:[#allocation4 + $0x28] sm:$0xf] }
 0x50e   :  { %v3872_v14 = vsel %vm1117_vm6, %v3867_v3, %v3871_v54  ;;  %v10438_v52 = vsel %vm3653_vm14, %v11402_v9, %v4001_v29  ;;  %v10443_v5 = vsel %vm3912_vm7, %v4053_v46, %v4055_v41  ;;  %v3875_v62 = vor.u32 %v3873_v57, %v3871_v54 }
 0x50f   :  { %3888 = vrot.lane.b32.xlu1 %v3872_v14, %s7866_s3  ;;  %v10432_v31 = vld [vmem:[#allocation4 + $0x24] sm:$0xf]  ;;  %v3964_v48 = vrot.slane %v3962_v47, 7  ;;  %v4267_v14 = vshrl.u32 %v10388_v55, 16 }
 0x510   :  { %v3807_v45 = vld [vmem:[#allocation4 + $0x24] sm:$0x1]  ;;  %v6666_v2 = vcombine.low %v10394_v38, %v10432_v31  ;;  %v10451_v50 = vcombine.low %v10432_v31, %v3814_v32  ;;  %v6671_v46 = vcombine.low %v10432_v31, %v10432_v31  ;;  %v4017_v32 = vrot.slane %v3949_v59, 3 }
 0x511   :  { %v10448_v44 = vcombine.low %v10394_v38, %v3807_v45  ;;  %v6676_v59 = vcombine.low %v10432_v31, %v3816_v4  ;;  %v3812_v4 = vld [vmem:[#allocation4 + $0x28] sm:$0x1] }
 0x512   :  { %v3920_v25 = vrot.slane %v6666_v2, 3  ;;  %v4029_v11 = vshrl.u32 %v10451_v50, 16  ;;  %v4032_v36 = vshll.u32 %v10451_v50, 16  ;;  %v4003_v1 = vrot.slane %v10451_v50, 2 }
 0x513   :  { %v3877_v51 = vshll.u32 %v10448_v44, 16  ;;  %v3970_v24 = vshrl.u32 %v6671_v46, 16  ;;  %v3881_v3 = vshrl.u32 %v10448_v44, 16  ;;  %v3973_v45 = vshll.u32 %v6671_v46, 16  ;;  %v10493_v46 = vld [vmem:[%s11355_s7 + $0xe8] sm:$0xff]  }
 0x514   :  { %v3921_v56 = vsel %vm3912_vm7, %v3918_v20, %v3920_v25  ;;  %v10478_v13 = vsel %vm3653_vm14, %v4001_v29, %v4003_v1  ;;  %v3967_v2 = vor.u32 %v3965_v30, %v3964_v48  ;;  %v4031_v57 = vrot.slane %v4029_v11, 2  ;;  %v10498_v11 = vld [vmem:[%s11355_s7 + $0xa8] sm:$0xff]   ;;  %7104 = vmatprep.subr.bf16.mxu0 %v10493_v46 }
 0x515   :  { %v3879_v39 = vrot.slane %v3877_v51, 1  ;;  %3928 = vrot.lane.b32.xlu0 %v3921_v56, %s7866_s3  ;;  %v3972_v54 = vrot.slane %v3970_v24, 7  ;;  %v4034_v51 = vrot.slane %v4032_v36, 3  ;;  %v4271_v56 = vshll.u32 %v10443_v5, 16  ;;  %7105 = vmatpush3.bf16.msra.mxu0 %v10498_v11 }
 0x516   :  { %v10487_v29 = vsel %vm3937_vm2, %v10385_v10, %v3967_v2  ;;  %v4269_v36 = vor.u32 %v4267_v14, %v4237_v21  ;;  %v10500_v24 = vrot.slane %v6676_v59, 3  ;;  %v4015_v10 = vor.u32 %v10456_v22, %v10454_v61  ;;  %v10550_v59 = vld [vmem:[%s11355_s7 + $0xf8] sm:$0xff]  }
 0x517   :  { %v3880_v20 = vsel %vm1117_vm6, %v3875_v62, %v3879_v39  ;;  %v3975_v9 = vor.u32 %v3973_v45, %v3972_v54  ;;  %v3883_v55 = vor.u32 %v3881_v3, %v3879_v39  ;;  %v4273_v62 = vrot.slane %v4271_v56, 1 }
 0x518   :  { %3890 = vrot.lane.b32.xlu1 %v3880_v20, %s7866_s3  ;;  %v4020_v39 = vrot.slane %v3954_v49, 2  ;;  %v4035_v20 = vor.u32 %v4034_v51, %v4031_v57  ;;  %v4021_v21 = vrot.slane %v3957_v60, 3  ;;  %v4058_v61 = vsel %vm3912_vm7, %v4055_v41, %v10500_v24  ;;  %v10533_v41 = vld [vmem:[%s11355_s7 + $0xb0] sm:$0xff]  }
 0x519   :  { %3930 = vrot.lane.b32.xlu0 %v3920_v25, %s7866_s3  ;;  %v4018_v25 = vor.u32 %v4017_v32, %v4016_v33  ;;  %v10507_v3 = vsel %vm3937_vm2, %v3964_v48, %v3975_v9  ;;  %v10514_v14 = vsel %vm1117_vm6, %v4269_v36, %v4273_v62  ;;  %v4303_v49 = vshrl.u32 %v10443_v5, 16  ;;  %v10528_v33 = vld [vmem:[%s11355_s7 + $0xf0] sm:$0xff]  }
 0x51a   :  { %v4307_v9 = vshll.u32 %v4058_v61, 16  ;;  %v4343_v22 = vshll.u32 %v10500_v24, 16  ;;  %v6672_v60 = vcombine.low %v10432_v31, %v3812_v4  ;;  %v4339_v5 = vshrl.u32 %v4058_v61, 16  ;;  %7106 = vmatprep.subr.bf16.mxu0 %v10528_v33  ;;  %v4872_v61 = vld [vmem:[%s11357_s9 + $0x30] sm:$0xff] }
 0x51b   :  { %v4305_v48 = vor.u32 %v4303_v49, %v4273_v62  ;;  %v4019_v54 = vsel %vm1928_vm9, %v4015_v10, %v4018_v25  ;;  %v4022_v45 = vor.u32 %v4021_v21, %v4020_v39  ;;  %v4024_v31 = vrot.slane %v3962_v47, 2  ;;  %7107 = vmatpush3.bf16.msra.mxu0 %v10533_v41  ;;  %v10555_v47 = vld [vmem:[%s11355_s7 + $0xb8] sm:$0xff]   ;;  %v4866_v10 = vld [vmem:[%s11357_s9] sm:$0xff]  ;;  %v4868_v39 = vld [vmem:[%s11357_s9 + $0x10] sm:$0xff] }
 0x51c   :  { %3892 = vrot.lane.b32.xlu1 %v3883_v55, %s7866_s3  ;;  %v4309_v32 = vrot.slane %v4307_v9, 1  ;;  %v4025_v2 = vrot.slane %v3965_v30, 3  ;;  %v10544_v56 = vrot.slane %v4343_v22, 1  ;;  %7108 = vmatprep.subr.bf16.mxu0 %v10550_v59  ;;  %v4870_v21 = vld [vmem:[%s11357_s9 + $0x20] sm:$0xff]  ;;  %v4873_v49 = vld [vmem:[%s11357_s9 + $0x38] sm:$0xff]  ;;  %v3897_v22 = vrot.slane %v10208_v53, 1 }
 0x51d   :  { %4045 = vrot.lane.b32.xlu0 %v4035_v20, %s7866_s3  ;;  %v4023_v55 = vsel %vm1928_vm9, %v4018_v25, %v4022_v45  ;;  %v4867_v25 = vld [vmem:[%s11357_s9 + $0x8] sm:$0xff]  ;;  %v4874_v9 = vld [vmem:[%s11357_s9 + $0x40] sm:$0xff] }
 0x51e   :  { %v10542_v57 = vsel %vm1117_vm6, %v4305_v48, %v4309_v32  ;;  %v4341_v51 = vor.u32 %v4339_v5, %v4309_v32  ;;  %v4026_v36 = vor.u32 %v4025_v2, %v4024_v31  ;;  %v3798_v32 = vld [vmem:[#allocation4] sm:$0xf] }
 0x51f   :  { %7109 = vmatpush3.bf16.msra.mxu0 %v10555_v47  ;;  %v6658_v31 = vcombine.low %v3798_v32, %v10204_v35  ;;  %v3902_v35 = vrot.slane %v10391_v27, 1 }
 0x520   :  { %3988 = vrot.lane.b32.xlu1 %v6672_v60, %s7866_s3  ;;  %v10559_v30 = vsel %vm1117_vm6, %v4341_v51, %v10544_v56  ;;  %v4027_v62 = vsel %vm1928_vm9, %v4022_v45, %v4026_v36  ;;  %v4036_v4 = vsel %vm1928_vm9, %v4026_v36, %v4035_v20  ;;  %v4869_v20 = vld [vmem:[%s11357_s9 + $0x18] sm:$0xff]  ;;  %v3898_v60 = vrot.slane %v10223_v37, 1 }
 0x521   :  { %4037 = vrot.lane.b32.xlu0 %v4019_v54, %s7866_s3 }
 0x522   :  { %v3899_v5 = vsel %vm1250_vm5, %v3897_v22, %v3898_v60 }
 0x524   :  { %3980 = vrot.lane.b32.xlu1 %v10216_v0, %s7866_s3 }
 0x525   :  { %4039 = vrot.lane.b32.xlu0 %v4023_v55, %s7866_s3  ;;  %v3900_v55 = vrot.slane %v10352_v19, 1 }
 0x527   :  { %v3901_v53 = vsel %vm1250_vm5, %v3898_v60, %v3900_v55 }
 0x528   :  { %3982 = vrot.lane.b32.xlu1 %v10230_v58, %s7866_s3 }
 0x529   :  { %4041 = vrot.lane.b32.xlu0 %v4027_v62, %s7866_s3 }
 0x52c   :  { %3984 = vrot.lane.b32.xlu1 %v10368_v15, %s7866_s3 }
 0x52d   :  { %4043 = vrot.lane.b32.xlu0 %v4036_v4, %s7866_s3 }
 0x530   :  { %3986 = vrot.lane.b32.xlu1 %v10403_v26, %s7866_s3  ;;  %v4871_v26 = vld [vmem:[%s11357_s9 + $0x28] sm:$0xff] }
 0x531   :  { %4877 = vperm.xlu0 %7660, %v4866_v10  }
 0x533   :  { %v3923_v48 = vpop.permute.xlu0 %3922 }
 0x534   :  { %4882 = vperm.xlu1 %7659, %v4867_v25   ;;  %v4072_v45 = vsel %vm1747_vm13, %v3899_v5, %v3923_v48  ;;  %v3809_v48 = vld [vmem:[#allocation4 + $0x24] sm:$0x3] }
 0x535   :  { %4887 = vperm.xlu0 %7660, %v4868_v39   ;;  %v3885_v54 = vpop.permute.xlu1 %3884  ;;  %v4199_v51 = vshll.u32 %v4072_v45, 16  ;;  %v4197_v25 = vshrl.u32 %v4072_v45, 16 }
 0x536   :  { %v4061_v2 = vsel %vm1747_vm13, %v6658_v31, %v3885_v54  ;;  %v6664_v54 = vcombine.low %v10394_v38, %v3809_v48  ;;  %v3903_v31 = vsel %vm1250_vm5, %v3900_v55, %v3902_v35 }
 0x537   :  { %v4189_v36 = vshll.u32 %v4061_v2, 16  ;;  %v4201_v62 = vrot.slane %v4199_v51, 1 }
 0x538   :  { %4892 = vperm.xlu1 %7659, %v4869_v20  }
 0x539   :  { %4897 = vperm.xlu0 %7660, %v4870_v21   ;;  %v4191_v39 = vrot.slane %v4189_v36, 1 }
 0x53c   :  { %4902 = vperm.xlu1 %7659, %v4871_v26  }
 0x53d   :  { %4907 = vperm.xlu0 %7660, %v4872_v61   ;;  %v4202_v61 = vor.u32 %v4201_v62, %v4197_v25 }
 0x540   :  { %4912 = vperm.xlu1 %7659, %v4873_v49   ;;  %v4187_v49 = vshrl.u32 %v4061_v2, 16 }
 0x541   :  { %4917 = vperm.xlu0 %7660, %v4874_v9  }
 0x542   :  { %v4192_v32 = vor.u32 %v4191_v39, %v4187_v49 }
 0x577   :  { %v3925_v4 = vpop.permute.xlu0 %3924 }
 0x578   :  { %v4075_v10 = vsel %vm1747_vm13, %v3901_v53, %v3925_v4  ;;  %v3904_v53 = vrot.slane %v6664_v54, 1 }
 0x579   :  { %v4203_v20 = vshll.u32 %v4075_v10, 16  ;;  %v3887_v21 = vpop.permute.xlu1 %3886  ;;  %v4246_v36 = vshrl.u32 %v4075_v10, 16 }
 0x57a   :  { %v4063_v26 = vsel %vm1747_vm13, %v10223_v37, %v3887_v21 }
 0x57b   :  { %v4205_v9 = vrot.slane %v4203_v20, 1  ;;  %v4193_v22 = vshll.u32 %v4063_v26, 16  ;;  %v4239_v25 = vshrl.u32 %v4063_v26, 16 }
 0x57d   :  { %v4195_v5 = vrot.slane %v4193_v22, 1  ;;  %v4206_v60 = vsel %vm1117_vm6, %v4202_v61, %v4205_v9  ;;  %v4248_v38 = vor.u32 %v4246_v36, %v4205_v9 }
 0x57e   :  { %4645 = vmatprep.mubr.bf16.mxu1 %v4206_v60 }
 0x57f   :  { %v3927_v45 = vpop.permute.xlu0 %3926  ;;  %v4196_v51 = vsel %vm1117_vm6, %v4192_v32, %v4195_v5  ;;  %v4241_v20 = vor.u32 %v4239_v25, %v4195_v5  ;;  %v3939_v5 = vshrl.u32 %v10216_v0, 16 }
 0x580   :  { %v4078_v37 = vsel %vm1747_vm13, %v3903_v31, %v3927_v45  ;;  %4646 = vmatmul.mubr.bf16.vlgmr.msra.gmra.mrb[76].mxu1 %v4196_v51 }
 0x581   :  { %v4249_v2 = vshll.u32 %v4078_v37, 16  ;;  %v3889_v62 = vpop.permute.xlu1 %3888  ;;  %7643 = vmatpush3.bf16.msra.mxu1 %v10240_v7  ;;  %v3813_v7 = vld [vmem:[#allocation4 + $0x4] sm:$0xc]  ;;  %v4282_v48 = vshrl.u32 %v4078_v37, 16  ;;  %v3941_v25 = vrot.slane %v3939_v5, 7 }
 0x582   :  { %v4065_v4 = vsel %vm1747_vm13, %v10352_v19, %v3889_v62  ;;  %7636 = vmatprep.subr.bf16.mxu1 %v10257_v18  ;;  %v3905_v19 = vsel %vm1250_vm5, %v3902_v35, %v3904_v53  ;;  %v6673_v22 = vcombine.low %v3813_v7, %v10210_v28 }
 0x583   :  { %v4251_v39 = vrot.slane %v4249_v2, 1  ;;  %v4242_v55 = vshll.u32 %v4065_v4, 16  ;;  %v4275_v54 = vshrl.u32 %v4065_v4, 16  ;;  %v3942_v2 = vshll.u32 %v10216_v0, 16 }
 0x584   :  { %v3996_v28 = vrot.slane %v6673_v22, 2 }
 0x585   :  { %v4244_v21 = vrot.slane %v4242_v55, 1  ;;  %v4252_v61 = vsel %vm1117_vm6, %v4248_v38, %v4251_v39  ;;  %7644 = vmatpush3.bf16.msra.mxu1 %v10271_v8  ;;  %v4284_v60 = vor.u32 %v4282_v48, %v4251_v39  ;;  %v3997_v38 = vrot.slane %v10230_v58, 2 }
 0x586   :  { %4653 = vmatprep.mubr.bf16.mxu1 %v4252_v61  ;;  %7637 = vmatprep.subr.bf16.mxu1 %v10280_v43 }
 0x587   :  { %v3929_v10 = vpop.permute.xlu0 %3928  ;;  %v4245_v49 = vsel %vm1117_vm6, %v4241_v20, %v4244_v21  ;;  %v4277_v37 = vor.u32 %v4275_v54, %v4244_v21  ;;  %v3998_v0 = vsel %vm3653_vm14, %v3996_v28, %v3997_v38  ;;  %v3944_v20 = vor.u32 %v3942_v2, %v3941_v25 }
 0x588   :  { %v4081_v18 = vsel %vm1747_vm13, %v3905_v19, %v3929_v10  ;;  %4654 = vmatmul.mubr.bf16.gmra.mrb[80].mxu1 %v4245_v49 }
 0x589   :  { %v4285_v26 = vshll.u32 %v4081_v18, 16  ;;  %7645 = vmatpush3.bf16.msra.mxu1 %v10299_v40  ;;  %v4318_v31 = vshrl.u32 %v4081_v18, 16 }
 0x58a   :  { %v3891_v9 = vpop.permute.xlu1 %3890  ;;  %7638 = vmatprep.subr.bf16.mxu1 %v10345_v63 }
 0x58b   :  { %v4067_v8 = vsel %vm1747_vm13, %v10391_v27, %v3891_v9  ;;  %v4287_v43 = vrot.slane %v4285_v26, 1  ;;  %v3931_v35 = vpop.permute.xlu0 %3930 }
 0x58c   :  { %v4278_v32 = vshll.u32 %v4067_v8, 16  ;;  %v4084_v45 = vsel %vm1747_vm13, %v3904_v53, %v3931_v35  ;;  %v4311_v21 = vshrl.u32 %v4067_v8, 16 }
 0x58d   :  { %v4321_v40 = vshll.u32 %v4084_v45, 16  ;;  %7646 = vmatpush3.bf16.msra.mxu1 %v10358_v23  ;;  %v4288_v27 = vsel %vm1117_vm6, %v4284_v60, %v4287_v43  ;;  %v4320_v62 = vor.u32 %v4318_v31, %v4287_v43  ;;  %v4350_v18 = vshrl.u32 %v4084_v45, 16 }
 0x58e   :  { %v4280_v51 = vrot.slane %v4278_v32, 1  ;;  %v3893_v36 = vpop.permute.xlu1 %3892  ;;  %7639 = vmatprep.subr.bf16.mxu1 %v10416_v42  ;;  %4661 = vmatprep.mubr.bf16.mxu1 %v4288_v27 }
 0x58f   :  { %v10641_v63 = vsel %vm1747_vm13, %v10448_v44, %v3893_v36  ;;  %v4323_v4 = vrot.slane %v4321_v40, 1  ;;  %v4046_v53 = vpop.permute.xlu0 %4045 }
 0x590   :  { %v4314_v23 = vshll.u32 %v10641_v63, 16  ;;  %v4281_v39 = vsel %vm1117_vm6, %v4277_v37, %v4280_v51  ;;  %v4114_v61 = vsel %vm1747_vm13, %v4003_v1, %v4046_v53  ;;  %v4313_v49 = vor.u32 %v4311_v21, %v4280_v51 }
 0x591   :  { %4662 = vmatmul.mubr.bf16.gmra.mrb[84].mxu1 %v4281_v39  ;;  %v4324_v55 = vsel %vm1117_vm6, %v4320_v62, %v4323_v4  ;;  %v4335_v26 = vshll.u32 %v4114_v61, 16  ;;  %v4352_v43 = vor.u32 %v4350_v18, %v4323_v4  ;;  %v4347_v40 = vshrl.u32 %v10641_v63, 16 }
 0x592   :  { %v3989_v44 = vpop.permute.xlu1 %3988  ;;  %4669 = vmatprep.mubr.bf16.mxu1 %v4324_v55  ;;  %7647 = vmatpush3.bf16.msra.mxu1 %v10421_v12  ;;  %v4316_v58 = vrot.slane %v4314_v23, 1  ;;  %v4356_v28 = vshrl.u32 %v4114_v61, 16 }
 0x593   :  { %v4038_v42 = vpop.permute.xlu0 %4037  ;;  %7640 = vmatprep.subr.bf16.mxu1 %v10493_v46  ;;  %v11446_v46 = vrot.slane %v10368_v15, 2  ;;  %v4099_v15 = vsel %vm1747_vm13, %v10507_v3, %v3989_v44  ;;  %v4337_v54 = vrot.slane %v4335_v26, 1 }
 0x594   :  { %v4102_v7 = vsel %vm1747_vm13, %v3998_v0, %v4038_v42  ;;  %v4317_v8 = vsel %vm1117_vm6, %v4313_v49, %v4316_v58  ;;  %v4328_v37 = vshll.u32 %v4099_v15, 16  ;;  %v4349_v23 = vor.u32 %v4347_v40, %v4316_v58 }
 0x595   :  { %v4219_v10 = vshll.u32 %v4102_v7, 16  ;;  %v4000_v22 = vsel %vm3653_vm14, %v3997_v38, %v11446_v46  ;;  %v4217_v5 = vshrl.u32 %v4102_v7, 16 }
 0x596   :  { %v3981_v19 = vpop.permute.xlu1 %3980  ;;  %7648 = vmatpush3.bf16.msra.mxu1 %v10498_v11  ;;  %v3952_v11 = vsel %vm3937_vm2, %v3941_v25, %v10293_v17 }
 0x597   :  { %v4087_v12 = vsel %vm1747_vm13, %v3944_v20, %v3981_v19  ;;  %v4040_v48 = vpop.permute.xlu0 %4039  ;;  %7641 = vmatprep.subr.bf16.mxu1 %v10528_v33  ;;  %v4221_v50 = vrot.slane %v4219_v10, 1 }
 0x598   :  { %v4209_v9 = vshll.u32 %v4087_v12, 16  ;;  %v4105_v1 = vsel %vm1747_vm13, %v4000_v22, %v4040_v48  ;;  %v4207_v36 = vshrl.u32 %v4087_v12, 16  ;;  %v4353_v12 = vshrl.u32 %v4099_v15, 16  ;;  %v7752_v15 = vld [vmem:[%s11355_s7 + $0x110] sm:$0xff]  }
 0x599   :  { %v4223_v32 = vshll.u32 %v4105_v1, 16  ;;  %4670 = vmatmul.mubr.bf16.gmra.mrb[88].mxu1 %v4317_v8  ;;  %v4222_v17 = vor.u32 %v4221_v50, %v4217_v5  ;;  %v7753_v5 = vld [vmem:[%s11355_s7 + $0x118] sm:$0xff]  }
 0x59a   :  { %v3983_v35 = vpop.permute.xlu1 %3982  ;;  %v4211_v60 = vrot.slane %v4209_v9, 1  ;;  %4677 = vmatprep.mubr.bf16.mxu1 %v4352_v43  ;;  %7649 = vmatpush3.bf16.msra.mxu1 %v10533_v41  ;;  %v4260_v41 = vshrl.u32 %v4105_v1, 16 }
 0x59b   :  { %v4090_v33 = vsel %vm1747_vm13, %v3952_v11, %v3983_v35  ;;  %v4225_v45 = vrot.slane %v4223_v32, 1  ;;  %v4042_v51 = vpop.permute.xlu0 %4041  ;;  %7642 = vmatprep.subr.bf16.mxu1 %v10550_v59  ;;  %v7751_v35 = vld [vmem:[%s11355_s7 + $0x108] sm:$0xff]  }
 0x59c   :  { %v4213_v31 = vshll.u32 %v4090_v33, 16  ;;  %v4108_v3 = vsel %vm1747_vm13, %v10438_v52, %v4042_v51  ;;  %v4212_v4 = vor.u32 %v4211_v60, %v4207_v36  ;;  %v4358_v52 = vor.u32 %v4356_v28, %v4337_v54  ;;  %v7771_v28 = vld [vmem:[%s11358_s10 + $0x48] sm:$0xff]  }
 0x59d   :  { %v4263_v2 = vshll.u32 %v4108_v3, 16  ;;  %v4226_v38 = vsel %vm1117_vm6, %v4222_v17, %v4225_v45  ;;  %v4262_v39 = vor.u32 %v4260_v41, %v4225_v45  ;;  %v4253_v44 = vshrl.u32 %v4090_v33, 16 }
 0x59e   :  { %v4215_v27 = vrot.slane %v4213_v31, 1  ;;  %v3985_v62 = vpop.permute.xlu1 %3984  ;;  %7650 = vmatpush3.bf16.msra.mxu1 %v10555_v47  ;;  %4717 = vmatprep.mubr.bf16.mxu0 %v4226_v38  ;;  %v4296_v42 = vshrl.u32 %v4108_v3, 16  ;;  %v7774_v38 = vld [vmem:[%s11358_s10 + $0x10] sm:$0xff]  }
 0x59f   :  { %v4093_v53 = vsel %vm1747_vm13, %v10408_v34, %v3985_v62  ;;  %v4265_v59 = vrot.slane %v4263_v2, 1  ;;  %v4044_v25 = vpop.permute.xlu0 %4043  ;;  %7480 = vmatprep.subr.bf16.mxu1 %v11433_v6  ;;  %v4330_v34 = vrot.slane %v4328_v37, 1  ;;  %v7772_v37 = vld [vmem:[%s11358_s10 + $0x8] sm:$0xff]   ;;  %v7773_v2 = vld [vmem:[%s11358_s10 + $0x50] sm:$0xff]  }
 0x5a0   :  { %v4256_v63 = vshll.u32 %v4093_v53, 16  ;;  %v4111_v55 = vsel %vm1747_vm13, %v10478_v13, %v4044_v25  ;;  %v4216_v0 = vsel %vm1117_vm6, %v4212_v4, %v4215_v27  ;;  %v4255_v61 = vor.u32 %v4253_v44, %v4215_v27  ;;  %v7776_v25 = vld [vmem:[%s11358_s10 + $0x18] sm:$0xff]  }
 0x5a1   :  { %v4299_v21 = vshll.u32 %v4111_v55, 16  ;;  %4678 = vmatmul.mubr.bf16.gmra.mrb[92].mxu1 %v4349_v23  ;;  %4718 = vmatmul.mubr.bf16.vlgmr.msra.gmra.mrb[104].mxu0 %v4216_v0  ;;  %v4289_v7 = vshrl.u32 %v4093_v53, 16  ;;  %v4266_v10 = vsel %vm1117_vm6, %v4262_v39, %v4265_v59  ;;  %v4298_v19 = vor.u32 %v4296_v42, %v4265_v59 }
 0x5a2   :  { %v4258_v20 = vrot.slane %v4256_v63, 1  ;;  %v3987_v47 = vpop.permute.xlu1 %3986  ;;  %4749 = vmatprep.mubr.bf16.mxu1 %v4358_v52  ;;  %v4332_v13 = vshrl.u32 %v4111_v55, 16  ;;  %4725 = vmatprep.mubr.bf16.mxu0 %v4266_v10  ;;  %v4355_v1 = vor.u32 %v4353_v12, %v4330_v34  ;;  %v7775_v63 = vld [vmem:[%s11358_s10 + $0x58] sm:$0xff]  }
 0x5a3   :  { %v4096_v58 = vsel %vm1747_vm13, %v10487_v29, %v3987_v47  ;;  %v4301_v49 = vrot.slane %v4299_v21, 1  ;;  %v7750_v29 = vld [vmem:[%s11355_s7 + $0x100] sm:$0xff]  }
 0x5a4   :  { %v4292_v18 = vshll.u32 %v4096_v58, 16  ;;  %v4291_v26 = vor.u32 %v4289_v7, %v4258_v20  ;;  %v4259_v9 = vsel %vm1117_vm6, %v4255_v61, %v4258_v20  ;;  %v4325_v48 = vshrl.u32 %v4096_v58, 16 }
 0x5a5   :  { %v4334_v46 = vor.u32 %v4332_v13, %v4301_v49  ;;  %v4302_v50 = vsel %vm1117_vm6, %v4298_v19, %v4301_v49 }
 0x5a6   :  { %v4294_v22 = vrot.slane %v4292_v18, 1 }
 0x5a7   :  { %v4338_v32 = vsel %vm1117_vm6, %v4334_v46, %v4337_v54 }
 0x5a8   :  { %v4327_v8 = vor.u32 %v4325_v48, %v4294_v22  ;;  %v4295_v43 = vsel %vm1117_vm6, %v4291_v26, %v4294_v22 }
 0x5a9   :  { %4726 = vmatmul.mubr.bf16.gmra.mrb[108].mxu0 %v4259_v9  ;;  %4750 = vmatmul.mubr.bf16.vlgmr.msra.gmra.mrb[96].mxu1 %v4355_v1 }
 0x5aa   :  { %v4331_v11 = vsel %vm1117_vm6, %v4327_v8, %v4330_v34  ;;  %7481 = vmatpush3.bf16.msra.mxu1 %v7750_v29  ;;  %4733 = vmatprep.mubr.bf16.mxu0 %v4302_v50 }
 0x5ab   :  { %7482 = vmatprep.subr.bf16.mxu1 %v11433_v6  ;;  %7488 = vmatprep.mubr.msk.bf16.mxu1 %vm7862_vm0, %v11433_v6 }
 0x5ae   :  { %7483 = vmatpush3.bf16.msra.mxu1 %v7751_v35 }
 0x5af   :  { %7484 = vmatprep.subr.bf16.mxu1 %v11433_v6 }
 0x5b1   :  { %4734 = vmatmul.mubr.bf16.gmra.mrb[112].mxu0 %v4295_v43 }
 0x5b2   :  { %7485 = vmatpush3.bf16.msra.mxu1 %v7752_v15  ;;  %4741 = vmatprep.mubr.bf16.mxu0 %v4338_v32 }
 0x5b3   :  { %7486 = vmatprep.subr.bf16.mxu1 %v11433_v6 }
 0x5b6   :  { %7487 = vmatpush3.bf16.msra.mxu1 %v7753_v5 }
 0x5b9   :  { %7489 = vmatmul.mubr.msk.bf16.vlgmr.msra.gmra.mrb[100].mxu1 %vm1747_vm13, %v10426_v16  ;;  %4742 = vmatmul.mubr.bf16.gmra.mrb[116].mxu0 %v4331_v11  ;;  %v4359_v16 = vshrl.u32 %v10500_v24, 16  ;;  %v7769_v24 = vld [vmem:[%s11358_s10 + $0x40] sm:$0xff]  }
 0x5ba   :  { %7492 = vmatprep.mubr.msk.bf16.mxu1 %vm7862_vm0, %v11433_v6  ;;  %7149 = vmatprep.subr.bf16.mxu0 %v7769_v24 }
 0x5bb   :  { %v4361_v60 = vor.u32 %v4359_v16, %v10544_v56  ;;  %v7770_v56 = vld [vmem:[%s11358_s10] sm:$0xff]  }
 0x5bc   :  { %7150 = vmatpush3.bf16.msra.mxu0 %v7770_v56 }
 0x5bd   :  { %7151 = vmatprep.subr.bf16.mxu0 %v7771_v28 }
 0x5c0   :  { %7152 = vmatpush3.bf16.msra.mxu0 %v7772_v37 }
 0x5c1   :  { %7493 = vmatmul.mubr.msk.bf16.gmra.mrb[104].mxu1 %vm1747_vm13, %v10514_v14  ;;  %7153 = vmatprep.subr.bf16.mxu0 %v7773_v2 }
 0x5c2   :  { %7496 = vmatprep.mubr.msk.bf16.mxu1 %vm7862_vm0, %v11433_v6 }
 0x5c4   :  { %7154 = vmatpush3.bf16.msra.mxu0 %v7774_v38 }
 0x5c5   :  { %7155 = vmatprep.subr.bf16.mxu0 %v7775_v63 }
 0x5c8   :  { %7156 = vmatpush3.bf16.msra.mxu0 %v7776_v25  ;;  %v4878_v25 = vpop.permute.xlu0 %4877 }
 0x5c9   :  { %7497 = vmatmul.mubr.msk.bf16.gmra.mrb[108].mxu1 %vm1747_vm13, %v10542_v57 }
 0x5ca   :  { %7500 = vmatprep.mubr.msk.bf16.mxu1 %vm7862_vm0, %v11433_v6 }
 0x5d1   :  { %7501 = vmatmul.mubr.msk.bf16.gmra.mrb[112].mxu1 %vm1747_vm13, %v10559_v30 }
 0x5d2   :  { %7504 = vmatprep.mubr.msk.bf16.mxu1 %vm7862_vm0, %v11433_v6 }
 0x5d9   :  { %7505 = vmatmul.mubr.msk.bf16.gmra.mrb[116].mxu1 %vm1747_vm13, %v4361_v60 }
 0x653   :  { %v7064_v14 = vpop.f32.mrb[76].mxu1 }
 0x654   :  { %v7065_v33 = vpop.f32.mrb[77].mxu1 }
 0x655   :  { %v7066_v54 = vadd.f32 %v7065_v33, %v7064_v14  ;;  %v7067_v45 = vpop.f32.mrb[78].mxu1 }
 0x656   :  { %v7068_v57 = vpop.f32.mrb[79].mxu1 }
 0x657   :  { %v7069_v31 = vadd.f32 %v7068_v57, %v7067_v45 }
 0x65b   :  { %v7070_v51 = vpop.f32.mrb[80].mxu1 }
 0x65c   :  { %v7071_v40 = vpop.f32.mrb[81].mxu1 }
 0x65d   :  { %v7072_v17 = vadd.f32 %v7071_v40, %v7070_v51  ;;  %v7073_v36 = vpop.f32.mrb[82].mxu1 }
 0x65e   :  { %v7074_v30 = vpop.f32.mrb[83].mxu1 }
 0x65f   :  { %v7075_v3 = vadd.f32 %v7074_v30, %v7073_v36  ;;  %v10761_v30 = vld [vmem:[%s11356_s8 + $0x1] ss:$0 sm:$0xff] }
 0x664   :  { %v7076_v27 = vpop.f32.mrb[84].mxu1 }
 0x665   :  { %v7077_v62 = vpop.f32.mrb[85].mxu1 }
 0x666   :  { %v7078_v4 = vadd.f32 %v7077_v62, %v7076_v27  ;;  %v7079_v41 = vpop.f32.mrb[86].mxu1 }
 0x667   :  { %v7080_v53 = vpop.f32.mrb[87].mxu1 }
 0x668   :  { %v7081_v59 = vadd.f32 %v7080_v53, %v7079_v41 }
 0x66c   :  { %v7082_v23 = vpop.f32.mrb[88].mxu1 }
 0x66d   :  { %v7083_v52 = vpop.f32.mrb[89].mxu1 }
 0x66e   :  { %v7084_v39 = vadd.f32 %v7083_v52, %v7082_v23  ;;  %v7085_v44 = vpop.f32.mrb[90].mxu1 }
 0x66f   :  { %v7086_v55 = vpop.f32.mrb[91].mxu1 }
 0x670   :  { %v7087_v0 = vadd.f32 %v7086_v55, %v7085_v44 }
 0x674   :  { %v7088_v34 = vpop.f32.mrb[92].mxu1  ;;  %v7110_v42 = vpop.f32.mrb[104].mxu0 }
 0x675   :  { %v7089_v20 = vpop.f32.mrb[93].mxu1  ;;  %v7111_v21 = vpop.f32.mrb[105].mxu0 }
 0x676   :  { %v7090_v47 = vadd.f32 %v7089_v20, %v7088_v34  ;;  %v7112_v61 = vadd.f32 %v7111_v21, %v7110_v42  ;;  %v7091_v7 = vpop.f32.mrb[94].mxu1  ;;  %v7113_v58 = vpop.f32.mrb[106].mxu0 }
 0x677   :  { %v7092_v10 = vpop.f32.mrb[95].mxu1  ;;  %v7114_v19 = vpop.f32.mrb[107].mxu0 }
 0x678   :  { %v7115_v49 = vadd.f32 %v7114_v19, %v7113_v58  ;;  %v4720_v13 = vadd.f32 %v7112_v61, %v7066_v54  ;;  %v4883_v42 = vpop.permute.xlu1 %4882 }
 0x67a   :  { %v4723_v18 = vadd.f32 %v7115_v49, %v7069_v31  ;;  %v10756_v31 = vld [vmem:[%s11356_s8] ss:$0 sm:$0xff] }
 0x67c   :  { %v7116_v12 = vpop.f32.mrb[108].mxu0  ;;  %v7134_v26 = vpop.f32.mrb[96].mxu1 }
 0x67d   :  { %v7117_v9 = vpop.f32.mrb[109].mxu0  ;;  %v7135_v46 = vpop.f32.mrb[97].mxu1 }
 0x67e   :  { %v7118_v22 = vadd.f32 %v7117_v9, %v7116_v12  ;;  %v7136_v48 = vadd.f32 %v7135_v46, %v7134_v26  ;;  %v7119_v50 = vpop.f32.mrb[110].mxu0  ;;  %v7137_v29 = vpop.f32.mrb[98].mxu1 }
 0x67f   :  { %v7120_v1 = vpop.f32.mrb[111].mxu0  ;;  %v7138_v8 = vpop.f32.mrb[99].mxu1 }
 0x680   :  { %v7121_v43 = vadd.f32 %v7120_v1, %v7119_v50  ;;  %v4728_v32 = vadd.f32 %v7118_v22, %v7072_v17  ;;  %v10751_v11 = vadd.f32 %v7136_v48, %v7090_v47  ;;  %v4893_v22 = vpop.permute.xlu1 %4892 }
 0x682   :  { %v4731_v35 = vadd.f32 %v7121_v43, %v7075_v3 }
 0x684   :  { %v7122_v15 = vpop.f32.mrb[112].mxu0 }
 0x685   :  { %v7123_v5 = vpop.f32.mrb[113].mxu0 }
 0x686   :  { %v7124_v16 = vadd.f32 %v7123_v5, %v7122_v15  ;;  %v7125_v60 = vpop.f32.mrb[114].mxu0 }
 0x687   :  { %v7126_v14 = vpop.f32.mrb[115].mxu0 }
 0x688   :  { %v7127_v33 = vadd.f32 %v7126_v14, %v7125_v60  ;;  %v4736_v54 = vadd.f32 %v7124_v16, %v7078_v4 }
 0x68a   :  { %v4739_v45 = vadd.f32 %v7127_v33, %v7081_v59 }
 0x68c   :  { %v4791_v57 = vpop.f32.mrb[100].mxu1  ;;  %v7128_v51 = vpop.f32.mrb[116].mxu0 }
 0x68d   :  { %v4792_v40 = vadd.f32 %v4791_v57, %v4720_v13  ;;  %v7490_v17 = vpop.f32.mrb[101].mxu1  ;;  %v7129_v36 = vpop.f32.mrb[117].mxu0 }
 0x68e   :  { %v7130_v3 = vadd.f32 %v7129_v36, %v7128_v51  ;;  %v4794_v24 = vpop.f32.mrb[102].mxu1  ;;  %v7131_v56 = vpop.f32.mrb[118].mxu0 }
 0x68f   :  { %v4834_v28 = vmul.f32 %v10756_v31, %v4792_v40  ;;  %v4795_v37 = vadd.f32 %v4794_v24, %v4723_v18  ;;  %v7491_v27 = vpop.f32.mrb[103].mxu1  ;;  %v7132_v2 = vpop.f32.mrb[119].mxu0 }
 0x690   :  { %v7133_v62 = vadd.f32 %v7132_v2, %v7131_v56  ;;  %v4744_v4 = vadd.f32 %v7130_v3, %v7084_v39  ;;  %v4888_v13 = vpop.permute.xlu0 %4887  ;;  %v4903_v3 = vpop.permute.xlu1 %4902  ;;  %v7778_v27 = vld [vmem:[%s11358_s10 + $0x20] sm:$0xff]  }
 0x691   :  { %v4848_v41 = vadd.f32 %v10761_v30, %v4834_v28  ;;  %v4835_v53 = vmul.f32 %v10756_v31, %v4795_v37  ;;  %v7777_v37 = vld [vmem:[%s11358_s10 + $0x60] sm:$0xff]  }
 0x692   :  { %v4747_v38 = vadd.f32 %v7133_v62, %v7087_v0  ;;  %7157 = vmatprep.subr.bf16.mxu0 %v7777_v37 }
 0x693   :  { %v4857_v59 = vmax.f32 %v4848_v41, 0.0  ;;  %v4849_v63 = vadd.f32 %v10761_v30, %v4835_v53  ;;  %7158 = vmatpush3.bf16.msra.mxu0 %v7778_v27 }
 0x694   :  { %v4799_v23 = vpop.f32.mrb[104].mxu1 }
 0x695   :  { %v4920_v52 = vmul.f32 %v4878_v25, %v4857_v59  ;;  %v4858_v44 = vmax.f32 %v4849_v63, 0.0  ;;  %v4800_v55 = vadd.f32 %v4799_v23, %v4728_v32  ;;  %v7494_v34 = vpop.f32.mrb[105].mxu1  ;;  %v4985_v32 = vld [vmem:[#allocation5] sm:$0xe] }
 0x696   :  { %v4802_v20 = vpop.f32.mrb[106].mxu1 }
 0x697   :  { %v6880_v21 = vpack.c.bf16 %v4920_v52, %v4920_v52  ;;  %v4921_v47 = vmul.f32 %v4883_v42, %v4858_v44  ;;  %v4836_v39 = vmul.f32 %v10756_v31, %v4800_v55  ;;  %v4803_v61 = vadd.f32 %v4802_v20, %v4731_v35  ;;  %v7495_v7 = vpop.f32.mrb[107].mxu1  ;;  %v7781_v55 = vld [vmem:[%s11358_s10 + $0x28] sm:$0xff]  }
 0x699   :  { %4966 = vst.msk [vmem:[#allocation5 + $0x4] sm:$0xf] %vm69_vm1, %v6880_v21  ;;  %v6881_v0 = vpack.c.bf16 %v4921_v47, %v4921_v47  ;;  %v4850_v58 = vadd.f32 %v10761_v30, %v4836_v39  ;;  %v4837_v10 = vmul.f32 %v10756_v31, %v4803_v61 }
 0x69b   :  { %4967 = vst.msk [vmem:[#allocation5 + $0x8] sm:$0xf] %vm69_vm1, %v6881_v0  ;;  %v4859_v19 = vmax.f32 %v4850_v58, 0.0  ;;  %v4851_v49 = vadd.f32 %v10761_v30, %v4837_v10 }
 0x69c   :  { %v4807_v18 = vpop.f32.mrb[108].mxu1 }
 0x69d   :  { %v4922_v12 = vmul.f32 %v4888_v13, %v4859_v19  ;;  %v4860_v26 = vmax.f32 %v4851_v49, 0.0  ;;  %v4808_v9 = vadd.f32 %v4807_v18, %v4736_v54  ;;  %v7498_v46 = vpop.f32.mrb[109].mxu1  ;;  %v4987_v54 = vld [vmem:[#allocation5] sm:$0x8] }
 0x69e   :  { %v4810_v48 = vpop.f32.mrb[110].mxu1 }
 0x69f   :  { %v6882_v50 = vpack.c.bf16 %v4922_v12, %v4922_v12  ;;  %v4923_v29 = vmul.f32 %v4893_v22, %v4860_v26  ;;  %v4838_v1 = vmul.f32 %v10756_v31, %v4808_v9  ;;  %v4811_v8 = vadd.f32 %v4810_v48, %v4739_v45  ;;  %v7499_v43 = vpop.f32.mrb[111].mxu1  ;;  %v4898_v45 = vpop.permute.xlu0 %4897 }
 0x6a0   :  { %v10774_v35 = vld [vmem:[#allocation5 + $0x4] sm:$0xf]  ;;  %v4913_v22 = vpop.permute.xlu1 %4912 }
 0x6a1   :  { %4968 = vst.msk [vmem:[#allocation5 + $0xc] sm:$0xf] %vm69_vm1, %v6882_v50  ;;  %v6883_v15 = vpack.c.bf16 %v4923_v29, %v4923_v29  ;;  %v4852_v5 = vadd.f32 %v10761_v30, %v4838_v1  ;;  %v4839_v16 = vmul.f32 %v10756_v31, %v4811_v8  ;;  %v10780_v60 = vcombine.low %v4985_v32, %v10774_v35  ;;  %v4990_v7 = vld [vmem:[#allocation5 + $0x4] sm:$0xc]  ;;  %v7782_v8 = vld [vmem:[%s11358_s10 + $0x70] sm:$0xff]  }
 0x6a2   :  { %v6736_v56 = vcombine.low %v4987_v54, %v10774_v35  ;;  %v10793_v59 = vld [vmem:[#allocation5 + $0x8] sm:$0xf] }
 0x6a3   :  { %4969 = vst.msk [vmem:[#allocation5 + $0x10] sm:$0xf] %vm69_vm1, %v6883_v15  ;;  %v4861_v14 = vmax.f32 %v4852_v5, 0.0  ;;  %v4853_v33 = vadd.f32 %v10761_v30, %v4839_v16  ;;  %v5025_v28 = vshll.u32 %v10780_v60, 16  ;;  %v4908_v0 = vpop.permute.xlu0 %4907  ;;  %v5023_v10 = vshrl.u32 %v10780_v60, 16  ;;  %v7784_v54 = vld [vmem:[%s11358_s10 + $0x78] sm:$0xff]  }
 0x6a4   :  { %v4815_v57 = vpop.f32.mrb[112].mxu1  ;;  %v5089_v34 = vrot.slane %v6736_v56, 3  ;;  %v10816_v49 = vcombine.low %v10774_v35, %v10793_v59  ;;  %v6744_v13 = vcombine.low %v4990_v7, %v10793_v59 }
 0x6a5   :  { %v4924_v51 = vmul.f32 %v4898_v45, %v4861_v14  ;;  %v4862_v40 = vmax.f32 %v4853_v33, 0.0  ;;  %v4816_v17 = vadd.f32 %v4815_v57, %v4744_v4  ;;  %v7502_v36 = vpop.f32.mrb[113].mxu1  ;;  %v5027_v42 = vrot.slane %v5025_v28, 1  ;;  %v7785_v45 = vld [vmem:[%s11358_s10 + $0xc0] sm:$0xff]  }
 0x6a6   :  { %v4818_v24 = vpop.f32.mrb[114].mxu1  ;;  %v5171_v57 = vrot.slane %v6744_v13, 2  ;;  %v4992_v36 = vld [vmem:[#allocation5 + $0x4] sm:$0x8]  ;;  %7195 = vmatprep.subr.bf16.mxu1 %v7785_v45  ;;  %v7790_v13 = vld [vmem:[%s11358_s10 + $0xd0] sm:$0xff]  }
 0x6a7   :  { %v6884_v2 = vpack.c.bf16 %v4924_v51, %v4924_v51  ;;  %v4925_v62 = vmul.f32 %v4903_v3, %v4862_v40  ;;  %v4840_v41 = vmul.f32 %v10756_v31, %v4816_v17  ;;  %v4819_v4 = vadd.f32 %v4818_v24, %v4747_v38  ;;  %v7503_v53 = vpop.f32.mrb[115].mxu1  ;;  %v7780_v38 = vld [vmem:[%s11358_s10 + $0x68] sm:$0xff]   ;;  %v7786_v3 = vld [vmem:[%s11358_s10 + $0x38] sm:$0xff]   ;;  %v7787_v24 = vld [vmem:[%s11358_s10 + $0x80] sm:$0xff]  }
 0x6a8   :  { %v4978_v63 = vld [vmem:[#allocation5 + $0xc] sm:$0xf]  ;;  %7159 = vmatprep.subr.bf16.mxu0 %v7780_v38  ;;  %v5028_v50 = vor.u32 %v5027_v42, %v5023_v10  ;;  %v5114_v51 = vshrl.u32 %v10816_v49, 16  ;;  %v10857_v27 = vcombine.low %v4992_v36, %v10793_v59  ;;  %7196 = vmatpush3.bf16.msra.mxu1 %v7787_v24  ;;  %v4991_v45 = vld [vmem:[#allocation5 + $0x28] sm:$0x7] }
 0x6a9   :  { %4970 = vst.msk [vmem:[#allocation5 + $0x14] sm:$0xf] %vm69_vm1, %v6884_v2  ;;  %v6885_v25 = vpack.c.bf16 %v4925_v62, %v4925_v62  ;;  %v4854_v23 = vadd.f32 %v10761_v30, %v4840_v41  ;;  %v4841_v52 = vmul.f32 %v10756_v31, %v4819_v4  ;;  %v10799_v44 = vcombine.low %v10793_v59, %v4978_v63  ;;  %v7794_v36 = vld [vmem:[%s11358_s10 + $0x98] sm:$0xff]  }
 0x6aa   :  { %v4979_v20 = vld [vmem:[#allocation5 + $0x10] sm:$0xf]  ;;  %7160 = vmatpush3.bf16.msra.mxu0 %v7781_v55 }
 0x6ab   :  { %4971 = vst.msk [vmem:[#allocation5 + $0x18] sm:$0xf] %vm69_vm1, %v6885_v25  ;;  %v4863_v21 = vmax.f32 %v4854_v23, 0.0  ;;  %v4855_v47 = vadd.f32 %v10761_v30, %v4841_v52  ;;  %v5090_v39 = vrot.slane %v10799_v44, 3  ;;  %v5030_v61 = vshll.u32 %v10799_v44, 16  ;;  %7161 = vmatprep.subr.bf16.mxu0 %v7782_v8 }
 0x6ac   :  { %v4823_v58 = vpop.f32.mrb[116].mxu1  ;;  %v10812_v19 = vcombine.low %v4978_v63, %v4979_v20  ;;  %v5034_v28 = vshrl.u32 %v10799_v44, 16  ;;  %v4918_v63 = vpop.permute.xlu0 %4917  ;;  %v10867_v23 = vrot.slane %v5114_v51, 7 }
 0x6ad   :  { %v4926_v18 = vmul.f32 %v4908_v0, %v4863_v21  ;;  %v4864_v12 = vmax.f32 %v4855_v47, 0.0  ;;  %v4824_v26 = vadd.f32 %v4823_v58, %v10751_v11  ;;  %v7506_v9 = vpop.f32.mrb[117].mxu1  ;;  %v5091_v46 = vsel %vm3912_vm7, %v5089_v34, %v5090_v39  ;;  %v7783_v11 = vld [vmem:[%s11358_s10 + $0x30] sm:$0xff]   ;;  %v7788_v21 = vld [vmem:[%s11358_s10 + $0xc8] sm:$0xff]  }
 0x6ae   :  { %v4826_v48 = vpop.f32.mrb[118].mxu1  ;;  %5098 = vrot.lane.b32.xlu1 %v5091_v46, %s7866_s3  ;;  %v5032_v29 = vrot.slane %v5030_v61, 1  ;;  %v5121_v1 = vshrl.u32 %v10812_v19, 16  ;;  %v5172_v16 = vrot.slane %v10812_v19, 2  ;;  %7162 = vmatpush3.bf16.msra.mxu0 %v7783_v11  ;;  %v5124_v37 = vshll.u32 %v10812_v19, 16  ;;  %v7789_v47 = vld [vmem:[%s11358_s10 + $0x88] sm:$0xff]  }
 0x6af   :  { %v6886_v43 = vpack.c.bf16 %v4926_v18, %v4926_v18  ;;  %v4927_v32 = vmul.f32 %v4913_v22, %v4864_v12  ;;  %v4842_v15 = vmul.f32 %v10756_v31, %v4824_v26  ;;  %v7507_v5 = vpop.f32.mrb[119].mxu1  ;;  %7163 = vmatprep.subr.bf16.mxu0 %v7784_v54  ;;  %v5226_v52 = vrot.slane %v10812_v19, 3  ;;  %7197 = vmatprep.subr.bf16.mxu1 %v7788_v21  ;;  %v7791_v46 = vld [vmem:[%s11358_s10 + $0x90] sm:$0xff]  }
 0x6b0   :  { %v5033_v14 = vsel %vm1117_vm6, %v5028_v50, %v5032_v29  ;;  %v4980_v33 = vld [vmem:[#allocation5 + $0x14] sm:$0xf]  ;;  %v5123_v56 = vrot.slane %v5121_v1, 7  ;;  %v10860_v2 = vsel %vm3653_vm14, %v5171_v57, %v5172_v16  ;;  %v5036_v25 = vor.u32 %v5034_v28, %v5032_v29  ;;  %7198 = vmatpush3.bf16.msra.mxu1 %v7789_v47 }
 0x6b1   :  { %4972 = vst.msk [vmem:[#allocation5 + $0x1c] sm:$0xf] %vm69_vm1, %v6886_v43  ;;  %v6887_v31 = vpack.c.bf16 %v4927_v32, %v4927_v32  ;;  %v4856_v40 = vadd.f32 %v10761_v30, %v4842_v15  ;;  %5061 = vrot.lane.b32.xlu0 %v5033_v14, %s7866_s3  ;;  %v10844_v17 = vcombine.low %v4979_v20, %v4980_v33  ;;  %v5225_v20 = vrot.slane %v10857_v27, 3 }
 0x6b2   :  { %v4981_v30 = vld [vmem:[#allocation5 + $0x18] sm:$0xf]  ;;  %v5126_v59 = vor.u32 %v5124_v37, %v5123_v56  ;;  %7164 = vmatpush3.bf16.msra.mxu0 %v7786_v3  ;;  %7199 = vmatprep.subr.bf16.mxu1 %v7790_v13  ;;  %v5184_v32 = vshrl.u32 %v10857_v27, 16  ;;  %v5187_v54 = vshll.u32 %v10857_v27, 16  ;;  %v5191_v57 = vrot.slane %v5121_v1, 2 }
 0x6b3   :  { %4973 = vst.msk [vmem:[#allocation5 + $0x20] sm:$0xf] %vm69_vm1, %v6887_v31  ;;  %v4865_v62 = vmax.f32 %v4856_v40, 0.0  ;;  %v5092_v41 = vrot.slane %v10844_v17, 3  ;;  %v5038_v4 = vshll.u32 %v10844_v17, 16  ;;  %v10865_v53 = vcombine.low %v4980_v33, %v4981_v30  ;;  %7508 = vmatprep.subr.bf16.mxu0 %v11433_v6  ;;  %v7793_v40 = vld [vmem:[%s11358_s10 + $0xd8] sm:$0xff]  }
 0x6b4   :  { %v10886_v61 = vsel %vm3937_vm2, %v10867_v23, %v5126_v59  ;;  %v10902_v26 = vsel %vm3912_vm7, %v5225_v20, %v5226_v52  ;;  %v5042_v8 = vshrl.u32 %v10844_v17, 16  ;;  %7200 = vmatpush3.bf16.msra.mxu1 %v7791_v46  ;;  %v5192_v51 = vrot.slane %v5124_v37, 3 }
 0x6b5   :  { %v4928_v38 = vmul.f32 %v4918_v63, %v4865_v62  ;;  %v5093_v55 = vsel %vm3912_vm7, %v5090_v39, %v5092_v41  ;;  %v5040_v34 = vrot.slane %v5038_v4, 1  ;;  %v5129_v42 = vshrl.u32 %v10865_v53, 16  ;;  %7201 = vmatprep.subr.bf16.mxu1 %v7793_v40  ;;  %v7796_v63 = vld [vmem:[%s11358_s10 + $0xe0] sm:$0xff]  }
 0x6b6   :  { %5100 = vrot.lane.b32.xlu1 %v5093_v55, %s7866_s3  ;;  %v5174_v39 = vrot.slane %v10865_v53, 2  ;;  %v5132_v10 = vshll.u32 %v10865_v53, 16  ;;  %v5228_v22 = vrot.slane %v10865_v53, 3 }
 0x6b7   :  { %v6888_v7 = vpack.c.bf16 %v4928_v38, %v4928_v38  ;;  %v5041_v0 = vsel %vm1117_vm6, %v5036_v25, %v5040_v34  ;;  %v10899_v12 = vrot.slane %v5129_v42, 7  ;;  %v5044_v14 = vor.u32 %v5042_v8, %v5040_v34  ;;  %v7797_v25 = vld [vmem:[%s11358_s10 + $0xa0] sm:$0xff]  }
 0x6b8   :  { %5063 = vrot.lane.b32.xlu0 %v5041_v0, %s7866_s3  ;;  %v4982_v58 = vld [vmem:[#allocation5 + $0x1c] sm:$0xf]  ;;  %v10895_v18 = vsel %vm3653_vm14, %v5172_v16, %v5174_v39  ;;  %v10929_v5 = vsel %vm3912_vm7, %v5226_v52, %v5228_v22  ;;  %7202 = vmatpush3.bf16.msra.mxu1 %v7794_v36  ;;  %v10967_v52 = vor.u32 %v5192_v51, %v5191_v57  ;;  %v5403_v0 = vshrl.u32 %v10902_v26, 16 }
 0x6b9   :  { %4974 = vst.msk [vmem:[#allocation5 + $0x24] sm:$0xf] %vm69_vm1, %v6888_v7  ;;  %v10905_v9 = vcombine.low %v4981_v30, %v4982_v58  ;;  %v5134_v50 = vor.u32 %v5132_v10, %v10899_v12  ;;  %v5186_v30 = vrot.slane %v5184_v32, 2  ;;  %7203 = vmatprep.subr.bf16.mxu1 %v7796_v63  ;;  %v5195_v32 = vrot.slane %v5129_v42, 2 }
 0x6ba   :  { %v10911_v48 = vld [vmem:[#allocation5 + $0x20] sm:$0xf]  ;;  %vm6042_vm1 = vcmask 588800  }
 0x6bb   :  { %v5094_v29 = vrot.slane %v10905_v9, 3  ;;  %v5046_v11 = vshll.u32 %v10905_v9, 16  ;;  %v10920_v43 = vcombine.low %v4982_v58, %v10911_v48  ;;  %v10924_v15 = vsel %vm3937_vm2, %v5123_v56, %v5134_v50 }
 0x6bc   :  { %v5405_v56 = vshll.u32 %v10902_v26, 16  ;;  %v5050_v59 = vshrl.u32 %v10905_v9, 16  ;;  %v5410_v58 = vshll.u32 %v10929_v5, 16  ;;  %7204 = vmatpush3.bf16.msra.mxu1 %v7797_v25  ;;  %v7799_v26 = vld [vmem:[%s11358_s10 + $0xe8] sm:$0xff]   ;;  %v5442_v25 = vshrl.u32 %v10929_v5, 16 }
 0x6bd   :  { %v5095_v16 = vsel %vm3912_vm7, %v5092_v41, %v5094_v29  ;;  %v5048_v33 = vrot.slane %v5046_v11, 1  ;;  %v5137_v31 = vshrl.u32 %v10920_v43, 16  ;;  %v5176_v3 = vrot.slane %v10920_v43, 2  ;;  %7205 = vmatprep.subr.bf16.mxu1 %v7799_v26 }
 0x6be   :  { %5102 = vrot.lane.b32.xlu1 %v5095_v16, %s7866_s3  ;;  %v5189_v41 = vrot.slane %v5187_v54, 3  ;;  %v5140_v21 = vshll.u32 %v10920_v43, 16  ;;  %v5407_v47 = vrot.slane %v5405_v56, 1  ;;  %v5196_v16 = vrot.slane %v5132_v10, 3  ;;  %v7801_v56 = vld [vmem:[%s11358_s10 + $0xf0] sm:$0xff]  }
 0x6bf   :  { %v5049_v24 = vsel %vm1117_vm6, %v5044_v14, %v5048_v33  ;;  %v10950_v37 = vsel %vm3653_vm14, %v5174_v39, %v5176_v3  ;;  %v5139_v38 = vrot.slane %v5137_v31, 7  ;;  %v5052_v39 = vor.u32 %v5050_v59, %v5048_v33  ;;  %v4993_v33 = vld [vmem:[#allocation5 + $0x28] sm:$0xf] }
 0x6c0   :  { %5065 = vrot.lane.b32.xlu0 %v5049_v24, %s7866_s3  ;;  %v10947_v1 = vld [vmem:[#allocation5 + $0x24] sm:$0xf]  ;;  %v5190_v11 = vor.u32 %v5189_v41, %v5186_v30  ;;  %v5412_v40 = vrot.slane %v5410_v58, 1  ;;  %v5230_v36 = vrot.slane %v10920_v43, 3  ;;  %v5197_v63 = vor.u32 %v5196_v16, %v5195_v32 }
 0x6c1   :  { %v4984_v28 = vld [vmem:[#allocation5 + $0x24] sm:$0x1]  ;;  %v6737_v27 = vcombine.low %v10911_v48, %v10947_v1  ;;  %v10958_v4 = vcombine.low %v10947_v1, %v4991_v45  ;;  %v6742_v55 = vcombine.low %v10947_v1, %v10947_v1  ;;  %v5142_v50 = vor.u32 %v5140_v21, %v5139_v38 }
 0x6c2   :  { %v10955_v62 = vcombine.low %v10911_v48, %v4984_v28  ;;  %v5408_v45 = vor.u32 %v5407_v47, %v5403_v0  ;;  %v6747_v24 = vcombine.low %v10947_v1, %v4993_v33  ;;  %v7802_v28 = vld [vmem:[%s11358_s10 + $0xb0] sm:$0xff]   ;;  %v5231_v41 = vsel %vm3912_vm7, %v5228_v22, %v5230_v36 }
 0x6c3   :  { %v5096_v34 = vrot.slane %v6737_v27, 3  ;;  %v5178_v7 = vrot.slane %v10958_v4, 2  ;;  %v5145_v8 = vshrl.u32 %v6742_v55, 16  ;;  %v10998_v42 = vsel %vm3937_vm2, %v10899_v12, %v5142_v50 }
 0x6c4   :  { %v5054_v20 = vshll.u32 %v10955_v62, 16  ;;  %v5058_v57 = vshrl.u32 %v10955_v62, 16  ;;  %v5148_v51 = vshll.u32 %v6742_v55, 16  ;;  %v11014_v27 = vsel %vm1117_vm6, %v5408_v45, %v5412_v40 }
 0x6c5   :  { %v5097_v13 = vsel %vm3912_vm7, %v5094_v29, %v5096_v34  ;;  %v7800_v29 = vld [vmem:[%s11358_s10 + $0xa8] sm:$0xff]   ;;  %v10993_v14 = vsel %vm3653_vm14, %v5176_v3, %v5178_v7  ;;  %v5147_v10 = vrot.slane %v5145_v8, 7  ;;  %v5194_v3 = vsel %vm1928_vm9, %v5190_v11, %v10967_v52 }
 0x6c6   :  { %v5056_v46 = vrot.slane %v5054_v20, 1  ;;  %5104 = vrot.lane.b32.xlu1 %v5097_v13, %s7866_s3  ;;  %7206 = vmatpush3.bf16.msra.mxu1 %v7800_v29  ;;  %v5446_v59 = vshll.u32 %v5231_v41, 16  ;;  %v11020_v55 = vrot.slane %v6747_v24, 3  ;;  %v5200_v20 = vrot.slane %v5140_v21, 3  ;;  %v7805_v21 = vld [vmem:[%s11358_s10 + $0xb8] sm:$0xff]  }
 0x6c7   :  { %v5150_v30 = vor.u32 %v5148_v51, %v5147_v10  ;;  %v5204_v47 = vshrl.u32 %v10958_v4, 16  ;;  %7207 = vmatprep.subr.bf16.mxu1 %v7801_v56  ;;  %v5207_v22 = vshll.u32 %v10958_v4, 16  ;;  %v5444_v0 = vor.u32 %v5442_v25, %v5412_v40  ;;  %v4975_v56 = vld [vmem:[#allocation5] sm:$0xf] }
 0x6c8   :  { %v5057_v54 = vsel %vm1117_vm6, %v5052_v39, %v5056_v46  ;;  %v5060_v12 = vor.u32 %v5058_v57, %v5056_v46  ;;  %v5448_v5 = vrot.slane %v5446_v59, 1  ;;  %v5233_v58 = vsel %vm3912_vm7, %v5230_v36, %v11020_v55 }
 0x6c9   :  { %5067 = vrot.lane.b32.xlu0 %v5057_v54, %s7866_s3  ;;  %v11027_v39 = vsel %vm3937_vm2, %v5139_v38, %v5150_v30  ;;  %v5478_v38 = vshrl.u32 %v5231_v41, 16  ;;  %v5482_v13 = vshll.u32 %v5233_v58, 16  ;;  %v5518_v46 = vshll.u32 %v11020_v55, 16 }
 0x6ca   :  { %5106 = vrot.lane.b32.xlu1 %v5096_v34, %s7866_s3  ;;  %v5199_v34 = vrot.slane %v5137_v31, 2  ;;  %7208 = vmatpush3.bf16.msra.mxu1 %v7802_v28  ;;  %v7804_v31 = vld [vmem:[%s11358_s10 + $0xf8] sm:$0xff]   ;;  %v11041_v50 = vsel %vm1117_vm6, %v5444_v0, %v5448_v5  ;;  %v5514_v32 = vshrl.u32 %v5233_v58, 16  ;;  %v5198_v16 = vsel %vm1928_vm9, %v10967_v52, %v5197_v63 }
 0x6cb   :  { %7209 = vmatprep.subr.bf16.mxu1 %v7804_v31  ;;  %v5480_v8 = vor.u32 %v5478_v38, %v5448_v5  ;;  %v5484_v11 = vrot.slane %v5482_v13, 1  ;;  %v5206_v29 = vrot.slane %v5204_v47, 2  ;;  %v5209_v33 = vrot.slane %v5207_v22, 3 }
 0x6cc   :  { %v5201_v26 = vor.u32 %v5200_v20, %v5199_v34  ;;  %v11051_v45 = vrot.slane %v5518_v46, 1  ;;  %v11447_v57 = vmov 0.0|0.0   ;;  %v5075_v24 = vrot.slane %v10799_v44, 1 }
 0x6cd   :  { %5069 = vrot.lane.b32.xlu0 %v5060_v12, %s7866_s3  ;;  %v11049_v54 = vsel %vm1117_vm6, %v5480_v8, %v5484_v11  ;;  %v5516_v10 = vor.u32 %v5514_v32, %v5484_v11  ;;  %v5210_v40 = vor.u32 %v5209_v33, %v5206_v29  ;;  %v5074_v12 = vrot.slane %v10780_v60, 1  ;;  %v4986_v8 = vld [vmem:[#allocation5 + $0x24] sm:$0x3] }
 0x6ce   :  { %5212 = vrot.lane.b32.xlu1 %v5194_v3, %s7866_s3  ;;  %7210 = vmatpush3.bf16.msra.mxu1 %v7805_v21  ;;  %v5202_v51 = vsel %vm1928_vm9, %v5197_v63, %v5201_v26  ;;  %v4989_v3 = vld [vmem:[#allocation5 + $0x28] sm:$0x1]  ;;  %v6729_v41 = vcombine.low %v4975_v56, %v10774_v35  ;;  %v5079_v31 = vrot.slane %v10905_v9, 1  ;;  %v6735_v29 = vcombine.low %v10911_v48, %v4986_v8 }
 0x6cf   :  { %7623 = vmatprep.subr.bf16.mxu1 %v11447_v57  ;;  %v11058_v52 = vsel %vm1117_vm6, %v5516_v10, %v11051_v45  ;;  %v5211_v36 = vsel %vm1928_vm9, %v5201_v26, %v5210_v40  ;;  %v5076_v28 = vsel %vm1250_vm5, %v5074_v12, %v5075_v24  ;;  %v7795_v26 = vld [vmem:[%s11358_s10 + $0x100] sm:$0xff]  }
 0x6d0   :  { %v5081_v48 = vrot.slane %v6735_v29, 1 }
 0x6d1   :  { %5155 = vrot.lane.b32.xlu0 %v10816_v49, %s7866_s3 }
 0x6d2   :  { %5214 = vrot.lane.b32.xlu1 %v5198_v16, %s7866_s3 }
 0x6d5   :  { %5157 = vrot.lane.b32.xlu0 %v10812_v19, %s7866_s3  ;;  %v6743_v19 = vcombine.low %v10947_v1, %v4989_v3  ;;  %v5077_v1 = vrot.slane %v10844_v17, 1 }
 0x6d6   :  { %5216 = vrot.lane.b32.xlu1 %v5202_v51, %s7866_s3 }
 0x6d7   :  { %v5078_v20 = vsel %vm1250_vm5, %v5075_v24, %v5077_v1 }
 0x6d9   :  { %5159 = vrot.lane.b32.xlu0 %v10865_v53, %s7866_s3 }
 0x6da   :  { %5218 = vrot.lane.b32.xlu1 %v5211_v36, %s7866_s3 }
 0x6dd   :  { %5161 = vrot.lane.b32.xlu0 %v10920_v43, %s7866_s3 }
 0x6de   :  { %5220 = vrot.lane.b32.xlu1 %v5210_v40, %s7866_s3 }
 0x6e1   :  { %5163 = vrot.lane.b32.xlu0 %v6743_v19, %s7866_s3  ;;  %v7803_v19 = vld [vmem:[%s11358_s10 + $0x108] sm:$0xff]  }
 0x720   :  { %v5099_v53 = vpop.permute.xlu1 %5098 }
 0x721   :  { %v5247_v30 = vsel %vm1747_vm13, %v5076_v28, %v5099_v53 }
 0x722   :  { %v5374_v43 = vshll.u32 %v5247_v30, 16  ;;  %v5372_v22 = vshrl.u32 %v5247_v30, 16 }
 0x723   :  { %v5062_v63 = vpop.permute.xlu0 %5061 }
 0x724   :  { %v5236_v25 = vsel %vm1747_vm13, %v6729_v41, %v5062_v63  ;;  %v5376_v34 = vrot.slane %v5374_v43, 1  ;;  %v7806_v43 = vld [vmem:[%s11358_s10 + $0x110] sm:$0xff]  }
 0x725   :  { %v5364_v59 = vshll.u32 %v5236_v25, 16  ;;  %v5362_v38 = vshrl.u32 %v5236_v25, 16 }
 0x726   :  { %v5377_v21 = vor.u32 %v5376_v34, %v5372_v22 }
 0x727   :  { %v5366_v0 = vrot.slane %v5364_v59, 1 }
 0x728   :  { %v5101_v47 = vpop.permute.xlu1 %5100 }
 0x729   :  { %v5250_v60 = vsel %vm1747_vm13, %v5078_v20, %v5101_v47  ;;  %v5367_v11 = vor.u32 %v5366_v0, %v5362_v38  ;;  %v7808_v47 = vld [vmem:[%s11358_s10 + $0x118] sm:$0xff]  }
 0x72a   :  { %v5378_v5 = vshll.u32 %v5250_v60, 16  ;;  %v5064_v58 = vpop.permute.xlu0 %5063  ;;  %v5421_v40 = vshrl.u32 %v5250_v60, 16 }
 0x72b   :  { %v5238_v35 = vsel %vm1747_vm13, %v10799_v44, %v5064_v58  ;;  %v5080_v44 = vsel %vm1250_vm5, %v5077_v1, %v5079_v31 }
 0x72c   :  { %v5380_v13 = vrot.slane %v5378_v5, 1  ;;  %v5368_v46 = vshll.u32 %v5238_v35, 16  ;;  %v5414_v56 = vshrl.u32 %v5238_v35, 16 }
 0x72e   :  { %v5370_v32 = vrot.slane %v5368_v46, 1  ;;  %v5381_v16 = vsel %vm1117_vm6, %v5377_v21, %v5380_v13  ;;  %v5423_v12 = vor.u32 %v5421_v40, %v5380_v13 }
 0x72f   :  { %5820 = vmatprep.mubr.bf16.mxu0 %v5381_v16  ;;  %v5117_v16 = vshll.u32 %v10816_v49, 16 }
 0x730   :  { %v5103_v33 = vpop.permute.xlu1 %5102  ;;  %v5371_v10 = vsel %vm1117_vm6, %v5367_v11, %v5370_v32  ;;  %v5416_v30 = vor.u32 %v5414_v56, %v5370_v32 }
 0x731   :  { %v5253_v51 = vsel %vm1747_vm13, %v5080_v44, %v5103_v33  ;;  %5821 = vmatmul.mubr.bf16.vlgmr.msra.gmra.mrb[120].mxu0 %v5371_v10 }
 0x732   :  { %v5424_v36 = vshll.u32 %v5253_v51, 16  ;;  %v5066_v3 = vpop.permute.xlu0 %5065  ;;  %7509 = vmatpush3.bf16.msra.mxu0 %v7795_v26  ;;  %v5457_v60 = vshrl.u32 %v5253_v51, 16 }
 0x733   :  { %v5240_v24 = vsel %vm1747_vm13, %v10844_v17, %v5066_v3  ;;  %7510 = vmatprep.subr.bf16.mxu0 %v11433_v6  ;;  %v5082_v17 = vsel %vm1250_vm5, %v5079_v31, %v5081_v48 }
 0x734   :  { %v5426_v53 = vrot.slane %v5424_v36, 1  ;;  %v5417_v28 = vshll.u32 %v5240_v24, 16  ;;  %v5450_v31 = vshrl.u32 %v5240_v24, 16 }
 0x736   :  { %v5419_v41 = vrot.slane %v5417_v28, 1  ;;  %v5427_v63 = vsel %vm1117_vm6, %v5423_v12, %v5426_v53  ;;  %7511 = vmatpush3.bf16.msra.mxu0 %v7803_v19  ;;  %v5459_v35 = vor.u32 %v5457_v60, %v5426_v53 }
 0x737   :  { %5828 = vmatprep.mubr.bf16.mxu0 %v5427_v63  ;;  %7512 = vmatprep.subr.bf16.mxu0 %v11433_v6 }
 0x738   :  { %v5105_v25 = vpop.permute.xlu1 %5104  ;;  %v5420_v1 = vsel %vm1117_vm6, %v5416_v30, %v5419_v41  ;;  %v5452_v11 = vor.u32 %v5450_v31, %v5419_v41 }
 0x739   :  { %v5256_v59 = vsel %vm1747_vm13, %v5082_v17, %v5105_v25  ;;  %5829 = vmatmul.mubr.bf16.gmra.mrb[124].mxu0 %v5420_v1 }
 0x73a   :  { %v5460_v34 = vshll.u32 %v5256_v59, 16  ;;  %7513 = vmatpush3.bf16.msra.mxu0 %v7806_v43  ;;  %v5493_v38 = vshrl.u32 %v5256_v59, 16 }
 0x73b   :  { %v5068_v20 = vpop.permute.xlu0 %5067  ;;  %7514 = vmatprep.subr.bf16.mxu0 %v11433_v6 }
 0x73c   :  { %v5242_v22 = vsel %vm1747_vm13, %v10905_v9, %v5068_v20  ;;  %v5462_v0 = vrot.slane %v5460_v34, 1  ;;  %v5107_v58 = vpop.permute.xlu1 %5106 }
 0x73d   :  { %v5453_v5 = vshll.u32 %v5242_v22, 16  ;;  %v5259_v21 = vsel %vm1747_vm13, %v5081_v48, %v5107_v58  ;;  %v5486_v48 = vshrl.u32 %v5242_v22, 16 }
 0x73e   :  { %v5496_v46 = vshll.u32 %v5259_v21, 16  ;;  %7515 = vmatpush3.bf16.msra.mxu0 %v7808_v47  ;;  %v5463_v9 = vsel %vm1117_vm6, %v5459_v35, %v5462_v0  ;;  %v5495_v26 = vor.u32 %v5493_v38, %v5462_v0  ;;  %v5525_v53 = vshrl.u32 %v5259_v21, 16 }
 0x73f   :  { %v5455_v13 = vrot.slane %v5453_v5, 1  ;;  %v5070_v8 = vpop.permute.xlu0 %5069  ;;  %7557 = vmatprep.subr.bf16.mxu0 %v11433_v6  ;;  %5836 = vmatprep.mubr.bf16.mxu0 %v5463_v9 }
 0x740   :  { %v11114_v32 = vsel %vm1747_vm13, %v10955_v62, %v5070_v8  ;;  %v5498_v29 = vrot.slane %v5496_v46, 1  ;;  %v5213_v44 = vpop.permute.xlu1 %5212  ;;  %v5119_v62 = vor.u32 %v5117_v16, %v10867_v23 }
 0x741   :  { %v5489_v33 = vshll.u32 %v11114_v32, 16  ;;  %v5277_v10 = vsel %vm1747_vm13, %v10860_v2, %v5213_v44  ;;  %v5456_v51 = vsel %vm1117_vm6, %v5452_v11, %v5455_v13  ;;  %v5488_v23 = vor.u32 %v5486_v48, %v5455_v13 }
 0x742   :  { %v5394_v40 = vshll.u32 %v5277_v10, 16  ;;  %5837 = vmatmul.mubr.bf16.gmra.mrb[128].mxu0 %v5456_v51  ;;  %v5499_v49 = vsel %vm1117_vm6, %v5495_v26, %v5498_v29  ;;  %v5392_v41 = vshrl.u32 %v5277_v10, 16  ;;  %v5527_v59 = vor.u32 %v5525_v53, %v5498_v29 }
 0x743   :  { %v5156_v36 = vpop.permute.xlu0 %5155  ;;  %5844 = vmatprep.mubr.bf16.mxu0 %v5499_v49  ;;  %v5491_v12 = vrot.slane %v5489_v33, 1  ;;  %v5522_v11 = vshrl.u32 %v11114_v32, 16 }
 0x744   :  { %v5262_v3 = vsel %vm1747_vm13, %v5119_v62, %v5156_v36  ;;  %v5215_v24 = vpop.permute.xlu1 %5214  ;;  %v5396_v56 = vrot.slane %v5394_v40, 1 }
 0x745   :  { %v5384_v19 = vshll.u32 %v5262_v3, 16  ;;  %v5280_v2 = vsel %vm1747_vm13, %v10895_v18, %v5215_v24  ;;  %v5382_v20 = vshrl.u32 %v5262_v3, 16  ;;  %v5492_v18 = vsel %vm1117_vm6, %v5488_v23, %v5491_v12 }
 0x746   :  { %v5398_v28 = vshll.u32 %v5280_v2, 16  ;;  %v5397_v34 = vor.u32 %v5396_v56, %v5392_v41  ;;  %v5435_v58 = vshrl.u32 %v5280_v2, 16 }
 0x747   :  { %v5158_v30 = vpop.permute.xlu0 %5157  ;;  %v5386_v63 = vrot.slane %v5384_v19, 1 }
 0x748   :  { %v5265_v43 = vsel %vm1747_vm13, %v10886_v61, %v5158_v30  ;;  %v5400_v17 = vrot.slane %v5398_v28, 1  ;;  %v5217_v1 = vpop.permute.xlu1 %5216 }
 0x749   :  { %v5388_v25 = vshll.u32 %v5265_v43, 16  ;;  %v5283_v47 = vsel %vm1747_vm13, %v10950_v37, %v5217_v1  ;;  %v5387_v5 = vor.u32 %v5386_v63, %v5382_v20  ;;  %v5428_v37 = vshrl.u32 %v5265_v43, 16  ;;  %v7814_v1 = vld [vmem:[%s11361_s13 + $0x20] sm:$0xff]  }
 0x74a   :  { %v5438_v22 = vshll.u32 %v5283_v47, 16  ;;  %5845 = vmatmul.mubr.bf16.gmra.mrb[132].mxu0 %v5492_v18  ;;  %v5401_v35 = vsel %vm1117_vm6, %v5397_v34, %v5400_v17  ;;  %v5437_v13 = vor.u32 %v5435_v58, %v5400_v17  ;;  %v5471_v29 = vshrl.u32 %v5283_v47, 16  ;;  %v7816_v34 = vld [vmem:[%s11361_s13 + $0x30] sm:$0xff]  }
 0x74b   :  { %v5390_v60 = vrot.slane %v5388_v25, 1  ;;  %v5160_v0 = vpop.permute.xlu0 %5159  ;;  %5852 = vmatprep.mubr.bf16.mxu0 %v5527_v59  ;;  %5892 = vmatprep.mubr.bf16.mxu1 %v5401_v35  ;;  %v7815_v59 = vld [vmem:[%s11361_s13 + $0x28] sm:$0xff]  }
 0x74c   :  { %v5268_v61 = vsel %vm1747_vm13, %v10924_v15, %v5160_v0  ;;  %v5440_v31 = vrot.slane %v5438_v22, 1  ;;  %v5219_v38 = vpop.permute.xlu1 %5218 }
 0x74d   :  { %v5431_v21 = vshll.u32 %v5268_v61, 16  ;;  %v5286_v46 = vsel %vm1747_vm13, %v10993_v14, %v5219_v38  ;;  %v5391_v8 = vsel %vm1117_vm6, %v5387_v5, %v5390_v60  ;;  %v5430_v26 = vor.u32 %v5428_v37, %v5390_v60 }
 0x74e   :  { %v5474_v16 = vshll.u32 %v5286_v46, 16  ;;  %5893 = vmatmul.mubr.bf16.vlgmr.msra.gmra.mrb[120].mxu1 %v5391_v8  ;;  %v5441_v33 = vsel %vm1117_vm6, %v5437_v13, %v5440_v31  ;;  %v5524_v14 = vor.u32 %v5522_v11, %v5491_v12  ;;  %v5473_v40 = vor.u32 %v5471_v29, %v5440_v31 }
 0x74f   :  { %v5433_v9 = vrot.slane %v5431_v21, 1  ;;  %v5162_v15 = vpop.permute.xlu0 %5161  ;;  %5900 = vmatprep.mubr.bf16.mxu1 %v5441_v33  ;;  %v5464_v36 = vshrl.u32 %v5268_v61, 16  ;;  %v5507_v3 = vshrl.u32 %v5286_v46, 16 }
 0x750   :  { %v5271_v44 = vsel %vm1747_vm13, %v10998_v42, %v5162_v15  ;;  %v5476_v10 = vrot.slane %v5474_v16, 1  ;;  %v5221_v62 = vpop.permute.xlu1 %5220 }
 0x751   :  { %v5467_v51 = vshll.u32 %v5271_v44, 16  ;;  %v5289_v32 = vsel %vm1747_vm13, %v5178_v7, %v5221_v62  ;;  %v5434_v49 = vsel %vm1117_vm6, %v5430_v26, %v5433_v9  ;;  %v5466_v48 = vor.u32 %v5464_v36, %v5433_v9 }
 0x752   :  { %v5510_v24 = vshll.u32 %v5289_v32, 16  ;;  %5853 = vmatmul.mubr.bf16.gmra.mrb[136].mxu0 %v5524_v14  ;;  %v5477_v2 = vsel %vm1117_vm6, %v5473_v40, %v5476_v10  ;;  %v5509_v12 = vor.u32 %v5507_v3, %v5476_v10  ;;  %v5500_v4 = vshrl.u32 %v5271_v44, 16 }
 0x753   :  { %v5469_v19 = vrot.slane %v5467_v51, 1  ;;  %v5164_v42 = vpop.permute.xlu0 %5163  ;;  %7516 = vmatprep.mubr.msk.bf16.mxu0 %vm7862_vm0, %v11433_v6 }
 0x754   :  { %v5274_v56 = vsel %vm1747_vm13, %v11027_v39, %v5164_v42  ;;  %v5512_v53 = vrot.slane %v5510_v24, 1  ;;  %v5531_v39 = vshrl.u32 %v5289_v32, 16 }
 0x755   :  { %v5503_v7 = vshll.u32 %v5274_v56, 16  ;;  %v5470_v28 = vsel %vm1117_vm6, %v5466_v48, %v5469_v19  ;;  %v5502_v30 = vor.u32 %v5500_v4, %v5469_v19  ;;  %v5528_v17 = vshrl.u32 %v5274_v56, 16 }
 0x756   :  { %5901 = vmatmul.mubr.bf16.gmra.mrb[124].mxu1 %v5434_v49  ;;  %v5513_v41 = vsel %vm1117_vm6, %v5509_v12, %v5512_v53  ;;  %v5533_v43 = vor.u32 %v5531_v39, %v5512_v53 }
 0x757   :  { %v5505_v23 = vrot.slane %v5503_v7, 1  ;;  %5908 = vmatprep.mubr.bf16.mxu1 %v5477_v2 }
 0x759   :  { %v5506_v63 = vsel %vm1117_vm6, %v5502_v30, %v5505_v23 }
 0x75a   :  { %7517 = vmatmul.mubr.msk.bf16.vlgmr.msra.gmra.mrb[140].mxu0 %vm1747_vm13, %v11014_v27  ;;  %v5530_v27 = vor.u32 %v5528_v17, %v5505_v23 }
 0x75b   :  { %7520 = vmatprep.mubr.msk.bf16.mxu0 %vm7862_vm0, %v11433_v6 }
 0x75e   :  { %5909 = vmatmul.mubr.bf16.gmra.mrb[128].mxu1 %v5470_v28  ;;  %v11215_v28 = vld [vmem:[%s11359_s11] ss:$0 sm:$0xff] }
 0x75f   :  { %5916 = vmatprep.mubr.bf16.mxu1 %v5513_v41 }
 0x762   :  { %7521 = vmatmul.mubr.msk.bf16.gmra.mrb[144].mxu0 %vm1747_vm13, %v11041_v50  ;;  %v5534_v50 = vshrl.u32 %v11020_v55, 16  ;;  %v7812_v55 = vld [vmem:[%s11361_s13 + $0x10] sm:$0xff]  }
 0x763   :  { %7524 = vmatprep.mubr.msk.bf16.mxu0 %vm7862_vm0, %v11433_v6 }
 0x764   :  { %v5536_v25 = vor.u32 %v5534_v50, %v11051_v45  ;;  %v7813_v45 = vld [vmem:[%s11361_s13 + $0x18] sm:$0xff]  }
 0x766   :  { %5917 = vmatmul.mubr.bf16.gmra.mrb[132].mxu1 %v5506_v63  ;;  %v11220_v63 = vld [vmem:[%s11359_s11 + $0x1] ss:$0 sm:$0xff] }
 0x767   :  { %5924 = vmatprep.mubr.bf16.mxu1 %v5533_v43 }
 0x76a   :  { %7525 = vmatmul.mubr.msk.bf16.gmra.mrb[148].mxu0 %vm1747_vm13, %v11049_v54  ;;  %v7810_v54 = vld [vmem:[%s11361_s13] sm:$0xff]  }
 0x76b   :  { %7528 = vmatprep.mubr.msk.bf16.mxu0 %vm7862_vm0, %v11433_v6  ;;  %7558 = vmatpush3.bf16.msra.mxu0 %v7810_v54 }
 0x76c   :  { %7559 = vmatprep.subr.bf16.mxu0 %v11433_v6 }
 0x76e   :  { %5925 = vmatmul.mubr.bf16.gmra.mrb[136].mxu1 %v5530_v27 }
 0x76f   :  { %7554 = vmatprep.mubr.msk.f32.mxu1 %vm7862_vm0, %v11433_v6 }
 0x772   :  { %7529 = vmatmul.mubr.msk.bf16.gmra.mrb[152].mxu0 %vm1747_vm13, %v11058_v52  ;;  %v7811_v52 = vld [vmem:[%s11361_s13 + $0x8] sm:$0xff]  }
 0x773   :  { %7532 = vmatprep.mubr.msk.bf16.mxu0 %vm7862_vm0, %v11433_v6  ;;  %7560 = vmatpush3.bf16.msra.mxu0 %v7811_v52 }
 0x774   :  { %7561 = vmatprep.subr.bf16.mxu0 %v11433_v6 }
 0x777   :  { %7562 = vmatpush3.bf16.msra.mxu0 %v7812_v55 }
 0x778   :  { %7563 = vmatprep.subr.bf16.mxu0 %v11433_v6 }
 0x77a   :  { %7533 = vmatmul.mubr.msk.bf16.gmra.mrb[156].mxu0 %vm1747_vm13, %v5536_v25 }
 0x77b   :  { %7573 = vmatprep.mubr.msk.bf16.mxu0 %vm7862_vm0, %v11433_v6  ;;  %7564 = vmatpush3.bf16.msra.mxu0 %v7813_v45 }
 0x77c   :  { %7565 = vmatprep.subr.bf16.mxu0 %v11433_v6 }
 0x77f   :  { %7566 = vmatpush3.bf16.msra.mxu0 %v7814_v1 }
 0x780   :  { %7567 = vmatprep.subr.bf16.mxu0 %v11433_v6 }
 0x783   :  { %7568 = vmatpush3.bf16.msra.mxu0 %v7815_v59 }
 0x784   :  { %7569 = vmatprep.subr.bf16.mxu0 %v11433_v6 }
 0x787   :  { %7570 = vmatpush3.bf16.msra.mxu0 %v7816_v34 }
 0x788   :  { %7571 = vmatprep.subr.bf16.mxu0 %v11433_v6 }
 0x804   :  { %v7165_v20 = vpop.f32.mrb[120].mxu0 }
 0x805   :  { %v7166_v47 = vpop.f32.mrb[121].mxu0 }
 0x806   :  { %v7167_v18 = vadd.f32 %v7166_v47, %v7165_v20  ;;  %v7168_v60 = vpop.f32.mrb[122].mxu0 }
 0x807   :  { %v7169_v22 = vpop.f32.mrb[123].mxu0 }
 0x808   :  { %v7170_v0 = vadd.f32 %v7169_v22, %v7168_v60 }
 0x80c   :  { %v7171_v5 = vpop.f32.mrb[124].mxu0 }
 0x80d   :  { %v7172_v58 = vpop.f32.mrb[125].mxu0 }
 0x80e   :  { %v7173_v61 = vadd.f32 %v7172_v58, %v7171_v5  ;;  %v7174_v35 = vpop.f32.mrb[126].mxu0 }
 0x80f   :  { %v7175_v31 = vpop.f32.mrb[127].mxu0 }
 0x810   :  { %v7176_v21 = vadd.f32 %v7175_v31, %v7174_v35 }
 0x815   :  { %v7177_v38 = vpop.f32.mrb[128].mxu0 }
 0x816   :  { %v7178_v13 = vpop.f32.mrb[129].mxu0 }
 0x817   :  { %v7179_v37 = vadd.f32 %v7178_v13, %v7177_v38  ;;  %v7180_v46 = vpop.f32.mrb[130].mxu0 }
 0x818   :  { %v7181_v8 = vpop.f32.mrb[131].mxu0 }
 0x819   :  { %v7182_v11 = vadd.f32 %v7181_v8, %v7180_v46 }
 0x81d   :  { %v7183_v9 = vpop.f32.mrb[132].mxu0 }
 0x81e   :  { %v7184_v16 = vpop.f32.mrb[133].mxu0 }
 0x81f   :  { %v11206_v15 = vadd.f32 %v7184_v16, %v7183_v9  ;;  %v7186_v26 = vpop.f32.mrb[134].mxu0 }
 0x820   :  { %v7187_v29 = vpop.f32.mrb[135].mxu0 }
 0x821   :  { %v11208_v44 = vadd.f32 %v7187_v29, %v7186_v26  ;;  %v7211_v33 = vpop.f32.mrb[120].mxu1 }
 0x822   :  { %v7212_v10 = vpop.f32.mrb[121].mxu1 }
 0x823   :  { %v7213_v51 = vadd.f32 %v7212_v10, %v7211_v33  ;;  %v7214_v62 = vpop.f32.mrb[122].mxu1 }
 0x824   :  { %v7215_v14 = vpop.f32.mrb[123].mxu1 }
 0x825   :  { %v7216_v40 = vadd.f32 %v7215_v14, %v7214_v62  ;;  %v7189_v36 = vpop.f32.mrb[136].mxu0  ;;  %v5895_v32 = vadd.f32 %v7213_v51, %v7167_v18 }
 0x826   :  { %v7190_v49 = vpop.f32.mrb[137].mxu0 }
 0x827   :  { %v11210_v3 = vadd.f32 %v7190_v49, %v7189_v36  ;;  %v7192_v19 = vpop.f32.mrb[138].mxu0  ;;  %v5898_v24 = vadd.f32 %v7216_v40, %v7170_v0 }
 0x828   :  { %v7193_v42 = vpop.f32.mrb[139].mxu0 }
 0x829   :  { %v7217_v48 = vpop.f32.mrb[124].mxu1 }
 0x82a   :  { %v7218_v56 = vpop.f32.mrb[125].mxu1 }
 0x82b   :  { %v7219_v2 = vadd.f32 %v7218_v56, %v7217_v48  ;;  %v7220_v12 = vpop.f32.mrb[126].mxu1 }
 0x82c   :  { %v7221_v4 = vpop.f32.mrb[127].mxu1 }
 0x82d   :  { %v7222_v53 = vadd.f32 %v7221_v4, %v7220_v12  ;;  %v5966_v7 = vpop.f32.mrb[140].mxu0  ;;  %v5903_v30 = vadd.f32 %v7219_v2, %v7173_v61 }
 0x82e   :  { %v5967_v23 = vadd.f32 %v5966_v7, %v5895_v32  ;;  %v7518_v41 = vpop.f32.mrb[141].mxu0 }
 0x82f   :  { %v5969_v39 = vpop.f32.mrb[142].mxu0  ;;  %v5906_v43 = vadd.f32 %v7222_v53, %v7176_v21 }
 0x830   :  { %v6009_v17 = vmul.f32 %v11215_v28, %v5967_v23  ;;  %v5970_v27 = vadd.f32 %v5969_v39, %v5898_v24  ;;  %v7519_v50 = vpop.f32.mrb[143].mxu0 }
 0x831   :  { %v7223_v25 = vpop.f32.mrb[128].mxu1 }
 0x832   :  { %v6023_v54 = vadd.f32 %v11220_v63, %v6009_v17  ;;  %v6010_v52 = vmul.f32 %v11215_v28, %v5970_v27  ;;  %v7224_v55 = vpop.f32.mrb[129].mxu1 }
 0x833   :  { %v7225_v45 = vadd.f32 %v7224_v55, %v7223_v25  ;;  %v7226_v1 = vpop.f32.mrb[130].mxu1 }
 0x834   :  { %v6024_v59 = vadd.f32 %v11220_v63, %v6010_v52  ;;  %v7227_v34 = vpop.f32.mrb[131].mxu1  ;;  %v6032_v60 = vmax.f32 %v6023_v54, 0.0 }
 0x835   :  { %v7228_v20 = vadd.f32 %v7227_v34, %v7226_v1  ;;  %v5974_v47 = vpop.f32.mrb[144].mxu0  ;;  %v5911_v18 = vadd.f32 %v7225_v45, %v7179_v37 }
 0x836   :  { %v6033_v22 = vmax.f32 %v6024_v59, 0.0  ;;  %v5975_v0 = vadd.f32 %v5974_v47, %v5903_v30  ;;  %v7522_v5 = vpop.f32.mrb[145].mxu0 }
 0x837   :  { %v5977_v58 = vpop.f32.mrb[146].mxu0  ;;  %v5914_v61 = vadd.f32 %v7228_v20, %v7182_v11 }
 0x838   :  { %v7624_v35 = vpack.c.bf16 %v6033_v22, %v6032_v60  ;;  %v6011_v31 = vmul.f32 %v11215_v28, %v5975_v0  ;;  %v5978_v21 = vadd.f32 %v5977_v58, %v5906_v43  ;;  %v7523_v38 = vpop.f32.mrb[147].mxu0  ;;  %v7819_v58 = vld [vmem:[%s11363_s15 + $0x8] sm:$0xff]  }
 0x839   :  { %v7229_v13 = vpop.f32.mrb[132].mxu1 }
 0x83a   :  { %v6025_v46 = vadd.f32 %v11220_v63, %v6011_v31  ;;  %v6012_v8 = vmul.f32 %v11215_v28, %v5978_v21  ;;  %v7230_v9 = vpop.f32.mrb[133].mxu1  ;;  %7625 = vmatpush3.bf16.msra.mxu1 %v7624_v35  ;;  %v7821_v35 = vld [vmem:[%s11363_s15 + $0x18] sm:$0xff]   ;;  %v7822_v31 = vld [vmem:[%s11363_s15 + $0x20] sm:$0xff]   ;;  %v7823_v21 = vld [vmem:[%s11363_s15 + $0x28] sm:$0xff]  }
 0x83b   :  { %v7231_v16 = vadd.f32 %v7230_v9, %v7229_v13  ;;  %v7232_v37 = vpop.f32.mrb[134].mxu1  ;;  %7626 = vmatprep.subr.bf16.mxu1 %v11447_v57  ;;  %v7825_v9 = vld [vmem:[%s11363_s15 + $0x38] sm:$0xff]  }
 0x83c   :  { %v6026_v26 = vadd.f32 %v11220_v63, %v6012_v8  ;;  %v7233_v29 = vpop.f32.mrb[135].mxu1  ;;  %v6034_v51 = vmax.f32 %v6025_v46, 0.0  ;;  %v7824_v8 = vld [vmem:[%s11363_s15 + $0x30] sm:$0xff]  }
 0x83d   :  { %v7234_v11 = vadd.f32 %v7233_v29, %v7232_v37  ;;  %v5982_v33 = vpop.f32.mrb[148].mxu0  ;;  %v5919_v10 = vadd.f32 %v7231_v16, %v11206_v15  ;;  %v7826_v16 = vld [vmem:[%s11365_s17] sm:$0xff]   ;;  %v7827_v37 = vld [vmem:[%s11365_s17 + $0x8] sm:$0xff]   ;;  %v7829_v29 = vld [vmem:[%s11365_s17 + $0x18] sm:$0xff]  }
 0x83e   :  { %v6035_v62 = vmax.f32 %v6026_v26, 0.0  ;;  %v5983_v14 = vadd.f32 %v5982_v33, %v5911_v18  ;;  %v7526_v40 = vpop.f32.mrb[149].mxu0  ;;  %v7828_v26 = vld [vmem:[%s11365_s17 + $0x10] sm:$0xff]   ;;  %v7831_v33 = vld [vmem:[%s11365_s17 + $0x28] sm:$0xff]  }
 0x83f   :  { %v5985_v36 = vpop.f32.mrb[150].mxu0  ;;  %v5922_v32 = vadd.f32 %v7234_v11, %v11208_v44  ;;  %v7830_v11 = vld [vmem:[%s11365_s17 + $0x20] sm:$0xff]  }
 0x840   :  { %v7627_v49 = vpack.c.bf16 %v6035_v62, %v6034_v51  ;;  %v6013_v19 = vmul.f32 %v11215_v28, %v5983_v14  ;;  %v5986_v24 = vadd.f32 %v5985_v36, %v5914_v61  ;;  %v7527_v42 = vpop.f32.mrb[151].mxu0  ;;  %v7820_v61 = vld [vmem:[%s11363_s15 + $0x10] sm:$0xff]   ;;  %v6801_v62 = vld [vmem:[%s11362_s14 + $0x1] ss:$0 sm:$0xff] }
 0x841   :  { %v7235_v48 = vpop.f32.mrb[136].mxu1  ;;  %v7832_v42 = vld [vmem:[%s11365_s17 + $0x30] sm:$0xff]  }
 0x842   :  { %v6027_v56 = vadd.f32 %v11220_v63, %v6013_v19  ;;  %v6014_v2 = vmul.f32 %v11215_v28, %v5986_v24  ;;  %v7236_v12 = vpop.f32.mrb[137].mxu1  ;;  %7628 = vmatpush3.bf16.msra.mxu1 %v7627_v49 }
 0x843   :  { %v7237_v15 = vadd.f32 %v7236_v12, %v7235_v48  ;;  %v7238_v4 = vpop.f32.mrb[138].mxu1  ;;  %7629 = vmatprep.subr.bf16.mxu1 %v11447_v57  ;;  %v7833_v48 = vld [vmem:[%s11365_s17 + $0x38] sm:$0xff]   ;;  %v6811_v12 = vld [vmem:[%s11364_s16 + $0x1] ss:$0 sm:$0xff] }
 0x844   :  { %v6028_v53 = vadd.f32 %v11220_v63, %v6014_v2  ;;  %v7239_v7 = vpop.f32.mrb[139].mxu1  ;;  %v6036_v23 = vmax.f32 %v6027_v56, 0.0  ;;  %v6810_v56 = vld [vmem:[%s11364_s16] ss:$0 sm:$0xff]  ;;  %s7837_s16 = scalar_lea.vmem %s6472_s29, 32 }
 0x845   :  { %v5990_v44 = vpop.f32.mrb[152].mxu0  ;;  %v5927_v30 = vadd.f32 %v7237_v15, %v11210_v3  ;;  %p7838_p0 = scmp.ne.s32.totalorder %s6472_s29, %s7837_s16  ;;  %p7843_p2 = scmp.lt.s32.totalorder %s7837_s16, %s7837_s16 }
 0x846   :  { %v6037_v41 = vmax.f32 %v6028_v53, 0.0  ;;  %v5991_v39 = vadd.f32 %v5990_v44, %v5919_v10  ;;  %v7530_v43 = vpop.f32.mrb[153].mxu0  ;;  %v6800_v10 = vld [vmem:[%s11362_s14] ss:$0 sm:$0xff] }
 0x847   :  { %v5993_v17 = vpop.f32.mrb[154].mxu0  ;;  %p7844_p3 = por %p7843_p2, %p7842_p1 }
 0x848   :  { %v7630_v27 = vpack.c.bf16 %v6037_v41, %v6036_v23  ;;  %v6015_v50 = vmul.f32 %v11215_v28, %v5991_v39  ;;  %v5994_v25 = vadd.f32 %v5993_v17, %v5922_v32  ;;  %v7531_v54 = vpop.f32.mrb[155].mxu0 }
 0x849   :  { %p7845_p4 = pnand %p7844_p3, %p7838_p0 }
 0x84a   :  { %v6029_v52 = vadd.f32 %v11220_v63, %v6015_v50  ;;  %v6016_v55 = vmul.f32 %v11215_v28, %v5994_v25  ;;  %7631 = vmatpush3.bf16.msra.mxu1 %v7630_v27 }
 0x84b   :  { %7632 = vmatprep.subr.bf16.mxu1 %v11447_v57  ;;  %v6041_v57 = vld [vmem:[%s11360_s12] sm:$0x3] }
 0x84c   :  { %v6030_v45 = vadd.f32 %v11220_v63, %v6016_v55  ;;  %v6038_v1 = vmax.f32 %v6029_v52, 0.0 }
 0x84d   :  { %v5998_v3 = vpop.f32.mrb[156].mxu0 }
 0x84e   :  { %v6039_v59 = vmax.f32 %v6030_v45, 0.0  ;;  %v5999_v34 = vadd.f32 %v5998_v3, %v5927_v30  ;;  %v7534_v20 = vpop.f32.mrb[157].mxu0 }
 0x84f   :  { %v6001_v47 = vpop.f32.mrb[158].mxu0 }
 0x850   :  { %v7633_v18 = vpack.c.bf16 %v6039_v59, %v6038_v1  ;;  %v6017_v60 = vmul.f32 %v11215_v28, %v5999_v34  ;;  %v7535_v22 = vpop.f32.mrb[159].mxu0  ;;  %v7817_v28 = vld [vmem:[%s11361_s13 + $0x38] sm:$0xff]  }
 0x851   :  { %7572 = vmatpush3.bf16.msra.mxu0 %v7817_v28 }
 0x852   :  { %v6031_v0 = vadd.f32 %v11220_v63, %v6017_v60  ;;  %7634 = vmatpush3.bf16.msra.mxu1 %v7633_v18  ;;  %v7818_v63 = vld [vmem:[%s11363_s15] sm:$0xff]   ;;  %7597 = vmatprep.subr.bf16.mxu0 %v11433_v6 }
 0x853   :  { %7552 = vmatprep.subr.mxu1 %v11433_v6 }
 0x854   :  { %v6040_v5 = vmax.f32 %v6031_v0, 0.0 }
 0x856   :  { %7553 = vmatpush3.msra.mxu1 %v6040_v5 }
 0x857   :  { %7555 = vmatmul.mubr.msk.f32.vlgmr.msra.gmra.mrb[140].mxu1 %vm6042_vm1, %v6041_v57  ;;  %7577 = vmatprep.subr.bf16.mxu1 %v11433_v6 }
 0x858   :  { %7593 = vmatprep.mubr.msk.bf16.mxu1 %vm7862_vm0, %v11433_v6  ;;  %7578 = vmatpush3.bf16.msra.mxu1 %v7818_v63 }
 0x859   :  { %7579 = vmatprep.subr.bf16.mxu1 %v11433_v6 }
 0x85c   :  { %7580 = vmatpush3.bf16.msra.mxu1 %v7819_v58 }
 0x85d   :  { %7581 = vmatprep.subr.bf16.mxu1 %v11433_v6 }
 0x860   :  { %7582 = vmatpush3.bf16.msra.mxu1 %v7820_v61 }
 0x861   :  { %7583 = vmatprep.subr.bf16.mxu1 %v11433_v6 }
 0x864   :  { %7584 = vmatpush3.bf16.msra.mxu1 %v7821_v35 }
 0x865   :  { %7585 = vmatprep.subr.bf16.mxu1 %v11433_v6 }
 0x868   :  { %7586 = vmatpush3.bf16.msra.mxu1 %v7822_v31 }
 0x869   :  { %7587 = vmatprep.subr.bf16.mxu1 %v11433_v6 }
 0x86c   :  { %7588 = vmatpush3.bf16.msra.mxu1 %v7823_v21 }
 0x86d   :  { %7589 = vmatprep.subr.bf16.mxu1 %v11433_v6 }
 0x870   :  { %7590 = vmatpush3.bf16.msra.mxu1 %v7824_v8 }
 0x871   :  { %7591 = vmatprep.subr.bf16.mxu1 %v11433_v6 }
 0x874   :  { %7592 = vmatpush3.bf16.msra.mxu1 %v7825_v9 }
 0x92a   :  { %v6112_v38 = vpop.f32.mrb[140].mxu1 }
 0x92b   :  { %v6116_v13 = vpack.c.bf16 %v6112_v38, %v6112_v38  ;;  %v7556_v46 = vpop.f32.mrb[141].mxu1 }
 0x92d   :  { %7574 = vmatmul.mubr.bf16.vlgmr.msra.gmra.mrb[160].mxu0 %v6116_v13 }
 0x92e   :  { %7613 = vmatprep.mubr.msk.bf16.mxu0 %vm7862_vm0, %v11433_v6  ;;  %7598 = vmatpush3.bf16.msra.mxu0 %v7826_v16 }
 0x92f   :  { %7599 = vmatprep.subr.bf16.mxu0 %v11433_v6 }
 0x932   :  { %7600 = vmatpush3.bf16.msra.mxu0 %v7827_v37 }
 0x933   :  { %7601 = vmatprep.subr.bf16.mxu0 %v11433_v6 }
 0x936   :  { %7602 = vmatpush3.bf16.msra.mxu0 %v7828_v26 }
 0x937   :  { %7603 = vmatprep.subr.bf16.mxu0 %v11433_v6 }
 0x93a   :  { %7604 = vmatpush3.bf16.msra.mxu0 %v7829_v29 }
 0x93b   :  { %7605 = vmatprep.subr.bf16.mxu0 %v11433_v6 }
 0x93e   :  { %7606 = vmatpush3.bf16.msra.mxu0 %v7830_v11 }
 0x93f   :  { %7607 = vmatprep.subr.bf16.mxu0 %v11433_v6 }
 0x942   :  { %7608 = vmatpush3.bf16.msra.mxu0 %v7831_v33 }
 0x943   :  { %7609 = vmatprep.subr.bf16.mxu0 %v11433_v6 }
 0x946   :  { %7610 = vmatpush3.bf16.msra.mxu0 %v7832_v42 }
 0x947   :  { %7611 = vmatprep.subr.bf16.mxu0 %v11433_v6  ;;  %v6812_v6 = vld [vmem:[%s11366_s18] ss:$0 sm:$0xff] }
 0x94a   :  { %7612 = vmatpush3.bf16.msra.mxu0 %v7833_v48 }
 0xa00   :  { %v6215_v51 = vpop.f32.mrb[160].mxu0 }
 0xa01   :  { %v6226_v14 = vmul.f32 %v6800_v10, %v6215_v51  ;;  %v7575_v40 = vpop.f32.mrb[161].mxu0 }
 0xa02   :  { %v6218_v36 = vpop.f32.mrb[162].mxu0 }
 0xa03   :  { %v6232_v32 = vadd.f32 %v6801_v62, %v6226_v14  ;;  %v7576_v49 = vpop.f32.mrb[163].mxu0 }
 0xa05   :  { %v6233_v19 = vmax.f32 %v6232_v32, 0.0 }
 0xa07   :  { %v6234_v24 = vpack.c.bf16 %v6233_v19, %v6233_v19 }
 0xa09   :  { %7594 = vmatmul.mubr.bf16.vlgmr.msra.gmra.mrb[144].mxu1 %v6234_v24 }
 0xadc   :  { %v6333_v2 = vpop.f32.mrb[144].mxu1 }
 0xadd   :  { %v6344_v15 = vmul.f32 %v6810_v56, %v6333_v2  ;;  %v7595_v4 = vpop.f32.mrb[145].mxu1 }
 0xade   :  { %v6336_v53 = vpop.f32.mrb[146].mxu1 }
 0xadf   :  { %v6350_v7 = vadd.f32 %v6811_v12, %v6344_v15  ;;  %v7596_v44 = vpop.f32.mrb[147].mxu1 }
 0xae1   :  { %v6351_v30 = vmax.f32 %v6350_v7, 0.0 }
 0xae3   :  { %v6352_v23 = vpack.c.bf16 %v6351_v30, %v6351_v30 }
 0xae5   :  { %7614 = vmatmul.mubr.bf16.vlgmr.msra.gmra.mrb[164].mxu0 %v6352_v23 }
 0xbb8   :  { %v6458_v41 = vpop.f32.mrb[164].mxu0 }
 0xbb9   :  { %v6459_v39 = vadd.f32 %v6812_v6, %v6458_v41  ;;  %v7615_v43 = vpop.f32.mrb[165].mxu0 }
 0xbba   :  { %v6461_v17 = vpop.f32.mrb[166].mxu0 }
 0xbbb   :  { %6464 = vst [vmem:[#allocation6] sm:$0x3] %v6459_v39  ;;  %v7616_v27 = vpop.f32.mrb[167].mxu0 }
 0xbbc   :  { %7848 = shalt.err (!%p7845_p4)
}
 0xbbd   :  { %s7849_s18 = scalar_lea.hbm %s11367_s19, 32 }
 0xbbe   :  { %p7850_p5 = scmp.ne.s32.totalorder %s11367_s19, %s7849_s18  ;;  %p7853_p6 = scmp.lt.u32.totalorder %s7849_s18, %s11367_s19 }
 0xbc0   :  { %p7855_p7 = pnand %p7853_p6, %p7850_p5 }
 0xbc2   :  { %7858 = shalt.err (!%p7855_p7)
}
 0xbc3   :  { %6474 = dma.vmem_to_hbm [thread:$0]  %s6472_s29, 32, %s11367_s19, [#allocation7]  }
 0xbc4   :  { %7859 = dma.done.wait [#allocation7], 32  }
 0xbc5   :  { %7860 = vsyncadd [#allocation7], 4294967264 }
 0xbc6   :  { %6478 = vsyncpa [#allocation7], 1 }

</bundles_post_ra>
